<compile_context>
chip_gen: v6e
topology: v6e:2x2x1
jax: 0.10.0
libtpu: 0.0.40
codegen_flags: <defaults>
</compile_context>

<pallas_src>
import math
import functools

import jax
import jax.numpy as jnp
from jax.experimental import pallas as pl
from jax.experimental.pallas import tpu as pltpu


MXU_DTYPE = jnp.bfloat16      # MXU input dtype (accumulation is always f32)
_LANE = 128                   # channel dims padded to a multiple of this


def _round_up(n, m):
    return ((n + m - 1) // m) * m


# ----------------------------------------------------------------------------
# Fused kernel: AdaIN (+stats) + LeakyReLU + 3x3 conv (+ shortcut + combine)
# One grid step == one batch image; full spatial extent is resident in VMEM.
# ----------------------------------------------------------------------------
def _adain_conv3x3_kernel(x_ref, g_ref, b_ref, w_ref, bias_ref, *rest,
                          H, W, Cin_p, Cout_p, eps, slope, scale_out,
                          combine, learned_sc, mxu_dtype):
    if combine and learned_sc:
        sc_ref, scw_ref, o_ref, pad_ref = rest
    elif combine:
        sc_ref, o_ref, pad_ref = rest
        scw_ref = None
    else:
        o_ref, pad_ref = rest
        sc_ref = scw_ref = None

    # ---- AdaIN prologue: instance-norm stats over the spatial axis ----
    x = x_ref[0]                                         # (H*W, Cin_p) f32
    mean = jnp.mean(x, axis=0, keepdims=True)            # (1, Cin_p)
    var = jnp.mean(jnp.square(x - mean), axis=0, keepdims=True)
    xn = (x - mean) * jax.lax.rsqrt(var + eps)
    z = (1.0 + g_ref[0]) * xn + b_ref[0]                 # (H*W, Cin_p)
    act = jnp.where(z >= 0, z, slope * z).astype(mxu_dtype)   # LeakyReLU(0.2)

    # ---- zero-padded spatial tile in VMEM (halo = 1), bf16 for the MXU ----
    pad_ref[...] = jnp.zeros(pad_ref.shape, pad_ref.dtype)
    pad_ref[1:H + 1, 1:W + 1, :] = act.reshape(H, W, Cin_p)

    # ---- 3x3 conv = 9 shifted-window matmuls, f32 accumulation ----
    acc = jnp.zeros((H * W, Cout_p), jnp.float32)
    for kh in range(3):
        for kw in range(3):
            win = pad_ref[kh:kh + H, kw:kw + W, :]       # (H, W, Cin_p)
            acc = acc + jnp.dot(win.reshape(H * W, Cin_p),
                                w_ref[kh * 3 + kw],
                                preferred_element_type=jnp.float32)
    out = acc + bias_ref[...]                            # (1, Cout_p) bcast

    # ---- fused shortcut (1x1 conv) + residual combine epilogue ----
    if combine:
        if learned_sc:
            sc = jnp.dot(sc_ref[0].astype(mxu_dtype), scw_ref[...],
                         preferred_element_type=jnp.float32)
        else:
            sc = sc_ref[0]
        out = (out + sc) * scale_out

    o_ref[0] = out


def _adain_conv3x3(x_flat, gamma, beta, w9, bias, *, H, W,
                   sc=None, sc_w=None, combine=False, learned_sc=False,
                   scale_out=1.0, eps=1e-5, slope=0.2, mxu_dtype=MXU_DTYPE):
    """x_flat: (B, H*W, Cin_p) f32; gamma/beta: (B, 1, Cin_p); w9: (9, Cin_p, Cout_p)."""
    B, HW, Cin_p = x_flat.shape
    Cout_p = w9.shape[-1]
    assert HW == H * W

    inputs = [x_flat, gamma, beta, w9, bias]
    in_specs = [
        pl.BlockSpec((1, HW, Cin_p), lambda b: (b, 0, 0)),       # activation
        pl.BlockSpec((1, 1, Cin_p), lambda b: (b, 0, 0)),        # AdaIN gamma
        pl.BlockSpec((1, 1, Cin_p), lambda b: (b, 0, 0)),        # AdaIN beta
        pl.BlockSpec((9, Cin_p, Cout_p), lambda b: (0, 0, 0)),   # conv taps
        pl.BlockSpec((1, Cout_p), lambda b: (0, 0)),             # conv bias
    ]
    if combine:
        inputs.append(sc)
        in_specs.append(pl.BlockSpec((1, HW, sc.shape[-1]),
                                     lambda b: (b, 0, 0)))
        if learned_sc:
            inputs.append(sc_w)
            in_specs.append(pl.BlockSpec(sc_w.shape, lambda b: (0, 0)))

    kernel = functools.partial(
        _adain_conv3x3_kernel, H=H, W=W, Cin_p=Cin_p, Cout_p=Cout_p,
        eps=eps, slope=slope, scale_out=scale_out, combine=combine,
        learned_sc=learned_sc, mxu_dtype=mxu_dtype)

    return pl.pallas_call(
        kernel,
        grid=(B,),
        in_specs=in_specs,
        out_specs=pl.BlockSpec((1, HW, Cout_p), lambda b: (b, 0, 0)),
        out_shape=jax.ShapeDtypeStruct((B, HW, Cout_p), jnp.float32),
        scratch_shapes=[pltpu.VMEM((H + 2, W + 2, Cin_p), mxu_dtype)],
        compiler_params=pltpu.CompilerParams(
            dimension_semantics=("parallel",),
            vmem_limit_bytes=32 * 1024 * 1024),
    )(*inputs)


# ----------------------------------------------------------------------------
# Weight packing / padding helpers (plain JAX, run once per call)
# ----------------------------------------------------------------------------
def _pack_conv3x3(w_oihw, cin_p, cout_p, dtype):
    O, I = w_oihw.shape[0], w_oihw.shape[1]
    w = jnp.transpose(w_oihw, (2, 3, 1, 0)).reshape(9, I, O)   # (kh*3+kw, I, O)
    w = jnp.pad(w, ((0, 0), (0, cin_p - I), (0, cout_p - O)))
    return w.astype(dtype)


def _pack_conv1x1(w_oihw, cin_p, cout_p, dtype):
    O, I = w_oihw.shape[0], w_oihw.shape[1]
    w = jnp.transpose(w_oihw.reshape(O, I), (1, 0))            # (I, O)
    w = jnp.pad(w, ((0, cin_p - I), (0, cout_p - O)))
    return w.astype(dtype)


def _pad_lane(a, cp):
    return jnp.pad(a, ((0, 0), (0, cp - a.shape[-1])))


# ----------------------------------------------------------------------------
# AdainResBlk forward (Pallas-backed)
# ----------------------------------------------------------------------------
def adain_resblk_forward(params, x, s, *, upsample=False, w_hpf=0,
                         learned_sc=True, mxu_dtype=MXU_DTYPE):
    B, Cin, H, W = x.shape
    Cout = params["conv1_w"].shape[0]
    Cip = _round_up(Cin, _LANE)
    Cop = _round_up(Cout, _LANE)

    # ---- tiny style FCs in plain JAX ----
    h1 = s @ params["fc1_w"].T + params["fc1_b"]      # (B, 2*Cin)
    h2 = s @ params["fc2_w"].T + params["fc2_b"]      # (B, 2*Cout)
    g1 = _pad_lane(h1[:, :Cin], Cip).reshape(B, 1, Cip).astype(jnp.float32)
    b1 = _pad_lane(h1[:, Cin:], Cip).reshape(B, 1, Cip).astype(jnp.float32)
    g2 = _pad_lane(h2[:, :Cout], Cop).reshape(B, 1, Cop).astype(jnp.float32)
    b2 = _pad_lane(h2[:, Cout:], Cop).reshape(B, 1, Cop).astype(jnp.float32)

    # ---- NCHW -> channels-last, pad channels to a lane multiple ----
    xh = jnp.transpose(x, (0, 2, 3, 1)).astype(jnp.float32)    # (B, H, W, Cin)
    xh = jnp.pad(xh, ((0, 0), (0, 0), (0, 0), (0, Cip - Cin)))
    if upsample:
        # TODO(synk): fold the nearest-2x upsample into the conv1 kernel
        # (phase-decomposed taps) instead of materializing the 4x tensor.
        # (Instance-norm stats are invariant under nearest upsample, so
        # computing them in-kernel on the upsampled tensor is equivalent.)
        xh = jnp.repeat(jnp.repeat(xh, 2, axis=1), 2, axis=2)
    Hy, Wy = xh.shape[1], xh.shape[2]
    x_flat = xh.reshape(B, Hy * Wy, Cip)

    # ---- packed conv weights (bf16 for the MXU, zero-padded channels) ----
    w1 = _pack_conv3x3(params["conv1_w"], Cip, Cop, mxu_dtype)
    w2 = _pack_conv3x3(params["conv2_w"], Cop, Cop, mxu_dtype)
    cb1 = jnp.pad(params["conv1_b"], (0, Cop - Cout)).reshape(1, Cop).astype(jnp.float32)
    cb2 = jnp.pad(params["conv2_b"], (0, Cop - Cout)).reshape(1, Cop).astype(jnp.float32)

    # ---- fused kernel 1: AdaIN1 + LReLU + conv1 ----
    y1 = _adain_conv3x3(x_flat, g1, b1, w1, cb1, H=Hy, W=Wy,
                        combine=False, mxu_dtype=mxu_dtype)

    # ---- fused kernel 2: AdaIN2 + LReLU + conv2 (+ shortcut + combine) ----
    if w_hpf == 0:
        sc_w = (_pack_conv1x1(params["conv1x1_w"], Cip, Cop, mxu_dtype)
                if learned_sc else None)
        y = _adain_conv3x3(y1, g2, b2, w2, cb2, H=Hy, W=Wy,
                           sc=x_flat, sc_w=sc_w, combine=True,
                           learned_sc=learned_sc,
                           scale_out=1.0 / math.sqrt(2.0),
                           mxu_dtype=mxu_dtype)
    else:
        y = _adain_conv3x3(y1, g2, b2, w2, cb2, H=Hy, W=Wy,
                           combine=False, mxu_dtype=mxu_dtype)

    # ---- strip channel padding, back to NCHW ----
    y = y.reshape(B, Hy, Wy, Cop)[..., :Cout]
    return jnp.transpose(y, (0, 3, 1, 2))


# ----------------------------------------------------------------------------
# Pure-JAX reference (for correctness check only)
# ----------------------------------------------------------------------------
def _upsample_nearest2x_nchw(x):
    return jnp.repeat(jnp.repeat(x, 2, axis=2), 2, axis=3)


def ref_forward(params, x, s, *, upsample=False, w_hpf=0, learned_sc=True):
    def instance_norm(z, eps=1e-5):
        mean = jnp.mean(z, axis=(2, 3), keepdims=True)
        var = jnp.mean((z - mean) ** 2, axis=(2, 3), keepdims=True)
        return (z - mean) / jnp.sqrt(var + eps)

    def adain(z, style, w, b):
        h = style @ w.T + b
        C = z.shape[1]
        gamma = h[:, :C][:, :, None, None]
        beta = h[:, C:][:, :, None, None]
        return (1.0 + gamma) * instance_norm(z) + beta

    def lrelu(z):
        return jnp.where(z >= 0, z, 0.2 * z)

    def conv(z, w, b=None):
        kh, kw = w.shape[2], w.shape[3]
        out = jax.lax.conv_general_dilated(
            z, w, (1, 1),
            padding=[(kh // 2, kh // 2), (kw // 2, kw // 2)],
            dimension_numbers=("NCHW", "OIHW", "NCHW"),
            precision=jax.lax.Precision.HIGHEST)
        if b is not None:
            out = out + b[None, :, None, None]
        return out

    y = lrelu(adain(x, s, params["fc1_w"], params["fc1_b"]))
    if upsample:
        y = _upsample_nearest2x_nchw(y)
    y = conv(y, params["conv1_w"], params["conv1_b"])
    y = lrelu(adain(y, s, params["fc2_w"], params["fc2_b"]))
    y = conv(y, params["conv2_w"], params["conv2_b"])
    sc = x
    if upsample:
        sc = _upsample_nearest2x_nchw(sc)
    if learned_sc:
        sc = conv(sc, params["conv1x1_w"])
    if w_hpf == 0:
        y = (y + sc) / math.sqrt(2.0)
    return y


# ----------------------------------------------------------------------------
if __name__ == "__main__":
    B, dim_in, dim_out, style_dim, H, W = 2, 4, 8, 16, 16, 16
    learned_sc = dim_in != dim_out

    key = jax.random.PRNGKey(0)
    ks = jax.random.split(key, 11)
    params = {
        "fc1_w":    0.1 * jax.random.normal(ks[0], (2 * dim_in, style_dim), jnp.float32),
        "fc1_b":    0.1 * jax.random.normal(ks[1], (2 * dim_in,), jnp.float32),
        "fc2_w":    0.1 * jax.random.normal(ks[2], (2 * dim_out, style_dim), jnp.float32),
        "fc2_b":    0.1 * jax.random.normal(ks[3], (2 * dim_out,), jnp.float32),
        "conv1_w":  0.1 * jax.random.normal(ks[4], (dim_out, dim_in, 3, 3), jnp.float32),
        "conv1_b":  0.1 * jax.random.normal(ks[5], (dim_out,), jnp.float32),
        "conv2_w":  0.1 * jax.random.normal(ks[6], (dim_out, dim_out, 3, 3), jnp.float32),
        "conv2_b":  0.1 * jax.random.normal(ks[7], (dim_out,), jnp.float32),
        "conv1x1_w": 0.1 * jax.random.normal(ks[8], (dim_out, dim_in, 1, 1), jnp.float32),
    }
    x = jax.random.normal(ks[9], (B, dim_in, H, W), jnp.float32)
    s = jax.random.normal(ks[10], (B, style_dim), jnp.float32)

    fwd = jax.jit(functools.partial(adain_resblk_forward, upsample=False,
                                    w_hpf=0, learned_sc=learned_sc))
    out = jax.block_until_ready(fwd(params, x, s))

    ref = jax.block_until_ready(
        ref_forward(params, x, s, upsample=False, w_hpf=0,
                    learned_sc=learned_sc))

    assert out.shape == (B, dim_out, H, W)
    max_err = float(jnp.max(jnp.abs(out - ref)))
    # bf16 MXU inputs with f32 accumulation -> loose-ish tolerance.
    assert jnp.allclose(out, ref, rtol=2e-2, atol=2e-2), max_err
    print("KERNEL_OK")
</pallas_src>

<mosaic_0001>
module attributes {stable_mosaic.version = 11 : i64} {
  func.func @_adain_conv3x3_kernel(%arg0: i32, %arg1: memref<1x256x128xf32, #tpu.memory_space<vmem>>, %arg2: memref<1x1x128xf32, #tpu.memory_space<vmem>>, %arg3: memref<1x1x128xf32, #tpu.memory_space<vmem>>, %arg4: memref<9x128x128xbf16, #tpu.memory_space<vmem>>, %arg5: memref<1x128xf32, #tpu.memory_space<vmem>>, %arg6: memref<1x256x128xf32, #tpu.memory_space<vmem>>, %arg7: memref<18x18x128xbf16, #tpu.memory_space<vmem>>) attributes {dimension_semantics = [#tpu.dimension_semantics<parallel>], iteration_bounds = array<i64: 2>, scalar_prefetch = 0 : i64, scratch_operands = 1 : i64, tpu.core_type = #tpu.core_type<tc>, window_params = [{transform_indices = @transform_0, window_bounds = array<i64: 1, 256, 128>}, {transform_indices = @transform_1, window_bounds = array<i64: 1, 1, 128>}, {transform_indices = @transform_2, window_bounds = array<i64: 1, 1, 128>}, {pipeline_mode = #tpu.pipeline_mode<synchronous>, transform_indices = @transform_3, window_bounds = array<i64: 9, 128, 128>}, {pipeline_mode = #tpu.pipeline_mode<synchronous>, transform_indices = @transform_4, window_bounds = array<i64: 1, 128>}, {transform_indices = @transform_5, window_bounds = array<i64: 1, 256, 128>}]} {
    %c0 = arith.constant 0 : index
    %c0_0 = arith.constant 0 : index
    %c0_1 = arith.constant 0 : index
    %0 = vector.load %arg1[%c0, %c0_0, %c0_1] : memref<1x256x128xf32, #tpu.memory_space<vmem>>, vector<1x256x128xf32>
    %1 = vector.shape_cast %0 : vector<1x256x128xf32> to vector<256x128xf32>
    %cst = arith.constant dense<0.000000e+00> : vector<128xf32>
    %2 = vector.multi_reduction <add>, %1, %cst [0] : vector<256x128xf32> to vector<128xf32>
    %3 = vector.shape_cast %2 : vector<128xf32> to vector<1x128xf32>
    %cst_2 = arith.constant 2.560000e+02 : f32
    %4 = vector.broadcast %cst_2 : f32 to vector<1x128xf32>
    %5 = arith.divf %3, %4 : vector<1x128xf32>
    %6 = vector.broadcast %5 : vector<1x128xf32> to vector<256x128xf32>
    %7 = arith.subf %1, %6 : vector<256x128xf32>
    %8 = arith.mulf %7, %7 : vector<256x128xf32>
    %cst_3 = arith.constant dense<0.000000e+00> : vector<128xf32>
    %9 = vector.multi_reduction <add>, %8, %cst_3 [0] : vector<256x128xf32> to vector<128xf32>
    %10 = vector.shape_cast %9 : vector<128xf32> to vector<1x128xf32>
    %cst_4 = arith.constant 2.560000e+02 : f32
    %11 = vector.broadcast %cst_4 : f32 to vector<1x128xf32>
    %12 = arith.divf %10, %11 : vector<1x128xf32>
    %13 = vector.broadcast %5 : vector<1x128xf32> to vector<256x128xf32>
    %14 = arith.subf %1, %13 : vector<256x128xf32>
    %cst_5 = arith.constant 9.99999974E-6 : f32
    %15 = vector.broadcast %cst_5 : f32 to vector<1x128xf32>
    %16 = arith.addf %12, %15 : vector<1x128xf32>
    %17 = math.rsqrt %16 : vector<1x128xf32>
    %18 = vector.broadcast %17 : vector<1x128xf32> to vector<256x128xf32>
    %19 = arith.mulf %14, %18 : vector<256x128xf32>
    %c0_6 = arith.constant 0 : index
    %c0_7 = arith.constant 0 : index
    %c0_8 = arith.constant 0 : index
    %20 = vector.load %arg2[%c0_6, %c0_7, %c0_8] : memref<1x1x128xf32, #tpu.memory_space<vmem>>, vector<1x1x128xf32>
    %21 = vector.shape_cast %20 : vector<1x1x128xf32> to vector<1x128xf32>
    %cst_9 = arith.constant 1.000000e+00 : f32
    %22 = vector.broadcast %cst_9 : f32 to vector<1x128xf32>
    %23 = arith.addf %22, %21 : vector<1x128xf32>
    %24 = vector.broadcast %23 : vector<1x128xf32> to vector<256x128xf32>
    %25 = arith.mulf %24, %19 : vector<256x128xf32>
    %c0_10 = arith.constant 0 : index
    %c0_11 = arith.constant 0 : index
    %c0_12 = arith.constant 0 : index
    %26 = vector.load %arg3[%c0_10, %c0_11, %c0_12] : memref<1x1x128xf32, #tpu.memory_space<vmem>>, vector<1x1x128xf32>
    %27 = vector.shape_cast %26 : vector<1x1x128xf32> to vector<1x128xf32>
    %28 = vector.broadcast %27 : vector<1x128xf32> to vector<256x128xf32>
    %29 = arith.addf %25, %28 : vector<256x128xf32>
    %cst_13 = arith.constant 0.000000e+00 : f32
    %30 = vector.broadcast %cst_13 : f32 to vector<256x128xf32>
    %31 = arith.cmpf oge, %29, %30 : vector<256x128xf32>
    %cst_14 = arith.constant 2.000000e-01 : f32
    %32 = vector.broadcast %cst_14 : f32 to vector<256x128xf32>
    %33 = arith.mulf %32, %29 : vector<256x128xf32>
    %34 = arith.select %31, %29, %33 : vector<256x128xi1>, vector<256x128xf32>
    %35 = arith.truncf %34 : vector<256x128xf32> to vector<256x128xbf16>
    %cst_15 = arith.constant 0.000000e+00 : bf16
    %36 = vector.broadcast %cst_15 : bf16 to vector<18x18x128xbf16>
    %c0_16 = arith.constant 0 : index
    %c0_17 = arith.constant 0 : index
    %c0_18 = arith.constant 0 : index
    %37 = vector.load %arg7[%c0_16, %c0_17, %c0_18] : memref<18x18x128xbf16, #tpu.memory_space<vmem>>, vector<18x18x128xbf16>
    tpu.vector_store %arg7[%c0_16, %c0_17, %c0_18], %36 {strides = array<i32>} : memref<18x18x128xbf16, #tpu.memory_space<vmem>>, vector<18x18x128xbf16>,
    %38 = vector.shape_cast %35 : vector<256x128xbf16> to vector<16x16x128xbf16>
    %c1 = arith.constant 1 : index
    %c1_19 = arith.constant 1 : index
    %c0_20 = arith.constant 0 : index
    %39 = vector.load %arg7[%c1, %c1_19, %c0_20] : memref<18x18x128xbf16, #tpu.memory_space<vmem>>, vector<16x16x128xbf16>
    tpu.vector_store %arg7[%c1, %c1_19, %c0_20], %38 {strides = array<i32>} : memref<18x18x128xbf16, #tpu.memory_space<vmem>>, vector<16x16x128xbf16>,
    %cst_21 = arith.constant 0.000000e+00 : f32
    %40 = vector.broadcast %cst_21 : f32 to vector<256x128xf32>
    %c0_22 = arith.constant 0 : index
    %c0_23 = arith.constant 0 : index
    %c0_24 = arith.constant 0 : index
    %41 = vector.load %arg7[%c0_22, %c0_23, %c0_24] : memref<18x18x128xbf16, #tpu.memory_space<vmem>>, vector<16x16x128xbf16>
    %42 = vector.shape_cast %41 : vector<16x16x128xbf16> to vector<256x128xbf16>
    %c0_25 = arith.constant 0 : index
    %c0_26 = arith.constant 0 : index
    %c0_27 = arith.constant 0 : index
    %43 = vector.load %arg4[%c0_25, %c0_26, %c0_27] : memref<9x128x128xbf16, #tpu.memory_space<vmem>>, vector<1x128x128xbf16>
    %44 = vector.shape_cast %43 : vector<1x128x128xbf16> to vector<128x128xbf16>
    %cst_28 = arith.constant dense<0.000000e+00> : vector<256x128xf32>
    %45 = tpu.matmul %42, %44, %cst_28 {dimension_numbers = #tpu.dot_dimension_numbers<[1], [0], [0], [1], [0, 0, 1, 1], [], []>} : vector<256x128xbf16>, vector<128x128xbf16>, vector<256x128xf32> -> vector<256x128xf32>
    %46 = arith.addf %40, %45 : vector<256x128xf32>
    %c0_29 = arith.constant 0 : index
    %c1_30 = arith.constant 1 : index
    %c0_31 = arith.constant 0 : index
    %47 = vector.load %arg7[%c0_29, %c1_30, %c0_31] : memref<18x18x128xbf16, #tpu.memory_space<vmem>>, vector<16x16x128xbf16>
    %48 = vector.shape_cast %47 : vector<16x16x128xbf16> to vector<256x128xbf16>
    %c1_32 = arith.constant 1 : index
    %c0_33 = arith.constant 0 : index
    %c0_34 = arith.constant 0 : index
    %49 = vector.load %arg4[%c1_32, %c0_33, %c0_34] : memref<9x128x128xbf16, #tpu.memory_space<vmem>>, vector<1x128x128xbf16>
    %50 = vector.shape_cast %49 : vector<1x128x128xbf16> to vector<128x128xbf16>
    %cst_35 = arith.constant dense<0.000000e+00> : vector<256x128xf32>
    %51 = tpu.matmul %48, %50, %cst_35 {dimension_numbers = #tpu.dot_dimension_numbers<[1], [0], [0], [1], [0, 0, 1, 1], [], []>} : vector<256x128xbf16>, vector<128x128xbf16>, vector<256x128xf32> -> vector<256x128xf32>
    %52 = arith.addf %46, %51 : vector<256x128xf32>
    %c0_36 = arith.constant 0 : index
    %c2 = arith.constant 2 : index
    %c0_37 = arith.constant 0 : index
    %53 = vector.load %arg7[%c0_36, %c2, %c0_37] : memref<18x18x128xbf16, #tpu.memory_space<vmem>>, vector<16x16x128xbf16>
    %54 = vector.shape_cast %53 : vector<16x16x128xbf16> to vector<256x128xbf16>
    %c2_38 = arith.constant 2 : index
    %c0_39 = arith.constant 0 : index
    %c0_40 = arith.constant 0 : index
    %55 = vector.load %arg4[%c2_38, %c0_39, %c0_40] : memref<9x128x128xbf16, #tpu.memory_space<vmem>>, vector<1x128x128xbf16>
    %56 = vector.shape_cast %55 : vector<1x128x128xbf16> to vector<128x128xbf16>
    %cst_41 = arith.constant dense<0.000000e+00> : vector<256x128xf32>
    %57 = tpu.matmul %54, %56, %cst_41 {dimension_numbers = #tpu.dot_dimension_numbers<[1], [0], [0], [1], [0, 0, 1, 1], [], []>} : vector<256x128xbf16>, vector<128x128xbf16>, vector<256x128xf32> -> vector<256x128xf32>
    %58 = arith.addf %52, %57 : vector<256x128xf32>
    %c1_42 = arith.constant 1 : index
    %c0_43 = arith.constant 0 : index
    %c0_44 = arith.constant 0 : index
    %59 = vector.load %arg7[%c1_42, %c0_43, %c0_44] : memref<18x18x128xbf16, #tpu.memory_space<vmem>>, vector<16x16x128xbf16>
    %60 = vector.shape_cast %59 : vector<16x16x128xbf16> to vector<256x128xbf16>
    %c3 = arith.constant 3 : index
    %c0_45 = arith.constant 0 : index
    %c0_46 = arith.constant 0 : index
    %61 = vector.load %arg4[%c3, %c0_45, %c0_46] : memref<9x128x128xbf16, #tpu.memory_space<vmem>>, vector<1x128x128xbf16>
    %62 = vector.shape_cast %61 : vector<1x128x128xbf16> to vector<128x128xbf16>
    %cst_47 = arith.constant dense<0.000000e+00> : vector<256x128xf32>
    %63 = tpu.matmul %60, %62, %cst_47 {dimension_numbers = #tpu.dot_dimension_numbers<[1], [0], [0], [1], [0, 0, 1, 1], [], []>} : vector<256x128xbf16>, vector<128x128xbf16>, vector<256x128xf32> -> vector<256x128xf32>
    %64 = arith.addf %58, %63 : vector<256x128xf32>
    %c1_48 = arith.constant 1 : index
    %c1_49 = arith.constant 1 : index
    %c0_50 = arith.constant 0 : index
    %65 = vector.load %arg7[%c1_48, %c1_49, %c0_50] : memref<18x18x128xbf16, #tpu.memory_space<vmem>>, vector<16x16x128xbf16>
    %66 = vector.shape_cast %65 : vector<16x16x128xbf16> to vector<256x128xbf16>
    %c4 = arith.constant 4 : index
    %c0_51 = arith.constant 0 : index
    %c0_52 = arith.constant 0 : index
    %67 = vector.load %arg4[%c4, %c0_51, %c0_52] : memref<9x128x128xbf16, #tpu.memory_space<vmem>>, vector<1x128x128xbf16>
    %68 = vector.shape_cast %67 : vector<1x128x128xbf16> to vector<128x128xbf16>
    %cst_53 = arith.constant dense<0.000000e+00> : vector<256x128xf32>
    %69 = tpu.matmul %66, %68, %cst_53 {dimension_numbers = #tpu.dot_dimension_numbers<[1], [0], [0], [1], [0, 0, 1, 1], [], []>} : vector<256x128xbf16>, vector<128x128xbf16>, vector<256x128xf32> -> vector<256x128xf32>
    %70 = arith.addf %64, %69 : vector<256x128xf32>
    %c1_54 = arith.constant 1 : index
    %c2_55 = arith.constant 2 : index
    %c0_56 = arith.constant 0 : index
    %71 = vector.load %arg7[%c1_54, %c2_55, %c0_56] : memref<18x18x128xbf16, #tpu.memory_space<vmem>>, vector<16x16x128xbf16>
    %72 = vector.shape_cast %71 : vector<16x16x128xbf16> to vector<256x128xbf16>
    %c5 = arith.constant 5 : index
    %c0_57 = arith.constant 0 : index
    %c0_58 = arith.constant 0 : index
    %73 = vector.load %arg4[%c5, %c0_57, %c0_58] : memref<9x128x128xbf16, #tpu.memory_space<vmem>>, vector<1x128x128xbf16>
    %74 = vector.shape_cast %73 : vector<1x128x128xbf16> to vector<128x128xbf16>
    %cst_59 = arith.constant dense<0.000000e+00> : vector<256x128xf32>
    %75 = tpu.matmul %72, %74, %cst_59 {dimension_numbers = #tpu.dot_dimension_numbers<[1], [0], [0], [1], [0, 0, 1, 1], [], []>} : vector<256x128xbf16>, vector<128x128xbf16>, vector<256x128xf32> -> vector<256x128xf32>
    %76 = arith.addf %70, %75 : vector<256x128xf32>
    %c2_60 = arith.constant 2 : index
    %c0_61 = arith.constant 0 : index
    %c0_62 = arith.constant 0 : index
    %77 = vector.load %arg7[%c2_60, %c0_61, %c0_62] : memref<18x18x128xbf16, #tpu.memory_space<vmem>>, vector<16x16x128xbf16>
    %78 = vector.shape_cast %77 : vector<16x16x128xbf16> to vector<256x128xbf16>
    %c6 = arith.constant 6 : index
    %c0_63 = arith.constant 0 : index
    %c0_64 = arith.constant 0 : index
    %79 = vector.load %arg4[%c6, %c0_63, %c0_64] : memref<9x128x128xbf16, #tpu.memory_space<vmem>>, vector<1x128x128xbf16>
    %80 = vector.shape_cast %79 : vector<1x128x128xbf16> to vector<128x128xbf16>
    %cst_65 = arith.constant dense<0.000000e+00> : vector<256x128xf32>
    %81 = tpu.matmul %78, %80, %cst_65 {dimension_numbers = #tpu.dot_dimension_numbers<[1], [0], [0], [1], [0, 0, 1, 1], [], []>} : vector<256x128xbf16>, vector<128x128xbf16>, vector<256x128xf32> -> vector<256x128xf32>
    %82 = arith.addf %76, %81 : vector<256x128xf32>
    %c2_66 = arith.constant 2 : index
    %c1_67 = arith.constant 1 : index
    %c0_68 = arith.constant 0 : index
    %83 = vector.load %arg7[%c2_66, %c1_67, %c0_68] : memref<18x18x128xbf16, #tpu.memory_space<vmem>>, vector<16x16x128xbf16>
    %84 = vector.shape_cast %83 : vector<16x16x128xbf16> to vector<256x128xbf16>
    %c7 = arith.constant 7 : index
    %c0_69 = arith.constant 0 : index
    %c0_70 = arith.constant 0 : index
    %85 = vector.load %arg4[%c7, %c0_69, %c0_70] : memref<9x128x128xbf16, #tpu.memory_space<vmem>>, vector<1x128x128xbf16>
    %86 = vector.shape_cast %85 : vector<1x128x128xbf16> to vector<128x128xbf16>
    %cst_71 = arith.constant dense<0.000000e+00> : vector<256x128xf32>
    %87 = tpu.matmul %84, %86, %cst_71 {dimension_numbers = #tpu.dot_dimension_numbers<[1], [0], [0], [1], [0, 0, 1, 1], [], []>} : vector<256x128xbf16>, vector<128x128xbf16>, vector<256x128xf32> -> vector<256x128xf32>
    %88 = arith.addf %82, %87 : vector<256x128xf32>
    %c2_72 = arith.constant 2 : index
    %c2_73 = arith.constant 2 : index
    %c0_74 = arith.constant 0 : index
    %89 = vector.load %arg7[%c2_72, %c2_73, %c0_74] : memref<18x18x128xbf16, #tpu.memory_space<vmem>>, vector<16x16x128xbf16>
    %90 = vector.shape_cast %89 : vector<16x16x128xbf16> to vector<256x128xbf16>
    %c8 = arith.constant 8 : index
    %c0_75 = arith.constant 0 : index
    %c0_76 = arith.constant 0 : index
    %91 = vector.load %arg4[%c8, %c0_75, %c0_76] : memref<9x128x128xbf16, #tpu.memory_space<vmem>>, vector<1x128x128xbf16>
    %92 = vector.shape_cast %91 : vector<1x128x128xbf16> to vector<128x128xbf16>
    %cst_77 = arith.constant dense<0.000000e+00> : vector<256x128xf32>
    %93 = tpu.matmul %90, %92, %cst_77 {dimension_numbers = #tpu.dot_dimension_numbers<[1], [0], [0], [1], [0, 0, 1, 1], [], []>} : vector<256x128xbf16>, vector<128x128xbf16>, vector<256x128xf32> -> vector<256x128xf32>
    %94 = arith.addf %88, %93 : vector<256x128xf32>
    %c0_78 = arith.constant 0 : index
    %c0_79 = arith.constant 0 : index
    %95 = vector.load %arg5[%c0_78, %c0_79] : memref<1x128xf32, #tpu.memory_space<vmem>>, vector<1x128xf32>
    %96 = vector.broadcast %95 : vector<1x128xf32> to vector<256x128xf32>
    %97 = arith.addf %94, %96 : vector<256x128xf32>
    %c0_80 = arith.constant 0 : index
    %c0_81 = arith.constant 0 : index
    %c0_82 = arith.constant 0 : index
    %98 = vector.load %arg6[%c0_80, %c0_81, %c0_82] : memref<1x256x128xf32, #tpu.memory_space<vmem>>, vector<1x256x128xf32>
    %99 = vector.shape_cast %98 : vector<1x256x128xf32> to vector<256x128xf32>
    %100 = vector.shape_cast %97 : vector<256x128xf32> to vector<1x256x128xf32>
    tpu.vector_store %arg6[%c0_80, %c0_81, %c0_82], %100 {strides = array<i32>} : memref<1x256x128xf32, #tpu.memory_space<vmem>>, vector<1x256x128xf32>,
    return
  }
  func.func @transform_0(%arg0: i32) -> (i32, i32, i32) {
    %c0_i32 = arith.constant 0 : i32
    %c0_i32_0 = arith.constant 0 : i32
    %c0_i32_1 = arith.constant 0 : i32
    return %arg0, %c0_i32, %c0_i32_0 : i32, i32, i32
  }
  func.func @transform_1(%arg0: i32) -> (i32, i32, i32) {
    %c0_i32 = arith.constant 0 : i32
    %c0_i32_0 = arith.constant 0 : i32
    %c0_i32_1 = arith.constant 0 : i32
    return %arg0, %c0_i32, %c0_i32_0 : i32, i32, i32
  }
  func.func @transform_2(%arg0: i32) -> (i32, i32, i32) {
    %c0_i32 = arith.constant 0 : i32
    %c0_i32_0 = arith.constant 0 : i32
    %c0_i32_1 = arith.constant 0 : i32
    return %arg0, %c0_i32, %c0_i32_0 : i32, i32, i32
  }
  func.func @transform_3(%arg0: i32) -> (i32, i32, i32) {
    %c0_i32 = arith.constant 0 : i32
    %c0_i32_0 = arith.constant 0 : i32
    %c0_i32_1 = arith.constant 0 : i32
    %c0_i32_2 = arith.constant 0 : i32
    return %c0_i32, %c0_i32_0, %c0_i32_1 : i32, i32, i32
  }
  func.func @transform_4(%arg0: i32) -> (i32, i32) {
    %c0_i32 = arith.constant 0 : i32
    %c0_i32_0 = arith.constant 0 : i32
    %c0_i32_1 = arith.constant 0 : i32
    return %c0_i32, %c0_i32_0 : i32, i32
  }
  func.func @transform_5(%arg0: i32) -> (i32, i32, i32) {
    %c0_i32 = arith.constant 0 : i32
    %c0_i32_0 = arith.constant 0 : i32
    %c0_i32_1 = arith.constant 0 : i32
    return %arg0, %c0_i32, %c0_i32_0 : i32, i32, i32
  }
}

module attributes {stable_mosaic.version = 11 : i64} {
  func.func @_adain_conv3x3_kernel(%arg0: i32, %arg1: memref<1x256x128xf32, #tpu.memory_space<vmem>>, %arg2: memref<1x1x128xf32, #tpu.memory_space<vmem>>, %arg3: memref<1x1x128xf32, #tpu.memory_space<vmem>>, %arg4: memref<9x128x128xbf16, #tpu.memory_space<vmem>>, %arg5: memref<1x128xf32, #tpu.memory_space<vmem>>, %arg6: memref<1x256x128xf32, #tpu.memory_space<vmem>>, %arg7: memref<128x128xbf16, #tpu.memory_space<vmem>>, %arg8: memref<1x256x128xf32, #tpu.memory_space<vmem>>, %arg9: memref<18x18x128xbf16, #tpu.memory_space<vmem>>) attributes {dimension_semantics = [#tpu.dimension_semantics<parallel>], iteration_bounds = array<i64: 2>, scalar_prefetch = 0 : i64, scratch_operands = 1 : i64, tpu.core_type = #tpu.core_type<tc>, window_params = [{transform_indices = @transform_0, window_bounds = array<i64: 1, 256, 128>}, {transform_indices = @transform_1, window_bounds = array<i64: 1, 1, 128>}, {transform_indices = @transform_2, window_bounds = array<i64: 1, 1, 128>}, {pipeline_mode = #tpu.pipeline_mode<synchronous>, transform_indices = @transform_3, window_bounds = array<i64: 9, 128, 128>}, {pipeline_mode = #tpu.pipeline_mode<synchronous>, transform_indices = @transform_4, window_bounds = array<i64: 1, 128>}, {transform_indices = @transform_5, window_bounds = array<i64: 1, 256, 128>}, {pipeline_mode = #tpu.pipeline_mode<synchronous>, transform_indices = @transform_6, window_bounds = array<i64: 128, 128>}, {transform_indices = @transform_7, window_bounds = array<i64: 1, 256, 128>}]} {
    %c0 = arith.constant 0 : index
    %c0_0 = arith.constant 0 : index
    %c0_1 = arith.constant 0 : index
    %0 = vector.load %arg1[%c0, %c0_0, %c0_1] : memref<1x256x128xf32, #tpu.memory_space<vmem>>, vector<1x256x128xf32>
    %1 = vector.shape_cast %0 : vector<1x256x128xf32> to vector<256x128xf32>
    %cst = arith.constant dense<0.000000e+00> : vector<128xf32>
    %2 = vector.multi_reduction <add>, %1, %cst [0] : vector<256x128xf32> to vector<128xf32>
    %3 = vector.shape_cast %2 : vector<128xf32> to vector<1x128xf32>
    %cst_2 = arith.constant 2.560000e+02 : f32
    %4 = vector.broadcast %cst_2 : f32 to vector<1x128xf32>
    %5 = arith.divf %3, %4 : vector<1x128xf32>
    %6 = vector.broadcast %5 : vector<1x128xf32> to vector<256x128xf32>
    %7 = arith.subf %1, %6 : vector<256x128xf32>
    %8 = arith.mulf %7, %7 : vector<256x128xf32>
    %cst_3 = arith.constant dense<0.000000e+00> : vector<128xf32>
    %9 = vector.multi_reduction <add>, %8, %cst_3 [0] : vector<256x128xf32> to vector<128xf32>
    %10 = vector.shape_cast %9 : vector<128xf32> to vector<1x128xf32>
    %cst_4 = arith.constant 2.560000e+02 : f32
    %11 = vector.broadcast %cst_4 : f32 to vector<1x128xf32>
    %12 = arith.divf %10, %11 : vector<1x128xf32>
    %13 = vector.broadcast %5 : vector<1x128xf32> to vector<256x128xf32>
    %14 = arith.subf %1, %13 : vector<256x128xf32>
    %cst_5 = arith.constant 9.99999974E-6 : f32
    %15 = vector.broadcast %cst_5 : f32 to vector<1x128xf32>
    %16 = arith.addf %12, %15 : vector<1x128xf32>
    %17 = math.rsqrt %16 : vector<1x128xf32>
    %18 = vector.broadcast %17 : vector<1x128xf32> to vector<256x128xf32>
    %19 = arith.mulf %14, %18 : vector<256x128xf32>
    %c0_6 = arith.constant 0 : index
    %c0_7 = arith.constant 0 : index
    %c0_8 = arith.constant 0 : index
    %20 = vector.load %arg2[%c0_6, %c0_7, %c0_8] : memref<1x1x128xf32, #tpu.memory_space<vmem>>, vector<1x1x128xf32>
    %21 = vector.shape_cast %20 : vector<1x1x128xf32> to vector<1x128xf32>
    %cst_9 = arith.constant 1.000000e+00 : f32
    %22 = vector.broadcast %cst_9 : f32 to vector<1x128xf32>
    %23 = arith.addf %22, %21 : vector<1x128xf32>
    %24 = vector.broadcast %23 : vector<1x128xf32> to vector<256x128xf32>
    %25 = arith.mulf %24, %19 : vector<256x128xf32>
    %c0_10 = arith.constant 0 : index
    %c0_11 = arith.constant 0 : index
    %c0_12 = arith.constant 0 : index
    %26 = vector.load %arg3[%c0_10, %c0_11, %c0_12] : memref<1x1x128xf32, #tpu.memory_space<vmem>>, vector<1x1x128xf32>
    %27 = vector.shape_cast %26 : vector<1x1x128xf32> to vector<1x128xf32>
    %28 = vector.broadcast %27 : vector<1x128xf32> to vector<256x128xf32>
    %29 = arith.addf %25, %28 : vector<256x128xf32>
    %cst_13 = arith.constant 0.000000e+00 : f32
    %30 = vector.broadcast %cst_13 : f32 to vector<256x128xf32>
    %31 = arith.cmpf oge, %29, %30 : vector<256x128xf32>
    %cst_14 = arith.constant 2.000000e-01 : f32
    %32 = vector.broadcast %cst_14 : f32 to vector<256x128xf32>
    %33 = arith.mulf %32, %29 : vector<256x128xf32>
    %34 = arith.select %31, %29, %33 : vector<256x128xi1>, vector<256x128xf32>
    %35 = arith.truncf %34 : vector<256x128xf32> to vector<256x128xbf16>
    %cst_15 = arith.constant 0.000000e+00 : bf16
    %36 = vector.broadcast %cst_15 : bf16 to vector<18x18x128xbf16>
    %c0_16 = arith.constant 0 : index
    %c0_17 = arith.constant 0 : index
    %c0_18 = arith.constant 0 : index
    %37 = vector.load %arg9[%c0_16, %c0_17, %c0_18] : memref<18x18x128xbf16, #tpu.memory_space<vmem>>, vector<18x18x128xbf16>
    tpu.vector_store %arg9[%c0_16, %c0_17, %c0_18], %36 {strides = array<i32>} : memref<18x18x128xbf16, #tpu.memory_space<vmem>>, vector<18x18x128xbf16>,
    %38 = vector.shape_cast %35 : vector<256x128xbf16> to vector<16x16x128xbf16>
    %c1 = arith.constant 1 : index
    %c1_19 = arith.constant 1 : index
    %c0_20 = arith.constant 0 : index
    %39 = vector.load %arg9[%c1, %c1_19, %c0_20] : memref<18x18x128xbf16, #tpu.memory_space<vmem>>, vector<16x16x128xbf16>
    tpu.vector_store %arg9[%c1, %c1_19, %c0_20], %38 {strides = array<i32>} : memref<18x18x128xbf16, #tpu.memory_space<vmem>>, vector<16x16x128xbf16>,
    %cst_21 = arith.constant 0.000000e+00 : f32
    %40 = vector.broadcast %cst_21 : f32 to vector<256x128xf32>
    %c0_22 = arith.constant 0 : index
    %c0_23 = arith.constant 0 : index
    %c0_24 = arith.constant 0 : index
    %41 = vector.load %arg9[%c0_22, %c0_23, %c0_24] : memref<18x18x128xbf16, #tpu.memory_space<vmem>>, vector<16x16x128xbf16>
    %42 = vector.shape_cast %41 : vector<16x16x128xbf16> to vector<256x128xbf16>
    %c0_25 = arith.constant 0 : index
    %c0_26 = arith.constant 0 : index
    %c0_27 = arith.constant 0 : index
    %43 = vector.load %arg4[%c0_25, %c0_26, %c0_27] : memref<9x128x128xbf16, #tpu.memory_space<vmem>>, vector<1x128x128xbf16>
    %44 = vector.shape_cast %43 : vector<1x128x128xbf16> to vector<128x128xbf16>
    %cst_28 = arith.constant dense<0.000000e+00> : vector<256x128xf32>
    %45 = tpu.matmul %42, %44, %cst_28 {dimension_numbers = #tpu.dot_dimension_numbers<[1], [0], [0], [1], [0, 0, 1, 1], [], []>} : vector<256x128xbf16>, vector<128x128xbf16>, vector<256x128xf32> -> vector<256x128xf32>
    %46 = arith.addf %40, %45 : vector<256x128xf32>
    %c0_29 = arith.constant 0 : index
    %c1_30 = arith.constant 1 : index
    %c0_31 = arith.constant 0 : index
    %47 = vector.load %arg9[%c0_29, %c1_30, %c0_31] : memref<18x18x128xbf16, #tpu.memory_space<vmem>>, vector<16x16x128xbf16>
    %48 = vector.shape_cast %47 : vector<16x16x128xbf16> to vector<256x128xbf16>
    %c1_32 = arith.constant 1 : index
    %c0_33 = arith.constant 0 : index
    %c0_34 = arith.constant 0 : index
    %49 = vector.load %arg4[%c1_32, %c0_33, %c0_34] : memref<9x128x128xbf16, #tpu.memory_space<vmem>>, vector<1x128x128xbf16>
    %50 = vector.shape_cast %49 : vector<1x128x128xbf16> to vector<128x128xbf16>
    %cst_35 = arith.constant dense<0.000000e+00> : vector<256x128xf32>
    %51 = tpu.matmul %48, %50, %cst_35 {dimension_numbers = #tpu.dot_dimension_numbers<[1], [0], [0], [1], [0, 0, 1, 1], [], []>} : vector<256x128xbf16>, vector<128x128xbf16>, vector<256x128xf32> -> vector<256x128xf32>
    %52 = arith.addf %46, %51 : vector<256x128xf32>
    %c0_36 = arith.constant 0 : index
    %c2 = arith.constant 2 : index
    %c0_37 = arith.constant 0 : index
    %53 = vector.load %arg9[%c0_36, %c2, %c0_37] : memref<18x18x128xbf16, #tpu.memory_space<vmem>>, vector<16x16x128xbf16>
    %54 = vector.shape_cast %53 : vector<16x16x128xbf16> to vector<256x128xbf16>
    %c2_38 = arith.constant 2 : index
    %c0_39 = arith.constant 0 : index
    %c0_40 = arith.constant 0 : index
    %55 = vector.load %arg4[%c2_38, %c0_39, %c0_40] : memref<9x128x128xbf16, #tpu.memory_space<vmem>>, vector<1x128x128xbf16>
    %56 = vector.shape_cast %55 : vector<1x128x128xbf16> to vector<128x128xbf16>
    %cst_41 = arith.constant dense<0.000000e+00> : vector<256x128xf32>
    %57 = tpu.matmul %54, %56, %cst_41 {dimension_numbers = #tpu.dot_dimension_numbers<[1], [0], [0], [1], [0, 0, 1, 1], [], []>} : vector<256x128xbf16>, vector<128x128xbf16>, vector<256x128xf32> -> vector<256x128xf32>
    %58 = arith.addf %52, %57 : vector<256x128xf32>
    %c1_42 = arith.constant 1 : index
    %c0_43 = arith.constant 0 : index
    %c0_44 = arith.constant 0 : index
    %59 = vector.load %arg9[%c1_42, %c0_43, %c0_44] : memref<18x18x128xbf16, #tpu.memory_space<vmem>>, vector<16x16x128xbf16>
    %60 = vector.shape_cast %59 : vector<16x16x128xbf16> to vector<256x128xbf16>
    %c3 = arith.constant 3 : index
    %c0_45 = arith.constant 0 : index
    %c0_46 = arith.constant 0 : index
    %61 = vector.load %arg4[%c3, %c0_45, %c0_46] : memref<9x128x128xbf16, #tpu.memory_space<vmem>>, vector<1x128x128xbf16>
    %62 = vector.shape_cast %61 : vector<1x128x128xbf16> to vector<128x128xbf16>
    %cst_47 = arith.constant dense<0.000000e+00> : vector<256x128xf32>
    %63 = tpu.matmul %60, %62, %cst_47 {dimension_numbers = #tpu.dot_dimension_numbers<[1], [0], [0], [1], [0, 0, 1, 1], [], []>} : vector<256x128xbf16>, vector<128x128xbf16>, vector<256x128xf32> -> vector<256x128xf32>
    %64 = arith.addf %58, %63 : vector<256x128xf32>
    %c1_48 = arith.constant 1 : index
    %c1_49 = arith.constant 1 : index
    %c0_50 = arith.constant 0 : index
    %65 = vector.load %arg9[%c1_48, %c1_49, %c0_50] : memref<18x18x128xbf16, #tpu.memory_space<vmem>>, vector<16x16x128xbf16>
    %66 = vector.shape_cast %65 : vector<16x16x128xbf16> to vector<256x128xbf16>
    %c4 = arith.constant 4 : index
    %c0_51 = arith.constant 0 : index
    %c0_52 = arith.constant 0 : index
    %67 = vector.load %arg4[%c4, %c0_51, %c0_52] : memref<9x128x128xbf16, #tpu.memory_space<vmem>>, vector<1x128x128xbf16>
    %68 = vector.shape_cast %67 : vector<1x128x128xbf16> to vector<128x128xbf16>
    %cst_53 = arith.constant dense<0.000000e+00> : vector<256x128xf32>
    %69 = tpu.matmul %66, %68, %cst_53 {dimension_numbers = #tpu.dot_dimension_numbers<[1], [0], [0], [1], [0, 0, 1, 1], [], []>} : vector<256x128xbf16>, vector<128x128xbf16>, vector<256x128xf32> -> vector<256x128xf32>
    %70 = arith.addf %64, %69 : vector<256x128xf32>
    %c1_54 = arith.constant 1 : index
    %c2_55 = arith.constant 2 : index
    %c0_56 = arith.constant 0 : index
    %71 = vector.load %arg9[%c1_54, %c2_55, %c0_56] : memref<18x18x128xbf16, #tpu.memory_space<vmem>>, vector<16x16x128xbf16>
    %72 = vector.shape_cast %71 : vector<16x16x128xbf16> to vector<256x128xbf16>
    %c5 = arith.constant 5 : index
    %c0_57 = arith.constant 0 : index
    %c0_58 = arith.constant 0 : index
    %73 = vector.load %arg4[%c5, %c0_57, %c0_58] : memref<9x128x128xbf16, #tpu.memory_space<vmem>>, vector<1x128x128xbf16>
    %74 = vector.shape_cast %73 : vector<1x128x128xbf16> to vector<128x128xbf16>
    %cst_59 = arith.constant dense<0.000000e+00> : vector<256x128xf32>
    %75 = tpu.matmul %72, %74, %cst_59 {dimension_numbers = #tpu.dot_dimension_numbers<[1], [0], [0], [1], [0, 0, 1, 1], [], []>} : vector<256x128xbf16>, vector<128x128xbf16>, vector<256x128xf32> -> vector<256x128xf32>
    %76 = arith.addf %70, %75 : vector<256x128xf32>
    %c2_60 = arith.constant 2 : index
    %c0_61 = arith.constant 0 : index
    %c0_62 = arith.constant 0 : index
    %77 = vector.load %arg9[%c2_60, %c0_61, %c0_62] : memref<18x18x128xbf16, #tpu.memory_space<vmem>>, vector<16x16x128xbf16>
    %78 = vector.shape_cast %77 : vector<16x16x128xbf16> to vector<256x128xbf16>
    %c6 = arith.constant 6 : index
    %c0_63 = arith.constant 0 : index
    %c0_64 = arith.constant 0 : index
    %79 = vector.load %arg4[%c6, %c0_63, %c0_64] : memref<9x128x128xbf16, #tpu.memory_space<vmem>>, vector<1x128x128xbf16>
    %80 = vector.shape_cast %79 : vector<1x128x128xbf16> to vector<128x128xbf16>
    %cst_65 = arith.constant dense<0.000000e+00> : vector<256x128xf32>
    %81 = tpu.matmul %78, %80, %cst_65 {dimension_numbers = #tpu.dot_dimension_numbers<[1], [0], [0], [1], [0, 0, 1, 1], [], []>} : vector<256x128xbf16>, vector<128x128xbf16>, vector<256x128xf32> -> vector<256x128xf32>
    %82 = arith.addf %76, %81 : vector<256x128xf32>
    %c2_66 = arith.constant 2 : index
    %c1_67 = arith.constant 1 : index
    %c0_68 = arith.constant 0 : index
    %83 = vector.load %arg9[%c2_66, %c1_67, %c0_68] : memref<18x18x128xbf16, #tpu.memory_space<vmem>>, vector<16x16x128xbf16>
    %84 = vector.shape_cast %83 : vector<16x16x128xbf16> to vector<256x128xbf16>
    %c7 = arith.constant 7 : index
    %c0_69 = arith.constant 0 : index
    %c0_70 = arith.constant 0 : index
    %85 = vector.load %arg4[%c7, %c0_69, %c0_70] : memref<9x128x128xbf16, #tpu.memory_space<vmem>>, vector<1x128x128xbf16>
    %86 = vector.shape_cast %85 : vector<1x128x128xbf16> to vector<128x128xbf16>
    %cst_71 = arith.constant dense<0.000000e+00> : vector<256x128xf32>
    %87 = tpu.matmul %84, %86, %cst_71 {dimension_numbers = #tpu.dot_dimension_numbers<[1], [0], [0], [1], [0, 0, 1, 1], [], []>} : vector<256x128xbf16>, vector<128x128xbf16>, vector<256x128xf32> -> vector<256x128xf32>
    %88 = arith.addf %82, %87 : vector<256x128xf32>
    %c2_72 = arith.constant 2 : index
    %c2_73 = arith.constant 2 : index
    %c0_74 = arith.constant 0 : index
    %89 = vector.load %arg9[%c2_72, %c2_73, %c0_74] : memref<18x18x128xbf16, #tpu.memory_space<vmem>>, vector<16x16x128xbf16>
    %90 = vector.shape_cast %89 : vector<16x16x128xbf16> to vector<256x128xbf16>
    %c8 = arith.constant 8 : index
    %c0_75 = arith.constant 0 : index
    %c0_76 = arith.constant 0 : index
    %91 = vector.load %arg4[%c8, %c0_75, %c0_76] : memref<9x128x128xbf16, #tpu.memory_space<vmem>>, vector<1x128x128xbf16>
    %92 = vector.shape_cast %91 : vector<1x128x128xbf16> to vector<128x128xbf16>
    %cst_77 = arith.constant dense<0.000000e+00> : vector<256x128xf32>
    %93 = tpu.matmul %90, %92, %cst_77 {dimension_numbers = #tpu.dot_dimension_numbers<[1], [0], [0], [1], [0, 0, 1, 1], [], []>} : vector<256x128xbf16>, vector<128x128xbf16>, vector<256x128xf32> -> vector<256x128xf32>
    %94 = arith.addf %88, %93 : vector<256x128xf32>
    %c0_78 = arith.constant 0 : index
    %c0_79 = arith.constant 0 : index
    %95 = vector.load %arg5[%c0_78, %c0_79] : memref<1x128xf32, #tpu.memory_space<vmem>>, vector<1x128xf32>
    %96 = vector.broadcast %95 : vector<1x128xf32> to vector<256x128xf32>
    %97 = arith.addf %94, %96 : vector<256x128xf32>
    %c0_80 = arith.constant 0 : index
    %c0_81 = arith.constant 0 : index
    %c0_82 = arith.constant 0 : index
    %98 = vector.load %arg6[%c0_80, %c0_81, %c0_82] : memref<1x256x128xf32, #tpu.memory_space<vmem>>, vector<1x256x128xf32>
    %99 = vector.shape_cast %98 : vector<1x256x128xf32> to vector<256x128xf32>
    %100 = arith.truncf %99 : vector<256x128xf32> to vector<256x128xbf16>
    %c0_83 = arith.constant 0 : index
    %c0_84 = arith.constant 0 : index
    %101 = vector.load %arg7[%c0_83, %c0_84] : memref<128x128xbf16, #tpu.memory_space<vmem>>, vector<128x128xbf16>
    %cst_85 = arith.constant dense<0.000000e+00> : vector<256x128xf32>
    %102 = tpu.matmul %100, %101, %cst_85 {dimension_numbers = #tpu.dot_dimension_numbers<[1], [0], [0], [1], [0, 0, 1, 1], [], []>} : vector<256x128xbf16>, vector<128x128xbf16>, vector<256x128xf32> -> vector<256x128xf32>
    %103 = arith.addf %97, %102 : vector<256x128xf32>
    %cst_86 = arith.constant 0.707106769 : f32
    %104 = vector.broadcast %cst_86 : f32 to vector<256x128xf32>
    %105 = arith.mulf %103, %104 : vector<256x128xf32>
    %c0_87 = arith.constant 0 : index
    %c0_88 = arith.constant 0 : index
    %c0_89 = arith.constant 0 : index
    %106 = vector.load %arg8[%c0_87, %c0_88, %c0_89] : memref<1x256x128xf32, #tpu.memory_space<vmem>>, vector<1x256x128xf32>
    %107 = vector.shape_cast %106 : vector<1x256x128xf32> to vector<256x128xf32>
    %108 = vector.shape_cast %105 : vector<256x128xf32> to vector<1x256x128xf32>
    tpu.vector_store %arg8[%c0_87, %c0_88, %c0_89], %108 {strides = array<i32>} : memref<1x256x128xf32, #tpu.memory_space<vmem>>, vector<1x256x128xf32>,
    return
  }
  func.func @transform_0(%arg0: i32) -> (i32, i32, i32) {
    %c0_i32 = arith.constant 0 : i32
    %c0_i32_0 = arith.constant 0 : i32
    %c0_i32_1 = arith.constant 0 : i32
    return %arg0, %c0_i32, %c0_i32_0 : i32, i32, i32
  }
  func.func @transform_1(%arg0: i32) -> (i32, i32, i32) {
    %c0_i32 = arith.constant 0 : i32
    %c0_i32_0 = arith.constant 0 : i32
    %c0_i32_1 = arith.constant 0 : i32
    return %arg0, %c0_i32, %c0_i32_0 : i32, i32, i32
  }
  func.func @transform_2(%arg0: i32) -> (i32, i32, i32) {
    %c0_i32 = arith.constant 0 : i32
    %c0_i32_0 = arith.constant 0 : i32
    %c0_i32_1 = arith.constant 0 : i32
    return %arg0, %c0_i32, %c0_i32_0 : i32, i32, i32
  }
  func.func @transform_3(%arg0: i32) -> (i32, i32, i32) {
    %c0_i32 = arith.constant 0 : i32
    %c0_i32_0 = arith.constant 0 : i32
    %c0_i32_1 = arith.constant 0 : i32
    %c0_i32_2 = arith.constant 0 : i32
    return %c0_i32, %c0_i32_0, %c0_i32_1 : i32, i32, i32
  }
  func.func @transform_4(%arg0: i32) -> (i32, i32) {
    %c0_i32 = arith.constant 0 : i32
    %c0_i32_0 = arith.constant 0 : i32
    %c0_i32_1 = arith.constant 0 : i32
    return %c0_i32, %c0_i32_0 : i32, i32
  }
  func.func @transform_5(%arg0: i32) -> (i32, i32, i32) {
    %c0_i32 = arith.constant 0 : i32
    %c0_i32_0 = arith.constant 0 : i32
    %c0_i32_1 = arith.constant 0 : i32
    return %arg0, %c0_i32, %c0_i32_0 : i32, i32, i32
  }
  func.func @transform_6(%arg0: i32) -> (i32, i32) {
    %c0_i32 = arith.constant 0 : i32
    %c0_i32_0 = arith.constant 0 : i32
    %c0_i32_1 = arith.constant 0 : i32
    return %c0_i32, %c0_i32_0 : i32, i32
  }
  func.func @transform_7(%arg0: i32) -> (i32, i32, i32) {
    %c0_i32 = arith.constant 0 : i32
    %c0_i32_0 = arith.constant 0 : i32
    %c0_i32_1 = arith.constant 0 : i32
    return %arg0, %c0_i32, %c0_i32_0 : i32, i32, i32
  }
}

</mosaic_0001>

<bundles_post_ra>
// kernel: adain_resblk_forward.2
= control target key start
LH: loop header
LB: loop body
LE: loop exit
PB: predicated region body
PF: predicated region fallthrough
CT: control target
= control target key end

     0   :  { %s7514_s18 = smov 0   ;;  %s10507_s0 = inlined_call_operand.vmem [shape: f32[2,256,128], index: 0, kind: input, shape index: {}]   ;;  %s10508_s1 = inlined_call_operand.vmem [shape: f32[2,1,128], index: 1, kind: input, shape index: {}]   ;;  %s10509_s2 = inlined_call_operand.vmem [shape: f32[2,1,128], index: 2, kind: input, shape index: {}]   ;;  %s10510_s3 = inlined_call_operand.vmem [shape: bf16[9,128,128], index: 3, kind: input, shape index: {}]   ;;  %s10511_s4 = inlined_call_operand.vmem [shape: f32[1,128], index: 4, kind: input, shape index: {}]   ;;  %s10512_s5 = inlined_call_operand.vmem [shape: f32[2,256,128], index: 5, kind: output, shape index: {}]  }
   0x1 LB: > { %s6179_s19 = sadd.s32 4294967295, %s7481_s18   ;;  %p6183_p0 = scmp.ge.s32.totalorder %s7481_s18, 1  ;;  %s7481_s18 = sphi %s7514_s18, %s15_s18  }
   0x2   : > { %p203_p1 = scmp.lt.s32.totalorder %s7481_s18, 3 }
   0x4   : > { %p204_p2 = pnand %p6183_p0, %p203_p1 }
   0x6   : > { %207 = sbr.rel (%p204_p2) target bundleno = 841 (0x349), region = 40 }
   0xb   : > { %v7323_v0 = vld [vmem:[%s10510_s3 + $0x78] sm:$0xff]   ;;  %v7528_v1 = vld [vmem:[%s10510_s3 + $0x70] sm:$0xff]   ;;  %v7483_v2 = vmov 0   ;;  %p237_p3 = scmp.lt.s32.totalorder %s6179_s19, 1  ;;  %v7325_v3 = vld [vmem:[%s10510_s3 + $0x68] sm:$0xff]   ;;  %vm1110_vm5 = vcmask 1043456  }
   0xc   : > { %652 = vst [vmem:[#allocation2] sm:$0xf] %v7483_v2  ;;  %653 = vst [vmem:[#allocation2 + $0x4] sm:$0xf] %v7483_v2  ;;  %6866 = vmatprep.subr.bf16.mxu0 %v7323_v0  ;;  %7298 = vmatprep.subr.bf16.mxu1 %v7323_v0  ;;  %v7326_v4 = vld [vmem:[%s10510_s3 + $0x60] sm:$0xff]   ;;  %v7327_v19 = vld [vmem:[%s10510_s3 + $0x58] sm:$0xff]  }
   0xd   : > { %654 = vst [vmem:[#allocation2 + $0x8] sm:$0x1] %v7483_v2  ;;  %655 = vst [vmem:[#allocation2 + $0xc] sm:$0xf] %v7483_v2  ;;  %6867 = vmatpush3.bf16.msra.mxu0 %v7323_v0  ;;  %7306 = vmatpush3.bf16.msra.mxu1 %v7323_v0  ;;  %s10781_s19 = smov (!%p237_p3, %s6179_s19), 1  ;;  %v7328_v31 = vld [vmem:[%s10510_s3 + $0x50] sm:$0xff]  }
   0xe   : > { %656 = vst [vmem:[#allocation2 + $0x10] sm:$0xf] %v7483_v2  ;;  %657 = vst [vmem:[#allocation2 + $0x14] sm:$0x1] %v7483_v2  ;;  %6868 = vmatprep.subr.bf16.mxu0 %v7528_v1  ;;  %7299 = vmatprep.subr.bf16.mxu1 %v7528_v1  ;;  %s6616_s26 = sshll.u32 %s10781_s19, 8  ;;  %v7329_v40 = vld [vmem:[%s10510_s3 + $0x48] sm:$0xff]   ;;  %s244_s23 = scalar_lea.vmem %s10508_s1, %s10781_s19 }
   0xf   : > { %658 = vst [vmem:[#allocation2 + $0x18] sm:$0xf] %v7483_v2  ;;  %659 = vst [vmem:[#allocation2 + $0x1c] sm:$0xf] %v7483_v2  ;;  %s7552_s6 = scalar_lea.vmem %s10507_s0, %s6616_s26  ;;  %vm1291_vm0 = vsmask.f32 3328  ;;  %s7917_s27 = scalar_lea.vmem %s10509_s2, %s10781_s19 }
  0x10   : > { %660 = vst [vmem:[#allocation2 + $0x20] sm:$0x1] %v7483_v2  ;;  %661 = vst [vmem:[#allocation2 + $0x24] sm:$0xf] %v7483_v2  ;;  %v7555_v13 = vld [vmem:[%s7552_s6] sm:$0xff]  ;;  %v7558_v14 = vld [vmem:[%s7552_s6 + $0x8] sm:$0xff]  ;;  %s10357_s7 = scalar_lea.vmem %s10512_s5, %s6616_s26 }
  0x11   : > { %662 = vst [vmem:[#allocation2 + $0x28] sm:$0xf] %v7483_v2  ;;  %663 = vst [vmem:[#allocation2 + $0x2c] sm:$0x1] %v7483_v2  ;;  %6869 = vmatpush3.bf16.msra.mxu0 %v7528_v1  ;;  %7307 = vmatpush3.bf16.msra.mxu1 %v7528_v1  ;;  %vm1292_vm1 = vsmask.f32 7440  ;;  %v286_v18 = vadd.f32 %v7558_v14, %v7555_v13 }
  0x12   : > { %664 = vst [vmem:[#allocation2 + $0x30] sm:$0xf] %v7483_v2  ;;  %665 = vst [vmem:[#allocation2 + $0x34] sm:$0xf] %v7483_v2  ;;  %6870 = vmatprep.subr.bf16.mxu0 %v7325_v3  ;;  %7300 = vmatprep.subr.bf16.mxu1 %v7325_v3  ;;  %v7561_v17 = vld [vmem:[%s7552_s6 + $0x10] sm:$0xff]  ;;  %v7569_v22 = vld [vmem:[%s7552_s6 + $0x18] sm:$0xff] }
  0x13   : > { %666 = vst [vmem:[#allocation2 + $0x38] sm:$0x1] %v7483_v2  ;;  %667 = vst [vmem:[#allocation2 + $0x3c] sm:$0xf] %v7483_v2  ;;  %v1227_v5 = vld [vmem:[#allocation2] sm:$0xf]  ;;  %v287_v24 = vadd.f32 %v286_v18, %v7561_v17 }
  0x14   : > { %668 = vst [vmem:[#allocation2 + $0x40] sm:$0xf] %v7483_v2  ;;  %669 = vst [vmem:[#allocation2 + $0x44] sm:$0x1] %v7483_v2  ;;  %v1228_v6 = vld [vmem:[#allocation2 + $0x4] sm:$0xf] }
  0x15   : > { %670 = vst [vmem:[#allocation2 + $0x48] sm:$0xf] %v7483_v2  ;;  %671 = vst [vmem:[#allocation2 + $0x4c] sm:$0xf] %v7483_v2  ;;  %v1275_v7 = vld [vmem:[#allocation2 + $0x8] sm:$0x1]  ;;  %6871 = vmatpush3.bf16.msra.mxu0 %v7325_v3  ;;  %7308 = vmatpush3.bf16.msra.mxu1 %v7325_v3  ;;  %v288_v30 = vadd.f32 %v287_v24, %v7569_v22 }
  0x16   : > { %672 = vst [vmem:[#allocation2 + $0x50] sm:$0x1] %v7483_v2  ;;  %673 = vst [vmem:[#allocation2 + $0x54] sm:$0xf] %v7483_v2  ;;  %v1295_v8 = vshrl.u32 %v1227_v5, 16  ;;  %v1298_v9 = vshll.u32 %v1227_v5, 16  ;;  %6872 = vmatprep.subr.bf16.mxu0 %v7326_v4  ;;  %7301 = vmatprep.subr.bf16.mxu1 %v7326_v4 }
  0x17   : > { %674 = vst [vmem:[#allocation2 + $0x58] sm:$0xf] %v7483_v2  ;;  %675 = vst [vmem:[#allocation2 + $0x5c] sm:$0x1] %v7483_v2  ;;  %v1304_v10 = vshll.u32 %v1228_v6, 16  ;;  %v1308_v11 = vshrl.u32 %v1228_v6, 16 }
  0x18   : > { %676 = vst [vmem:[#allocation2 + $0x60] sm:$0xf] %v7483_v2  ;;  %677 = vst [vmem:[#allocation2 + $0x64] sm:$0xf] %v7483_v2  ;;  %v1314_v12 = vshll.u32 %v1275_v7, 16  ;;  %v1297_v15 = vrot.slane %v1295_v8, 4 }
  0x19   : > { %678 = vst [vmem:[#allocation2 + $0x68] sm:$0x1] %v7483_v2  ;;  %679 = vst [vmem:[#allocation2 + $0x6c] sm:$0xf] %v7483_v2  ;;  %v1300_v16 = vrot.slane %v1298_v9, 5  ;;  %v1306_v20 = vrot.slane %v1304_v10, 5  ;;  %6873 = vmatpush3.bf16.msra.mxu0 %v7326_v4  ;;  %7309 = vmatpush3.bf16.msra.mxu1 %v7326_v4 }
  0x1a   : > { %680 = vst [vmem:[#allocation2 + $0x70] sm:$0xf] %v7483_v2  ;;  %681 = vst [vmem:[#allocation2 + $0x74] sm:$0x1] %v7483_v2  ;;  %v1310_v21 = vrot.slane %v1308_v11, 4  ;;  %v1316_v27 = vrot.slane %v1314_v12, 5  ;;  %6874 = vmatprep.subr.bf16.mxu0 %v7327_v19  ;;  %7302 = vmatprep.subr.bf16.mxu1 %v7327_v19 }
  0x1b   : > { %682 = vst [vmem:[#allocation2 + $0x78] sm:$0xf] %v7483_v2  ;;  %683 = vst [vmem:[#allocation2 + $0x7c] sm:$0xf] %v7483_v2  ;;  %v1301_v23 = vor.u32 %v1300_v16, %v1297_v15  ;;  %v7578_v28 = vld [vmem:[%s7552_s6 + $0x20] sm:$0xff]  ;;  %v7585_v33 = vld [vmem:[%s7552_s6 + $0x28] sm:$0xff] }
  0x1c   : > { %684 = vst [vmem:[#allocation2 + $0x80] sm:$0x1] %v7483_v2  ;;  %685 = vst [vmem:[#allocation2 + $0x84] sm:$0xf] %v7483_v2  ;;  %v1311_v26 = vor.u32 %v1310_v21, %v1306_v20  ;;  %v289_v35 = vadd.f32 %v288_v30, %v7578_v28  ;;  %v7593_v37 = vld [vmem:[%s7552_s6 + $0x30] sm:$0xff]  ;;  %v7600_v41 = vld [vmem:[%s7552_s6 + $0x38] sm:$0xff] }
  0x1d   : > { %686 = vst [vmem:[#allocation2 + $0x88] sm:$0xf] %v7483_v2  ;;  %687 = vst [vmem:[#allocation2 + $0x8c] sm:$0x1] %v7483_v2  ;;  %v1302_v29 = vrot.slane %v1301_v23, 4  ;;  %6875 = vmatpush3.bf16.msra.mxu0 %v7327_v19  ;;  %7310 = vmatpush3.bf16.msra.mxu1 %v7327_v19  ;;  %v7603_v42 = vld [vmem:[%s7552_s6 + $0x40] sm:$0xff] }
  0x1e   : > { %688 = vst [vmem:[#allocation2 + $0x90] sm:$0xf] %v7483_v2  ;;  %689 = vst [vmem:[#allocation2 + $0x94] sm:$0xf] %v7483_v2  ;;  %v1312_v32 = vrot.slane %v1311_v26, 4  ;;  %v290_v39 = vadd.f32 %v289_v35, %v7585_v33  ;;  %6876 = vmatprep.subr.bf16.mxu0 %v7328_v31  ;;  %7303 = vmatprep.subr.bf16.mxu1 %v7328_v31  ;;  %v7330_v44 = vld [vmem:[%s10510_s3 + $0x40] sm:$0xff]  }
  0x1f   : > { %690 = vst [vmem:[#allocation2 + $0x98] sm:$0x1] %v7483_v2  ;;  %691 = vst [vmem:[#allocation2 + $0x9c] sm:$0xf] %v7483_v2  ;;  %v7610_v45 = vld [vmem:[%s7552_s6 + $0x48] sm:$0xff]  ;;  %v7614_v47 = vld [vmem:[%s7552_s6 + $0x50] sm:$0xff] }
  0x20   : > { %692 = vst [vmem:[#allocation2 + $0xa0] sm:$0xf] %v7483_v2  ;;  %693 = vst [vmem:[#allocation2 + $0xa4] sm:$0x1] %v7483_v2  ;;  %v291_v43 = vadd.f32 %v290_v39, %v7593_v37  ;;  %v7618_v49 = vld [vmem:[%s7552_s6 + $0x58] sm:$0xff]  ;;  %v7622_v51 = vld [vmem:[%s7552_s6 + $0x60] sm:$0xff] }
  0x21   : > { %694 = vst [vmem:[#allocation2 + $0xa8] sm:$0xf] %v7483_v2  ;;  %695 = vst [vmem:[#allocation2 + $0xac] sm:$0xf] %v7483_v2  ;;  %6877 = vmatpush3.bf16.msra.mxu0 %v7328_v31  ;;  %7311 = vmatpush3.bf16.msra.mxu1 %v7328_v31  ;;  %v7626_v53 = vld [vmem:[%s7552_s6 + $0x68] sm:$0xff]  ;;  %v7630_v55 = vld [vmem:[%s7552_s6 + $0x70] sm:$0xff] }
  0x22   : > { %696 = vst [vmem:[#allocation2 + $0xb0] sm:$0x1] %v7483_v2  ;;  %697 = vst [vmem:[#allocation2 + $0xb4] sm:$0xf] %v7483_v2  ;;  %v292_v46 = vadd.f32 %v291_v43, %v7600_v41  ;;  %6878 = vmatprep.subr.bf16.mxu0 %v7329_v40  ;;  %7304 = vmatprep.subr.bf16.mxu1 %v7329_v40  ;;  %v7634_v57 = vld [vmem:[%s7552_s6 + $0x78] sm:$0xff]  ;;  %v7638_v59 = vld [vmem:[%s7552_s6 + $0x80] sm:$0xff] }
  0x23   : > { %698 = vst [vmem:[#allocation2 + $0xb8] sm:$0xf] %v7483_v2  ;;  %699 = vst [vmem:[#allocation2 + $0xbc] sm:$0x1] %v7483_v2  ;;  %v7642_v61 = vld [vmem:[%s7552_s6 + $0x88] sm:$0xff]  ;;  %v7646_v63 = vld [vmem:[%s7552_s6 + $0x90] sm:$0xff] }
  0x24   : > { %700 = vst [vmem:[#allocation2 + $0xc0] sm:$0xf] %v7483_v2  ;;  %701 = vst [vmem:[#allocation2 + $0xc4] sm:$0xf] %v7483_v2  ;;  %v293_v48 = vadd.f32 %v292_v46, %v7603_v42  ;;  %v7650_v1 = vld [vmem:[%s7552_s6 + $0x98] sm:$0xff]  ;;  %v7654_v3 = vld [vmem:[%s7552_s6 + $0xa0] sm:$0xff] }
  0x25   : > { %702 = vst [vmem:[#allocation2 + $0xc8] sm:$0x1] %v7483_v2  ;;  %703 = vst [vmem:[#allocation2 + $0xcc] sm:$0xf] %v7483_v2  ;;  %6879 = vmatpush3.bf16.msra.mxu0 %v7329_v40  ;;  %7312 = vmatpush3.bf16.msra.mxu1 %v7329_v40  ;;  %v7658_v5 = vld [vmem:[%s7552_s6 + $0xa8] sm:$0xff]  ;;  %v7662_v7 = vld [vmem:[%s7552_s6 + $0xb0] sm:$0xff] }
  0x26   : > { %704 = vst [vmem:[#allocation2 + $0xd0] sm:$0xf] %v7483_v2  ;;  %705 = vst [vmem:[#allocation2 + $0xd4] sm:$0x1] %v7483_v2  ;;  %v294_v50 = vadd.f32 %v293_v48, %v7610_v45  ;;  %6880 = vmatprep.subr.bf16.mxu0 %v7330_v44  ;;  %7305 = vmatprep.subr.bf16.mxu1 %v7330_v44  ;;  %v7666_v9 = vld [vmem:[%s7552_s6 + $0xb8] sm:$0xff]  ;;  %v7670_v11 = vld [vmem:[%s7552_s6 + $0xc0] sm:$0xff] }
  0x27   : > { %vm7573_vm2 = vmor %vm1291_vm0, %vm1292_vm1  ;;  %v7674_v15 = vld [vmem:[%s7552_s6 + $0xc8] sm:$0xff]  ;;  %v7678_v18 = vld [vmem:[%s7552_s6 + $0xd0] sm:$0xff]  ;;  %vm786_vm3 = vsmask.f32 256  ;;  %vm787_vm4 = vsmask.f32 4368 }
  0x28   : > { %v1307_v34 = vsel %vm7573_vm2, %v1302_v29, %v1306_v20  ;;  %v1317_v36 = vsel %vm7573_vm2, %v1312_v32, %v1316_v27  ;;  %v295_v52 = vadd.f32 %v294_v50, %v7614_v47  ;;  %v7682_v20 = vld [vmem:[%s7552_s6 + $0xd8] sm:$0xff]  ;;  %v7686_v23 = vld [vmem:[%s7552_s6 + $0xe0] sm:$0xff]  ;;  %v7691_v27 = vld [vmem:[%s7552_s6 + $0xe8] sm:$0xff]  ;;  %vm1111_vm6 = vsmask.f32 7938 }
  0x29   : > { %v6237_v38 = vcombine.low %v1307_v34, %v1317_v36  ;;  %6881 = vmatpush3.bf16.msra.mxu0 %v7330_v44  ;;  %7313 = vmatpush3.bf16.msra.mxu1 %v7330_v44  ;;  %v7695_v30 = vld [vmem:[%s7552_s6 + $0xf0] sm:$0xff]  ;;  %v7699_v32 = vld [vmem:[%s7552_s6 + $0xf8] sm:$0xff]  ;;  %vm1117_vm7 = vcmask 1040384   ;;  %vm7964_vm14 = vmor %vm786_vm3, %vm787_vm4 }
  0x2a   : > { %v296_v54 = vadd.f32 %v295_v52, %v7618_v49  ;;  %vm7970_vm15 = vmand %vm1110_vm5, %vm1111_vm6 }
  0x2b   : > { %6882 = vmatprep.mubr.bf16.mxu0 %v6237_v38  ;;  %vm7978_vm0 = vmand %vm1117_vm7, %vm786_vm3 }
  0x2c   : > { %v297_v56 = vadd.f32 %v296_v54, %v7622_v51 }
  0x2e   : > { %v298_v58 = vadd.f32 %v297_v56, %v7626_v53 }
  0x30   : > { %v299_v60 = vadd.f32 %v298_v58, %v7630_v55 }
  0x32   : > { %v300_v62 = vadd.f32 %v299_v60, %v7634_v57 }
  0x34   : > { %v301_v0 = vadd.f32 %v300_v62, %v7638_v59 }
  0x36   : > { %v302_v2 = vadd.f32 %v301_v0, %v7642_v61 }
  0x38   : > { %v303_v4 = vadd.f32 %v302_v2, %v7646_v63  ;;  %v7746_v2 = vld [vmem:[%s10510_s3 + $0xb8] sm:$0xff]  }
  0x39   : > { %6962 = vmatprep.subr.bf16.mxu0 %v7746_v2 }
  0x3a   : > { %v304_v6 = vadd.f32 %v303_v4, %v7650_v1 }
  0x3c   : > { %v305_v8 = vadd.f32 %v304_v6, %v7654_v3 }
  0x3e   : > { %v306_v10 = vadd.f32 %v305_v8, %v7658_v5 }
  0x40   : > { %v307_v12 = vadd.f32 %v306_v10, %v7662_v7 }
  0x42   : > { %v308_v16 = vadd.f32 %v307_v12, %v7666_v9 }
  0x44   : > { %v309_v19 = vadd.f32 %v308_v16, %v7670_v11 }
  0x46   : > { %v310_v21 = vadd.f32 %v309_v19, %v7674_v15 }
  0x48   : > { %v311_v24 = vadd.f32 %v310_v21, %v7678_v18 }
  0x4a   : > { %v312_v26 = vadd.f32 %v311_v24, %v7682_v20 }
  0x4c   : > { %v313_v29 = vadd.f32 %v312_v26, %v7686_v23 }
  0x4e   : > { %v314_v31 = vadd.f32 %v313_v29, %v7691_v27 }
  0x50   : > { %v315_v34 = vadd.f32 %v314_v31, %v7695_v30 }
  0x52   : > { %v316_v35 = vadd.f32 %v315_v34, %v7699_v32 }
  0x54   : > { %v317_v36 = vrot.slane %v316_v35, 4 }
  0x56   : > { %v318_v38 = vadd.f32 %v317_v36, %v316_v35 }
  0x58   : > { %v319_v39 = vrot.slane %v318_v38, 2 }
  0x5a   : > { %v320_v40 = vadd.f32 %v319_v39, %v318_v38 }
  0x5c   : > { %v321_v43 = vrot.slane %v320_v40, 1 }
  0x5e   : > { %v322_v44 = vadd.f32 %v321_v43, %v320_v40 }
  0x60   : > { %v7703_v46 = vmul.f32 0.00390625, %v322_v44 }
  0x62   : > { %v7707_v48 = vsub.f32 %v7555_v13, %v7703_v46  ;;  %v7711_v50 = vsub.f32 %v7558_v14, %v7703_v46  ;;  %v7715_v52 = vsub.f32 %v7561_v17, %v7703_v46  ;;  %v7719_v54 = vsub.f32 %v7569_v22, %v7703_v46 }
  0x63   : > { %v7727_v13 = vsub.f32 %v7578_v28, %v7703_v46  ;;  %v7733_v17 = vsub.f32 %v7585_v33, %v7703_v46  ;;  %v7739_v62 = vsub.f32 %v7593_v37, %v7703_v46  ;;  %v7750_v33 = vsub.f32 %v7600_v41, %v7703_v46  ;;  %v7757_v37 = vld [vmem:[%s10510_s3 + $0x38] sm:$0xff]  }
  0x64   : > { %v357_v56 = vmul.f32 %v7707_v48, %v7707_v48  ;;  %v358_v58 = vmul.f32 %v7711_v50, %v7711_v50  ;;  %v359_v14 = vmul.f32 %v7715_v52, %v7715_v52  ;;  %v360_v22 = vmul.f32 %v7719_v54, %v7719_v54  ;;  %6914 = vmatprep.subr.bf16.mxu1 %v7757_v37 }
  0x65   : > { %v361_v0 = vmul.f32 %v7727_v13, %v7727_v13  ;;  %v362_v4 = vmul.f32 %v7733_v17, %v7733_v17  ;;  %v7762_v8 = vsub.f32 %v7603_v42, %v7703_v46  ;;  %v363_v10 = vmul.f32 %v7739_v62, %v7739_v62 }
  0x66   : > { %v389_v60 = vadd.f32 %v358_v58, %v357_v56  ;;  %v7769_v12 = vsub.f32 %v7610_v45, %v7703_v46  ;;  %v364_v16 = vmul.f32 %v7750_v33, %v7750_v33  ;;  %v7775_v21 = vsub.f32 %v7614_v47, %v7703_v46 }
  0x67   : > { %v365_v42 = vmul.f32 %v7762_v8, %v7762_v8  ;;  %v7781_v26 = vsub.f32 %v7618_v49, %v7703_v46  ;;  %v7787_v31 = vsub.f32 %v7622_v51, %v7703_v46  ;;  %v7793_v35 = vsub.f32 %v7626_v53, %v7703_v46 }
  0x68   : > { %v390_v28 = vadd.f32 %v389_v60, %v359_v14  ;;  %v366_v45 = vmul.f32 %v7769_v12, %v7769_v12  ;;  %v367_v47 = vmul.f32 %v7775_v21, %v7775_v21  ;;  %v7799_v38 = vsub.f32 %v7630_v55, %v7703_v46 }
  0x69   : > { %v368_v49 = vmul.f32 %v7781_v26, %v7781_v26  ;;  %v369_v51 = vmul.f32 %v7787_v31, %v7787_v31  ;;  %v7805_v40 = vsub.f32 %v7634_v57, %v7703_v46  ;;  %v370_v53 = vmul.f32 %v7793_v35, %v7793_v35 }
  0x6a   : > { %v391_v6 = vadd.f32 %v390_v28, %v360_v22  ;;  %v7811_v44 = vsub.f32 %v7638_v59, %v7703_v46  ;;  %v371_v55 = vmul.f32 %v7799_v38, %v7799_v38  ;;  %v7817_v58 = vsub.f32 %v7642_v61, %v7703_v46 }
  0x6b   : > { %v372_v57 = vmul.f32 %v7805_v40, %v7805_v40  ;;  %v7823_v22 = vsub.f32 %v7646_v63, %v7703_v46 }
  0x6c   : > { %v392_v41 = vadd.f32 %v391_v6, %v361_v0  ;;  %v373_v59 = vmul.f32 %v7811_v44, %v7811_v44  ;;  %v7829_v0 = vsub.f32 %v7650_v1, %v7703_v46  ;;  %v374_v61 = vmul.f32 %v7817_v58, %v7817_v58 }
  0x6d   : > { %v375_v63 = vmul.f32 %v7823_v22, %v7823_v22 }
  0x6e   : > { %v393_v19 = vadd.f32 %v392_v41, %v362_v4  ;;  %v7835_v4 = vsub.f32 %v7654_v3, %v7703_v46  ;;  %v376_v1 = vmul.f32 %v7829_v0, %v7829_v0 }
  0x70   : > { %v394_v24 = vadd.f32 %v393_v19, %v363_v10  ;;  %v7841_v10 = vsub.f32 %v7658_v5, %v7703_v46  ;;  %v377_v3 = vmul.f32 %v7835_v4, %v7835_v4 }
  0x72   : > { %v395_v29 = vadd.f32 %v394_v24, %v364_v16  ;;  %v7847_v16 = vsub.f32 %v7662_v7, %v7703_v46  ;;  %v378_v5 = vmul.f32 %v7841_v10, %v7841_v10 }
  0x74   : > { %v396_v34 = vadd.f32 %v395_v29, %v365_v42  ;;  %v7853_v42 = vsub.f32 %v7666_v9, %v7703_v46  ;;  %v379_v7 = vmul.f32 %v7847_v16, %v7847_v16 }
  0x76   : > { %v397_v36 = vadd.f32 %v396_v34, %v366_v45  ;;  %v7859_v45 = vsub.f32 %v7670_v11, %v7703_v46  ;;  %v380_v9 = vmul.f32 %v7853_v42, %v7853_v42 }
  0x78   : > { %v398_v39 = vadd.f32 %v397_v36, %v367_v47  ;;  %v7865_v47 = vsub.f32 %v7674_v15, %v7703_v46  ;;  %v381_v11 = vmul.f32 %v7859_v45, %v7859_v45 }
  0x7a   : > { %v399_v43 = vadd.f32 %v398_v39, %v368_v49  ;;  %v7871_v49 = vsub.f32 %v7678_v18, %v7703_v46  ;;  %v382_v15 = vmul.f32 %v7865_v47, %v7865_v47 }
  0x7c   : > { %v400_v56 = vadd.f32 %v399_v43, %v369_v51  ;;  %v7877_v51 = vsub.f32 %v7682_v20, %v7703_v46  ;;  %v383_v18 = vmul.f32 %v7871_v49, %v7871_v49 }
  0x7e   : > { %v401_v14 = vadd.f32 %v400_v56, %v370_v53  ;;  %v7883_v53 = vsub.f32 %v7686_v23, %v7703_v46  ;;  %v384_v20 = vmul.f32 %v7877_v51, %v7877_v51 }
  0x80   : > { %v402_v60 = vadd.f32 %v401_v14, %v371_v55  ;;  %v7889_v55 = vsub.f32 %v7691_v27, %v7703_v46  ;;  %v385_v23 = vmul.f32 %v7883_v53, %v7883_v53 }
  0x82   : > { %v403_v28 = vadd.f32 %v402_v60, %v372_v57  ;;  %v7895_v57 = vsub.f32 %v7695_v30, %v7703_v46  ;;  %v386_v27 = vmul.f32 %v7889_v55, %v7889_v55 }
  0x84   : > { %v404_v6 = vadd.f32 %v403_v28, %v373_v59  ;;  %10531 = vst [vmem:[#allocation3_spill] sm:$0xff] %v7895_v57  ;;  %v7901_v59 = vsub.f32 %v7699_v32, %v7703_v46 }
  0x86   : > { %v405_v41 = vadd.f32 %v404_v6, %v374_v61  ;;  %10532 = vst [vmem:[#allocation4_spill] sm:$0xff] %v7901_v59  ;;  %v387_v61 = vmul.f32 %v7895_v57, %v7895_v57  ;;  %v388_v30 = vmul.f32 %v7901_v59, %v7901_v59 }
  0x88   : > { %v406_v19 = vadd.f32 %v405_v41, %v375_v63 }
  0x8a   : > { %v407_v24 = vadd.f32 %v406_v19, %v376_v1 }
  0x8c   : > { %v408_v29 = vadd.f32 %v407_v24, %v377_v3 }
  0x8e   : > { %v409_v34 = vadd.f32 %v408_v29, %v378_v5  ;;  %v464_v29 = vlaneseq }
  0x90   : > { %v410_v36 = vadd.f32 %v409_v34, %v379_v7  ;;  %v461_v34 = vld [vmem:[%s244_s23] sm:$0x1] }
  0x92   : > { %v411_v39 = vadd.f32 %v410_v36, %v380_v9  ;;  %v465_v9 = vshrl.u32 %v464_v29, 7 }
  0x94   : > { %v412_v43 = vadd.f32 %v411_v39, %v381_v11  ;;  %v462_v11 = vadd.f32 1.0, %v461_v34  ;;  %v466_v36 = vsub.s32 0, %v465_v9 }
  0x96   : > { %v413_v56 = vadd.f32 %v412_v43, %v382_v15  ;;  %v7919_v15 = vrot.slane %v462_v11, %v466_v36 }
  0x98   : > { %v414_v14 = vadd.f32 %v413_v56, %v383_v18  ;;  %10533 = vst [vmem:[#allocation5_spill] sm:$0xff] %v7919_v15 }
  0x9a   : > { %v415_v60 = vadd.f32 %v414_v14, %v384_v20 }
  0x9c   : > { %v416_v28 = vadd.f32 %v415_v60, %v385_v23  ;;  %v7932_v23 = vld [vmem:[%s7917_s27] ss:$0 sm:$0xff] }
  0x9e   : > { %v417_v63 = vadd.f32 %v416_v28, %v386_v27 }
  0xa0   : > { %v418_v6 = vadd.f32 %v417_v63, %v387_v61 }
  0xa2   : > { %v419_v1 = vadd.f32 %v418_v6, %v388_v30 }
  0xa4   : > { %v420_v41 = vrot.slane %v419_v1, 4 }
  0xa6   : > { %v421_v3 = vadd.f32 %v420_v41, %v419_v1 }
  0xa8   : > { %v422_v32 = vrot.slane %v421_v3, 2 }
  0xaa   : > { %v423_v46 = vadd.f32 %v422_v32, %v421_v3 }
  0xac   : > { %v424_v19 = vrot.slane %v423_v46, 1 }
  0xae   : > { %v425_v5 = vadd.f32 %v424_v19, %v423_v46 }
  0xb0   : > { %v426_v24 = vmul.f32 0.00390625, %v425_v5 }
  0xb2   : > { %v427_v7 = vadd.f32 1e-05, %v426_v24 }
  0xb4   : > { %7443 = vrsqrt.f32 %v427_v7 }
  0xc1   : > { %v7921_v39 = vpop.eup %7443 }
  0xc2   : > { %10534 = vst [vmem:[#allocation6_spill] sm:$0xff] %v7921_v39  ;;  %v429_v18 = vmul.f32 %v7921_v39, %v7707_v48  ;;  %v430_v43 = vmul.f32 %v7921_v39, %v7711_v50  ;;  %v443_v20 = vmul.f32 %v7921_v39, %v7799_v38  ;;  %v444_v56 = vmul.f32 %v7921_v39, %v7805_v40 }
  0xc3   : > { %v445_v14 = vmul.f32 %v7921_v39, %v7811_v44  ;;  %v446_v27 = vmul.f32 %v7921_v39, %v7817_v58  ;;  %v431_v48 = vmul.f32 %v7921_v39, %v7715_v52  ;;  %v432_v50 = vmul.f32 %v7921_v39, %v7719_v54 }
  0xc4   : > { %v469_v38 = vmul.f32 %v7919_v15, %v429_v18  ;;  %v470_v40 = vmul.f32 %v7919_v15, %v430_v43  ;;  %v483_v60 = vmul.f32 %v7919_v15, %v443_v20  ;;  %v484_v61 = vmul.f32 %v7919_v15, %v444_v56 }
  0xc5   : > { %v485_v44 = vmul.f32 %v7919_v15, %v445_v14  ;;  %v486_v58 = vmul.f32 %v7919_v15, %v446_v27  ;;  %v471_v52 = vmul.f32 %v7919_v15, %v431_v48  ;;  %v472_v28 = vmul.f32 %v7919_v15, %v432_v50 }
  0xc6   : > { %v508_v54 = vadd.f32 %v7932_v23, %v469_v38  ;;  %v509_v30 = vadd.f32 %v7932_v23, %v470_v40  ;;  %v522_v63 = vadd.f32 %v7932_v23, %v483_v60  ;;  %v523_v6 = vadd.f32 %v7932_v23, %v484_v61 }
  0xc7   : > { %v524_v1 = vadd.f32 %v7932_v23, %v485_v44  ;;  %v525_v41 = vadd.f32 %v7932_v23, %v486_v58  ;;  %v7957_v3 = vadd.f32 %v7932_v23, %v471_v52  ;;  %v7960_v32 = vadd.f32 %v7932_v23, %v472_v28 }
  0xc8   : > { %vm540_vm8 = vcmp.ge.f32.partialorder %v508_v54, 0.0  ;;  %vm541_vm9 = vcmp.ge.f32.partialorder %v509_v30, 0.0  ;;  %v572_v46 = vmul.f32 0.2, %v508_v54  ;;  %v573_v19 = vmul.f32 0.2, %v509_v30 }
  0xc9   : > { %vm554_vm10 = vcmp.ge.f32.partialorder %v522_v63, 0.0  ;;  %vm555_vm11 = vcmp.ge.f32.partialorder %v523_v6, 0.0  ;;  %v586_v5 = vmul.f32 0.2, %v522_v63  ;;  %v587_v24 = vmul.f32 0.2, %v523_v6 }
  0xca   : > { %v604_v7 = vsel %vm540_vm8, %v508_v54, %v572_v46  ;;  %v605_v29 = vsel %vm541_vm9, %v509_v30, %v573_v19  ;;  %vm556_vm12 = vcmp.ge.f32.partialorder %v524_v1, 0.0  ;;  %vm557_vm13 = vcmp.ge.f32.partialorder %v525_v41, 0.0  ;;  %v1119_v46 = vld [vmem:[#allocation2 + $0x14] sm:$0x1] }
  0xcb   : > { %v6618_v9 = vpack.c.bf16 %v604_v7, %v604_v7  ;;  %v6619_v34 = vpack.c.bf16 %v605_v29, %v605_v29  ;;  %v618_v11 = vsel %vm554_vm10, %v522_v63, %v586_v5  ;;  %v619_v36 = vsel %vm555_vm11, %v523_v6, %v587_v24  ;;  %v1113_v63 = vld [vmem:[#allocation2 + $0xc] sm:$0xf] }
  0xcc   : > { %v6632_v18 = vpack.c.bf16 %v618_v11, %v618_v11  ;;  %v6633_v43 = vpack.c.bf16 %v619_v36, %v619_v36  ;;  %v588_v20 = vmul.f32 0.2, %v524_v1  ;;  %v589_v56 = vmul.f32 0.2, %v525_v41  ;;  %v1164_v36 = vld [vmem:[#allocation2 + $0x60] sm:$0xf] }
  0xcd   : > { %v790_v14 = vshrl.u32 %v6618_v9, 16  ;;  %v793_v27 = vshll.u32 %v6618_v9, 16  ;;  %v798_v48 = vshrl.u32 %v6619_v34, 16  ;;  %v801_v50 = vshll.u32 %v6619_v34, 16 }
  0xce   : > { %v10535_v38 = vmov 0  ;;  %v909_v40 = vshrl.u32 %v6632_v18, 16  ;;  %v912_v60 = vshll.u32 %v6632_v18, 16  ;;  %v917_v61 = vshrl.u32 %v6633_v43, 16 }
  0xcf   : > { %v10536_v38 = vsel %vm7964_vm14, 4294967295, %v10535_v38  ;;  %v920_v44 = vshll.u32 %v6633_v43, 16  ;;  %v792_v58 = vrot.slane %v790_v14, 7  ;;  %v800_v52 = vrot.slane %v798_v48, 7 }
  0xd0   : > { %10537 = vst [vmem:[#allocation7_spill] sm:$0xff] %v10536_v38  ;;  %v10538_v28 = vmov 0  ;;  %v620_v54 = vsel %vm556_vm12, %v524_v1, %v588_v20  ;;  %v621_v30 = vsel %vm557_vm13, %v525_v41, %v589_v56  ;;  %v10541_v6 = vmov 0  ;;  %v1168_v1 = vld [vmem:[#allocation2 + $0x68] sm:$0x1] }
  0xd1   : > { %v10539_v28 = vsel %vm7970_vm15, 4294967295, %v10538_v28  ;;  %v10542_v6 = vsel %vm7978_vm0, 4294967295, %v10541_v6  ;;  %v911_v19 = vrot.slane %v909_v40, 7  ;;  %v919_v5 = vrot.slane %v917_v61, 7 }
  0xd2   : > { %10540 = vst [vmem:[#allocation8_spill] sm:$0xff] %v10539_v28  ;;  %10543 = vst [vmem:[#allocation9_spill] sm:$0xff] %v10542_v6  ;;  %v6634_v24 = vpack.c.bf16 %v620_v54, %v620_v54  ;;  %v6635_v7 = vpack.c.bf16 %v621_v30, %v621_v30  ;;  %v795_v29 = vor.u32 %v793_v27, %v792_v58  ;;  %v796_v9 = vrot.slane %v792_v58, 4  ;;  %v1171_v54 = vld [vmem:[#allocation2 + $0x6c] sm:$0xf] }
  0xd3   : > { %v803_v34 = vor.u32 %v801_v50, %v800_v52  ;;  %v805_v11 = vrot.slane %v800_v52, 4  ;;  %v914_v18 = vor.u32 %v912_v60, %v911_v19  ;;  %v915_v41 = vrot.slane %v911_v19, 4 }
  0xd4   : > { %v922_v43 = vor.u32 %v920_v44, %v919_v5  ;;  %v924_v20 = vrot.slane %v919_v5, 4  ;;  %v1114_v14 = vsel %vm7970_vm15, %v795_v29, %v1113_v63  ;;  %v926_v40 = vshrl.u32 %v6634_v24, 16 }
  0xd5   : > { %v804_v56 = vsel %vm7964_vm14, %v796_v9, %v803_v34  ;;  %v1120_v48 = vsel %vm7978_vm0, %v805_v11, %v1119_v46  ;;  %1115 = vst [vmem:[#allocation2 + $0xc] sm:$0xf] %v1114_v14  ;;  %v1165_v50 = vsel %vm7970_vm15, %v914_v18, %v1164_v36  ;;  %v929_v61 = vshll.u32 %v6634_v24, 16  ;;  %v1175_v9 = vld [vmem:[#allocation2 + $0x74] sm:$0x1] }
  0xd6   : > { %1116 = vst [vmem:[#allocation2 + $0x10] sm:$0xf] %v804_v56  ;;  %1121 = vst [vmem:[#allocation2 + $0x14] sm:$0x1] %v1120_v48  ;;  %v923_v27 = vsel %vm7964_vm14, %v915_v41, %v922_v43  ;;  %v1169_v60 = vsel %vm7978_vm0, %v924_v20, %v1168_v1  ;;  %v928_v44 = vrot.slane %v926_v40, 7  ;;  %v934_v58 = vshrl.u32 %v6635_v7, 16 }
  0xd7   : > { %1166 = vst [vmem:[#allocation2 + $0x60] sm:$0xf] %v1165_v50  ;;  %1167 = vst [vmem:[#allocation2 + $0x64] sm:$0xf] %v923_v27  ;;  %v937_v52 = vshll.u32 %v6635_v7, 16  ;;  %vm542_vm1 = vcmp.ge.f32.partialorder %v7957_v3, 0.0  ;;  %v433_v46 = vmul.f32 %v7921_v39, %v7727_v13  ;;  %v434_v29 = vmul.f32 %v7921_v39, %v7733_v17 }
  0xd8   : > { %1170 = vst [vmem:[#allocation2 + $0x68] sm:$0x1] %v1169_v60  ;;  %vm543_vm3 = vcmp.ge.f32.partialorder %v7960_v32, 0.0  ;;  %v574_v30 = vmul.f32 0.2, %v7957_v3  ;;  %v931_v19 = vor.u32 %v929_v61, %v928_v44  ;;  %v932_v5 = vrot.slane %v928_v44, 4 }
  0xd9   : > { %v575_v63 = vmul.f32 0.2, %v7960_v32  ;;  %v936_v24 = vrot.slane %v934_v58, 7  ;;  %v473_v11 = vmul.f32 %v7919_v15, %v433_v46  ;;  %v447_v13 = vmul.f32 %v7921_v39, %v7823_v22 }
  0xda   : > { %v606_v7 = vsel %vm542_vm1, %v7957_v3, %v574_v30  ;;  %v1172_v18 = vsel %vm7970_vm15, %v931_v19, %v1171_v54  ;;  %v474_v17 = vmul.f32 %v7919_v15, %v434_v29  ;;  %v448_v22 = vmul.f32 %v7921_v39, %v7829_v0 }
  0xdb   : > { %v607_v34 = vsel %vm543_vm3, %v7960_v32, %v575_v63  ;;  %v939_v36 = vor.u32 %v937_v52, %v936_v24  ;;  %v941_v1 = vrot.slane %v936_v24, 4  ;;  %1173 = vst [vmem:[#allocation2 + $0x6c] sm:$0xf] %v1172_v18  ;;  %v8009_v41 = vpack.c.bf16 %v606_v7, %v606_v7 }
  0xdc   : > { %v8011_v43 = vpack.c.bf16 %v607_v34, %v607_v34  ;;  %v1229_v3 = vld [vmem:[#allocation2 + $0xc] sm:$0xf]  ;;  %v8019_v48 = vadd.f32 %v7932_v23, %v473_v11  ;;  %v8024_v54 = vadd.f32 %v7932_v23, %v474_v17  ;;  %v487_v30 = vmul.f32 %v7919_v15, %v447_v13 }
  0xdd   : > { %v1230_v20 = vld [vmem:[#allocation2 + $0x10] sm:$0xf]  ;;  %v1276_v32 = vld [vmem:[#allocation2 + $0x14] sm:$0x1]  ;;  %v940_v56 = vsel %vm7964_vm14, %v932_v5, %v939_v36  ;;  %v1176_v14 = vsel %vm7978_vm0, %v941_v1, %v1175_v9  ;;  %v1319_v40 = vshrl.u32 %v1229_v3, 16  ;;  %v1322_v27 = vshll.u32 %v1229_v3, 16 }
  0xde   : > { %v1328_v50 = vshll.u32 %v1230_v20, 16  ;;  %v1332_v60 = vshrl.u32 %v1230_v20, 16  ;;  %v1243_v61 = vld [vmem:[#allocation2 + $0x60] sm:$0xf]  ;;  %1174 = vst [vmem:[#allocation2 + $0x70] sm:$0xf] %v940_v56  ;;  %v8029_v63 = vmul.f32 %v7921_v39, %v7835_v4  ;;  %v488_v20 = vmul.f32 %v7919_v15, %v448_v22 }
  0xdf   : > { %1177 = vst [vmem:[#allocation2 + $0x74] sm:$0x1] %v1176_v14  ;;  %v1338_v44 = vshll.u32 %v1276_v32, 16  ;;  %v1244_v58 = vld [vmem:[#allocation2 + $0x64] sm:$0xf]  ;;  %v1321_v0 = vrot.slane %v1319_v40, 4 }
  0xe0   : > { %v1283_v52 = vld [vmem:[#allocation2 + $0x68] sm:$0x1]  ;;  %v1324_v46 = vrot.slane %v1322_v27, 5  ;;  %v1330_v19 = vrot.slane %v1328_v50, 5  ;;  %v1334_v5 = vrot.slane %v1332_v60, 4  ;;  %v1487_v29 = vshrl.u32 %v1243_v61, 16 }
  0xe1   : > { %v1340_v24 = vrot.slane %v1338_v44, 5  ;;  %v1490_v9 = vshll.u32 %v1243_v61, 16  ;;  %v1496_v7 = vshll.u32 %v1244_v58, 16  ;;  %v1500_v36 = vshrl.u32 %v1244_v58, 16 }
  0xe2   : > { %v1325_v34 = vor.u32 %v1324_v46, %v1321_v0  ;;  %v1335_v11 = vor.u32 %v1334_v5, %v1330_v19  ;;  %v1506_v1 = vshll.u32 %v1283_v52, 16  ;;  %v1489_v18 = vrot.slane %v1487_v29, 4  ;;  %v1245_v13 = vld [vmem:[#allocation2 + $0x6c] sm:$0xf] }
  0xe3   : > { %v1492_v17 = vrot.slane %v1490_v9, 5  ;;  %v1498_v3 = vrot.slane %v1496_v7, 5  ;;  %v1502_v56 = vrot.slane %v1500_v36, 4  ;;  %v1511_v60 = vshrl.u32 %v1245_v13, 16  ;;  %v7334_v7 = vld [vmem:[%s10510_s3 + $0xb0] sm:$0xff]  }
  0xe4   : > { %v1326_v4 = vrot.slane %v1325_v34, 4  ;;  %v1336_v32 = vrot.slane %v1335_v11, 4  ;;  %v1508_v14 = vrot.slane %v1506_v1, 5  ;;  %v1514_v61 = vshll.u32 %v1245_v13, 16 }
  0xe5   : > { %v1493_v40 = vor.u32 %v1492_v17, %v1489_v18  ;;  %v1246_v27 = vld [vmem:[#allocation2 + $0x70] sm:$0xf]  ;;  %v8033_v44 = vadd.f32 %v7932_v23, %v487_v30  ;;  %v1503_v0 = vor.u32 %v1502_v56, %v1498_v3  ;;  %v1513_v29 = vrot.slane %v1511_v60, 4 }
  0xe6   : > { %v1284_v50 = vld [vmem:[#allocation2 + $0x74] sm:$0x1]  ;;  %v1331_v58 = vsel %vm7573_vm2, %v1326_v4, %v1330_v19  ;;  %v1341_v52 = vsel %vm7573_vm2, %v1336_v32, %v1340_v24  ;;  %v1520_v22 = vshll.u32 %v1246_v27, 16  ;;  %v1516_v9 = vrot.slane %v1514_v61, 5  ;;  %v1122_v61 = vld [vmem:[#allocation2 + $0x18] sm:$0xf] }
  0xe7   : > { %v6238_v46 = vcombine.low %v1331_v58, %v1341_v52  ;;  %v1494_v5 = vrot.slane %v1493_v40, 4  ;;  %v1504_v34 = vrot.slane %v1503_v0, 4  ;;  %v1524_v30 = vshrl.u32 %v1246_v27, 16  ;;  %v1126_v52 = vld [vmem:[#allocation2 + $0x20] sm:$0x1] }
  0xe8   : > { %v1522_v11 = vrot.slane %v1520_v22, 5  ;;  %v1530_v36 = vshll.u32 %v1284_v50, 16  ;;  %v1517_v1 = vor.u32 %v1516_v9, %v1513_v29  ;;  %v807_v24 = vshrl.u32 %v8009_v41, 16  ;;  %v7336_v50 = vld [vmem:[%s10510_s3 + $0xa8] sm:$0xff]  }
  0xe9   : > { %6883 = vmatmul.mubr.bf16.vlgmr.msra.gmra.mxu0 %v6238_v46  ;;  %v1499_v19 = vsel %vm7573_vm2, %v1494_v5, %v1498_v3  ;;  %v810_v18 = vshll.u32 %v8009_v41, 16  ;;  %v1509_v17 = vsel %vm7573_vm2, %v1504_v34, %v1508_v14  ;;  %v1526_v13 = vrot.slane %v1524_v30, 4 }
  0xea   : > { %v1532_v4 = vrot.slane %v1530_v36, 5  ;;  %6963 = vmatpush3.bf16.msra.mxu0 %v7746_v2  ;;  %v815_v32 = vshrl.u32 %v8011_v43, 16  ;;  %v6245_v56 = vcombine.low %v1499_v19, %v1509_v17  ;;  %v1518_v40 = vrot.slane %v1517_v1, 4  ;;  %v7333_v19 = vld [vmem:[%s10510_s3 + $0x30] sm:$0xff]  }
  0xeb   : > { %6964 = vmatprep.subr.bf16.mxu0 %v7334_v7  ;;  %v809_v27 = vrot.slane %v807_v24, 7  ;;  %v818_v3 = vshll.u32 %v8011_v43, 16  ;;  %v1527_v41 = vor.u32 %v1526_v13, %v1522_v11  ;;  %vm544_vm4 = vcmp.ge.f32.partialorder %v8019_v48, 0.0 }
  0xec   : > { %v817_v60 = vrot.slane %v815_v32, 7  ;;  %vm545_vm5 = vcmp.ge.f32.partialorder %v8024_v54, 0.0  ;;  %6898 = vmatprep.mubr.bf16.mxu1 %v6245_v56  ;;  %v1523_v2 = vsel %vm7573_vm2, %v1518_v40, %v1522_v11  ;;  %v576_v43 = vmul.f32 0.2, %v8019_v48  ;;  %v7338_v11 = vld [vmem:[%s10510_s3 + $0xa0] sm:$0xff]  }
  0xed   : > { %v812_v14 = vor.u32 %v810_v18, %v809_v27  ;;  %v813_v58 = vrot.slane %v809_v27, 4  ;;  %v1528_v0 = vrot.slane %v1527_v41, 4  ;;  %v577_v5 = vmul.f32 0.2, %v8024_v54  ;;  %v7340_v27 = vld [vmem:[%s10510_s3 + $0x98] sm:$0xff]  }
  0xee   : > { %6965 = vmatpush3.bf16.msra.mxu0 %v7334_v7  ;;  %v820_v22 = vor.u32 %v818_v3, %v817_v60  ;;  %v822_v46 = vrot.slane %v817_v60, 4  ;;  %v608_v9 = vsel %vm544_vm4, %v8019_v48, %v576_v43  ;;  %v527_v34 = vadd.f32 %v7932_v23, %v488_v20 }
  0xef   : > { %v1123_v29 = vsel %vm7970_vm15, %v812_v14, %v1122_v61  ;;  %vm558_vm6 = vcmp.ge.f32.partialorder %v8033_v44, 0.0  ;;  %6966 = vmatprep.subr.bf16.mxu0 %v7336_v50  ;;  %v1533_v7 = vsel %vm7573_vm2, %v1528_v0, %v1532_v4  ;;  %v609_v48 = vsel %vm545_vm5, %v8024_v54, %v577_v5  ;;  %v1129_v61 = vld [vmem:[#allocation2 + $0x24] sm:$0xf]  ;;  %v7342_v0 = vld [vmem:[%s10510_s3 + $0x90] sm:$0xff]  }
  0xf0   : > { %v821_v30 = vsel %vm7964_vm14, %v813_v58, %v820_v22  ;;  %1124 = vst [vmem:[#allocation2 + $0x18] sm:$0xf] %v1123_v29  ;;  %v1127_v36 = vsel %vm7978_vm0, %v822_v46, %v1126_v52  ;;  %v6246_v20 = vcombine.low %v1523_v2, %v1533_v7  ;;  %v6622_v1 = vpack.c.bf16 %v608_v9, %v608_v9  ;;  %v1133_v58 = vld [vmem:[#allocation2 + $0x2c] sm:$0x1] }
  0xf1   : > { %1125 = vst [vmem:[#allocation2 + $0x1c] sm:$0xf] %v821_v30  ;;  %1128 = vst [vmem:[#allocation2 + $0x20] sm:$0x1] %v1127_v36  ;;  %v6623_v24 = vpack.c.bf16 %v609_v48, %v609_v48  ;;  %vm559_vm7 = vcmp.ge.f32.partialorder %v527_v34, 0.0  ;;  %v450_v13 = vmul.f32 %v7921_v39, %v7841_v10  ;;  %v489_v4 = vmul.f32 %v7919_v15, %v8029_v63 }
  0xf2   : > { %v590_v18 = vmul.f32 0.2, %v8033_v44  ;;  %v591_v17 = vmul.f32 0.2, %v527_v34  ;;  %6967 = vmatpush3.bf16.msra.mxu0 %v7336_v50  ;;  %6899 = vmatmul.mubr.bf16.vlgmr.msra.gmra.mxu1 %v6246_v20  ;;  %v824_v54 = vshrl.u32 %v6622_v1, 16  ;;  %v827_v32 = vshll.u32 %v6622_v1, 16 }
  0xf3   : > { %v832_v56 = vshrl.u32 %v6623_v24, 16  ;;  %v835_v40 = vshll.u32 %v6623_v24, 16  ;;  %6968 = vmatprep.subr.bf16.mxu0 %v7338_v11  ;;  %6915 = vmatpush3.bf16.msra.mxu1 %v7757_v37  ;;  %v490_v63 = vmul.f32 %v7919_v15, %v450_v13  ;;  %v528_v50 = vadd.f32 %v7932_v23, %v489_v4  ;;  %v7335_v37 = vld [vmem:[%s10510_s3 + $0x28] sm:$0xff]  }
  0xf4   : > { %v622_v10 = vsel %vm558_vm6, %v8033_v44, %v590_v18  ;;  %v623_v3 = vsel %vm559_vm7, %v527_v34, %v591_v17  ;;  %6916 = vmatprep.subr.bf16.mxu1 %v7333_v19  ;;  %v826_v41 = vrot.slane %v824_v54, 7  ;;  %v435_v43 = vmul.f32 %v7921_v39, %v7739_v62  ;;  %v7344_v4 = vld [vmem:[%s10510_s3 + $0x88] sm:$0xff]  }
  0xf5   : > { %v834_v60 = vrot.slane %v832_v56, 7  ;;  %v6636_v2 = vpack.c.bf16 %v622_v10, %v622_v10  ;;  %v8094_v14 = vpack.c.bf16 %v623_v3, %v623_v3  ;;  %v529_v52 = vadd.f32 %v7932_v23, %v490_v63 }
  0xf6   : > { %vm560_vm8 = vcmp.ge.f32.partialorder %v528_v50, 0.0  ;;  %v592_v44 = vmul.f32 0.2, %v528_v50  ;;  %6969 = vmatpush3.bf16.msra.mxu0 %v7338_v11  ;;  %v829_v46 = vor.u32 %v827_v32, %v826_v41  ;;  %v830_v5 = vrot.slane %v826_v41, 4 }
  0xf7   : > { %v1231_v22 = vld [vmem:[#allocation2 + $0x18] sm:$0xf]  ;;  %v837_v29 = vor.u32 %v835_v40, %v834_v60  ;;  %v839_v9 = vrot.slane %v834_v60, 4  ;;  %6970 = vmatprep.subr.bf16.mxu0 %v7340_v27  ;;  %6917 = vmatpush3.bf16.msra.mxu1 %v7333_v19  ;;  %v8108_v62 = vmul.f32 %v7921_v39, %v7750_v33  ;;  %v7337_v19 = vld [vmem:[%s10510_s3 + $0x20] sm:$0xff]   ;;  %v943_v40 = vshrl.u32 %v6636_v2, 16 }
  0xf8   : > { %v1232_v34 = vld [vmem:[#allocation2 + $0x1c] sm:$0xf]  ;;  %v1277_v7 = vld [vmem:[#allocation2 + $0x20] sm:$0x1]  ;;  %v1343_v30 = vshrl.u32 %v1231_v22, 16  ;;  %v1346_v36 = vshll.u32 %v1231_v22, 16  ;;  %v624_v11 = vsel %vm560_vm8, %v528_v50, %v592_v44  ;;  %6918 = vmatprep.subr.bf16.mxu1 %v7335_v37  ;;  %v1130_v13 = vsel %vm7970_vm15, %v829_v46, %v1129_v61 }
  0xf9   : > { %v1352_v48 = vshll.u32 %v1232_v34, 16  ;;  %v1356_v20 = vshrl.u32 %v1232_v34, 16  ;;  %v1362_v1 = vshll.u32 %v1277_v7, 16  ;;  %v838_v24 = vsel %vm7964_vm14, %v830_v5, %v837_v29  ;;  %1131 = vst [vmem:[#allocation2 + $0x24] sm:$0xf] %v1130_v13 }
  0xfa   : > { %v1345_v18 = vrot.slane %v1343_v30, 4  ;;  %v1348_v17 = vrot.slane %v1346_v36, 5  ;;  %1132 = vst [vmem:[#allocation2 + $0x28] sm:$0xf] %v838_v24  ;;  %v1134_v33 = vsel %vm7978_vm0, %v839_v9, %v1133_v58  ;;  %6971 = vmatpush3.bf16.msra.mxu0 %v7340_v27  ;;  %v946_v3 = vshll.u32 %v6636_v2, 16  ;;  %v7339_v27 = vld [vmem:[%s10510_s3 + $0x18] sm:$0xff]  }
  0xfb   : > { %v1354_v54 = vrot.slane %v1352_v48, 5  ;;  %v1358_v32 = vrot.slane %v1356_v20, 4  ;;  %v1364_v56 = vrot.slane %v1362_v1, 5  ;;  %1135 = vst [vmem:[#allocation2 + $0x2c] sm:$0x1] %v1134_v33  ;;  %6972 = vmatprep.subr.bf16.mxu0 %v7342_v0  ;;  %v951_v63 = vshrl.u32 %v8094_v14, 16  ;;  %6919 = vmatpush3.bf16.msra.mxu1 %v7335_v37 }
  0xfc   : > { %v1349_v10 = vor.u32 %v1348_v17, %v1345_v18  ;;  %v954_v50 = vshll.u32 %v8094_v14, 16  ;;  %v945_v60 = vrot.slane %v943_v40, 7  ;;  %vm561_vm9 = vcmp.ge.f32.partialorder %v529_v52, 0.0  ;;  %6920 = vmatprep.subr.bf16.mxu1 %v7337_v19  ;;  %v1178_v22 = vld [vmem:[#allocation2 + $0x78] sm:$0xf]  ;;  %v7346_v9 = vld [vmem:[%s10510_s3 + $0x80] sm:$0xff]  }
  0xfd   : > { %v1359_v41 = vor.u32 %v1358_v32, %v1354_v54  ;;  %v593_v61 = vmul.f32 0.2, %v529_v52  ;;  %v953_v44 = vrot.slane %v951_v63, 7  ;;  %v6638_v46 = vpack.c.bf16 %v624_v11, %v624_v11  ;;  %v1182_v36 = vld [vmem:[#allocation2 + $0x80] sm:$0x1]  ;;  %v7341_v1 = vld [vmem:[%s10510_s3 + $0x10] sm:$0xff]  }
  0xfe   : > { %v1350_v58 = vrot.slane %v1349_v10, 4  ;;  %v475_v2 = vmul.f32 %v7919_v15, %v435_v43  ;;  %6973 = vmatpush3.bf16.msra.mxu0 %v7342_v0  ;;  %v948_v29 = vor.u32 %v946_v3, %v945_v60  ;;  %v949_v14 = vrot.slane %v945_v60, 4  ;;  %v1185_v10 = vld [vmem:[#allocation2 + $0x84] sm:$0xf]  ;;  %v7343_v3 = vld [vmem:[%s10510_s3 + $0x8] sm:$0xff]   ;;  %v7350_v63 = vld [vmem:[%s10510_s3 + $0x138] sm:$0xff]  }
  0xff   : > { %v1360_v5 = vrot.slane %v1359_v41, 4  ;;  %v625_v37 = vsel %vm561_vm9, %v529_v52, %v593_v61  ;;  %6974 = vmatprep.subr.bf16.mxu0 %v7344_v4  ;;  %v956_v7 = vor.u32 %v954_v50, %v953_v44  ;;  %v958_v30 = vrot.slane %v953_v44, 4  ;;  %6921 = vmatpush3.bf16.msra.mxu1 %v7337_v19 }
 0x100   : > { %v1355_v34 = vsel %vm7573_vm2, %v1350_v58, %v1354_v54  ;;  %v6639_v48 = vpack.c.bf16 %v625_v37, %v625_v37  ;;  %v1179_v52 = vsel %vm7970_vm15, %v948_v29, %v1178_v22  ;;  %v960_v11 = vshrl.u32 %v6638_v46, 16  ;;  %6922 = vmatprep.subr.bf16.mxu1 %v7339_v27  ;;  %v1233_v18 = vld [vmem:[#allocation2 + $0x24] sm:$0xf] }
 0x101   : > { %v1365_v43 = vsel %vm7573_vm2, %v1360_v5, %v1364_v56  ;;  %v1234_v0 = vld [vmem:[#allocation2 + $0x28] sm:$0xf]  ;;  %v963_v20 = vshll.u32 %v6638_v46, 16  ;;  %v957_v19 = vsel %vm7964_vm14, %v949_v14, %v956_v7  ;;  %1180 = vst [vmem:[#allocation2 + $0x78] sm:$0xf] %v1179_v52  ;;  %v1367_v54 = vshrl.u32 %v1233_v18, 16 }
 0x102   : > { %v6239_v24 = vcombine.low %v1355_v34, %v1365_v43  ;;  %v1278_v17 = vld [vmem:[#allocation2 + $0x2c] sm:$0x1]  ;;  %v1376_v13 = vshll.u32 %v1234_v0, 16  ;;  %v1380_v33 = vshrl.u32 %v1234_v0, 16  ;;  %6975 = vmatpush3.bf16.msra.mxu0 %v7344_v4  ;;  %v1370_v32 = vshll.u32 %v1233_v18, 16 }
 0x103   : > { %v1386_v56 = vshll.u32 %v1278_v17, 16  ;;  %1181 = vst [vmem:[#allocation2 + $0x7c] sm:$0xf] %v957_v19  ;;  %v1183_v40 = vsel %vm7978_vm0, %v958_v30, %v1182_v36  ;;  %6976 = vmatprep.subr.bf16.mxu0 %v7346_v9  ;;  %v962_v41 = vrot.slane %v960_v11, 7  ;;  %v968_v60 = vshrl.u32 %v6639_v48, 16  ;;  %6923 = vmatpush3.bf16.msra.mxu1 %v7339_v27 }
 0x104   : > { %6886 = vmatprep.mubr.bf16.mxu0 %v6239_v24  ;;  %v1378_v50 = vrot.slane %v1376_v13, 5  ;;  %v1382_v4 = vrot.slane %v1380_v33, 4  ;;  %1184 = vst [vmem:[#allocation2 + $0x80] sm:$0x1] %v1183_v40  ;;  %v1369_v61 = vrot.slane %v1367_v54, 4  ;;  %v1372_v58 = vrot.slane %v1370_v32, 5  ;;  %6924 = vmatprep.subr.bf16.mxu1 %v7341_v1 }
 0x105   : > { %v1388_v44 = vrot.slane %v1386_v56, 5  ;;  %v971_v22 = vshll.u32 %v6639_v48, 16  ;;  %v965_v5 = vor.u32 %v963_v20, %v962_v41  ;;  %v966_v29 = vrot.slane %v962_v41, 4  ;;  %v1189_v0 = vld [vmem:[#allocation2 + $0x8c] sm:$0x1] }
 0x106   : > { %v1383_v46 = vor.u32 %v1382_v4, %v1378_v50  ;;  %v970_v14 = vrot.slane %v968_v60, 7  ;;  %6977 = vmatpush3.bf16.msra.mxu0 %v7346_v9  ;;  %v1373_v37 = vor.u32 %v1372_v58, %v1369_v61  ;;  %v476_v34 = vmul.f32 %v7919_v15, %v8108_v62  ;;  %v7345_v9 = vld [vmem:[%s10510_s3] sm:$0xff]  }
 0x107   : > { %v514_v7 = vadd.f32 %v7932_v23, %v475_v2  ;;  %v437_v30 = vmul.f32 %v7921_v39, %v7762_v8  ;;  %7058 = vmatprep.subr.bf16.mxu0 %v7350_v63  ;;  %v1186_v48 = vsel %vm7970_vm15, %v965_v5, %v1185_v10  ;;  %6925 = vmatpush3.bf16.msra.mxu1 %v7341_v1 }
 0x108   : > { %v1384_v27 = vrot.slane %v1383_v46, 4  ;;  %v973_v36 = vor.u32 %v971_v22, %v970_v14  ;;  %v975_v43 = vrot.slane %v970_v14, 4  ;;  %v1374_v52 = vrot.slane %v1373_v37, 4  ;;  %v1247_v62 = vld [vmem:[#allocation2 + $0x78] sm:$0xf]  ;;  %6926 = vmatprep.subr.bf16.mxu1 %v7343_v3 }
 0x109   : > { %1187 = vst [vmem:[#allocation2 + $0x84] sm:$0xf] %v1186_v48  ;;  %v515_v2 = vadd.f32 %v7932_v23, %v476_v34  ;;  %vm546_vm10 = vcmp.ge.f32.partialorder %v514_v7, 0.0  ;;  %v578_v8 = vmul.f32 0.2, %v514_v7  ;;  %v1535_v24 = vshrl.u32 %v1247_v62, 16 }
 0x10a   : > { %v1389_v11 = vsel %vm7573_vm2, %v1384_v27, %v1388_v44  ;;  %v1248_v20 = vld [vmem:[#allocation2 + $0x7c] sm:$0xf]  ;;  %v1538_v18 = vshll.u32 %v1247_v62, 16  ;;  %v974_v1 = vsel %vm7964_vm14, %v966_v29, %v973_v36  ;;  %v1379_v17 = vsel %vm7573_vm2, %v1374_v52, %v1378_v50 }
 0x10b   : > { %v1285_v13 = vld [vmem:[#allocation2 + $0x80] sm:$0x1]  ;;  %v1544_v33 = vshll.u32 %v1248_v20, 16  ;;  %v1548_v19 = vshrl.u32 %v1248_v20, 16  ;;  %1188 = vst [vmem:[#allocation2 + $0x88] sm:$0xf] %v974_v1  ;;  %v1190_v54 = vsel %vm7978_vm0, %v975_v43, %v1189_v0  ;;  %v6240_v32 = vcombine.low %v1379_v17, %v1389_v11  ;;  %6927 = vmatpush3.bf16.msra.mxu1 %v7343_v3 }
 0x10c   : > { %v1537_v56 = vrot.slane %v1535_v24, 4  ;;  %v1540_v40 = vrot.slane %v1538_v18, 5  ;;  %v1554_v10 = vshll.u32 %v1285_v13, 16  ;;  %1191 = vst [vmem:[#allocation2 + $0x8c] sm:$0x1] %v1190_v54  ;;  %vm547_vm11 = vcmp.ge.f32.partialorder %v515_v2, 0.0  ;;  %6928 = vmatprep.subr.bf16.mxu1 %v7345_v9 }
 0x10d   : > { %v1546_v63 = vrot.slane %v1544_v33, 5  ;;  %v1550_v4 = vrot.slane %v1548_v19, 4  ;;  %v579_v41 = vmul.f32 0.2, %v515_v2  ;;  %v7348_v50 = vld [vmem:[%s10510_s3 + $0xf8] sm:$0xff]   ;;  %6887 = vmatmul.mubr.bf16.gmra.mxu0 %v6240_v32  ;;  %v610_v58 = vsel %vm546_vm10, %v514_v7, %v578_v8 }
 0x10e   : > { %v1541_v60 = vor.u32 %v1540_v40, %v1537_v56  ;;  %v1556_v61 = vrot.slane %v1554_v10, 5  ;;  %v438_v44 = vmul.f32 %v7921_v39, %v7769_v12  ;;  %v6624_v3 = vpack.c.bf16 %v610_v58, %v610_v58 }
 0x10f   : > { %v1551_v22 = vor.u32 %v1550_v4, %v1546_v63  ;;  %v611_v46 = vsel %vm547_vm11, %v515_v2, %v579_v41  ;;  %v477_v5 = vmul.f32 %v7919_v15, %v437_v30  ;;  %v451_v27 = vmul.f32 %v7921_v39, %v7847_v16  ;;  %6929 = vmatpush3.bf16.msra.mxu1 %v7345_v9  ;;  %v1136_v9 = vld [vmem:[#allocation2 + $0x30] sm:$0xf] }
 0x110   : > { %v1542_v29 = vrot.slane %v1541_v60, 4  ;;  %v1249_v14 = vld [vmem:[#allocation2 + $0x84] sm:$0xf]  ;;  %v6625_v37 = vpack.c.bf16 %v611_v46, %v611_v46  ;;  %v478_v34 = vmul.f32 %v7919_v15, %v438_v44  ;;  %v841_v48 = vshrl.u32 %v6624_v3, 16  ;;  %7010 = vmatprep.subr.bf16.mxu1 %v7348_v50 }
 0x111   : > { %v1552_v36 = vrot.slane %v1551_v22, 4  ;;  %v1559_v43 = vshrl.u32 %v1249_v14, 16  ;;  %v1562_v7 = vshll.u32 %v1249_v14, 16  ;;  %v844_v52 = vshll.u32 %v6624_v3, 16 }
 0x112   : > { %v1547_v12 = vsel %vm7573_vm2, %v1542_v29, %v1546_v63  ;;  %v1250_v0 = vld [vmem:[#allocation2 + $0x88] sm:$0xf]  ;;  %v849_v30 = vshrl.u32 %v6625_v37, 16  ;;  %v852_v62 = vshll.u32 %v6625_v37, 16  ;;  %v843_v17 = vrot.slane %v841_v48, 7 }
 0x113   : > { %v1557_v2 = vsel %vm7573_vm2, %v1552_v36, %v1556_v61  ;;  %v1286_v8 = vld [vmem:[#allocation2 + $0x8c] sm:$0x1]  ;;  %v1561_v11 = vrot.slane %v1559_v43, 4  ;;  %v1564_v20 = vrot.slane %v1562_v7, 5  ;;  %v1568_v16 = vshll.u32 %v1250_v0, 16 }
 0x114   : > { %v6247_v24 = vcombine.low %v1547_v12, %v1557_v2  ;;  %v1572_v18 = vshrl.u32 %v1250_v0, 16  ;;  %v1578_v1 = vshll.u32 %v1286_v8, 16  ;;  %v851_v19 = vrot.slane %v849_v30, 7  ;;  %v1140_v63 = vld [vmem:[#allocation2 + $0x38] sm:$0x1] }
 0x115   : > { %v1565_v13 = vor.u32 %v1564_v20, %v1561_v11  ;;  %v1570_v33 = vrot.slane %v1568_v16, 5  ;;  %v516_v54 = vadd.f32 %v7932_v23, %v477_v5  ;;  %v846_v40 = vor.u32 %v844_v52, %v843_v17 }
 0x116   : > { %6902 = vmatprep.mubr.bf16.mxu1 %v6247_v24  ;;  %v1574_v32 = vrot.slane %v1572_v18, 4  ;;  %v1580_v56 = vrot.slane %v1578_v1, 5  ;;  %v847_v10 = vrot.slane %v843_v17, 4  ;;  %v854_v41 = vor.u32 %v852_v62, %v851_v19  ;;  %v8216_v1 = vld [vmem:[%s7917_s27] ss:$0 sm:$0xff] }
 0x117   : > { %v1566_v4 = vrot.slane %v1565_v13, 4  ;;  %v856_v50 = vrot.slane %v851_v19, 4  ;;  %v517_v60 = vadd.f32 %v7932_v23, %v478_v34  ;;  %v1137_v58 = vsel %vm7970_vm15, %v846_v40, %v1136_v9  ;;  %v1143_v9 = vld [vmem:[#allocation2 + $0x3c] sm:$0xf] }
 0x118   : > { %v1575_v61 = vor.u32 %v1574_v32, %v1570_v33  ;;  %vm548_vm12 = vcmp.ge.f32.partialorder %v516_v54, 0.0  ;;  %v580_v44 = vmul.f32 0.2, %v516_v54  ;;  %v855_v46 = vsel %vm7964_vm14, %v847_v10, %v854_v41  ;;  %1138 = vst [vmem:[#allocation2 + $0x30] sm:$0xf] %v1137_v58 }
 0x119   : > { %v1571_v22 = vsel %vm7573_vm2, %v1566_v4, %v1570_v33  ;;  %v1141_v3 = vsel %vm7978_vm0, %v856_v50, %v1140_v63  ;;  %vm549_vm13 = vcmp.ge.f32.partialorder %v517_v60, 0.0  ;;  %1139 = vst [vmem:[#allocation2 + $0x34] sm:$0xf] %v855_v46  ;;  %v581_v29 = vmul.f32 0.2, %v517_v60 }
 0x11a   : > { %v1576_v5 = vrot.slane %v1575_v61, 4  ;;  %1142 = vst [vmem:[#allocation2 + $0x38] sm:$0x1] %v1141_v3  ;;  %v612_v14 = vsel %vm548_vm12, %v516_v54, %v580_v44  ;;  %v452_v37 = vmul.f32 %v7921_v39, %v7853_v42  ;;  %v491_v36 = vmul.f32 %v7919_v15, %v451_v27 }
 0x11b   : > { %v6626_v34 = vpack.c.bf16 %v612_v14, %v612_v14  ;;  %v453_v43 = vmul.f32 %v7921_v39, %v7859_v45  ;;  %v454_v7 = vmul.f32 %v7921_v39, %v7865_v47  ;;  %v613_v12 = vsel %vm549_vm13, %v517_v60, %v581_v29  ;;  %v1147_v60 = vld [vmem:[#allocation2 + $0x44] sm:$0x1] }
 0x11c   : > { %v1581_v48 = vsel %vm7573_vm2, %v1576_v5, %v1580_v56  ;;  %v492_v0 = vmul.f32 %v7919_v15, %v452_v37  ;;  %v8205_v52 = vmul.f32 %v7921_v39, %v7775_v21  ;;  %v6627_v30 = vpack.c.bf16 %v613_v12, %v613_v12 }
 0x11d   : > { %v6248_v42 = vcombine.low %v1571_v22, %v1581_v48  ;;  %v858_v62 = vshrl.u32 %v6626_v34, 16  ;;  %v861_v27 = vshll.u32 %v6626_v34, 16  ;;  %v530_v45 = vadd.f32 %v7932_v23, %v491_v36 }
 0x11e   : > { %v531_v2 = vadd.f32 %v7932_v23, %v492_v0  ;;  %v493_v47 = vmul.f32 %v7919_v15, %v453_v43  ;;  %v494_v8 = vmul.f32 %v7919_v15, %v454_v7  ;;  %v866_v20 = vshrl.u32 %v6627_v30, 16 }
 0x11f   : > { %6903 = vmatmul.mubr.bf16.gmra.mxu1 %v6248_v42  ;;  %v860_v11 = vrot.slane %v858_v62, 7  ;;  %v869_v16 = vshll.u32 %v6627_v30, 16  ;;  %v440_v21 = vmul.f32 %v7921_v39, %v7781_v26  ;;  %v8213_v24 = vld [vmem:[#allocation2 + $0x30] sm:$0xf]  ;;  %vm562_vm1 = vcmp.ge.f32.partialorder %v530_v45, 0.0 }
 0x120   : > { %vm563_vm3 = vcmp.ge.f32.partialorder %v531_v2, 0.0  ;;  %v594_v18 = vmul.f32 0.2, %v530_v45  ;;  %v532_v23 = vadd.f32 %v8216_v1, %v493_v47  ;;  %v8219_v17 = vld [vmem:[#allocation2 + $0x34] sm:$0xf]  ;;  %v1391_v33 = vshrl.u32 %v8213_v24, 16 }
 0x121   : > { %v8221_v13 = vld [vmem:[#allocation2 + $0x38] sm:$0x1]  ;;  %v1394_v19 = vshll.u32 %v8213_v24, 16  ;;  %v863_v54 = vor.u32 %v861_v27, %v860_v11  ;;  %v533_v26 = vadd.f32 %v8216_v1, %v494_v8  ;;  %v1400_v32 = vshll.u32 %v8219_v17, 16  ;;  %v1192_v8 = vld [vmem:[#allocation2 + $0x90] sm:$0xf] }
 0x122   : > { %v1404_v56 = vshrl.u32 %v8219_v17, 16  ;;  %v1410_v40 = vshll.u32 %v8221_v13, 16  ;;  %v864_v10 = vrot.slane %v860_v11, 4  ;;  %v1393_v63 = vrot.slane %v1391_v33, 4  ;;  %v1196_v33 = vld [vmem:[#allocation2 + $0x98] sm:$0x1] }
 0x123   : > { %v1396_v4 = vrot.slane %v1394_v19, 5  ;;  %v868_v41 = vrot.slane %v866_v20, 7  ;;  %v1144_v50 = vsel %vm7970_vm15, %v863_v54, %v1143_v9  ;;  %v1402_v61 = vrot.slane %v1400_v32, 5 }
 0x124   : > { %v1406_v58 = vrot.slane %v1404_v56, 4  ;;  %v1412_v44 = vrot.slane %v1410_v40, 5  ;;  %1145 = vst [vmem:[#allocation2 + $0x3c] sm:$0xf] %v1144_v50  ;;  %v595_v22 = vmul.f32 0.2, %v531_v2  ;;  %v626_v29 = vsel %vm562_vm1, %v530_v45, %v594_v18 }
 0x125   : > { %v1397_v46 = vor.u32 %v1396_v4, %v1393_v63  ;;  %v871_v3 = vor.u32 %v869_v16, %v868_v41  ;;  %v873_v5 = vrot.slane %v868_v41, 4  ;;  %v6640_v34 = vpack.c.bf16 %v626_v29, %v626_v29 }
 0x126   : > { %v1407_v14 = vor.u32 %v1406_v58, %v1402_v61  ;;  %v627_v37 = vsel %vm563_vm3, %v531_v2, %v595_v22  ;;  %vm564_vm4 = vcmp.ge.f32.partialorder %v532_v23, 0.0  ;;  %vm565_vm5 = vcmp.ge.f32.partialorder %v533_v26, 0.0 }
 0x127   : > { %v1398_v36 = vrot.slane %v1397_v46, 4  ;;  %v872_v43 = vsel %vm7964_vm14, %v864_v10, %v871_v3  ;;  %v1148_v7 = vsel %vm7978_vm0, %v873_v5, %v1147_v60  ;;  %v6641_v48 = vpack.c.bf16 %v627_v37, %v627_v37 }
 0x128   : > { %v1408_v12 = vrot.slane %v1407_v14, 4  ;;  %1146 = vst [vmem:[#allocation2 + $0x40] sm:$0xf] %v872_v43  ;;  %1149 = vst [vmem:[#allocation2 + $0x44] sm:$0x1] %v1148_v7  ;;  %v977_v0 = vshrl.u32 %v6640_v34, 16  ;;  %v479_v20 = vmul.f32 %v7919_v15, %v8205_v52  ;;  %v480_v54 = vmul.f32 %v7919_v15, %v440_v21 }
 0x129   : > { %v980_v42 = vshll.u32 %v6640_v34, 16  ;;  %v1403_v30 = vsel %vm7573_vm2, %v1398_v36, %v1402_v61  ;;  %v985_v62 = vshrl.u32 %v6641_v48, 16  ;;  %v988_v27 = vshll.u32 %v6641_v48, 16 }
 0x12a   : > { %v596_v45 = vmul.f32 0.2, %v532_v23  ;;  %v1413_v2 = vsel %vm7573_vm2, %v1408_v12, %v1412_v44  ;;  %v979_v47 = vrot.slane %v977_v0, 7  ;;  %v597_v11 = vmul.f32 0.2, %v533_v26 }
 0x12b   : > { %v6241_v16 = vcombine.low %v1403_v30, %v1413_v2  ;;  %v8243_v9 = vld [vmem:[#allocation2 + $0x3c] sm:$0xf]  ;;  %v987_v18 = vrot.slane %v985_v62, 7  ;;  %v518_v43 = vadd.f32 %v8216_v1, %v479_v20  ;;  %vm2321_vm12 = vcmask 1042432  }
 0x12c   : > { %v628_v19 = vsel %vm564_vm4, %v532_v23, %v596_v45  ;;  %v1415_v32 = vshrl.u32 %v8243_v9, 16  ;;  %v1418_v56 = vshll.u32 %v8243_v9, 16  ;;  %v982_v40 = vor.u32 %v980_v42, %v979_v47  ;;  %v1199_v42 = vld [vmem:[#allocation2 + $0x9c] sm:$0xf] }
 0x12d   : > { %v983_v10 = vrot.slane %v979_v47, 4  ;;  %6890 = vmatprep.mubr.bf16.mxu0 %v6241_v16  ;;  %v990_v63 = vor.u32 %v988_v27, %v987_v18  ;;  %v992_v4 = vrot.slane %v987_v18, 4  ;;  %v629_v52 = vsel %vm565_vm5, %v533_v26, %v597_v11 }
 0x12e   : > { %v6642_v41 = vpack.c.bf16 %v628_v19, %v628_v19  ;;  %v1417_v50 = vrot.slane %v1415_v32, 4  ;;  %v1420_v60 = vrot.slane %v1418_v56, 5  ;;  %v1193_v61 = vsel %vm7970_vm15, %v982_v40, %v1192_v8  ;;  %v1203_v8 = vld [vmem:[#allocation2 + $0xa4] sm:$0x1] }
 0x12f   : > { %v6643_v23 = vpack.c.bf16 %v629_v52, %v629_v52  ;;  %v8252_v58 = vld [vmem:[#allocation2 + $0x40] sm:$0xf]  ;;  %v8254_v21 = vld [vmem:[#allocation2 + $0x44] sm:$0x1]  ;;  %v991_v44 = vsel %vm7964_vm14, %v983_v10, %v990_v63  ;;  %1194 = vst [vmem:[#allocation2 + $0x90] sm:$0xf] %v1193_v61  ;;  %v1197_v22 = vsel %vm7978_vm0, %v992_v4, %v1196_v33  ;;  %v519_v45 = vadd.f32 %v8216_v1, %v480_v54 }
 0x130   : > { %v994_v46 = vshrl.u32 %v6642_v41, 16  ;;  %v997_v26 = vshll.u32 %v6642_v41, 16  ;;  %v1421_v3 = vor.u32 %v1420_v60, %v1417_v50  ;;  %v1424_v5 = vshll.u32 %v8252_v58, 16  ;;  %1195 = vst [vmem:[#allocation2 + $0x94] sm:$0xf] %v991_v44 }
 0x131   : > { %v1428_v29 = vshrl.u32 %v8252_v58, 16  ;;  %v1434_v14 = vshll.u32 %v8254_v21, 16  ;;  %1198 = vst [vmem:[#allocation2 + $0x98] sm:$0x1] %v1197_v22  ;;  %v1002_v34 = vshrl.u32 %v6643_v23, 16  ;;  %v1005_v36 = vshll.u32 %v6643_v23, 16 }
 0x132   : > { %v996_v37 = vrot.slane %v994_v46, 7  ;;  %v1422_v7 = vrot.slane %v1421_v3, 4  ;;  %v1426_v48 = vrot.slane %v1424_v5, 5  ;;  %vm550_vm6 = vcmp.ge.f32.partialorder %v518_v43, 0.0 }
 0x133   : > { %v1430_v12 = vrot.slane %v1428_v29, 4  ;;  %v1436_v0 = vrot.slane %v1434_v14, 5  ;;  %v1004_v27 = vrot.slane %v1002_v34, 7  ;;  %v582_v11 = vmul.f32 0.2, %v518_v43 }
 0x134   : > { %v999_v30 = vor.u32 %v997_v26, %v996_v37  ;;  %v1000_v62 = vrot.slane %v996_v37, 4  ;;  %v1427_v2 = vsel %vm7573_vm2, %v1422_v7, %v1426_v48  ;;  %vm551_vm7 = vcmp.ge.f32.partialorder %v519_v45, 0.0 }
 0x135   : > { %v1431_v47 = vor.u32 %v1430_v12, %v1426_v48  ;;  %v1007_v16 = vor.u32 %v1005_v36, %v1004_v27  ;;  %v1009_v18 = vrot.slane %v1004_v27, 4  ;;  %v583_v32 = vmul.f32 0.2, %v519_v45 }
 0x136   : > { %v1200_v20 = vsel %vm7970_vm15, %v999_v30, %v1199_v42  ;;  %v8269_v19 = vld [vmem:[#allocation2 + $0x90] sm:$0xf]  ;;  %v614_v56 = vsel %vm550_vm6, %v518_v43, %v582_v11  ;;  %v441_v54 = vmul.f32 %v7921_v39, %v7787_v31  ;;  %v442_v34 = vmul.f32 %v7921_v39, %v7793_v35 }
 0x137   : > { %v1432_v33 = vrot.slane %v1431_v47, 4  ;;  %1201 = vst [vmem:[#allocation2 + $0x9c] sm:$0xf] %v1200_v20  ;;  %v8273_v40 = vld [vmem:[#allocation2 + $0x94] sm:$0xf]  ;;  %v1583_v63 = vshrl.u32 %v8269_v19, 16  ;;  %v1008_v52 = vsel %vm7964_vm14, %v1000_v62, %v1007_v16  ;;  %v1204_v41 = vsel %vm7978_vm0, %v1009_v18, %v1203_v8 }
 0x138   : > { %v8275_v10 = vld [vmem:[#allocation2 + $0x98] sm:$0x1]  ;;  %v1586_v4 = vshll.u32 %v8269_v19, 16  ;;  %v1592_v60 = vshll.u32 %v8273_v40, 16  ;;  %v1596_v31 = vshrl.u32 %v8273_v40, 16  ;;  %v615_v46 = vsel %vm551_vm7, %v519_v45, %v583_v32 }
 0x139   : > { %v1437_v50 = vsel %vm7573_vm2, %v1432_v33, %v1436_v0  ;;  %v1602_v61 = vshll.u32 %v8275_v10, 16  ;;  %1202 = vst [vmem:[#allocation2 + $0xa0] sm:$0xf] %v1008_v52  ;;  %1205 = vst [vmem:[#allocation2 + $0xa4] sm:$0x1] %v1204_v41  ;;  %v1585_v44 = vrot.slane %v1583_v63, 4  ;;  %v6628_v29 = vpack.c.bf16 %v614_v56, %v614_v56 }
 0x13a   : > { %v6242_v23 = vcombine.low %v1427_v2, %v1437_v50  ;;  %v1588_v22 = vrot.slane %v1586_v4, 5  ;;  %v1594_v26 = vrot.slane %v1592_v60, 5  ;;  %v1598_v3 = vrot.slane %v1596_v31, 4  ;;  %v1150_v63 = vld [vmem:[#allocation2 + $0x48] sm:$0xf] }
 0x13b   : > { %v1604_v5 = vrot.slane %v1602_v61, 5  ;;  %v6629_v37 = vpack.c.bf16 %v615_v46, %v615_v46  ;;  %v481_v36 = vmul.f32 %v7919_v15, %v441_v54  ;;  %v875_v7 = vshrl.u32 %v6628_v29, 16 }
 0x13c   : > { %6891 = vmatmul.mubr.bf16.gmra.mxu0 %v6242_v23  ;;  %v1589_v14 = vor.u32 %v1588_v22, %v1585_v44  ;;  %v1599_v43 = vor.u32 %v1598_v3, %v1594_v26  ;;  %v878_v48 = vshll.u32 %v6628_v29, 16  ;;  %v455_v12 = vmul.f32 %v7921_v39, %v7871_v49  ;;  %v1154_v44 = vld [vmem:[#allocation2 + $0x50] sm:$0x1] }
 0x13d   : > { %v883_v30 = vshrl.u32 %v6629_v37, 16  ;;  %v886_v62 = vshll.u32 %v6629_v37, 16  ;;  %v482_v27 = vmul.f32 %v7919_v15, %v442_v34  ;;  %v877_v47 = vrot.slane %v875_v7, 7 }
 0x13e   : > { %v1590_v0 = vrot.slane %v1589_v14, 4  ;;  %v8294_v42 = vld [vmem:[#allocation2 + $0x9c] sm:$0xf]  ;;  %v1600_v45 = vrot.slane %v1599_v43, 4  ;;  %v520_v18 = vadd.f32 %v8216_v1, %v481_v36  ;;  %v456_v7 = vmul.f32 %v7921_v39, %v7877_v51 }
 0x13f   : > { %v1607_v2 = vshrl.u32 %v8294_v42, 16  ;;  %v1610_v35 = vshll.u32 %v8294_v42, 16  ;;  %v885_v49 = vrot.slane %v883_v30, 7  ;;  %v521_v20 = vadd.f32 %v8216_v1, %v482_v27 }
 0x140   : > { %v1595_v8 = vsel %vm7573_vm2, %v1590_v0, %v1594_v26  ;;  %v8301_v11 = vld [vmem:[#allocation2 + $0xa0] sm:$0xf]  ;;  %v8303_v16 = vld [vmem:[#allocation2 + $0xa4] sm:$0x1]  ;;  %v1605_v33 = vsel %vm7573_vm2, %v1600_v45, %v1604_v5  ;;  %v880_v50 = vor.u32 %v878_v48, %v877_v47  ;;  %v881_v61 = vrot.slane %v877_v47, 4 }
 0x141   : > { %v1609_v32 = vrot.slane %v1607_v2, 4  ;;  %v1612_v56 = vrot.slane %v1610_v35, 5  ;;  %v1616_v54 = vshll.u32 %v8301_v11, 16  ;;  %v6249_v4 = vcombine.low %v1595_v8, %v1605_v33 }
 0x142   : > { %v1620_v52 = vshrl.u32 %v8301_v11, 16  ;;  %v1626_v41 = vshll.u32 %v8303_v16, 16  ;;  %v888_v23 = vor.u32 %v886_v62, %v885_v49  ;;  %v890_v26 = vrot.slane %v885_v49, 4  ;;  %v8329_v49 = vld [vmem:[#allocation2 + $0x8] sm:$0x1] }
 0x143   : > { %v1613_v60 = vor.u32 %v1612_v56, %v1609_v32  ;;  %v1618_v31 = vrot.slane %v1616_v54, 5  ;;  %6906 = vmatprep.mubr.bf16.mxu1 %v6249_v4  ;;  %v1151_v3 = vsel %vm7970_vm15, %v880_v50, %v1150_v63  ;;  %vm552_vm8 = vcmp.ge.f32.partialorder %v520_v18, 0.0  ;;  %v1157_v63 = vld [vmem:[#allocation2 + $0x54] sm:$0xf] }
 0x144   : > { %v1622_v22 = vrot.slane %v1620_v52, 4  ;;  %v1628_v46 = vrot.slane %v1626_v41, 5  ;;  %v889_v29 = vsel %vm7964_vm14, %v881_v61, %v888_v23  ;;  %1152 = vst [vmem:[#allocation2 + $0x48] sm:$0xf] %v1151_v3  ;;  %vm553_vm9 = vcmp.ge.f32.partialorder %v521_v20, 0.0 }
 0x145   : > { %v1614_v5 = vrot.slane %v1613_v60, 4  ;;  %1153 = vst [vmem:[#allocation2 + $0x4c] sm:$0xf] %v889_v29  ;;  %v1155_v37 = vsel %vm7978_vm0, %v890_v26, %v1154_v44  ;;  %v584_v34 = vmul.f32 0.2, %v520_v18  ;;  %v495_v48 = vmul.f32 %v7919_v15, %v455_v12 }
 0x146   : > { %v1623_v14 = vor.u32 %v1622_v22, %v1618_v31  ;;  %v585_v36 = vmul.f32 0.2, %v521_v20  ;;  %1156 = vst [vmem:[#allocation2 + $0x50] sm:$0x1] %v1155_v37  ;;  %v457_v0 = vmul.f32 %v7921_v39, %v7883_v53  ;;  %v458_v45 = vmul.f32 %v7921_v39, %v7889_v55  ;;  %v3149_v39 = vld [vmem:[#allocation2 + $0x20] sm:$0x1] }
 0x147   : > { %v1619_v43 = vsel %vm7573_vm2, %v1614_v5, %v1618_v31  ;;  %v616_v62 = vsel %vm552_vm8, %v520_v18, %v584_v34  ;;  %v496_v47 = vmul.f32 %v7919_v15, %v456_v7  ;;  %v534_v8 = vadd.f32 %v8216_v1, %v495_v48 }
 0x148   : > { %v1624_v30 = vrot.slane %v1623_v14, 4  ;;  %v617_v27 = vsel %vm553_vm9, %v521_v20, %v585_v36  ;;  %v6630_v2 = vpack.c.bf16 %v616_v62, %v616_v62  ;;  %v2329_v51 = vrot.slane %v8329_v49, 5 }
 0x149   : > { %v6631_v35 = vpack.c.bf16 %v617_v27, %v617_v27  ;;  %v497_v53 = vmul.f32 %v7919_v15, %v457_v0  ;;  %v498_v18 = vmul.f32 %v7919_v15, %v458_v45  ;;  %v535_v4 = vadd.f32 %v8216_v1, %v496_v47 }
 0x14a   : > { %v1629_v12 = vsel %vm7573_vm2, %v1624_v30, %v1628_v46  ;;  %v892_v33 = vshrl.u32 %v6630_v2, 16  ;;  %v895_v55 = vshll.u32 %v6630_v2, 16  ;;  %vm566_vm10 = vcmp.ge.f32.partialorder %v534_v8, 0.0 }
 0x14b   : > { %v6250_v20 = vcombine.low %v1619_v43, %v1629_v12  ;;  %v900_v32 = vshrl.u32 %v6631_v35, 16  ;;  %v8336_v56 = vld [vmem:[#allocation2 + $0x48] sm:$0xf]  ;;  %v903_v54 = vshll.u32 %v6631_v35, 16  ;;  %v598_v52 = vmul.f32 0.2, %v534_v8 }
 0x14c   : > { %v8339_v41 = vld [vmem:[#allocation2 + $0x4c] sm:$0xf]  ;;  %v1439_v50 = vshrl.u32 %v8336_v56, 16  ;;  %v1442_v60 = vshll.u32 %v8336_v56, 16  ;;  %v894_v31 = vrot.slane %v892_v33, 7  ;;  %vm567_vm11 = vcmp.ge.f32.partialorder %v535_v4, 0.0 }
 0x14d   : > { %6907 = vmatmul.mubr.bf16.gmra.mxu1 %v6250_v20  ;;  %v902_v61 = vrot.slane %v900_v32, 7  ;;  %v8343_v23 = vld [vmem:[#allocation2 + $0x50] sm:$0x1]  ;;  %v1448_v44 = vshll.u32 %v8339_v41, 16  ;;  %v1452_v22 = vshrl.u32 %v8339_v41, 16  ;;  %v630_v46 = vsel %vm566_vm10, %v534_v8, %v598_v52 }
 0x14e   : > { %v1441_v26 = vrot.slane %v1439_v50, 4  ;;  %v1444_v3 = vrot.slane %v1442_v60, 5  ;;  %v1458_v5 = vshll.u32 %v8343_v23, 16  ;;  %v897_v29 = vor.u32 %v895_v55, %v894_v31  ;;  %v1161_v43 = vld [vmem:[#allocation2 + $0x5c] sm:$0x1] }
 0x14f   : > { %v1450_v14 = vrot.slane %v1448_v44, 5  ;;  %v1454_v37 = vrot.slane %v1452_v22, 4  ;;  %v898_v34 = vrot.slane %v894_v31, 4  ;;  %v905_v36 = vor.u32 %v903_v54, %v902_v61  ;;  %v2273_v52 = vld [vmem:[#allocation2] sm:$0xe] }
 0x150   : > { %v1445_v7 = vor.u32 %v1444_v3, %v1441_v26  ;;  %v1460_v48 = vrot.slane %v1458_v5, 5  ;;  %v907_v0 = vrot.slane %v902_v61, 4  ;;  %v1158_v30 = vsel %vm7970_vm15, %v897_v29, %v1157_v63  ;;  %v1206_v44 = vld [vmem:[#allocation2 + $0xa8] sm:$0xf]  ;;  %v1210_v29 = vld [vmem:[#allocation2 + $0xb0] sm:$0x1] }
 0x151   : > { %v1455_v62 = vor.u32 %v1454_v37, %v1450_v14  ;;  %v906_v27 = vsel %vm7964_vm14, %v898_v34, %v905_v36  ;;  %1159 = vst [vmem:[#allocation2 + $0x54] sm:$0xf] %v1158_v30  ;;  %v599_v45 = vmul.f32 0.2, %v535_v4  ;;  %v6644_v2 = vpack.c.bf16 %v630_v46, %v630_v46 }
 0x152   : > { %v1446_v35 = vrot.slane %v1445_v7, 4  ;;  %1160 = vst [vmem:[#allocation2 + $0x58] sm:$0xf] %v906_v27  ;;  %v1162_v47 = vsel %vm7978_vm0, %v907_v0, %v1161_v43  ;;  %v536_v8 = vadd.f32 %v8216_v1, %v497_v53  ;;  %v537_v12 = vadd.f32 %v8216_v1, %v498_v18  ;;  %v8369_v0 = vld [vmem:[#allocation2 + $0x4] sm:$0xf] }
 0x153   : > { %v1456_v20 = vrot.slane %v1455_v62, 4  ;;  %1163 = vst [vmem:[#allocation2 + $0x5c] sm:$0x1] %v1162_v47  ;;  %v631_v33 = vsel %vm567_vm11, %v535_v4, %v599_v45  ;;  %v1011_v55 = vshrl.u32 %v6644_v2, 16  ;;  %v1014_v32 = vshll.u32 %v6644_v2, 16 }
 0x154   : > { %v1451_v54 = vsel %vm7573_vm2, %v1446_v35, %v1450_v14  ;;  %v6645_v63 = vpack.c.bf16 %v631_v33, %v631_v33  ;;  %vm568_vm13 = vcmp.ge.f32.partialorder %v536_v8, 0.0  ;;  %vm569_vm1 = vcmp.ge.f32.partialorder %v537_v12, 0.0 }
 0x155   : > { %v1461_v50 = vsel %vm7573_vm2, %v1456_v20, %v1460_v48  ;;  %v1013_v60 = vrot.slane %v1011_v55, 7  ;;  %v600_v53 = vmul.f32 0.2, %v536_v8  ;;  %v601_v31 = vmul.f32 0.2, %v537_v12 }
 0x156   : > { %v6243_v1 = vcombine.low %v1451_v54, %v1461_v50  ;;  %v1019_v18 = vshrl.u32 %v6645_v63, 16  ;;  %v1022_v61 = vshll.u32 %v6645_v63, 16  ;;  %vm2322_vm3 = vcmask 1046532   ;;  %v1213_v63 = vld [vmem:[#allocation2 + $0xb4] sm:$0xf] }
 0x157   : > { %v1016_v4 = vor.u32 %v1014_v32, %v1013_v60  ;;  %v1017_v22 = vrot.slane %v1013_v60, 4  ;;  %v632_v46 = vsel %vm568_vm13, %v536_v8, %v600_v53  ;;  %v633_v26 = vsel %vm569_vm1, %v537_v12, %v601_v31  ;;  %vm8383_vm4 = vmor %vm2321_vm12, %vm2322_vm3  ;;  %v2274_v31 = vld [vmem:[#allocation2 + $0xc] sm:$0xe] }
 0x158   : > { %6894 = vmatprep.mubr.bf16.mxu0 %v6243_v1  ;;  %v8361_v3 = vld [vmem:[#allocation2 + $0x54] sm:$0xf]  ;;  %v1021_v5 = vrot.slane %v1019_v18, 7  ;;  %v6646_v14 = vpack.c.bf16 %v632_v46, %v632_v46  ;;  %v6647_v37 = vpack.c.bf16 %v633_v26, %v633_v26  ;;  %v6285_v34 = vrot.slane %v2273_v52, 9 }
 0x159   : > { %v8363_v36 = vld [vmem:[#allocation2 + $0x58] sm:$0xf]  ;;  %v1463_v43 = vshrl.u32 %v8361_v3, 16  ;;  %v1466_v7 = vshll.u32 %v8361_v3, 16  ;;  %v1207_v48 = vsel %vm7970_vm15, %v1016_v4, %v1206_v44  ;;  %v2326_v30 = vrot.slane %v8369_v0, 5 }
 0x15a   : > { %v8372_v62 = vld [vmem:[#allocation2 + $0x5c] sm:$0x1]  ;;  %v1472_v27 = vshll.u32 %v8363_v36, 16  ;;  %v1476_v45 = vshrl.u32 %v8363_v36, 16  ;;  %v1024_v2 = vor.u32 %v1022_v61, %v1021_v5  ;;  %v1026_v35 = vrot.slane %v1021_v5, 4 }
 0x15b   : > { %1208 = vst [vmem:[#allocation2 + $0xa8] sm:$0xf] %v1207_v48  ;;  %v1465_v47 = vrot.slane %v1463_v43, 4  ;;  %v1468_v8 = vrot.slane %v1466_v7, 5  ;;  %v1482_v12 = vshll.u32 %v8372_v62, 16  ;;  %v1028_v20 = vshrl.u32 %v6646_v14, 16 }
 0x15c   : > { %v1474_v33 = vrot.slane %v1472_v27, 5  ;;  %v1478_v55 = vrot.slane %v1476_v45, 4  ;;  %v1025_v32 = vsel %vm7964_vm14, %v1017_v22, %v1024_v2  ;;  %v1211_v54 = vsel %vm7978_vm0, %v1026_v35, %v1210_v29  ;;  %v8399_v45 = vld [vmem:[#allocation2 + $0x10] sm:$0xf] }
 0x15d   : > { %v1469_v50 = vor.u32 %v1468_v8, %v1465_v47  ;;  %1209 = vst [vmem:[#allocation2 + $0xac] sm:$0xf] %v1025_v32  ;;  %1212 = vst [vmem:[#allocation2 + $0xb0] sm:$0x1] %v1211_v54  ;;  %v1030_v60 = vrot.slane %v1028_v20, 7  ;;  %v1031_v53 = vshll.u32 %v6646_v14, 16  ;;  %v2327_v46 = vsel %vm8383_vm4, %v6285_v34, %v2326_v30 }
 0x15e   : > { %v1479_v1 = vor.u32 %v1478_v55, %v1474_v33  ;;  %v1484_v18 = vrot.slane %v1482_v12, 5  ;;  %v1036_v61 = vshrl.u32 %v6647_v37, 16  ;;  %v1039_v44 = vshll.u32 %v6647_v37, 16  ;;  %v1217_v8 = vld [vmem:[#allocation2 + $0xbc] sm:$0x1] }
 0x15f   : > { %v1470_v4 = vrot.slane %v1469_v50, 4  ;;  %v1033_v22 = vor.u32 %v1031_v53, %v1030_v60  ;;  %v2328_v26 = vrot.slane %v2326_v30, 4  ;;  %v1034_v29 = vrot.slane %v1030_v60, 4  ;;  %v7449_v12 = vld [vmem:[#allocation2 + $0x14] sm:$0x1] }
 0x160   : > { %v1480_v5 = vrot.slane %v1479_v1, 4  ;;  %v1038_v43 = vrot.slane %v1036_v61, 7  ;;  %v6286_v7 = vrot.slane %v2274_v31, 9  ;;  %v2333_v34 = vrot.slane %v8399_v45, 5 }
 0x161   : > { %v1475_v48 = vsel %vm7573_vm2, %v1470_v4, %v1474_v33  ;;  %v1214_v14 = vsel %vm7970_vm15, %v1033_v22, %v1213_v63  ;;  %v2330_v37 = vsel %vm8383_vm4, %v2328_v26, %v2329_v51  ;;  %v2336_v20 = vrot.slane %v7449_v12, 5  ;;  %v2275_v51 = vld [vmem:[#allocation2 + $0x18] sm:$0xe] }
 0x162   : > { %v8391_v27 = vld [vmem:[#allocation2 + $0xa8] sm:$0xf]  ;;  %v1485_v30 = vsel %vm7573_vm2, %v1480_v5, %v1484_v18  ;;  %v1041_v47 = vor.u32 %v1039_v44, %v1038_v43  ;;  %1215 = vst [vmem:[#allocation2 + $0xb4] sm:$0xf] %v1214_v14  ;;  %v1043_v33 = vrot.slane %v1038_v43, 4  ;;  %v6317_v55 = vcombine.low %v2327_v46, %v2330_v37 }
 0x163   : > { %v1631_v2 = vshrl.u32 %v8391_v27, 16  ;;  %v1634_v35 = vshll.u32 %v8391_v27, 16  ;;  %v6244_v49 = vcombine.low %v1475_v48, %v1485_v30  ;;  %v2334_v53 = vsel %vm8383_vm4, %v6286_v7, %v2333_v34  ;;  %v8419_v46 = vld [vmem:[#allocation2 + $0x1c] sm:$0xf]  ;;  %v2276_v5 = vld [vmem:[#allocation2 + $0x24] sm:$0xe] }
 0x164   : > { %v8406_v32 = vld [vmem:[#allocation2 + $0xac] sm:$0xf]  ;;  %v8408_v54 = vld [vmem:[#allocation2 + $0xb0] sm:$0x1]  ;;  %v1042_v60 = vsel %vm7964_vm14, %v1034_v29, %v1041_v47  ;;  %v1218_v61 = vsel %vm7978_vm0, %v1043_v33, %v1217_v8  ;;  %v2335_v4 = vrot.slane %v2333_v34, 4  ;;  %v6287_v22 = vrot.slane %v2275_v51, 9 }
 0x165   : > { %10546 = vst [vmem:[#allocation10_spill] sm:$0xff] %v8406_v32  ;;  %v1633_v63 = vrot.slane %v1631_v2, 4  ;;  %v1636_v50 = vrot.slane %v1634_v35, 5  ;;  %6895 = vmatmul.mubr.bf16.gmra.mxu0 %v6244_v49  ;;  %v1640_v31 = vshll.u32 %v8406_v32, 16  ;;  %v1644_v1 = vshrl.u32 %v8406_v32, 16 }
 0x166   : > { %v1650_v18 = vshll.u32 %v8408_v54, 16  ;;  %1216 = vst [vmem:[#allocation2 + $0xb8] sm:$0xf] %v1042_v60  ;;  %1219 = vst [vmem:[#allocation2 + $0xbc] sm:$0x1] %v1218_v61  ;;  %6978 = vmatprep.mubr.bf16.mxu0 %v6317_v55  ;;  %v2340_v26 = vrot.slane %v8419_v46, 5  ;;  %v2337_v37 = vsel %vm8383_vm4, %v2335_v4, %v2336_v20 }
 0x167   : > { %v1637_v44 = vor.u32 %v1636_v50, %v1633_v63  ;;  %v1642_v29 = vrot.slane %v1640_v31, 5  ;;  %v1646_v43 = vrot.slane %v1644_v1, 4  ;;  %v7451_v7 = vld [vmem:[#allocation2 + $0x20] sm:$0x1]  ;;  %v6318_v8 = vcombine.low %v2334_v53, %v2337_v37  ;;  %v2277_v49 = vld [vmem:[#allocation2 + $0x30] sm:$0xe] }
 0x168   : > { %v2343_v48 = vrot.slane %v7451_v7, 5  ;;  %v2341_v30 = vsel %vm8383_vm4, %v6287_v22, %v2340_v26  ;;  %v2342_v2 = vrot.slane %v2340_v26, 4  ;;  %v1652_v34 = vrot.slane %v1650_v18, 5  ;;  %v8434_v60 = vld [vmem:[#allocation2 + $0x28] sm:$0xf]  ;;  %v7354_v53 = vld [vmem:[%s10510_s3 + $0x130] sm:$0xff]  }
 0x169   : > { %v1638_v14 = vrot.slane %v1637_v44, 4  ;;  %v1647_v35 = vor.u32 %v1646_v43, %v1642_v29  ;;  %v8426_v47 = vld [vmem:[#allocation2 + $0xb4] sm:$0xf]  ;;  %v6288_v12 = vrot.slane %v2276_v5, 9  ;;  %v2347_v31 = vrot.slane %v8434_v60, 5 }
 0x16a   : > { %10547 = vst [vmem:[#allocation11_spill] sm:$0xff] %v8426_v47  ;;  %v1655_v33 = vshrl.u32 %v8426_v47, 16  ;;  %v1658_v55 = vshll.u32 %v8426_v47, 16  ;;  %v2344_v51 = vsel %vm8383_vm4, %v2342_v2, %v2343_v48  ;;  %v7453_v44 = vld [vmem:[#allocation2 + $0x2c] sm:$0x1]  ;;  %v6289_v22 = vrot.slane %v2277_v49, 9 }
 0x16b   : > { %v1643_v20 = vsel %vm7573_vm2, %v1638_v14, %v1642_v29  ;;  %v1648_v63 = vrot.slane %v1647_v35, 4  ;;  %v6319_v50 = vcombine.low %v2341_v30, %v2344_v51  ;;  %v2350_v4 = vrot.slane %v7453_v44, 5  ;;  %v7358_v48 = vld [vmem:[%s10510_s3 + $0x128] sm:$0xff]   ;;  %v7454_v2 = vld [vmem:[%s10510_s3 + $0x138] sm:$0xff]   ;;  %v8619_v38 = vld [vmem:[#allocation2 + $0xb4] sm:$0xe] }
 0x16c   : > { %v1657_v18 = vrot.slane %v1655_v33, 4  ;;  %v1660_v61 = vrot.slane %v1658_v55, 5  ;;  %v2348_v7 = vsel %vm8383_vm4, %v6288_v12, %v2347_v31  ;;  %v2349_v35 = vrot.slane %v2347_v31, 4  ;;  %v2278_v33 = vld [vmem:[#allocation2 + $0x3c] sm:$0xe] }
 0x16d   : > { %v8440_v1 = vld [vmem:[#allocation2 + $0xb8] sm:$0xf]  ;;  %v1653_v26 = vsel %vm7573_vm2, %v1648_v63, %v1652_v34  ;;  %v8444_v5 = vld [vmem:[#allocation2 + $0xbc] sm:$0x1]  ;;  %6979 = vmatmul.mubr.bf16.vlgmr.msra.gmra.mxu0 %v6318_v8  ;;  %v2354_v12 = vrot.slane %v8219_v17, 5  ;;  %v2357_v49 = vrot.slane %v8221_v13, 5 }
 0x16e   : > { %v1664_v29 = vshll.u32 %v8440_v1, 16  ;;  %v1668_v43 = vshrl.u32 %v8440_v1, 16  ;;  %v6251_v14 = vcombine.low %v1643_v20, %v1653_v26  ;;  %v1661_v37 = vor.u32 %v1660_v61, %v1657_v18  ;;  %7059 = vmatpush3.bf16.msra.mxu0 %v7454_v2  ;;  %6982 = vmatprep.mubr.bf16.mxu0 %v6319_v50  ;;  %v8459_v55 = vld [vmem:[#allocation2 + $0x68] sm:$0x1]  ;;  %v2279_v50 = vld [vmem:[#allocation2 + $0x48] sm:$0xe] }
 0x16f   : > { %v1674_v30 = vshll.u32 %v8444_v5, 16  ;;  %7060 = vmatprep.subr.bf16.mxu0 %v7354_v53  ;;  %v2385_v51 = vrot.slane %v8459_v55, 5  ;;  %v2351_v18 = vsel %vm8383_vm4, %v2349_v35, %v2350_v4  ;;  %v2355_v44 = vsel %vm8383_vm4, %v6289_v22, %v2354_v12  ;;  %v7362_v4 = vld [vmem:[%s10510_s3 + $0x120] sm:$0xff]   ;;  %v8476_v35 = vld [vmem:[#allocation2 + $0xc] sm:$0xf] }
 0x170   : > { %v1666_v34 = vrot.slane %v1664_v29, 5  ;;  %v1670_v8 = vrot.slane %v1668_v43, 4  ;;  %6910 = vmatprep.mubr.bf16.mxu1 %v6251_v14  ;;  %v1662_v20 = vrot.slane %v1661_v37, 4  ;;  %v6320_v61 = vcombine.low %v2348_v7, %v2351_v18  ;;  %v7456_v29 = vld [vmem:[#allocation2] sm:$0xf] }
 0x171   : > { %v1676_v63 = vrot.slane %v1674_v30, 5  ;;  %v2356_v26 = vrot.slane %v2354_v12, 4  ;;  %v6261_v13 = vcombine.low %v7456_v29, %v8369_v0  ;;  %v6290_v43 = vrot.slane %v2278_v33, 9  ;;  %v2280_v0 = vld [vmem:[#allocation2 + $0x54] sm:$0xe] }
 0x172   : > { %v1671_v31 = vor.u32 %v1670_v8, %v1666_v34  ;;  %7061 = vmatpush3.bf16.msra.mxu0 %v7354_v53  ;;  %v2361_v2 = vrot.slane %v8252_v58, 5  ;;  %v2364_v14 = vrot.slane %v8254_v21, 5  ;;  %v1667_v7 = vsel %vm7573_vm2, %v1662_v20, %v1666_v34  ;;  %v2281_v53 = vld [vmem:[#allocation2 + $0x60] sm:$0xe]  ;;  %v2285_v21 = vld [vmem:[#allocation2 + $0x90] sm:$0xe] }
 0x173   : > { %v2358_v22 = vsel %vm8383_vm4, %v2356_v26, %v2357_v49  ;;  %7062 = vmatprep.subr.bf16.mxu0 %v7358_v48  ;;  %v6291_v30 = vrot.slane %v2279_v50, 9  ;;  %v2368_v33 = vrot.slane %v8339_v41, 5  ;;  %v2371_v20 = vrot.slane %v8343_v23, 5  ;;  %v2282_v50 = vld [vmem:[#allocation2 + $0x6c] sm:$0xe] }
 0x174   : > { %v1672_v37 = vrot.slane %v1671_v31, 4  ;;  %v6321_v8 = vcombine.low %v2355_v44, %v2358_v22  ;;  %v2363_v12 = vrot.slane %v2361_v2, 4  ;;  %v2362_v49 = vsel %vm8383_vm4, %v6290_v43, %v2361_v2  ;;  %v8496_v23 = vld [vmem:[#allocation2 + $0x24] sm:$0xf] }
 0x175   : > { %6983 = vmatmul.mubr.bf16.gmra.mxu0 %v6320_v61  ;;  %v2369_v26 = vsel %vm8383_vm4, %v6291_v30, %v2368_v33  ;;  %v8492_v61 = vld [vmem:[#allocation2 + $0x18] sm:$0xf]  ;;  %v6293_v22 = vrot.slane %v2281_v53, 9  ;;  %v8508_v30 = vld [vmem:[#allocation2 + $0x64] sm:$0xf]  ;;  %v2378_v2 = vrot.slane %v8372_v62, 5 }
 0x176   : > { %v1677_v34 = vsel %vm7573_vm2, %v1672_v37, %v1676_v63  ;;  %6986 = vmatprep.mubr.bf16.mxu0 %v6321_v8  ;;  %v2365_v44 = vsel %vm8383_vm4, %v2363_v12, %v2364_v14  ;;  %7063 = vmatpush3.bf16.msra.mxu0 %v7358_v48  ;;  %v2370_v63 = vrot.slane %v2368_v33, 4  ;;  %v2375_v14 = vrot.slane %v8363_v36, 5  ;;  %v7366_v48 = vld [vmem:[%s10510_s3 + $0x118] sm:$0xff]  }
 0x177   : > { %v6252_v31 = vcombine.low %v1667_v7, %v1677_v34  ;;  %7064 = vmatprep.subr.bf16.mxu0 %v7362_v4  ;;  %v6292_v37 = vrot.slane %v2280_v0, 9  ;;  %v2382_v8 = vrot.slane %v8508_v30, 5  ;;  %v2283_v12 = vld [vmem:[#allocation2 + $0x78] sm:$0xe]  ;;  %v6322_v33 = vcombine.low %v2362_v49, %v2365_v44  ;;  %v7462_v0 = vld [vmem:[#allocation2 + $0x74] sm:$0x1] }
 0x178   : > { %v2372_v7 = vsel %vm8383_vm4, %v2370_v63, %v2371_v20  ;;  %v2377_v18 = vrot.slane %v2375_v14, 4  ;;  %v6294_v29 = vrot.slane %v2282_v50, 9  ;;  %v2392_v53 = vrot.slane %v7462_v0, 5  ;;  %v8519_v44 = vld [vmem:[#allocation2 + $0x7c] sm:$0xf] }
 0x179   : > { %6911 = vmatmul.mubr.bf16.gmra.mxu1 %v6252_v31  ;;  %v6323_v34 = vcombine.low %v2369_v26, %v2372_v7  ;;  %v2384_v43 = vrot.slane %v2382_v8, 4  ;;  %v8512_v31 = vld [vmem:[#allocation2 + $0x70] sm:$0xf]  ;;  %v6295_v49 = vrot.slane %v2283_v12, 9  ;;  %v2396_v62 = vrot.slane %v8519_v44, 5 }
 0x17a   : > { %6930 = vmatprep.mubr.bf16.mxu1 %v6261_v13  ;;  %7065 = vmatpush3.bf16.msra.mxu0 %v7362_v4  ;;  %v2389_v20 = vrot.slane %v8512_v31, 5  ;;  %v7370_v4 = vld [vmem:[%s10510_s3 + $0x110] sm:$0xff]   ;;  %v8527_v50 = vsel %vm8383_vm4, %v6292_v37, %v2375_v14  ;;  %v8531_v26 = vsel %vm8383_vm4, %v6293_v22, %v2382_v8  ;;  %v8533_v7 = vld [vmem:[#allocation2 + $0x60] sm:$0xf]  ;;  %v2284_v13 = vld [vmem:[#allocation2 + $0x84] sm:$0xe]  ;;  %v2379_v63 = vsel %vm8383_vm4, %v2377_v18, %v2378_v2 }
 0x17b   : > { %7066 = vmatprep.subr.bf16.mxu0 %v7366_v48  ;;  %v8543_v14 = vsel %vm8383_vm4, %v2384_v43, %v2385_v51  ;;  %v2398_v37 = vrot.slane %v2396_v62, 4  ;;  %v7465_v22 = vld [vmem:[#allocation2 + $0x80] sm:$0x1]  ;;  %v7352_v12 = vld [vmem:[%s10510_s3 + $0xf0] sm:$0xff]   ;;  %v8556_v18 = vld [vmem:[#allocation2 + $0x6c] sm:$0xf]  ;;  %v10548_v51 = vcombine.low %v8476_v35, %v8399_v45 }
 0x17c   : > { %v2391_v0 = vrot.slane %v2389_v20, 4  ;;  %v2399_v8 = vrot.slane %v7465_v22, 5  ;;  %v8560_v43 = vld [vmem:[#allocation2 + $0x88] sm:$0xf]  ;;  %v2286_v22 = vld [vmem:[#allocation2 + $0x9c] sm:$0xe] }
 0x17d   : > { %6987 = vmatmul.mubr.bf16.gmra.mxu0 %v6322_v33  ;;  %v8550_v33 = vsel %vm8383_vm4, %v6294_v29, %v2389_v20  ;;  %v2403_v2 = vrot.slane %v8560_v43, 5  ;;  %v6296_v20 = vrot.slane %v2284_v13, 9  ;;  %v7469_v13 = vld [vmem:[%s10510_s3 + $0xf8] sm:$0xff]  }
 0x17e   : > { %6990 = vmatprep.mubr.bf16.mxu0 %v6323_v34  ;;  %v8554_v55 = vsel %vm8383_vm4, %v2391_v0, %v2392_v53  ;;  %7067 = vmatpush3.bf16.msra.mxu0 %v7366_v48  ;;  %v8565_v34 = vsel %vm8383_vm4, %v6295_v49, %v2396_v62  ;;  %v8569_v29 = vsel %vm8383_vm4, %v2398_v37, %v2399_v8  ;;  %v7468_v53 = vld [vmem:[#allocation2 + $0x8c] sm:$0x1]  ;;  %v6297_v8 = vrot.slane %v2285_v21, 9  ;;  %v8588_v35 = vld [vmem:[#allocation2 + $0x78] sm:$0xf] }
 0x17f   : > { %v2406_v0 = vrot.slane %v7468_v53, 5  ;;  %7068 = vmatprep.subr.bf16.mxu0 %v7370_v4  ;;  %v7374_v48 = vld [vmem:[%s10510_s3 + $0x108] sm:$0xff]   ;;  %v6324_v49 = vcombine.low %v8527_v50, %v2379_v63  ;;  %v6325_v62 = vcombine.low %v8531_v26, %v8543_v14  ;;  %v2405_v37 = vrot.slane %v2403_v2, 4 }
 0x180   : > { %v10549_v53 = vcombine.low %v8492_v61, %v8419_v46  ;;  %v2410_v50 = vrot.slane %v8273_v40, 5  ;;  %v2413_v21 = vrot.slane %v8275_v10, 5  ;;  %v2287_v26 = vld [vmem:[#allocation2 + $0xa8] sm:$0xe]  ;;  %v8599_v61 = vld [vmem:[#allocation2 + $0x84] sm:$0xf]  ;;  %v8606_v10 = vsel %vm8383_vm4, %v6296_v20, %v2403_v2 }
 0x181   : > { %6931 = vmatmul.mubr.bf16.vlgmr.msra.gmra.mxu1 %v10548_v51  ;;  %v7356_v14 = vld [vmem:[%s10510_s3 + $0xe8] sm:$0xff]   ;;  %v8610_v63 = vsel %vm8383_vm4, %v2405_v37, %v2406_v0  ;;  %v2420_v46 = vrot.slane %v8303_v16, 5  ;;  %v6299_v51 = vrot.slane %v2287_v26, 9  ;;  %v7378_v2 = vld [vmem:[%s10510_s3 + $0x100] sm:$0xff]   ;;  %v2424_v20 = vrot.slane %v8406_v32, 5 }
 0x182   : > { %7011 = vmatpush3.bf16.msra.mxu1 %v7469_v13  ;;  %6934 = vmatprep.mubr.bf16.mxu1 %v10549_v53  ;;  %v6298_v13 = vrot.slane %v2286_v22, 9  ;;  %v2417_v53 = vrot.slane %v8301_v11, 5  ;;  %v2412_v45 = vrot.slane %v2410_v50, 4  ;;  %v8615_v6 = vsel %vm8383_vm4, %v6297_v8, %v2410_v50  ;;  %v3144_v8 = vld [vmem:[#allocation2 + $0xc] sm:$0xf]  ;;  %v7360_v50 = vld [vmem:[%s10510_s3 + $0xe0] sm:$0xff]  }
 0x183   : > { %7012 = vmatprep.subr.bf16.mxu1 %v7352_v12  ;;  %7069 = vmatpush3.bf16.msra.mxu0 %v7370_v4  ;;  %v10521_v37 = vrot.slane %v8440_v1, 5  ;;  %v6300_v4 = vrot.slane %v8619_v38, 9  ;;  %v3196_v38 = vshll.u32 %v3144_v8, 16  ;;  %v2434_v26 = vrot.slane %v8444_v5, 5 }
 0x184   : > { %7070 = vmatprep.subr.bf16.mxu0 %v7374_v48  ;;  %v2419_v22 = vrot.slane %v2417_v53, 4  ;;  %v8626_v16 = vsel %vm8383_vm4, %v2412_v45, %v2413_v21  ;;  %v8643_v21 = vld [vmem:[#allocation2 + $0x10] sm:$0xf]  ;;  %v8663_v45 = vsel %vm8383_vm4, %v6299_v51, %v2424_v20  ;;  %v10553_v5 = vcombine.low %v8550_v33, %v8554_v55 }
 0x185   : > { %6991 = vmatmul.mubr.bf16.gmra.mxu0 %v6324_v49  ;;  %v8639_v49 = vsel %vm8383_vm4, %v6298_v13, %v2417_v53  ;;  %v10551_v13 = vcombine.low %v8496_v23, %v8434_v60  ;;  %v7364_v53 = vld [vmem:[%s10510_s3 + $0xd8] sm:$0xff]   ;;  %v10552_v23 = vcombine.low %v8213_v24, %v8219_v17  ;;  %v2433_v51 = vrot.slane %v10521_v37, 4 }
 0x186   : > { %7013 = vmatpush3.bf16.msra.mxu1 %v7352_v12  ;;  %6994 = vmatprep.mubr.bf16.mxu0 %v6325_v62  ;;  %v8649_v0 = vsel %vm8383_vm4, %v2419_v22, %v2420_v46  ;;  %v2427_v62 = vrot.slane %v8408_v54, 5  ;;  %v8653_v12 = vld [vmem:[#allocation2 + $0x14] sm:$0x1]  ;;  %v3193_v54 = vshrl.u32 %v3144_v8, 16  ;;  %v3147_v46 = vld [vmem:[#allocation2 + $0x18] sm:$0xf] }
 0x187   : > { %7014 = vmatprep.subr.bf16.mxu1 %v7356_v14  ;;  %7071 = vmatpush3.bf16.msra.mxu0 %v7374_v48  ;;  %10550 = vst [vmem:[#allocation12_spill] sm:$0xff] %v8653_v12  ;;  %v8670_v60 = vld [vmem:[%s10510_s3 + $0x1b8] sm:$0xff]   ;;  %v2426_v22 = vrot.slane %v2424_v20, 4  ;;  %v3206_v48 = vshrl.u32 %v8643_v21, 16  ;;  %v3198_v15 = vrot.slane %v3196_v38, 5  ;;  %v3212_v59 = vshll.u32 %v8653_v12, 16 }
 0x188   : > { %7072 = vmatprep.subr.bf16.mxu0 %v7378_v2  ;;  %v3148_v8 = vld [vmem:[#allocation2 + $0x1c] sm:$0xf]  ;;  %v3195_v28 = vrot.slane %v3193_v54, 4  ;;  %v3220_v20 = vshll.u32 %v3147_v46, 16 }
 0x189   : > { %6935 = vmatmul.mubr.bf16.gmra.mxu1 %v10551_v13  ;;  %v3202_v13 = vshll.u32 %v8643_v21, 16  ;;  %v3208_v17 = vrot.slane %v3206_v48, 4  ;;  %v3214_v57 = vrot.slane %v3212_v59, 5  ;;  %v3226_v47 = vshll.u32 %v3148_v8, 16  ;;  %v7368_v59 = vld [vmem:[%s10510_s3 + $0xd0] sm:$0xff]  }
 0x18a   : > { %6938 = vmatprep.mubr.bf16.mxu1 %v10552_v23  ;;  %7015 = vmatpush3.bf16.msra.mxu1 %v7356_v14  ;;  %v3217_v14 = vshrl.u32 %v3147_v46, 16  ;;  %v3150_v23 = vld [vmem:[#allocation2 + $0x24] sm:$0xf]  ;;  %v3199_v37 = vor.u32 %v3198_v15, %v3195_v28  ;;  %v3230_v32 = vshrl.u32 %v3148_v8, 16  ;;  %v3222_v12 = vrot.slane %v3220_v20, 5 }
 0x18b   : > { %7016 = vmatprep.subr.bf16.mxu1 %v7360_v50  ;;  %7073 = vmatpush3.bf16.msra.mxu0 %v7378_v2  ;;  %v3204_v24 = vrot.slane %v3202_v13, 5  ;;  %v3236_v2 = vshll.u32 %v3149_v39, 16  ;;  %v8685_v13 = vld [vmem:[#allocation2 + $0x28] sm:$0xf]  ;;  %v10554_v15 = vcombine.low %v8565_v34, %v8569_v29  ;;  %v3241_v55 = vshrl.u32 %v3150_v23, 16 }
 0x18c   : > { %7154 = vmatprep.subr.bf16.mxu0 %v8670_v60  ;;  %v3219_v38 = vrot.slane %v3217_v14, 4  ;;  %v3200_v28 = vrot.slane %v3199_v37, 4  ;;  %v3232_v33 = vrot.slane %v3230_v32, 4  ;;  %v6330_v48 = vcombine.low %v8639_v49, %v8649_v0  ;;  %v8712_v14 = vld [vmem:[#allocation2 + $0x34] sm:$0xf] }
 0x18d   : > { %6995 = vmatmul.mubr.bf16.gmra.mxu0 %v10553_v5  ;;  %v3209_v54 = vor.u32 %v3208_v17, %v3204_v24  ;;  %v3244_v8 = vshll.u32 %v3150_v23, 16  ;;  %v10555_v17 = vcombine.low %v8243_v9, %v8252_v58  ;;  %v8702_v34 = vsel %vm8383_vm4, %v2426_v22, %v2427_v62  ;;  %v8721_v62 = vld [vmem:[#allocation2 + $0x2c] sm:$0x1] }
 0x18e   : > { %7017 = vmatpush3.bf16.msra.mxu1 %v7360_v50  ;;  %6998 = vmatprep.mubr.bf16.mxu0 %v10554_v15  ;;  %v8693_v50 = vrot.slane %v3226_v47, 5  ;;  %v3223_v46 = vor.u32 %v3222_v12, %v3219_v38  ;;  %v10556_v29 = vrot.slane %v8440_v1, 5  ;;  %v3250_v37 = vshll.u32 %v8685_v13, 16  ;;  %v3153_v12 = vld [vmem:[#allocation2 + $0x30] sm:$0xf]  ;;  %v7372_v23 = vld [vmem:[%s10510_s3 + $0xc8] sm:$0xff]  }
 0x18f   : > { %7018 = vmatprep.subr.bf16.mxu1 %v7364_v53  ;;  %v3210_v39 = vrot.slane %v3209_v54, 4  ;;  %v10557_v9 = vcombine.low %v8336_v56, %v8339_v41  ;;  %v8719_v58 = vsel %vm8383_vm4, %v2433_v51, %v2434_v26  ;;  %v3246_v22 = vrot.slane %v3244_v8, 5 }
 0x190   : > { %v8708_v32 = vsel %vm8383_vm4, %v6300_v4, %v10556_v29  ;;  %v3233_v47 = vor.u32 %v3232_v33, %v8693_v50  ;;  %v3243_v4 = vrot.slane %v3241_v55, 4  ;;  %v3254_v20 = vshrl.u32 %v8685_v13, 16 }
 0x191   : > { %6939 = vmatmul.mubr.bf16.gmra.mxu1 %v10555_v17  ;;  %v3205_v56 = vsel %vm7573_vm2, %v3200_v28, %v3204_v24  ;;  %v3215_v41 = vsel %vm7573_vm2, %v3210_v39, %v3214_v57  ;;  %v8731_v26 = vrot.slane %v3250_v37, 5  ;;  %v3224_v51 = vrot.slane %v3223_v46, 4  ;;  %v3156_v17 = vld [vmem:[#allocation2 + $0x3c] sm:$0xf]  ;;  %v8744_v39 = vld [vmem:[#allocation2 + $0x38] sm:$0x1] }
 0x192   : > { %6942 = vmatprep.mubr.bf16.mxu1 %v10557_v9  ;;  %7019 = vmatpush3.bf16.msra.mxu1 %v7364_v53  ;;  %v3238_v53 = vrot.slane %v3236_v2, 5  ;;  %v3234_v5 = vrot.slane %v3233_v47, 4  ;;  %v3256_v54 = vrot.slane %v3254_v20, 4  ;;  %v3265_v38 = vshrl.u32 %v3153_v12, 16  ;;  %v8746_v46 = vld [vmem:[#allocation2 + $0x40] sm:$0xf] }
 0x193   : > { %7020 = vmatprep.subr.bf16.mxu1 %v7368_v59  ;;  %v6331_v15 = vcombine.low %v8663_v45, %v8702_v34  ;;  %v3260_v33 = vshll.u32 %v8721_v62, 16  ;;  %v3268_v55 = vshll.u32 %v3153_v12, 16  ;;  %v3274_v8 = vshll.u32 %v8712_v14, 16 }
 0x194   : > { %v10558_v24 = vcombine.low %v8606_v10, %v8610_v63  ;;  %v6332_v57 = vcombine.low %v8708_v32, %v8719_v58  ;;  %v8742_v2 = vcombine.low %v3205_v56, %v3215_v41  ;;  %v3247_v28 = vor.u32 %v3246_v22, %v3243_v4  ;;  %v7376_v63 = vld [vmem:[%s10510_s3 + $0xc0] sm:$0xff]  }
 0x195   : > { %v3267_v45 = vrot.slane %v3265_v38, 4  ;;  %v10559_v34 = vcombine.low %v8615_v6, %v8626_v16  ;;  %v3257_v10 = vor.u32 %v3256_v54, %v8731_v26  ;;  %v8755_v29 = vrot.slane %v3274_v8, 5  ;;  %v8763_v16 = vld [vmem:[#allocation2 + $0x44] sm:$0x1]  ;;  %v3159_v54 = vld [vmem:[#allocation2 + $0x48] sm:$0xf] }
 0x196   : > { %6999 = vmatmul.mubr.bf16.gmra.mxu0 %v10558_v24  ;;  %7021 = vmatpush3.bf16.msra.mxu1 %v7368_v59  ;;  %v3270_v59 = vrot.slane %v3268_v55, 5  ;;  %v3278_v47 = vshrl.u32 %v8712_v14, 16  ;;  %v3229_v37 = vsel %vm7573_vm2, %v3224_v51, %v8693_v50  ;;  %v3239_v6 = vsel %vm7573_vm2, %v3234_v5, %v3238_v53 }
 0x197   : > { %7002 = vmatprep.mubr.bf16.mxu0 %v10559_v34  ;;  %7022 = vmatprep.subr.bf16.mxu1 %v7372_v23  ;;  %v3289_v12 = vshrl.u32 %v3156_v17, 16  ;;  %v3292_v9 = vshll.u32 %v3156_v17, 16  ;;  %v10560_v4 = vcombine.low %v8361_v3, %v8363_v36  ;;  %v8768_v22 = vrot.slane %v3260_v33, 5  ;;  %v8776_v3 = vld [vmem:[#allocation2 + $0x4c] sm:$0xf]  ;;  %v8781_v36 = vld [vmem:[%s10510_s3 + $0x178] sm:$0xff]  }
 0x198   : > { %v3280_v20 = vrot.slane %v3278_v47, 4  ;;  %v3284_v56 = vshll.u32 %v8744_v39, 16  ;;  %v3298_v41 = vshll.u32 %v8746_v46, 16  ;;  %v10561_v50 = vcombine.low %v8533_v7, %v8508_v30 }
 0x199   : > { %6943 = vmatmul.mubr.bf16.gmra.mxu1 %v10560_v4  ;;  %v3271_v53 = vor.u32 %v3270_v59, %v3267_v45  ;;  %v3291_v51 = vrot.slane %v3289_v12, 4  ;;  %v3294_v5 = vrot.slane %v3292_v9, 5  ;;  %v3302_v38 = vshrl.u32 %v8746_v46, 16  ;;  %v8793_v59 = vld [vmem:[#allocation2 + $0x50] sm:$0x1] }
 0x19a   : > { %6946 = vmatprep.mubr.bf16.mxu1 %v10561_v50  ;;  %7023 = vmatpush3.bf16.msra.mxu1 %v7372_v23  ;;  %v8783_v33 = vrot.slane %v3247_v28, 4  ;;  %v8785_v55 = vrot.slane %v3257_v10, 4  ;;  %v3281_v30 = vor.u32 %v3280_v20, %v8755_v29  ;;  %v8788_v7 = vrot.slane %v3298_v41, 5  ;;  %v3162_v20 = vld [vmem:[#allocation2 + $0x54] sm:$0xf] }
 0x19b   : > { %7024 = vmatprep.subr.bf16.mxu1 %v7376_v63  ;;  %v3295_v23 = vor.u32 %v3294_v5, %v3291_v51  ;;  %v3304_v8 = vrot.slane %v3302_v38, 4  ;;  %v3308_v17 = vshll.u32 %v8763_v16, 16  ;;  %v3313_v24 = vshrl.u32 %v3159_v54, 16  ;;  %v8818_v51 = vld [vmem:[#allocation2 + $0x5c] sm:$0x1] }
 0x19c   : > { %v8791_v45 = vcombine.low %v3229_v37, %v3239_v6  ;;  %v3286_v34 = vrot.slane %v3284_v56, 5  ;;  %v3316_v47 = vshll.u32 %v3159_v54, 16  ;;  %v3322_v28 = vshll.u32 %v8776_v3, 16  ;;  %v8804_v54 = vld [vmem:[#allocation2 + $0x58] sm:$0xf] }
 0x19d   : > { %v3272_v10 = vrot.slane %v3271_v53, 4  ;;  %v3282_v12 = vrot.slane %v3281_v30, 4  ;;  %v3305_v9 = vor.u32 %v3304_v8, %v8788_v7  ;;  %v3315_v4 = vrot.slane %v3313_v24, 4  ;;  %v8834_v8 = vld [vmem:[#allocation2 + $0x64] sm:$0xf] }
 0x19e   : > { %7003 = vmatmul.mubr.bf16.gmra.mxu0 %v6330_v48  ;;  %7025 = vmatpush3.bf16.msra.mxu1 %v7376_v63  ;;  %v3296_v37 = vrot.slane %v3295_v23, 4  ;;  %v3318_v6 = vrot.slane %v3316_v47, 5  ;;  %v8801_v56 = vrot.slane %v3322_v28, 5  ;;  %v3326_v41 = vshrl.u32 %v8776_v3, 16 }
 0x19f   : > { %7006 = vmatprep.mubr.bf16.mxu0 %v6331_v15  ;;  %7106 = vmatprep.subr.bf16.mxu1 %v8781_v36  ;;  %v3253_v0 = vsel %vm7573_vm2, %v8783_v33, %v8731_v26  ;;  %v3263_v49 = vsel %vm7573_vm2, %v8785_v55, %v8768_v22  ;;  %v3306_v48 = vrot.slane %v3305_v9, 4  ;;  %v3310_v15 = vrot.slane %v3308_v17, 5 }
 0x1a0   : > { %v10562_v63 = vcombine.low %v8556_v18, %v8512_v31  ;;  %v3328_v50 = vrot.slane %v3326_v41, 4  ;;  %v3332_v53 = vshll.u32 %v8793_v59, 16  ;;  %v3337_v5 = vshrl.u32 %v3162_v20, 16  ;;  %v3165_v18 = vld [vmem:[#allocation2 + $0x60] sm:$0xf] }
 0x1a1   : > { %v3340_v38 = vshll.u32 %v3162_v20, 16  ;;  %v10563_v26 = vcombine.low %v8588_v35, %v8519_v44  ;;  %v3277_v22 = vsel %vm7573_vm2, %v3272_v10, %v8755_v29  ;;  %v3319_v33 = vor.u32 %v3318_v6, %v3315_v4 }
 0x1a2   : > { %6947 = vmatmul.mubr.bf16.gmra.mxu1 %v10562_v63  ;;  %v3346_v55 = vshll.u32 %v8804_v54, 16  ;;  %v3350_v31 = vshrl.u32 %v8804_v54, 16  ;;  %v3287_v30 = vsel %vm7573_vm2, %v3282_v12, %v3286_v34  ;;  %v3301_v23 = vsel %vm7573_vm2, %v3296_v37, %v8788_v7  ;;  %v3168_v37 = vld [vmem:[#allocation2 + $0x6c] sm:$0xf]  ;;  %v8854_v63 = vld [vmem:[#allocation2 + $0x70] sm:$0xf] }
 0x1a3   : > { %6950 = vmatprep.mubr.bf16.mxu1 %v10563_v26  ;;  %v3329_v44 = vor.u32 %v3328_v50, %v8801_v56  ;;  %v3339_v35 = vrot.slane %v3337_v5, 4  ;;  %v3342_v17 = vrot.slane %v3340_v38, 5  ;;  %v3356_v47 = vshll.u32 %v8818_v51, 16  ;;  %v8858_v50 = vld [vmem:[#allocation2 + $0x68] sm:$0x1] }
 0x1a4   : > { %v8836_v29 = vrot.slane %v3346_v55, 5  ;;  %v3352_v24 = vrot.slane %v3350_v31, 4  ;;  %v3311_v28 = vsel %vm7573_vm2, %v3306_v48, %v3310_v15  ;;  %v8841_v10 = vrot.slane %v3332_v53, 5 }
 0x1a5   : > { %v3361_v34 = vshrl.u32 %v3165_v18, 16  ;;  %v3364_v12 = vshll.u32 %v3165_v18, 16  ;;  %v8846_v7 = vrot.slane %v3319_v33, 4  ;;  %v3343_v9 = vor.u32 %v3342_v17, %v3339_v35 }
 0x1a6   : > { %7007 = vmatmul.mubr.bf16.gmra.mxu0 %v6332_v57  ;;  %v3353_v4 = vor.u32 %v3352_v24, %v8836_v29  ;;  %v3370_v20 = vshll.u32 %v8834_v8, 16  ;;  %v8851_v6 = vrot.slane %v3329_v44, 4  ;;  %v3374_v15 = vshrl.u32 %v8834_v8, 16 }
 0x1a7   : > { %7074 = vmatprep.mubr.bf16.mxu0 %v8742_v2  ;;  %v3363_v41 = vrot.slane %v3361_v34, 4  ;;  %v3366_v48 = vrot.slane %v3364_v12, 5  ;;  %v6399_v32 = vcombine.low %v3253_v0, %v3263_v49  ;;  %v8856_v58 = vcombine.low %v3277_v22, %v3287_v30  ;;  %v8874_v22 = vld [vmem:[#allocation2 + $0x74] sm:$0x1] }
 0x1a8   : > { %v3358_v57 = vrot.slane %v3356_v47, 5  ;;  %v8860_v53 = vrot.slane %v3370_v20, 5  ;;  %v10564_v5 = vcombine.low %v8599_v61, %v8560_v43  ;;  %v3344_v2 = vrot.slane %v3343_v9, 4  ;;  %v3171_v61 = vld [vmem:[#allocation2 + $0x78] sm:$0xf] }
 0x1a9   : > { %v3354_v38 = vrot.slane %v3353_v4, 4  ;;  %v3376_v26 = vrot.slane %v3374_v15, 4  ;;  %v3385_v33 = vshrl.u32 %v3168_v37, 16  ;;  %v10565_v55 = vcombine.low %v8269_v19, %v8273_v40  ;;  %v3174_v20 = vld [vmem:[#allocation2 + $0x84] sm:$0xf] }
 0x1aa   : > { %6951 = vmatmul.mubr.bf16.gmra.mxu1 %v10564_v5  ;;  %v8868_v0 = vcombine.low %v3301_v23, %v3311_v28  ;;  %v3325_v49 = vsel %vm7573_vm2, %v8846_v7, %v8801_v56  ;;  %v3388_v31 = vshll.u32 %v3168_v37, 16  ;;  %v3394_v43 = vshll.u32 %v8854_v63, 16  ;;  %v8883_v23 = vld [vmem:[#allocation2 + $0x7c] sm:$0xf]  ;;  %v7386_v56 = vld [vmem:[%s10510_s3 + $0x1b0] sm:$0xff]  }
 0x1ab   : > { %6954 = vmatprep.mubr.bf16.mxu1 %v10565_v55  ;;  %v3335_v18 = vsel %vm7573_vm2, %v8851_v6, %v8841_v10  ;;  %v3367_v19 = vor.u32 %v3366_v48, %v3363_v41  ;;  %v3377_v40 = vor.u32 %v3376_v26, %v8860_v53  ;;  %v3380_v30 = vshll.u32 %v8858_v50, 16  ;;  %v8900_v41 = vld [vmem:[#allocation2 + $0x80] sm:$0x1] }
 0x1ac   : > { %v3387_v44 = vrot.slane %v3385_v33, 4  ;;  %v3390_v35 = vrot.slane %v3388_v31, 5  ;;  %v8888_v17 = vrot.slane %v3394_v43, 5  ;;  %v3398_v24 = vshrl.u32 %v8854_v63, 16  ;;  %v10567_v31 = vld [vmem:[#allocation10_spill] sm:$0xff] }
 0x1ad   : > { %v3349_v47 = vsel %vm7573_vm2, %v3344_v2, %v8836_v29  ;;  %v3359_v28 = vsel %vm7573_vm2, %v3354_v38, %v3358_v57  ;;  %v3404_v10 = vshll.u32 %v8874_v22, 16  ;;  %v3409_v34 = vshrl.u32 %v3171_v61, 16  ;;  %v8907_v38 = vld [vmem:[#allocation2 + $0x88] sm:$0xf] }
 0x1ae   : > { %7075 = vmatmul.mubr.bf16.vlgmr.msra.gmra.mxu0 %v8791_v45  ;;  %v3391_v12 = vor.u32 %v3390_v35, %v3387_v44  ;;  %v3400_v7 = vrot.slane %v3398_v24, 4  ;;  %v3412_v9 = vshll.u32 %v3171_v61, 16  ;;  %v3418_v4 = vshll.u32 %v8883_v23, 16  ;;  %v7390_v45 = vld [vmem:[%s10510_s3 + $0x1a8] sm:$0xff]  }
 0x1af   : > { %7155 = vmatpush3.bf16.msra.mxu0 %v8670_v60  ;;  %7078 = vmatprep.mubr.bf16.mxu0 %v6399_v32  ;;  %v3368_v37 = vrot.slane %v3367_v19, 4  ;;  %v3378_v6 = vrot.slane %v3377_v40, 4  ;;  %v3382_v29 = vrot.slane %v3380_v30, 5  ;;  %v3422_v48 = vshrl.u32 %v8883_v23, 16  ;;  %v8921_v30 = vld [vmem:[#allocation2 + $0x8c] sm:$0x1] }
 0x1b0   : > { %7156 = vmatprep.subr.bf16.mxu0 %v7386_v56  ;;  %v3401_v15 = vor.u32 %v3400_v7, %v8888_v17  ;;  %v3406_v57 = vrot.slane %v3404_v10, 5  ;;  %v3411_v5 = vrot.slane %v3409_v34, 4  ;;  %v3414_v2 = vrot.slane %v3412_v9, 5  ;;  %v8934_v10 = vld [vmem:[#allocation2 + $0x94] sm:$0xf]  ;;  %v7379_v9 = vld [vmem:[#allocation2 + $0xc] sm:$0xff]  }
 0x1b1   : > { %v10566_v60 = vcombine.low %v8294_v42, %v8301_v11  ;;  %v3392_v32 = vrot.slane %v3391_v12, 4  ;;  %v8912_v26 = vrot.slane %v3418_v4, 5  ;;  %v3424_v33 = vrot.slane %v3422_v48, 4 }
 0x1b2   : > { %v3433_v55 = vshrl.u32 %v3174_v20, 16  ;;  %v10568_v43 = vcombine.low %v8391_v27, %v10567_v31  ;;  %v8917_v61 = vcombine.low %v3325_v49, %v3335_v18  ;;  %v8919_v19 = vcombine.low %v3349_v47, %v3359_v28  ;;  %v3177_v27 = vld [vmem:[#allocation2 + $0x90] sm:$0xf]  ;;  %v7394_v18 = vld [vmem:[%s10510_s3 + $0x1a0] sm:$0xff]   ;;  %v8965_v31 = vld [vmem:[#allocation2 + $0x98] sm:$0x1] }
 0x1b3   : > { %6955 = vmatmul.mubr.bf16.gmra.mxu1 %v10566_v60  ;;  %v3402_v40 = vrot.slane %v3401_v15, 4  ;;  %v3436_v44 = vshll.u32 %v3174_v20, 16  ;;  %7157 = vmatpush3.bf16.msra.mxu0 %v7386_v56  ;;  %v3373_v42 = vsel %vm7573_vm2, %v3368_v37, %v8860_v53  ;;  %v3428_v11 = vshll.u32 %v8900_v41, 16  ;;  %v8960_v60 = vld [vmem:[#allocation2 + $0xa0] sm:$0xf] }
 0x1b4   : > { %6958 = vmatprep.mubr.bf16.mxu1 %v10568_v43  ;;  %v3435_v35 = vrot.slane %v3433_v55, 4  ;;  %v3442_v24 = vshll.u32 %v8907_v38, 16  ;;  %7158 = vmatprep.subr.bf16.mxu0 %v7390_v45  ;;  %v3383_v49 = vsel %vm7573_vm2, %v3378_v6, %v3382_v29  ;;  %v3415_v47 = vor.u32 %v3414_v2, %v3411_v5  ;;  %v7398_v2 = vld [vmem:[%s10510_s3 + $0x198] sm:$0xff]  }
 0x1b5   : > { %v3438_v56 = vrot.slane %v3436_v44, 5  ;;  %v3446_v28 = vshrl.u32 %v8907_v38, 16  ;;  %v3397_v53 = vsel %vm7573_vm2, %v3392_v32, %v8888_v17  ;;  %v3407_v34 = vsel %vm7573_vm2, %v3402_v40, %v3406_v57  ;;  %v3180_v57 = vld [vmem:[#allocation2 + $0x9c] sm:$0xf] }
 0x1b6   : > { %v3425_v12 = vor.u32 %v3424_v33, %v8912_v26  ;;  %v8942_v7 = vrot.slane %v3442_v24, 5  ;;  %7079 = vmatmul.mubr.bf16.gmra.mxu0 %v8856_v58  ;;  %v3452_v37 = vshll.u32 %v8921_v30, 16  ;;  %v3457_v6 = vshrl.u32 %v3177_v27, 16  ;;  %v10569_v32 = vld [vmem:[#allocation11_spill] sm:$0xff] }
 0x1b7   : > { %v3439_v4 = vor.u32 %v3438_v56, %v3435_v35  ;;  %v3448_v20 = vrot.slane %v3446_v28, 4  ;;  %7082 = vmatprep.mubr.bf16.mxu0 %v8868_v0  ;;  %7159 = vmatpush3.bf16.msra.mxu0 %v7390_v45  ;;  %v8947_v29 = vcombine.low %v3373_v42, %v3383_v49  ;;  %v8949_v17 = vrot.slane %v3428_v11, 5  ;;  %v3183_v28 = vld [vmem:[#allocation2 + $0xa8] sm:$0xf] }
 0x1b8   : > { %v3460_v48 = vshll.u32 %v3177_v27, 16  ;;  %v3466_v15 = vshll.u32 %v8934_v10, 16  ;;  %7160 = vmatprep.subr.bf16.mxu0 %v7394_v18  ;;  %v8952_v5 = vcombine.low %v3397_v53, %v3407_v34  ;;  %v8954_v58 = vrot.slane %v3415_v47, 4 }
 0x1b9   : > { %v3449_v0 = vor.u32 %v3448_v20, %v8942_v7  ;;  %v3459_v45 = vrot.slane %v3457_v6, 4  ;;  %v10570_v33 = vcombine.low %v10569_v32, %v8440_v1  ;;  %v3426_v55 = vrot.slane %v3425_v12, 4  ;;  %v7402_v1 = vld [vmem:[%s10510_s3 + $0x190] sm:$0xff]  }
 0x1ba   : > { %v3462_v43 = vrot.slane %v3460_v48, 5  ;;  %v8967_v40 = vrot.slane %v3466_v15, 5  ;;  %v3470_v44 = vshrl.u32 %v8934_v10, 16  ;;  %v3440_v42 = vrot.slane %v3439_v4, 4  ;;  %v8976_v4 = vld [vmem:[#allocation2 + $0xac] sm:$0xf] }
 0x1bb   : > { %6959 = vmatmul.mubr.bf16.gmra.mxu1 %v10570_v33  ;;  %v3454_v11 = vrot.slane %v3452_v37, 5  ;;  %v3481_v35 = vshrl.u32 %v3180_v57, 16  ;;  %v3484_v24 = vshll.u32 %v3180_v57, 16  ;;  %7161 = vmatpush3.bf16.msra.mxu0 %v7394_v18  ;;  %v3450_v27 = vrot.slane %v3449_v0, 4  ;;  %v7381_v18 = vld [vmem:[#allocation2 + $0x18] sm:$0xff]   ;;  %v7383_v57 = vld [vmem:[#allocation2 + $0x24] sm:$0xff]  }
 0x1bc   : > { %7026 = vmatprep.mubr.bf16.mxu1 %v7379_v9  ;;  %v3463_v49 = vor.u32 %v3462_v43, %v3459_v45  ;;  %v3472_v47 = vrot.slane %v3470_v44, 4  ;;  %v3490_v56 = vshll.u32 %v8960_v60, 16  ;;  %7162 = vmatprep.subr.bf16.mxu0 %v7398_v2  ;;  %v3476_v53 = vshll.u32 %v8965_v31, 16  ;;  %v8986_v48 = vld [vmem:[#allocation2 + $0xa4] sm:$0x1]  ;;  %v7384_v0 = vld [vmem:[%s10510_s3 + $0x170] sm:$0xff]  }
 0x1bd   : > { %v3483_v34 = vrot.slane %v3481_v35, 4  ;;  %v3486_v12 = vrot.slane %v3484_v24, 5  ;;  %v3494_v9 = vshrl.u32 %v8960_v60, 16  ;;  %v3421_v20 = vsel %vm7573_vm2, %v8954_v58, %v8912_v26  ;;  %v3186_v44 = vld [vmem:[#allocation2 + $0xb4] sm:$0xf] }
 0x1be   : > { %v3431_v37 = vsel %vm7573_vm2, %v3426_v55, %v8949_v17  ;;  %v3473_v6 = vor.u32 %v3472_v47, %v8967_v40  ;;  %v8988_v15 = vrot.slane %v3490_v56, 5  ;;  %7083 = vmatmul.mubr.bf16.gmra.mxu0 %v8917_v61  ;;  %v8994_v45 = vrot.slane %v3463_v49, 4  ;;  %v9002_v55 = vld [vmem:[#allocation2 + $0xb0] sm:$0x1]  ;;  %v9017_v47 = vld [vmem:[#allocation2 + $0xb8] sm:$0xf] }
 0x1bf   : > { %v3487_v26 = vor.u32 %v3486_v12, %v3483_v34  ;;  %v3496_v58 = vrot.slane %v3494_v9, 4  ;;  %v3505_v32 = vshrl.u32 %v3183_v28, 16  ;;  %7086 = vmatprep.mubr.bf16.mxu0 %v8919_v19  ;;  %7163 = vmatpush3.bf16.msra.mxu0 %v7398_v2  ;;  %v3445_v17 = vsel %vm7573_vm2, %v3440_v42, %v8942_v7  ;;  %10571 = vst [vmem:[#allocation10_spill] sm:$0xff] %v9002_v55  ;;  %v7406_v7 = vld [vmem:[%s10510_s3 + $0x188] sm:$0xff]  }
 0x1c0   : > { %v3455_v33 = vsel %vm7573_vm2, %v3450_v27, %v3454_v11  ;;  %v3508_v43 = vshll.u32 %v3183_v28, 16  ;;  %v3514_v61 = vshll.u32 %v8976_v4, 16  ;;  %v9005_v35 = vrot.slane %v3473_v6, 4  ;;  %7164 = vmatprep.subr.bf16.mxu0 %v7402_v1  ;;  %10572 = vst [vmem:[#allocation11_spill] sm:$0xff] %v9017_v47  ;;  %v7388_v56 = vld [vmem:[%s10510_s3 + $0x168] sm:$0xff]  }
 0x1c1   : > { %v9007_v24 = vrot.slane %v3476_v53, 5  ;;  %v3500_v19 = vshll.u32 %v8986_v48, 16  ;;  %v3507_v2 = vrot.slane %v3505_v32, 4  ;;  %v3497_v42 = vor.u32 %v3496_v58, %v8988_v15 }
 0x1c2   : > { %v3510_v11 = vrot.slane %v3508_v43, 5  ;;  %v9014_v27 = vrot.slane %v3514_v61, 5  ;;  %v3518_v49 = vshrl.u32 %v8976_v4, 16  ;;  %v9023_v28 = vcombine.low %v3421_v20, %v3431_v37  ;;  %v3898_v43 = vld [vmem:[#allocation2 + $0xc] sm:$0xe]  ;;  %v7387_v61 = vld [vmem:[#allocation2 + $0x3c] sm:$0xff]  }
 0x1c3   : > { %7027 = vmatmul.mubr.bf16.vlgmr.msra.gmra.mxu1 %v7381_v18  ;;  %v9025_v53 = vcombine.low %v3445_v17, %v3455_v33  ;;  %v3469_v34 = vsel %vm7573_vm2, %v8994_v45, %v8967_v40  ;;  %v9031_v12 = vrot.slane %v3487_v26, 4  ;;  %7165 = vmatpush3.bf16.msra.mxu0 %v7402_v1  ;;  %v9034_v18 = vld [vmem:[#allocation2 + $0xbc] sm:$0x1]  ;;  %v3529_v6 = vshrl.u32 %v3186_v44, 16  ;;  %v7385_v40 = vld [vmem:[#allocation2 + $0x30] sm:$0xff]   ;;  %v7410_v33 = vld [vmem:[%s10510_s3 + $0x180] sm:$0xff]  }
 0x1c4   : > { %7107 = vmatpush3.bf16.msra.mxu1 %v8781_v36  ;;  %7030 = vmatprep.mubr.bf16.mxu1 %v7383_v57  ;;  %v3520_v9 = vrot.slane %v3518_v49, 4  ;;  %v3524_v36 = vshll.u32 %v9002_v55, 16  ;;  %10573 = vst [vmem:[#allocation13_spill] sm:$0xff] %v9034_v18  ;;  %v3532_v57 = vshll.u32 %v3186_v44, 16  ;;  %v9036_v20 = vrot.slane %v3500_v19, 5 }
 0x1c5   : > { %7108 = vmatprep.subr.bf16.mxu1 %v7384_v0  ;;  %v3511_v37 = vor.u32 %v3510_v11, %v3507_v2  ;;  %7166 = vmatprep.subr.bf16.mxu0 %v7406_v7  ;;  %v3538_v58 = vshll.u32 %v9017_v47, 16  ;;  %v3542_v32 = vshrl.u32 %v9017_v47, 16  ;;  %v3479_v1 = vsel %vm7573_vm2, %v9005_v35, %v9007_v24  ;;  %v7392_v35 = vld [vmem:[%s10510_s3 + $0x160] sm:$0xff]   ;;  %v10577_v47 = vld [vmem:[#allocation5_spill] sm:$0xff] }
 0x1c6   : > { %v3498_v45 = vrot.slane %v3497_v42, 4  ;;  %v3521_v26 = vor.u32 %v3520_v9, %v9014_v27  ;;  %v3531_v17 = vrot.slane %v3529_v6, 4  ;;  %7087 = vmatmul.mubr.bf16.gmra.mxu0 %v8947_v29  ;;  %v3534_v44 = vrot.slane %v3532_v57, 5  ;;  %v10574_v29 = vld [vmem:[#allocation3_spill] sm:$0xff]  ;;  %v10575_v42 = vld [vmem:[#allocation6_spill] sm:$0xff]  ;;  %v10576_v9 = vld [vmem:[#allocation4_spill] sm:$0xff] }
 0x1c7   : > { %v9049_v19 = vrot.slane %v3538_v58, 5  ;;  %v3544_v2 = vrot.slane %v3542_v32, 4  ;;  %v3548_v11 = vshll.u32 %v9034_v18, 16  ;;  %7090 = vmatprep.mubr.bf16.mxu0 %v8952_v5  ;;  %v3526_v24 = vrot.slane %v3524_v36, 5  ;;  %7167 = vmatpush3.bf16.msra.mxu0 %v7406_v7  ;;  %v9071_v36 = vld [vmem:[%s10510_s3 + $0x238] sm:$0xff]  }
 0x1c8   : > { %7109 = vmatpush3.bf16.msra.mxu1 %v7384_v0  ;;  %v3493_v0 = vsel %vm7573_vm2, %v9031_v12, %v8988_v15  ;;  %v459_v49 = vmul.f32 %v10575_v42, %v10574_v29  ;;  %v460_v6 = vmul.f32 %v10575_v42, %v10576_v9  ;;  %v3512_v57 = vrot.slane %v3511_v37, 4  ;;  %7168 = vmatprep.subr.bf16.mxu0 %v7410_v33 }
 0x1c9   : > { %7110 = vmatprep.subr.bf16.mxu1 %v7388_v56  ;;  %v3535_v58 = vor.u32 %v3534_v44, %v3531_v17  ;;  %v3545_v32 = vor.u32 %v3544_v2, %v9049_v19  ;;  %v6421_v18 = vrot.slane %v3898_v43, 9  ;;  %v3522_v5 = vrot.slane %v3521_v26, 4  ;;  %v10578_v26 = vld [vmem:[#allocation12_spill] sm:$0xff] }
 0x1ca   : > { %v499_v55 = vmul.f32 %v10577_v47, %v459_v49  ;;  %v500_v15 = vmul.f32 %v10577_v47, %v460_v6  ;;  %v3964_v12 = vrot.slane %v8643_v21, 5  ;;  %v3503_v7 = vsel %vm7573_vm2, %v3498_v45, %v9036_v20  ;;  %v7396_v21 = vld [vmem:[%s10510_s3 + $0x158] sm:$0xff]   ;;  %v7472_v43 = vld [vmem:[%s7917_s27] ss:$0 sm:$0xff]  ;;  %v3900_v45 = vld [vmem:[#allocation2 + $0x24] sm:$0xe] }
 0x1cb   : > { %7031 = vmatmul.mubr.bf16.gmra.mxu1 %v7385_v40  ;;  %v3536_v37 = vrot.slane %v3535_v58, 4  ;;  %v3550_v40 = vrot.slane %v3548_v11, 5  ;;  %v3967_v17 = vrot.slane %v10578_v26, 5  ;;  %v3546_v47 = vrot.slane %v3545_v32, 4  ;;  %7169 = vmatpush3.bf16.msra.mxu0 %v7410_v33  ;;  %v7389_v11 = vld [vmem:[#allocation2 + $0x48] sm:$0xff]  }
 0x1cc   : > { %7034 = vmatprep.mubr.bf16.mxu1 %v7387_v61  ;;  %7111 = vmatpush3.bf16.msra.mxu1 %v7388_v56  ;;  %v538_v44 = vadd.f32 %v7472_v43, %v499_v55  ;;  %v539_v2 = vadd.f32 %v7472_v43, %v500_v15  ;;  %v3966_v29 = vrot.slane %v3964_v12, 4  ;;  %v6408_v61 = vcombine.low %v3469_v34, %v3479_v1  ;;  %v7391_v34 = vld [vmem:[#allocation2 + $0x54] sm:$0xff]   ;;  %v1220_v43 = vld [vmem:[#allocation2 + $0xc0] sm:$0xf] }
 0x1cd   : > { %7112 = vmatprep.subr.bf16.mxu1 %v7392_v35  ;;  %v3517_v56 = vsel %vm7573_vm2, %v3512_v57, %v9014_v27  ;;  %v9086_v20 = vsel %vm8383_vm4, %v6421_v18, %v3964_v12  ;;  %v3527_v42 = vsel %vm7573_vm2, %v3522_v5, %v3526_v24  ;;  %7250 = vmatprep.subr.bf16.mxu0 %v9071_v36  ;;  %v3901_v24 = vld [vmem:[#allocation2 + $0x30] sm:$0xe]  ;;  %v6423_v49 = vrot.slane %v3900_v45, 9  ;;  %v3902_v12 = vld [vmem:[#allocation2 + $0x3c] sm:$0xe] }
 0x1ce   : > { %vm570_vm5 = vcmp.ge.f32.partialorder %v538_v44, 0.0  ;;  %vm571_vm6 = vcmp.ge.f32.partialorder %v539_v2, 0.0  ;;  %v602_v55 = vmul.f32 0.2, %v538_v44  ;;  %7091 = vmatmul.mubr.bf16.gmra.mxu0 %v9023_v28  ;;  %v6409_v27 = vcombine.low %v3493_v0, %v3503_v7 }
 0x1cf   : > { %v3541_v18 = vsel %vm7573_vm2, %v3536_v37, %v9049_v19  ;;  %v603_v1 = vmul.f32 0.2, %v539_v2  ;;  %v9097_v33 = vsel %vm8383_vm4, %v3966_v29, %v3967_v17  ;;  %7094 = vmatprep.mubr.bf16.mxu0 %v9025_v53  ;;  %v3551_v28 = vsel %vm7573_vm2, %v3546_v47, %v3550_v40 }
 0x1d0   : > { %7113 = vmatpush3.bf16.msra.mxu1 %v7392_v35  ;;  %v7400_v35 = vld [vmem:[%s10510_s3 + $0x150] sm:$0xff]   ;;  %v634_v0 = vsel %vm570_vm5, %v538_v44, %v602_v55  ;;  %v6453_v19 = vcombine.low %v9086_v20, %v9097_v33  ;;  %v9108_v9 = vcombine.low %v3517_v56, %v3527_v42  ;;  %v3978_v53 = vrot.slane %v8685_v13, 5  ;;  %v7404_v13 = vld [vmem:[%s10510_s3 + $0x148] sm:$0xff]   ;;  %v7393_v56 = vld [vmem:[#allocation2 + $0x60] sm:$0xff]  }
 0x1d1   : > { %7114 = vmatprep.subr.bf16.mxu1 %v7396_v21  ;;  %v635_v6 = vsel %vm571_vm6, %v539_v2, %v603_v1  ;;  %v6648_v57 = vpack.c.bf16 %v634_v0, %v634_v0  ;;  %v3981_v32 = vrot.slane %v8721_v62, 5  ;;  %v6424_v5 = vrot.slane %v3901_v24, 9  ;;  %v4784_v20 = vld [vmem:[#allocation2 + $0x1c] sm:$0xf] }
 0x1d2   : > { %v6649_v58 = vpack.c.bf16 %v635_v6, %v635_v6  ;;  %v3985_v15 = vrot.slane %v8712_v14, 5  ;;  %v9114_v7 = vcombine.low %v3541_v18, %v3551_v28  ;;  %v9118_v26 = vsel %vm8383_vm4, %v6423_v49, %v3978_v53  ;;  %v7395_v18 = vld [vmem:[#allocation2 + $0x6c] sm:$0xff]   ;;  %v1224_v28 = vld [vmem:[#allocation2 + $0xc8] sm:$0x1]  ;;  %v3904_v49 = vld [vmem:[#allocation2 + $0x54] sm:$0xe] }
 0x1d3   : > { %7035 = vmatmul.mubr.bf16.gmra.mxu1 %v7389_v11  ;;  %v1045_v37 = vshrl.u32 %v6648_v57, 16  ;;  %v1048_v40 = vshll.u32 %v6648_v57, 16  ;;  %v3980_v47 = vrot.slane %v3978_v53, 4  ;;  %v3988_v2 = vrot.slane %v8744_v39, 5 }
 0x1d4   : > { %7038 = vmatprep.mubr.bf16.mxu1 %v7391_v34  ;;  %7115 = vmatpush3.bf16.msra.mxu1 %v7396_v21  ;;  %v1053_v62 = vshrl.u32 %v6649_v58, 16  ;;  %v1056_v17 = vshll.u32 %v6649_v58, 16  ;;  %v9125_v14 = vsel %vm8383_vm4, %v6424_v5, %v3985_v15  ;;  %v3987_v44 = vrot.slane %v3985_v15, 4  ;;  %v3903_v34 = vld [vmem:[#allocation2 + $0x48] sm:$0xe] }
 0x1d5   : > { %7116 = vmatprep.subr.bf16.mxu1 %v7400_v35  ;;  %v1047_v21 = vrot.slane %v1045_v37, 7  ;;  %v6425_v29 = vrot.slane %v3902_v12, 9  ;;  %v9130_v11 = vsel %vm8383_vm4, %v3980_v47, %v3981_v32  ;;  %v3992_v42 = vrot.slane %v8746_v46, 5  ;;  %v3905_v5 = vld [vmem:[#allocation2 + $0x60] sm:$0xe] }
 0x1d6   : > { %v1055_v45 = vrot.slane %v1053_v62, 7  ;;  %v3995_v55 = vrot.slane %v8763_v16, 5  ;;  %7095 = vmatmul.mubr.bf16.gmra.mxu0 %v6408_v61  ;;  %v6455_v39 = vcombine.low %v9118_v26, %v9130_v11  ;;  %v9138_v0 = vsel %vm8383_vm4, %v3987_v44, %v3988_v2  ;;  %v7408_v16 = vld [vmem:[%s10510_s3 + $0x140] sm:$0xff]   ;;  %v3906_v44 = vld [vmem:[#allocation2 + $0x6c] sm:$0xe]  ;;  %v7434_v26 = vld [vmem:[%s10510_s3 + $0x210] sm:$0xff]  }
 0x1d7   : > { %v1050_v1 = vor.u32 %v1048_v40, %v1047_v21  ;;  %v1051_v24 = vrot.slane %v1047_v21, 4  ;;  %7098 = vmatprep.mubr.bf16.mxu0 %v6409_v27  ;;  %v3994_v58 = vrot.slane %v3992_v42, 4  ;;  %v6426_v32 = vrot.slane %v3903_v34, 9 }
 0x1d8   : > { %7117 = vmatpush3.bf16.msra.mxu1 %v7400_v35  ;;  %v1058_v46 = vor.u32 %v1056_v17, %v1055_v45  ;;  %v1060_v6 = vrot.slane %v1055_v45, 4  ;;  %v9147_v35 = vsel %vm8383_vm4, %v6425_v29, %v3992_v42  ;;  %v3999_v27 = vrot.slane %v8776_v3, 5  ;;  %v3907_v45 = vld [vmem:[#allocation2 + $0x78] sm:$0xe] }
 0x1d9   : > { %7118 = vmatprep.subr.bf16.mxu1 %v7404_v13  ;;  %v1221_v53 = vsel %vm7970_vm15, %v1050_v1, %v1220_v43  ;;  %v4002_v62 = vrot.slane %v8793_v59, 5  ;;  %v6427_v17 = vrot.slane %v3904_v49, 9  ;;  %v9159_v47 = vsel %vm8383_vm4, %v3994_v58, %v3995_v55  ;;  %v9169_v59 = vld [vmem:[%s10510_s3 + $0x1f8] sm:$0xff]   ;;  %v7399_v49 = vld [vmem:[#allocation2 + $0x84] sm:$0xff]  }
 0x1da   : > { %v1059_v12 = vsel %vm7964_vm14, %v1051_v24, %v1058_v46  ;;  %1222 = vst [vmem:[#allocation2 + $0xc0] sm:$0xf] %v1221_v53  ;;  %v1225_v40 = vsel %vm7978_vm0, %v1060_v6, %v1224_v28  ;;  %v9163_v3 = vsel %vm8383_vm4, %v6426_v32, %v3999_v27  ;;  %v4001_v21 = vrot.slane %v3999_v27, 4  ;;  %v3908_v28 = vld [vmem:[#allocation2 + $0x84] sm:$0xe] }
 0x1db   : > { %7039 = vmatmul.mubr.bf16.gmra.mxu1 %v7393_v56  ;;  %1223 = vst [vmem:[#allocation2 + $0xc4] sm:$0xf] %v1059_v12  ;;  %1226 = vst [vmem:[#allocation2 + $0xc8] sm:$0x1] %v1225_v40  ;;  %v4006_v43 = vrot.slane %v8804_v54, 5  ;;  %v4009_v2 = vrot.slane %v8818_v51, 5 }
 0x1dc   : > { %7042 = vmatprep.mubr.bf16.mxu1 %v7395_v18  ;;  %7119 = vmatpush3.bf16.msra.mxu1 %v7404_v13  ;;  %v6428_v29 = vrot.slane %v3905_v5, 9  ;;  %v4013_v56 = vrot.slane %v8834_v8, 5  ;;  %v9177_v42 = vsel %vm8383_vm4, %v4001_v21, %v4002_v62  ;;  %v4016_v34 = vrot.slane %v8858_v50, 5  ;;  %v7397_v18 = vld [vmem:[#allocation2 + $0x78] sm:$0xff]   ;;  %v3909_v5 = vld [vmem:[#allocation2 + $0x90] sm:$0xe] }
 0x1dd   : > { %7120 = vmatprep.subr.bf16.mxu1 %v7408_v16  ;;  %v9181_v54 = vsel %vm8383_vm4, %v6427_v17, %v4006_v43  ;;  %v4008_v55 = vrot.slane %v4006_v43, 4  ;;  %v6429_v24 = vrot.slane %v3906_v44, 9  ;;  %v4020_v50 = vrot.slane %v8854_v63, 5  ;;  %v3910_v43 = vld [vmem:[#allocation2 + $0x9c] sm:$0xe]  ;;  %v7425_v13 = vld [vmem:[%s10510_s3 + $0x1e0] sm:$0xff]  }
 0x1de   : > { %v9188_v51 = vsel %vm8383_vm4, %v6428_v29, %v4013_v56  ;;  %v4015_v8 = vrot.slane %v4013_v56, 4  ;;  %7099 = vmatmul.mubr.bf16.gmra.mxu0 %v9108_v9  ;;  %v4023_v6 = vrot.slane %v8874_v22, 5  ;;  %v6430_v57 = vrot.slane %v3907_v45, 9  ;;  %v4788_v63 = vld [vmem:[#allocation2 + $0x2c] sm:$0x1] }
 0x1df   : > { %v9193_v46 = vsel %vm8383_vm4, %v4008_v55, %v4009_v2  ;;  %7102 = vmatprep.mubr.bf16.mxu0 %v9114_v7  ;;  %v4030_v58 = vrot.slane %v8900_v41, 5  ;;  %v9211_v22 = vsel %vm8383_vm4, %v6429_v24, %v4020_v50  ;;  %v4022_v7 = vrot.slane %v4020_v50, 4 }
 0x1e0   : > { %7121 = vmatpush3.bf16.msra.mxu1 %v7408_v16  ;;  %v9203_v9 = vsel %vm8383_vm4, %v4015_v8, %v4016_v34  ;;  %v4027_v16 = vrot.slane %v8883_v23, 5  ;;  %v6431_v27 = vrot.slane %v3908_v28, 9  ;;  %v7401_v8 = vld [vmem:[#allocation2 + $0x90] sm:$0xff]   ;;  %v6432_v50 = vrot.slane %v3909_v5, 9 }
 0x1e1   : > { %7202 = vmatprep.subr.bf16.mxu1 %v9169_v59  ;;  %v3189_v32 = vld [vmem:[#allocation2 + $0xc0] sm:$0xf]  ;;  %v9226_v21 = vsel %vm8383_vm4, %v4022_v7, %v4023_v6  ;;  %v4048_v5 = vrot.slane %v8960_v60, 5  ;;  %v7411_v60 = vld [vmem:[#allocation2 + $0x18] sm:$0xff]  }
 0x1e2   : > { %v9213_v15 = vld [vmem:[#allocation2 + $0xc4] sm:$0xf]  ;;  %v9215_v12 = vld [vmem:[#allocation2 + $0xc8] sm:$0x1]  ;;  %v3553_v37 = vshrl.u32 %v3189_v32, 16  ;;  %v3556_v23 = vshll.u32 %v3189_v32, 16  ;;  %v9219_v41 = vsel %vm8383_vm4, %v6430_v57, %v4027_v16 }
 0x1e3   : > { %7043 = vmatmul.mubr.bf16.gmra.mxu1 %v7397_v18  ;;  %v3562_v40 = vshll.u32 %v9213_v15, 16  ;;  %v3566_v62 = vshrl.u32 %v9213_v15, 16  ;;  %v3572_v17 = vshll.u32 %v9215_v12, 16  ;;  %v4029_v56 = vrot.slane %v4027_v16, 4  ;;  %v7403_v6 = vld [vmem:[#allocation2 + $0x9c] sm:$0xff]  }
 0x1e4   : > { %7046 = vmatprep.mubr.bf16.mxu1 %v7399_v49  ;;  %v3555_v44 = vrot.slane %v3553_v37, 4  ;;  %v3558_v2 = vrot.slane %v3556_v23, 5  ;;  %v4034_v18 = vrot.slane %v8907_v38, 5  ;;  %v4037_v49 = vrot.slane %v8921_v30, 5  ;;  %v5538_v32 = vld [vmem:[#allocation2 + $0x24] sm:$0xe] }
 0x1e5   : > { %v3564_v45 = vrot.slane %v3562_v40, 5  ;;  %v3568_v55 = vrot.slane %v3566_v62, 4  ;;  %v3574_v34 = vrot.slane %v3572_v17, 5  ;;  %v9233_v28 = vsel %vm8383_vm4, %v4029_v56, %v4030_v58  ;;  %v3911_v40 = vld [vmem:[#allocation2 + $0xa8] sm:$0xe] }
 0x1e6   : > { %v3559_v24 = vor.u32 %v3558_v2, %v3555_v44  ;;  %v9240_v16 = vsel %vm8383_vm4, %v6431_v27, %v4034_v18  ;;  %v4036_v7 = vrot.slane %v4034_v18, 4  ;;  %v4041_v37 = vrot.slane %v8934_v10, 5  ;;  %v3912_v44 = vld [vmem:[#allocation2 + $0xb4] sm:$0xe] }
 0x1e7   : > { %v3569_v57 = vor.u32 %v3568_v55, %v3564_v45  ;;  %v4044_v23 = vrot.slane %v8965_v31, 5  ;;  %v6433_v58 = vrot.slane %v3910_v43, 9  ;;  %v4051_v17 = vrot.slane %v8986_v48, 5 }
 0x1e8   : > { %v3560_v38 = vrot.slane %v3559_v24, 4  ;;  %v9246_v30 = vsel %vm8383_vm4, %v4036_v7, %v4037_v49  ;;  %v9256_v31 = vsel %vm8383_vm4, %v6432_v50, %v4041_v37  ;;  %v4043_v43 = vrot.slane %v4041_v37, 4  ;;  %v10582_v24 = vld [vmem:[#allocation10_spill] sm:$0xff]  ;;  %v3913_v50 = vld [vmem:[#allocation2 + $0xc0] sm:$0xe]  ;;  %v10583_v7 = vld [vmem:[#allocation11_spill] sm:$0xff] }
 0x1e9   : > { %v3570_v62 = vrot.slane %v3569_v57, 4  ;;  %v9262_v48 = vsel %vm8383_vm4, %v6433_v58, %v4048_v5  ;;  %v4050_v56 = vrot.slane %v4048_v5, 4  ;;  %v4058_v49 = vrot.slane %v10582_v24, 5  ;;  %v7405_v37 = vld [vmem:[#allocation2 + $0xa8] sm:$0xff]   ;;  %v7407_v5 = vld [vmem:[#allocation2 + $0xb4] sm:$0xff]  }
 0x1ea   : > { %v3565_v27 = vsel %vm7573_vm2, %v3560_v38, %v3564_v45  ;;  %v6434_v45 = vrot.slane %v3911_v40, 9  ;;  %v9266_v18 = vsel %vm8383_vm4, %v4043_v43, %v4044_v23  ;;  %v6435_v57 = vrot.slane %v3912_v44, 9  ;;  %v10584_v40 = vld [vmem:[#allocation13_spill] sm:$0xff]  ;;  %v7423_v23 = vld [vmem:[#allocation2 + $0x60] sm:$0xff]  }
 0x1eb   : > { %7047 = vmatmul.mubr.bf16.gmra.mxu1 %v7401_v8  ;;  %v3575_v2 = vsel %vm7573_vm2, %v3570_v62, %v3574_v34  ;;  %v4055_v8 = vrot.slane %v8976_v4, 5  ;;  %v4062_v38 = vrot.slane %v10583_v7, 5  ;;  %v4065_v62 = vrot.slane %v10584_v40, 5  ;;  %v3899_v7 = vld [vmem:[#allocation2 + $0x18] sm:$0xe] }
 0x1ec   : > { %7050 = vmatprep.mubr.bf16.mxu1 %v7403_v6  ;;  %v6412_v55 = vcombine.low %v3565_v27, %v3575_v2  ;;  %v9274_v6 = vsel %vm8383_vm4, %v4050_v56, %v4051_v17  ;;  %v6436_v43 = vrot.slane %v3913_v50, 9  ;;  %v4069_v44 = vrot.slane %v9213_v15, 5  ;;  %v7412_v15 = vld [vmem:[#allocation2 + $0x24] sm:$0xff]   ;;  %v7415_v50 = vld [vmem:[#allocation2 + $0x30] sm:$0xff]  }
 0x1ed   : > { %v9281_v4 = vsel %vm8383_vm4, %v6434_v45, %v4055_v8  ;;  %v4057_v58 = vrot.slane %v4055_v8, 4  ;;  %v9286_v17 = vsel %vm8383_vm4, %v6435_v57, %v4062_v38  ;;  %v4064_v27 = vrot.slane %v4062_v38, 4  ;;  %v7418_v38 = vld [vmem:[%s10510_s3 + $0x230] sm:$0xff]  }
 0x1ee   : > { %7103 = vmatmul.mubr.bf16.gmra.mxu0 %v6412_v55  ;;  %v4072_v56 = vrot.slane %v9215_v12, 5  ;;  %v9302_v55 = vsel %vm8383_vm4, %v6436_v43, %v4069_v44  ;;  %v4071_v8 = vrot.slane %v4069_v44, 4  ;;  %v6422_v40 = vrot.slane %v3899_v7, 9  ;;  %v9316_v43 = vpop.f32.mrf.mxu0  ;;  %v7422_v44 = vld [vmem:[%s10510_s3 + $0x228] sm:$0xff]   ;;  %v7426_v7 = vld [vmem:[%s10510_s3 + $0x220] sm:$0xff]  }
 0x1ef   : > { %7170 = vmatprep.mubr.bf16.mxu0 %v7411_v60  ;;  %v9291_v2 = vsel %vm8383_vm4, %v4057_v58, %v4058_v49  ;;  %v9298_v60 = vsel %vm8383_vm4, %v4064_v27, %v4065_v62  ;;  %v7473_v49 = vld [vmem:[#allocation2 + $0x1c] sm:$0xf]  ;;  %v7409_v58 = vld [vmem:[#allocation2 + $0xc0] sm:$0xff]   ;;  %10585 = vst [vmem:[#allocation3_spill] sm:$0xff] %v9316_v43  ;;  %v6558_v53 = vrot.slane %v5538_v32, 9 }
 0x1f0   : > { %v3971_v12 = vrot.slane %v7473_v49, 5  ;;  %v9308_v57 = vsel %vm8383_vm4, %v4071_v8, %v4072_v56  ;;  %v7416_v56 = vld [vmem:[#allocation2 + $0x3c] sm:$0xff]   ;;  %v9328_v49 = vpop.f32.mrf.mxu0 }
 0x1f1   : > { %10586 = vst [vmem:[#allocation6_spill] sm:$0xff] %v9328_v49 }
 0x1f2   : > { %v3973_v62 = vrot.slane %v3971_v12, 4  ;;  %v3972_v8 = vsel %vm8383_vm4, %v6422_v40, %v3971_v12  ;;  %v9333_v12 = vpop.f32.mrf.mxu0  ;;  %v4786_v40 = vld [vmem:[#allocation2 + $0x24] sm:$0xf] }
 0x1f3   : > { %7051 = vmatmul.mubr.bf16.gmra.mxu1 %v7405_v37  ;;  %10587 = vst [vmem:[#allocation4_spill] sm:$0xff] %v9333_v12  ;;  %v4856_v24 = vshrl.u32 %v4786_v40, 16  ;;  %v4859_v45 = vshll.u32 %v4786_v40, 16 }
 0x1f4   : > { %7054 = vmatprep.mubr.bf16.mxu1 %v7407_v5  ;;  %v7474_v5 = vld [vmem:[#allocation2 + $0x20] sm:$0x1]  ;;  %v9345_v34 = vpop.f32.mrf.mxu0 }
 0x1f5   : > { %v3974_v27 = vrot.slane %v7474_v5, 5  ;;  %v5537_v5 = vld [vmem:[#allocation2 + $0x18] sm:$0xe]  ;;  %10588 = vst [vmem:[#allocation5_spill] sm:$0xff] %v9345_v34  ;;  %v4858_v1 = vrot.slane %v4856_v24, 4  ;;  %v10592_v34 = vcombine.low %v9147_v35, %v9159_v47 }
 0x1f6   : > { %7171 = vmatmul.mubr.bf16.vlgmr.msra.gmra.mxu0 %v7412_v15  ;;  %v7419_v15 = vld [vmem:[#allocation2 + $0x48] sm:$0xff]   ;;  %v6557_v10 = vrot.slane %v5537_v5, 9  ;;  %v9358_v61 = vpop.f32.mrf.mxu0  ;;  %v9370_v24 = vld [vmem:[#allocation2 + $0x34] sm:$0xf] }
 0x1f7   : > { %7251 = vmatpush3.bf16.msra.mxu0 %v9071_v36  ;;  %7174 = vmatprep.mubr.bf16.mxu0 %v7415_v50  ;;  %v3975_v36 = vsel %vm8383_vm4, %v3973_v62, %v3974_v27  ;;  %v4783_v50 = vld [vmem:[#allocation2 + $0x18] sm:$0xf]  ;;  %v5603_v27 = vrot.slane %v4784_v20, 5  ;;  %10589 = vst [vmem:[#allocation12_spill] sm:$0xff] %v9358_v61  ;;  %v4875_v61 = vshll.u32 %v4788_v63, 16  ;;  %v5617_v35 = vrot.slane %v9370_v24, 5 }
 0x1f8   : > { %7252 = vmatprep.subr.bf16.mxu0 %v7418_v38  ;;  %v4832_v33 = vshrl.u32 %v4783_v50, 16  ;;  %v7430_v62 = vld [vmem:[%s10510_s3 + $0x218] sm:$0xff]  }
 0x1fb   : > { %7055 = vmatmul.mubr.bf16.gmra.mxu1 %v7409_v58  ;;  %7253 = vmatpush3.bf16.msra.mxu0 %v7418_v38  ;;  %v6454_v58 = vcombine.low %v3972_v8, %v3975_v36  ;;  %v7417_v38 = vld [vmem:[%s10510_s3 + $0x1f0] sm:$0xff]   ;;  %v4841_v8 = vshll.u32 %v4784_v20, 16  ;;  %v4845_v36 = vshrl.u32 %v4784_v20, 16  ;;  %v5605_v20 = vrot.slane %v5603_v27, 4 }
 0x1fc   : > { %7122 = vmatprep.mubr.bf16.mxu1 %v6453_v19  ;;  %7254 = vmatprep.subr.bf16.mxu0 %v7422_v44  ;;  %v4835_v19 = vshll.u32 %v4783_v50, 16  ;;  %v4787_v50 = vld [vmem:[#allocation2 + $0x28] sm:$0xf] }
 0x1fd   : > { %v4869_v40 = vshrl.u32 %v4787_v50, 16  ;;  %v9353_v11 = vrot.slane %v4841_v8, 5  ;;  %v5610_v5 = vrot.slane %v4787_v50, 5  ;;  %v7424_v8 = vld [vmem:[#allocation2 + $0x6c] sm:$0xff]  }
 0x1fe   : > { %7175 = vmatmul.mubr.bf16.gmra.mxu0 %v7416_v56  ;;  %v4785_v56 = vld [vmem:[#allocation2 + $0x20] sm:$0x1]  ;;  %v4837_v37 = vrot.slane %v4835_v19, 5  ;;  %v4865_v19 = vshll.u32 %v4787_v50, 16  ;;  %v5613_v50 = vrot.slane %v4788_v63, 5 }
 0x1ff   : > { %7178 = vmatprep.mubr.bf16.mxu0 %v7419_v15  ;;  %7255 = vmatpush3.bf16.msra.mxu0 %v7422_v44  ;;  %v7420_v44 = vld [vmem:[#allocation2 + $0x54] sm:$0xff]   ;;  %v4834_v15 = vrot.slane %v4832_v33, 4  ;;  %v5606_v33 = vrot.slane %v4785_v56, 5 }
 0x200   : > { %7256 = vmatprep.subr.bf16.mxu0 %v7426_v7 }
 0x201   : > { %v4838_v29 = vor.u32 %v4837_v37, %v4834_v15  ;;  %v9366_v32 = vsel %vm8383_vm4, %v5605_v20, %v5606_v33  ;;  %v4789_v37 = vld [vmem:[#allocation2 + $0x30] sm:$0xf]  ;;  %v10590_v15 = vcombine.low %v9125_v14, %v9138_v0  ;;  %v9381_v20 = vpop.f32.mrf.mxu1  ;;  %v9396_v14 = vpop.f32.mrf.mxu0 }
 0x202   : > { %10591 = vst [vmem:[#allocation8_spill] sm:$0xff] %v9381_v20  ;;  %10593 = vst [vmem:[#allocation7_spill] sm:$0xff] %v9396_v14  ;;  %v5539_v0 = vld [vmem:[#allocation2 + $0x30] sm:$0xe]  ;;  %v4889_v20 = vshll.u32 %v9370_v24, 16 }
 0x203   : > { %7123 = vmatmul.mubr.bf16.vlgmr.msra.gmra.mxu1 %v6454_v58  ;;  %v7421_v58 = vld [vmem:[%s10510_s3 + $0x1e8] sm:$0xff]   ;;  %7257 = vmatpush3.bf16.msra.mxu0 %v7426_v7  ;;  %v4861_v7 = vrot.slane %v4859_v45, 5  ;;  %v9368_v45 = vrot.slane %v4865_v19, 5  ;;  %v9383_v33 = vrot.slane %v4838_v29, 4  ;;  %v9387_v19 = vsel %vm8383_vm4, %v6558_v53, %v5610_v5 }
 0x204   : > { %7203 = vmatpush3.bf16.msra.mxu1 %v9169_v59  ;;  %7126 = vmatprep.mubr.bf16.mxu1 %v6455_v39  ;;  %v4847_v39 = vrot.slane %v4845_v36, 4  ;;  %v4851_v59 = vshll.u32 %v4785_v56, 16  ;;  %v9362_v56 = vsel %vm8383_vm4, %v6557_v10, %v5603_v27  ;;  %v5612_v27 = vrot.slane %v5610_v5, 4 }
 0x205   : > { %7204 = vmatprep.subr.bf16.mxu1 %v7417_v38  ;;  %7258 = vmatprep.subr.bf16.mxu0 %v7430_v62  ;;  %v4880_v29 = vshrl.u32 %v4789_v37, 16  ;;  %v4893_v53 = vshrl.u32 %v9370_v24, 16  ;;  %v6559_v14 = vrot.slane %v5539_v0, 9  ;;  %v9425_v49 = vrot.slane %v4889_v20, 5  ;;  %v9438_v20 = vld [vmem:[#allocation2 + $0x44] sm:$0x1] }
 0x206   : > { %7179 = vmatmul.mubr.bf16.gmra.mxu0 %v7420_v44  ;;  %v4848_v36 = vor.u32 %v4847_v39, %v9353_v11  ;;  %v9376_v10 = vrot.slane %v4851_v59, 5  ;;  %v4792_v44 = vld [vmem:[#allocation2 + $0x3c] sm:$0xf]  ;;  %v9389_v39 = vld [vmem:[#allocation2 + $0x38] sm:$0x1] }
 0x207   : > { %7182 = vmatprep.mubr.bf16.mxu0 %v7423_v23  ;;  %7259 = vmatpush3.bf16.msra.mxu0 %v7430_v62  ;;  %v4871_v23 = vrot.slane %v4869_v40, 4  ;;  %v7438_v62 = vld [vmem:[%s10510_s3 + $0x208] sm:$0xff]   ;;  %v4862_v40 = vor.u32 %v4861_v7, %v4858_v1  ;;  %v9391_v59 = vld [vmem:[#allocation2 + $0x40] sm:$0xf]  ;;  %v7429_v1 = vld [vmem:[%s10510_s3 + $0x1d8] sm:$0xff]   ;;  %v4904_v47 = vshrl.u32 %v4792_v44, 16  ;;  %v9412_v7 = vsel %vm8383_vm4, %v5612_v27, %v5613_v50 }
 0x208   : > { %7205 = vmatpush3.bf16.msra.mxu1 %v7417_v38  ;;  %v7427_v38 = vld [vmem:[#allocation2 + $0x78] sm:$0xff]   ;;  %7260 = vmatprep.subr.bf16.mxu0 %v7434_v26  ;;  %v9408_v5 = vrot.slane %v4848_v36, 4  ;;  %v5620_v12 = vrot.slane %v9389_v39, 5  ;;  %v9423_v36 = vpop.f32.mrf.mxu0  ;;  %v4882_v27 = vrot.slane %v4880_v29, 4  ;;  %v4895_v43 = vrot.slane %v4893_v53, 4  ;;  %v7428_v53 = vld [vmem:[#allocation2 + $0x84] sm:$0xff]  }
 0x209   : > { %7206 = vmatprep.subr.bf16.mxu1 %v7421_v58  ;;  %v4872_v63 = vor.u32 %v4871_v23, %v9368_v45  ;;  %v9416_v23 = vpop.f32.mrf.mxu1  ;;  %v9418_v24 = vrot.slane %v4862_v40, 4  ;;  %10595 = vst [vmem:[#allocation10_spill] sm:$0xff] %v9423_v36  ;;  %v5619_v40 = vrot.slane %v5617_v35, 4  ;;  %v4906_v0 = vrot.slane %v4904_v47, 4 }
 0x20a   : > { %10594 = vst [vmem:[#allocation9_spill] sm:$0xff] %v9416_v23  ;;  %v4854_v47 = vsel %vm7573_vm2, %v9408_v5, %v9376_v10 }
 0x20b   : > { %7127 = vmatmul.mubr.bf16.gmra.mxu1 %v10590_v15  ;;  %v4883_v15 = vshll.u32 %v4789_v37, 16  ;;  %7261 = vmatpush3.bf16.msra.mxu0 %v7434_v26  ;;  %v4913_v37 = vshll.u32 %v9391_v59, 16  ;;  %v4917_v26 = vshrl.u32 %v9391_v59, 16  ;;  %v4868_v10 = vsel %vm7573_vm2, %v9418_v24, %v9368_v45 }
 0x20c   : > { %7130 = vmatprep.mubr.bf16.mxu1 %v10592_v34  ;;  %7207 = vmatpush3.bf16.msra.mxu1 %v7421_v58  ;;  %v4907_v34 = vshll.u32 %v4792_v44, 16  ;;  %v7442_v58 = vld [vmem:[%s10510_s3 + $0x200] sm:$0xff]   ;;  %v9420_v44 = vrot.slane %v4875_v61, 5  ;;  %v9430_v61 = vrot.slane %v4872_v63, 4  ;;  %v9445_v63 = vpop.f32.mrf.mxu1  ;;  %v9478_v45 = vsel %vm8383_vm4, %v5619_v40, %v5620_v12 }
 0x20d   : > { %7208 = vmatprep.subr.bf16.mxu1 %v7425_v13  ;;  %7262 = vmatprep.subr.bf16.mxu0 %v7438_v62  ;;  %v4885_v50 = vrot.slane %v4883_v15, 5  ;;  %v9440_v29 = vrot.slane %v4913_v37, 5  ;;  %v4919_v15 = vrot.slane %v4917_v26, 4  ;;  %10597 = vst [vmem:[#allocation11_spill] sm:$0xff] %v9445_v63  ;;  %v4795_v37 = vld [vmem:[#allocation2 + $0x48] sm:$0xf]  ;;  %v9461_v26 = vpop.f32.mrf.mxu0 }
 0x20e   : > { %7183 = vmatmul.mubr.bf16.gmra.mxu0 %v7424_v8  ;;  %v7433_v8 = vld [vmem:[%s10510_s3 + $0x1d0] sm:$0xff]   ;;  %v4909_v23 = vrot.slane %v4907_v34, 5  ;;  %v4899_v34 = vshll.u32 %v9389_v39, 16  ;;  %10599 = vst [vmem:[#allocation13_spill] sm:$0xff] %v9461_v26  ;;  %v5624_v39 = vrot.slane %v9391_v59, 5 }
 0x20f   : > { %7186 = vmatprep.mubr.bf16.mxu0 %v7427_v38  ;;  %7263 = vmatpush3.bf16.msra.mxu0 %v7438_v62  ;;  %v4844_v38 = vsel %vm7573_vm2, %v9383_v33, %v9353_v11  ;;  %v10596_v62 = vcombine.low %v9163_v3, %v9177_v42  ;;  %v9455_v33 = vsel %vm8383_vm4, %v6559_v14, %v5617_v35  ;;  %v7431_v42 = vld [vmem:[#allocation2 + $0x90] sm:$0xff]   ;;  %v5540_v35 = vld [vmem:[#allocation2 + $0x3c] sm:$0xe]  ;;  %v9484_v11 = vpop.f32.mrf.mxu1  ;;  %v9486_v12 = vpop.f32.mrf.mxu0 }
 0x210   : > { %7209 = vmatpush3.bf16.msra.mxu1 %v7425_v13  ;;  %7264 = vmatprep.subr.bf16.mxu0 %v7442_v58  ;;  %v10598_v3 = vcombine.low %v9181_v54, %v9193_v46  ;;  %v4886_v5 = vor.u32 %v4885_v50, %v4882_v27  ;;  %v4896_v14 = vor.u32 %v4895_v43, %v9425_v49  ;;  %v7437_v54 = vld [vmem:[%s10510_s3 + $0x1c8] sm:$0xff]   ;;  %v9481_v59 = vld [vmem:[#allocation2 + $0x50] sm:$0x1]  ;;  %v4901_v13 = vrot.slane %v4899_v34, 5 }
 0x211   : > { %7210 = vmatprep.subr.bf16.mxu1 %v7429_v1  ;;  %v4878_v46 = vsel %vm7573_vm2, %v9430_v61, %v9420_v44  ;;  %v4910_v43 = vor.u32 %v4909_v23, %v4906_v0  ;;  %v4920_v24 = vor.u32 %v4919_v15, %v9440_v29  ;;  %v5541_v27 = vld [vmem:[#allocation2 + $0x48] sm:$0xe]  ;;  %10600 = vst [vmem:[#allocation14_spill] sm:$0xff] %v9484_v11  ;;  %v6560_v44 = vrot.slane %v5540_v35, 9 }
 0x212   : > { %10601 = vst [vmem:[#allocation15_spill] sm:$0xff] %v9486_v12  ;;  %v4887_v23 = vrot.slane %v4886_v5, 4  ;;  %v4897_v40 = vrot.slane %v4896_v14, 4  ;;  %v5626_v0 = vrot.slane %v5624_v39, 4  ;;  %v5627_v15 = vrot.slane %v9438_v20, 5  ;;  %v7432_v14 = vld [vmem:[#allocation2 + $0x9c] sm:$0xff]  }
 0x213   : > { %7131 = vmatmul.mubr.bf16.gmra.mxu1 %v10596_v62  ;;  %v4796_v62 = vld [vmem:[#allocation2 + $0x4c] sm:$0xf]  ;;  %7265 = vmatpush3.bf16.msra.mxu0 %v7442_v58  ;;  %v4931_v58 = vshll.u32 %v4795_v37, 16  ;;  %v6561_v34 = vrot.slane %v5541_v27, 9  ;;  %v5634_v35 = vrot.slane %v9481_v59, 5  ;;  %v10602_v5 = vcombine.low %v9188_v51, %v9203_v9  ;;  %v9509_v51 = vpop.f32.mrf.mxu0 }
 0x214   : > { %7134 = vmatprep.mubr.bf16.mxu1 %v10598_v3  ;;  %7211 = vmatpush3.bf16.msra.mxu1 %v7429_v1  ;;  %v4923_v1 = vshll.u32 %v9438_v20, 16  ;;  %v5631_v50 = vrot.slane %v4796_v62, 5  ;;  %v4928_v3 = vshrl.u32 %v4795_v37, 16  ;;  %v4937_v61 = vshll.u32 %v4796_v62, 16  ;;  %v9496_v20 = vpop.f32.mrf.mxu1  ;;  %10605 = vst [vmem:[#allocation17_spill] sm:$0xff] %v9509_v51 }
 0x215   : > { %7212 = vmatprep.subr.bf16.mxu1 %v7433_v8  ;;  %v4941_v63 = vshrl.u32 %v4796_v62, 16  ;;  %v4911_v37 = vrot.slane %v4910_v43, 4  ;;  %v4921_v62 = vrot.slane %v4920_v24, 4  ;;  %v4933_v26 = vrot.slane %v4931_v58, 5  ;;  %10603 = vst [vmem:[#allocation16_spill] sm:$0xff] %v9496_v20 }
 0x216   : > { %7187 = vmatmul.mubr.bf16.gmra.mxu0 %v7428_v53  ;;  %v7441_v53 = vld [vmem:[%s10510_s3 + $0x1c0] sm:$0xff]   ;;  %v4925_v11 = vrot.slane %v4923_v1, 5  ;;  %v9498_v12 = vcombine.low %v4844_v38, %v4854_v47  ;;  %v9502_v43 = vsel %vm8383_vm4, %v6560_v44, %v5624_v39  ;;  %v9504_v1 = vrot.slane %v4937_v61, 5  ;;  %v4798_v58 = vld [vmem:[#allocation2 + $0x54] sm:$0xf]  ;;  %v9538_v61 = vpop.f32.mrf.mxu1 }
 0x217   : > { %7190 = vmatprep.mubr.bf16.mxu0 %v7431_v42  ;;  %v5633_v42 = vrot.slane %v5631_v50, 4  ;;  %v4943_v27 = vrot.slane %v4941_v63, 4  ;;  %v10604_v24 = vcombine.low %v9211_v22, %v9226_v21  ;;  %v4892_v9 = vsel %vm7573_vm2, %v4887_v23, %v9425_v49  ;;  %v5542_v63 = vld [vmem:[#allocation2 + $0x54] sm:$0xe]  ;;  %10606 = vst [vmem:[#allocation18_spill] sm:$0xff] %v9538_v61 }
 0x218   : > { %7213 = vmatpush3.bf16.msra.mxu1 %v7433_v8  ;;  %v4930_v8 = vrot.slane %v4928_v3, 4  ;;  %v7435_v3 = vld [vmem:[#allocation2 + $0xa8] sm:$0xff]   ;;  %v4902_v38 = vsel %vm7573_vm2, %v4897_v40, %v4901_v13  ;;  %v9518_v47 = vsel %vm8383_vm4, %v5626_v0, %v5627_v15  ;;  %v9520_v39 = vcombine.low %v4868_v10, %v4878_v46  ;;  %v9545_v40 = vld [vmem:[#allocation2 + $0x5c] sm:$0x1]  ;;  %v4801_v0 = vld [vmem:[#allocation2 + $0x60] sm:$0xf] }
 0x219   : > { %7214 = vmatprep.subr.bf16.mxu1 %v7437_v54  ;;  %v9526_v21 = vsel %vm8383_vm4, %v6561_v34, %v5631_v50  ;;  %v4947_v49 = vshll.u32 %v9481_v59, 16  ;;  %v4916_v13 = vsel %vm7573_vm2, %v4911_v37, %v9440_v29  ;;  %v4926_v44 = vsel %vm7573_vm2, %v4921_v62, %v4925_v11  ;;  %v9547_v11 = vpop.f32.mrf.mxu0  ;;  %v5543_v59 = vld [vmem:[#allocation2 + $0x60] sm:$0xe] }
 0x21a   : > { %v9536_v10 = vsel %vm8383_vm4, %v5633_v42, %v5634_v35  ;;  %v4934_v46 = vor.u32 %v4933_v26, %v4930_v8  ;;  %v9540_v50 = vcombine.low %v4892_v9, %v4902_v38  ;;  %v4944_v23 = vor.u32 %v4943_v27, %v9504_v1  ;;  %10607 = vst [vmem:[#allocation19_spill] sm:$0xff] %v9547_v11  ;;  %v9549_v35 = vld [vmem:[#allocation2 + $0x64] sm:$0xf]  ;;  %v4804_v9 = vld [vmem:[#allocation2 + $0x6c] sm:$0xf] }
 0x21b   : > { %7135 = vmatmul.mubr.bf16.gmra.mxu1 %v10602_v5  ;;  %v6562_v29 = vrot.slane %v5542_v63, 9  ;;  %v4952_v15 = vshrl.u32 %v4798_v58, 16  ;;  %v4955_v26 = vshll.u32 %v4798_v58, 16  ;;  %v9551_v62 = vcombine.low %v4916_v13, %v4926_v44  ;;  %v9561_v63 = vpop.f32.mrf.mxu1  ;;  %v7436_v58 = vld [vmem:[#allocation2 + $0xb4] sm:$0xff]  }
 0x21c   : > { %7138 = vmatprep.mubr.bf16.mxu1 %v10604_v24  ;;  %7215 = vmatpush3.bf16.msra.mxu1 %v7437_v54  ;;  %v4799_v54 = vld [vmem:[#allocation2 + $0x58] sm:$0xf]  ;;  %v4949_v8 = vrot.slane %v4947_v49, 5  ;;  %v4935_v27 = vrot.slane %v4934_v46, 4  ;;  %v5641_v24 = vrot.slane %v9545_v40, 5  ;;  %v10608_v38 = vcombine.low %v9219_v41, %v9233_v28  ;;  %10609 = vst [vmem:[#allocation20_spill] sm:$0xff] %v9561_v63 }
 0x21d   : > { %7216 = vmatprep.subr.bf16.mxu1 %v7441_v53  ;;  %v4961_v37 = vshll.u32 %v4799_v54, 16  ;;  %v4965_v34 = vshrl.u32 %v4799_v54, 16  ;;  %v5638_v5 = vrot.slane %v4799_v54, 5  ;;  %v4945_v13 = vrot.slane %v4944_v23, 4  ;;  %v7439_v41 = vld [vmem:[#allocation2 + $0xc0] sm:$0xff]  }
 0x21e   : > { %7191 = vmatmul.mubr.bf16.gmra.mxu0 %v7432_v14  ;;  %v9555_v14 = vld [vmem:[#allocation2 + $0x70] sm:$0xf]  ;;  %v4985_v54 = vshll.u32 %v9549_v35, 16  ;;  %v4989_v44 = vshrl.u32 %v9549_v35, 16  ;;  %v10610_v46 = vcombine.low %v9240_v16, %v9246_v30  ;;  %v4954_v28 = vrot.slane %v4952_v15, 4 }
 0x21f   : > { %7194 = vmatprep.mubr.bf16.mxu0 %v7435_v3  ;;  %v4976_v3 = vshrl.u32 %v4801_v0, 16  ;;  %v9565_v49 = vsel %vm8383_vm4, %v6562_v29, %v5638_v5  ;;  %v9574_v42 = vrot.slane %v4961_v37, 5  ;;  %v4967_v23 = vrot.slane %v4965_v34, 4  ;;  %v9586_v37 = vld [vmem:[#allocation2 + $0x68] sm:$0x1] }
 0x220   : > { %7217 = vmatpush3.bf16.msra.mxu1 %v7441_v53  ;;  %v4979_v53 = vshll.u32 %v4801_v0, 16  ;;  %v9572_v0 = vpop.f32.mrf.mxu0  ;;  %v5000_v22 = vshrl.u32 %v4804_v9, 16  ;;  %v5003_v29 = vshll.u32 %v4804_v9, 16  ;;  %v5009_v63 = vshll.u32 %v9555_v14, 16 }
 0x221   : > { %10611 = vst [vmem:[#allocation21_spill] sm:$0xff] %v9572_v0  ;;  %v5013_v61 = vshrl.u32 %v9555_v14, 16  ;;  %v4940_v16 = vsel %vm7573_vm2, %v4935_v27, %v9504_v1  ;;  %v5640_v30 = vrot.slane %v5638_v5, 4  ;;  %v9581_v0 = vpop.f32.mrf.mxu1  ;;  %v4950_v15 = vsel %vm7573_vm2, %v4945_v13, %v4949_v8 }
 0x222   : > { %v4981_v20 = vrot.slane %v4979_v53, 5  ;;  %10612 = vst [vmem:[#allocation22_spill] sm:$0xff] %v9581_v0  ;;  %v9588_v34 = vrot.slane %v4985_v54, 5  ;;  %v4991_v9 = vrot.slane %v4989_v44, 4  ;;  %v4968_v5 = vor.u32 %v4967_v23, %v9574_v42  ;;  %v9594_v53 = vld [vmem:[#allocation2 + $0x74] sm:$0x1] }
 0x223   : > { %7139 = vmatmul.mubr.bf16.gmra.mxu1 %v10608_v38  ;;  %v4957_v38 = vrot.slane %v4955_v26, 5  ;;  %v4971_v26 = vshll.u32 %v9545_v40, 16  ;;  %v6563_v27 = vrot.slane %v5543_v59, 9  ;;  %v5005_v8 = vrot.slane %v5003_v29, 5  ;;  %v4808_v29 = vld [vmem:[#allocation2 + $0x7c] sm:$0xf] }
 0x224   : > { %7142 = vmatprep.mubr.bf16.mxu1 %v10610_v46  ;;  %v4978_v46 = vrot.slane %v4976_v3, 4  ;;  %v5645_v3 = vrot.slane %v9549_v35, 5  ;;  %v9596_v13 = vrot.slane %v5009_v63, 5  ;;  %v5015_v40 = vrot.slane %v5013_v61, 4  ;;  %v7440_v63 = vld [vmem:[#allocation2 + $0xcc] sm:$0xff]  }
 0x225   : > { %v9590_v11 = vpop.f32.mrf.mxu0  ;;  %v4958_v1 = vor.u32 %v4957_v38, %v4954_v28  ;;  %v9600_v54 = vcombine.low %v4940_v16, %v4950_v15  ;;  %v9604_v44 = vsel %vm8383_vm4, %v5640_v30, %v5641_v24  ;;  %v4995_v59 = vshll.u32 %v9586_v37, 16  ;;  %v5544_v28 = vld [vmem:[#allocation2 + $0x6c] sm:$0xe]  ;;  %v5545_v15 = vld [vmem:[#allocation2 + $0x78] sm:$0xe] }
 0x226   : > { %7195 = vmatmul.mubr.bf16.gmra.mxu0 %v7436_v58  ;;  %10613 = vst [vmem:[#allocation23_spill] sm:$0xff] %v9590_v11  ;;  %v5002_v58 = vrot.slane %v5000_v22, 4  ;;  %v10615_v35 = vcombine.low %v9256_v31, %v9266_v18  ;;  %v9610_v22 = vpop.f32.mrf.mxu1  ;;  %v9612_v61 = vrot.slane %v4971_v26, 5  ;;  %v4992_v38 = vor.u32 %v4991_v9, %v9588_v34 }
 0x227   : > { %7198 = vmatprep.mubr.bf16.mxu0 %v7439_v41  ;;  %v9598_v0 = vpop.f32.mrf.mxu0  ;;  %v4982_v41 = vor.u32 %v4981_v20, %v4978_v46  ;;  %10616 = vst [vmem:[#allocation25_spill] sm:$0xff] %v9610_v22  ;;  %v5652_v23 = vrot.slane %v9555_v14, 5  ;;  %v5019_v24 = vshll.u32 %v9594_v53, 16  ;;  %v10617_v20 = vcombine.low %v9262_v48, %v9274_v6  ;;  %v4807_v22 = vld [vmem:[#allocation2 + $0x78] sm:$0xf] }
 0x228   : > { %10614 = vst [vmem:[#allocation24_spill] sm:$0xff] %v9598_v0  ;;  %v9622_v31 = vrot.slane %v4958_v1, 4  ;;  %v9626_v18 = vsel %vm8383_vm4, %v6563_v27, %v5645_v3  ;;  %v5647_v30 = vrot.slane %v5645_v3, 4  ;;  %v5648_v46 = vrot.slane %v9586_v37, 5  ;;  %v4809_v0 = vld [vmem:[#allocation2 + $0x80] sm:$0x1]  ;;  %v9633_v27 = vpop.f32.mrf.mxu1 }
 0x229   : > { %v9620_v16 = vpop.f32.mrf.mxu0  ;;  %v4969_v14 = vrot.slane %v4968_v5, 4  ;;  %v5006_v26 = vor.u32 %v5005_v8, %v5002_v58  ;;  %v5016_v9 = vor.u32 %v5015_v40, %v9596_v13  ;;  %v4983_v6 = vrot.slane %v4982_v41, 4  ;;  %10620 = vst [vmem:[#allocation28_spill] sm:$0xff] %v9633_v27 }
 0x22a   : > { %10618 = vst [vmem:[#allocation26_spill] sm:$0xff] %v9620_v16  ;;  %v6564_v1 = vrot.slane %v5544_v28, 9  ;;  %v5655_v16 = vrot.slane %v9594_v53, 5  ;;  %v4993_v3 = vrot.slane %v4992_v38, 4  ;;  %v5654_v37 = vrot.slane %v5652_v23, 4 }
 0x22b   : > { %7143 = vmatmul.mubr.bf16.gmra.mxu1 %v10615_v35  ;;  %v5659_v35 = vrot.slane %v4808_v29, 5  ;;  %v9630_v48 = vpop.f32.mrf.mxu0  ;;  %v5021_v11 = vrot.slane %v5019_v24, 5  ;;  %v6565_v5 = vrot.slane %v5545_v15, 9  ;;  %v10621_v58 = vcombine.low %v9362_v56, %v9366_v32  ;;  %v9660_v24 = vpop.f32.mrf.mxu1 }
 0x22c   : > { %7146 = vmatprep.mubr.bf16.mxu1 %v10617_v20  ;;  %10619 = vst [vmem:[#allocation27_spill] sm:$0xff] %v9630_v48  ;;  %v4997_v20 = vrot.slane %v4995_v59, 5  ;;  %v5024_v40 = vshrl.u32 %v4807_v22, 16  ;;  %v5027_v41 = vshll.u32 %v4807_v22, 16  ;;  %v5033_v59 = vshll.u32 %v4808_v29, 16  ;;  %10623 = vst [vmem:[#allocation29_spill] sm:$0xff] %v9660_v24 }
 0x22d   : > { %v9638_v8 = vpop.f32.mrf.mxu0  ;;  %v5037_v28 = vshrl.u32 %v4808_v29, 16  ;;  %v5007_v48 = vrot.slane %v5006_v26, 4  ;;  %v5017_v53 = vrot.slane %v5016_v9, 4  ;;  %v5661_v51 = vrot.slane %v5659_v35, 4 }
 0x22e   : > { %7199 = vmatmul.mubr.bf16.gmra.mxu0 %v7440_v63  ;;  %v5662_v36 = vrot.slane %v4809_v0, 5  ;;  %v4964_v63 = vsel %vm7573_vm2, %v9622_v31, %v9574_v42  ;;  %v4974_v56 = vsel %vm7573_vm2, %v4969_v14, %v9612_v61  ;;  %v9651_v32 = vsel %vm8383_vm4, %v5647_v30, %v5648_v46  ;;  %v9675_v31 = vld [vmem:[#allocation2 + $0x88] sm:$0xf] }
 0x22f   : > { %7266 = vmatprep.mubr.bf16.mxu0 %v10621_v58  ;;  %v9640_v27 = vpop.f32.mrf.mxu0  ;;  %v9655_v22 = vsel %vm8383_vm4, %v6564_v1, %v5652_v23  ;;  %v10622_v38 = vcombine.low %v9281_v4, %v9291_v2  ;;  %v4988_v42 = vsel %vm7573_vm2, %v4983_v6, %v9588_v34  ;;  %v4998_v61 = vsel %vm7573_vm2, %v4993_v3, %v4997_v20  ;;  %v4810_v4 = vld [vmem:[#allocation2 + $0x84] sm:$0xf] }
 0x230   : > { %v9669_v29 = vsel %vm8383_vm4, %v5654_v37, %v5655_v16  ;;  %v9673_v23 = vsel %vm8383_vm4, %v6565_v5, %v5659_v35  ;;  %v10624_v2 = vcombine.low %v9286_v17, %v9298_v60  ;;  %v5026_v34 = vrot.slane %v5024_v40, 4  ;;  %v5546_v35 = vld [vmem:[#allocation2 + $0x84] sm:$0xe]  ;;  %v9697_v37 = vpop.f32.mrf.mxu1 }
 0x231   : > { %v9680_v30 = vpop.f32.mrf.mxu0  ;;  %v5029_v46 = vrot.slane %v5027_v41, 5  ;;  %v9682_v15 = vrot.slane %v5033_v59, 5  ;;  %v5039_v14 = vrot.slane %v5037_v28, 4  ;;  %v5012_v16 = vsel %vm7573_vm2, %v5007_v48, %v9596_v13  ;;  %10625 = vst [vmem:[#allocation30_spill] sm:$0xff] %v9697_v37  ;;  %v9719_v41 = vld [vmem:[#allocation2 + $0x94] sm:$0xf] }
 0x232   : > { %v5022_v26 = vsel %vm7573_vm2, %v5017_v53, %v5021_v11  ;;  %v9691_v9 = vsel %vm8383_vm4, %v5661_v51, %v5662_v36  ;;  %v5043_v17 = vshll.u32 %v4809_v0, 16  ;;  %v5048_v6 = vshrl.u32 %v4810_v4, 16  ;;  %v4813_v59 = vld [vmem:[#allocation2 + $0x90] sm:$0xf] }
 0x233   : > { %7147 = vmatmul.mubr.bf16.gmra.mxu1 %v10622_v38  ;;  %v9693_v60 = vpop.f32.mrf.mxu0  ;;  %v5051_v20 = vshll.u32 %v4810_v4, 16  ;;  %v5057_v1 = vshll.u32 %v9675_v31, 16  ;;  %v5061_v3 = vshrl.u32 %v9675_v31, 16  ;;  %v10626_v13 = vcombine.low %v9387_v19, %v9412_v7 }
 0x234   : > { %7150 = vmatprep.mubr.bf16.mxu1 %v10624_v2  ;;  %v9704_v51 = vcombine.low %v4964_v63, %v4974_v56  ;;  %v9708_v0 = vcombine.low %v4988_v42, %v4998_v61  ;;  %v10627_v48 = vcombine.low %v9455_v33, %v9478_v45  ;;  %v5030_v7 = vor.u32 %v5029_v46, %v5026_v34  ;;  %v4812_v45 = vld [vmem:[#allocation2 + $0x8c] sm:$0x1]  ;;  %v9727_v56 = vld [vmem:[#allocation2 + $0xa0] sm:$0xf]  ;;  %v4816_v2 = vld [vmem:[#allocation2 + $0x9c] sm:$0xf] }
 0x235   : > { %v9713_v5 = vpop.f32.mrf.mxu0  ;;  %v5040_v58 = vor.u32 %v5039_v14, %v9682_v15  ;;  %v5666_v40 = vrot.slane %v9675_v31, 5  ;;  %v9721_v28 = vcombine.low %v5012_v16, %v5022_v26  ;;  %v9725_v33 = vrot.slane %v5043_v17, 5 }
 0x236   : > { %7267 = vmatmul.mubr.bf16.vlgmr.msra.gmra.mxu0 %v10626_v13  ;;  %v6566_v63 = vrot.slane %v5546_v35, 9  ;;  %v5050_v42 = vrot.slane %v5048_v6, 4  ;;  %v5053_v61 = vrot.slane %v5051_v20, 5  ;;  %v9731_v4 = vrot.slane %v5057_v1, 5 }
 0x237   : > { %7270 = vmatprep.mubr.bf16.mxu0 %v10627_v48  ;;  %10628 = vst [vmem:[#allocation31_spill] sm:$0xff] %v9721_v28  ;;  %v9729_v38 = vpop.f32.mrf.mxu0  ;;  %v5063_v31 = vrot.slane %v5061_v3, 4  ;;  %v10630_v46 = vcombine.low %v9302_v55, %v9308_v57  ;;  %v5072_v14 = vshrl.u32 %v4813_v59, 16  ;;  %v5075_v16 = vshll.u32 %v4813_v59, 16 }
 0x238   : > { %v5081_v26 = vshll.u32 %v9719_v41, 16  ;;  %v5085_v17 = vshrl.u32 %v9719_v41, 16  ;;  %v5031_v6 = vrot.slane %v5030_v7, 4  ;;  %v5041_v20 = vrot.slane %v5040_v58, 4 }
 0x239   : > { %v9733_v34 = vpop.f32.mrf.mxu1  ;;  %v9741_v35 = vpop.f32.mrf.mxu0  ;;  %v5668_v1 = vrot.slane %v5666_v40, 4  ;;  %v5669_v3 = vrot.slane %v4812_v45, 5  ;;  %v5096_v48 = vshrl.u32 %v4816_v2, 16  ;;  %v5099_v53 = vshll.u32 %v4816_v2, 16  ;;  %v9759_v2 = vld [vmem:[#allocation2 + $0x98] sm:$0x1] }
 0x23a   : > { %10629 = vst [vmem:[#allocation32_spill] sm:$0xff] %v9733_v34  ;;  %v5105_v55 = vshll.u32 %v9727_v56, 16  ;;  %v5109_v57 = vshrl.u32 %v9727_v56, 16  ;;  %v5064_v7 = vor.u32 %v5063_v31, %v9731_v4  ;;  %v5067_v58 = vshll.u32 %v4812_v45, 16 }
 0x23b   : > { %7151 = vmatmul.mubr.bf16.gmra.mxu1 %v10630_v46  ;;  %v9743_v13 = vpop.f32.mrf.mxu1  ;;  %v9747_v59 = vpop.f32.mrf.mxu0  ;;  %v9751_v46 = vsel %vm8383_vm4, %v6566_v63, %v5666_v40  ;;  %v10633_v11 = vcombine.low %v9502_v43, %v9518_v47  ;;  %v5074_v36 = vrot.slane %v5072_v14, 4  ;;  %v9761_v34 = vrot.slane %v5081_v26, 5 }
 0x23c   : > { %7218 = vmatprep.mubr.bf16.mxu1 %v9498_v12  ;;  %10631 = vst [vmem:[#allocation33_spill] sm:$0xff] %v9743_v13  ;;  %v5054_v12 = vor.u32 %v5053_v61, %v5050_v42  ;;  %v5077_v13 = vrot.slane %v5075_v16, 5  ;;  %v5087_v37 = vrot.slane %v5085_v17, 4  ;;  %v10634_v40 = vcombine.low %v9526_v21, %v9536_v10  ;;  %v9781_v21 = vld [vmem:[#allocation2 + $0xa4] sm:$0x1] }
 0x23d   : > { %v9754_v19 = vpop.f32.mrf.mxu1  ;;  %v9766_v63 = vpop.f32.mrf.mxu0  ;;  %v5036_v45 = vsel %vm7573_vm2, %v5031_v6, %v9682_v15  ;;  %v5046_v43 = vsel %vm7573_vm2, %v5041_v20, %v9725_v33  ;;  %v9776_v47 = vsel %vm8383_vm4, %v5668_v1, %v5669_v3  ;;  %v5673_v42 = vrot.slane %v9719_v41, 5  ;;  %v5548_v3 = vld [vmem:[#allocation2 + $0x9c] sm:$0xe] }
 0x23e   : > { %10632 = vst [vmem:[#allocation34_spill] sm:$0xff] %v9754_v19  ;;  %7271 = vmatmul.mubr.bf16.gmra.mxu0 %v10633_v11  ;;  %v5547_v11 = vld [vmem:[#allocation2 + $0x90] sm:$0xe]  ;;  %v5098_v10 = vrot.slane %v5096_v48, 4  ;;  %v5101_v31 = vrot.slane %v5099_v53, 5  ;;  %v9783_v14 = vrot.slane %v5105_v55, 5  ;;  %v5078_v1 = vor.u32 %v5077_v13, %v5074_v36 }
 0x23f   : > { %7274 = vmatprep.mubr.bf16.mxu0 %v10634_v40  ;;  %v9779_v61 = vpop.f32.mrf.mxu1  ;;  %v5111_v15 = vrot.slane %v5109_v57, 4  ;;  %v9785_v16 = vpop.f32.mrf.mxu0  ;;  %v5055_v26 = vrot.slane %v5054_v12, 4  ;;  %v5065_v33 = vrot.slane %v5064_v7, 4  ;;  %v5069_v17 = vrot.slane %v5067_v58, 5  ;;  %v4820_v58 = vld [vmem:[#allocation2 + $0xac] sm:$0xf] }
 0x240   : > { %10635 = vst [vmem:[#allocation35_spill] sm:$0xff] %v9779_v61  ;;  %10636 = vst [vmem:[#allocation36_spill] sm:$0xff] %v9785_v16  ;;  %v5091_v6 = vshll.u32 %v9759_v2, 16  ;;  %v5088_v53 = vor.u32 %v5087_v37, %v9761_v34  ;;  %v5680_v48 = vrot.slane %v9727_v56, 5  ;;  %v9798_v57 = vcombine.low %v5036_v45, %v5046_v43  ;;  %v5549_v13 = vld [vmem:[#allocation2 + $0xa8] sm:$0xe] }
 0x241   : > { %v9788_v20 = vpop.f32.mrf.mxu1  ;;  %v9796_v55 = vpop.f32.mrf.mxu0  ;;  %v6567_v12 = vrot.slane %v5547_v11, 9  ;;  %v5676_v7 = vrot.slane %v9759_v2, 5  ;;  %v5675_v41 = vrot.slane %v5673_v42, 4  ;;  %v5102_v36 = vor.u32 %v5101_v31, %v5098_v10  ;;  %v4819_v56 = vld [vmem:[#allocation2 + $0xa8] sm:$0xf] }
 0x242   : > { %10637 = vst [vmem:[#allocation37_spill] sm:$0xff] %v9796_v55  ;;  %10638 = vst [vmem:[#allocation38_spill] sm:$0xff] %v9798_v57  ;;  %v5112_v37 = vor.u32 %v5111_v15, %v9783_v14  ;;  %v5687_v61 = vrot.slane %v4820_v58, 5  ;;  %v5070_v2 = vsel %vm7573_vm2, %v5065_v33, %v5069_v17  ;;  %v5093_v45 = vrot.slane %v5091_v6, 5  ;;  %v4821_v11 = vld [vmem:[#allocation2 + $0xb0] sm:$0x1] }
 0x243   : > { %7219 = vmatmul.mubr.bf16.vlgmr.msra.gmra.mxu1 %v9520_v39  ;;  %v5115_v39 = vshll.u32 %v9781_v21, 16  ;;  %v2146_v40 = vpop.f32.mrf.mxu1  ;;  %v9803_v19 = vpop.f32.mrf.mxu0  ;;  %v6568_v43 = vrot.slane %v5548_v3, 9  ;;  %v10640_v10 = vcombine.low %v9565_v49, %v9604_v44  ;;  %v5079_v31 = vrot.slane %v5078_v1, 4 }
 0x244   : > { %7222 = vmatprep.mubr.bf16.mxu1 %v9540_v50  ;;  %10639 = vst [vmem:[#allocation39_spill] sm:$0xff] %v9803_v19  ;;  %v5060_v50 = vsel %vm7573_vm2, %v5055_v26, %v9731_v4  ;;  %v5089_v15 = vrot.slane %v5088_v53, 4  ;;  %v5682_v57 = vrot.slane %v5680_v48, 4  ;;  %v5683_v19 = vrot.slane %v9781_v21, 5 }
 0x245   : > { %v6933_v24 = vpop.f32.mrf.mxu1  ;;  %v10641_v28 = vcombine.low %v9626_v18, %v9651_v32  ;;  %v9817_v4 = vpop.f32.mrf.mxu0  ;;  %v5117_v26 = vrot.slane %v5115_v39, 5  ;;  %v6569_v33 = vrot.slane %v5549_v13, 9  ;;  %v5120_v17 = vshrl.u32 %v4819_v56, 16 }
 0x246   : > { %7275 = vmatmul.mubr.bf16.gmra.mxu0 %v10640_v10  ;;  %v5123_v6 = vshll.u32 %v4819_v56, 16  ;;  %v5103_v55 = vrot.slane %v5102_v36, 4  ;;  %v5113_v16 = vrot.slane %v5112_v37, 4  ;;  %v5689_v49 = vrot.slane %v5687_v61, 4 }
 0x247   : > { %7278 = vmatprep.mubr.bf16.mxu0 %v10641_v28  ;;  %v2149_v3 = vpop.f32.mrf.mxu1  ;;  %v5690_v44 = vrot.slane %v4821_v11, 5  ;;  %v9819_v1 = vpop.f32.mrf.mxu0  ;;  %v9823_v21 = vsel %vm8383_vm4, %v6567_v12, %v5673_v42  ;;  %v9827_v18 = vsel %vm8383_vm4, %v5675_v41, %v5676_v7  ;;  %v5129_v32 = vshll.u32 %v4820_v58, 16 }
 0x248   : > { %v5133_v28 = vshrl.u32 %v4820_v58, 16  ;;  %v9830_v39 = vcombine.low %v5060_v50, %v5070_v2  ;;  %v5084_v36 = vsel %vm7573_vm2, %v5079_v31, %v9761_v34  ;;  %v5094_v37 = vsel %vm7573_vm2, %v5089_v15, %v5093_v45  ;;  %v10643_v45 = vld [vmem:[#allocation6_spill] sm:$0xff] }
 0x249   : > { %v6936_v53 = vpop.f32.mrf.mxu1  ;;  %v9839_v42 = vsel %vm8383_vm4, %v6568_v43, %v5680_v48  ;;  %v9842_v41 = vpop.f32.mrf.mxu0  ;;  %v5122_v12 = vrot.slane %v5120_v17, 4  ;;  %v5125_v7 = vrot.slane %v5123_v6, 5  ;;  %v5139_v58 = vshll.u32 %v4821_v11, 16 }
 0x24a   : > { %v5108_v34 = vsel %vm7573_vm2, %v5103_v55, %v9783_v14  ;;  %v5118_v48 = vsel %vm7573_vm2, %v5113_v16, %v5117_v26  ;;  %v9859_v56 = vsel %vm8383_vm4, %v5689_v49, %v5690_v44  ;;  %v6599_v2 = vcombine.low %v9823_v21, %v9827_v18  ;;  %v5550_v16 = vld [vmem:[#allocation2 + $0xb4] sm:$0xe]  ;;  %v10648_v44 = vld [vmem:[#allocation12_spill] sm:$0xff]  ;;  %v10649_v18 = vld [vmem:[#allocation7_spill] sm:$0xff] }
 0x24b   : > { %7223 = vmatmul.mubr.bf16.gmra.mxu1 %v9551_v62  ;;  %v9846_v62 = vsel %vm8383_vm4, %v5682_v57, %v5683_v19  ;;  %v2162_v13 = vpop.f32.mrf.mxu1  ;;  %v10642_v19 = vld [vmem:[#allocation3_spill] sm:$0xff]  ;;  %v9863_v50 = vpop.f32.mrf.mxu0  ;;  %v9867_v14 = vrot.slane %v5129_v32, 5  ;;  %v5135_v55 = vrot.slane %v5133_v28, 4  ;;  %v2147_v43 = vadd.f32 %v2146_v40, %v10643_v45  ;;  %v4822_v28 = vld [vmem:[#allocation2 + $0xb4] sm:$0xf] }
 0x24c   : > { %7226 = vmatprep.mubr.bf16.mxu1 %v9600_v54  ;;  %v9855_v54 = vsel %vm8383_vm4, %v6569_v33, %v5687_v61  ;;  %v2155_v57 = vadd.f32 %v9788_v20, %v10642_v19  ;;  %v10644_v61 = vld [vmem:[#allocation4_spill] sm:$0xff]  ;;  %v10645_v31 = vcombine.low %v9655_v22, %v9669_v29  ;;  %v9874_v15 = vcombine.low %v5084_v36, %v5094_v37  ;;  %v9889_v22 = vld [vmem:[#allocation2 + $0xbc] sm:$0x1]  ;;  %v10647_v29 = vld [vmem:[#allocation5_spill] sm:$0xff] }
 0x24d   : > { %v2158_v11 = vadd.f32 %v6933_v24, %v10644_v61  ;;  %v6937_v10 = vpop.f32.mrf.mxu1  ;;  %v10646_v26 = vcombine.low %v9673_v23, %v9691_v9  ;;  %v9881_v33 = vpop.f32.mrf.mxu0  ;;  %v9883_v17 = vcombine.low %v5108_v34, %v5118_v48  ;;  %v5126_v40 = vor.u32 %v5125_v7, %v5122_v12  ;;  %v10650_v36 = vld [vmem:[#allocation10_spill] sm:$0xff]  ;;  %v10651_v34 = vld [vmem:[#allocation13_spill] sm:$0xff]  ;;  %v4823_v7 = vld [vmem:[#allocation2 + $0xb8] sm:$0xf] }
 0x24e   : > { %7279 = vmatmul.mubr.bf16.gmra.mxu0 %v10645_v31  ;;  %v9887_v6 = vrot.slane %v5139_v58, 5  ;;  %v2150_v49 = vadd.f32 %v2149_v3, %v10647_v29  ;;  %v2171_v21 = vadd.f32 %v6936_v53, %v10648_v44  ;;  %v2163_v32 = vadd.f32 %v2162_v13, %v10649_v18  ;;  %v10652_v61 = vld [vmem:[#allocation15_spill] sm:$0xff]  ;;  %v4826_v29 = vld [vmem:[#allocation2 + $0xc4] sm:$0xf]  ;;  %v10663_v24 = vld [vmem:[#allocation38_spill] sm:$0xff] }
 0x24f   : > { %7282 = vmatprep.mubr.bf16.mxu0 %v10646_v26  ;;  %v2165_v23 = vpop.f32.mrf.mxu1  ;;  %v6570_v9 = vrot.slane %v5550_v16, 9  ;;  %v2174_v37 = vadd.f32 %v6937_v10, %v10650_v36  ;;  %v9896_v19 = vpop.f32.mrf.mxu0  ;;  %v5136_v12 = vor.u32 %v5135_v55, %v9867_v14  ;;  %v9900_v58 = vadd.f32 %v9638_v8, %v2155_v57 }
 0x250   : > { %v2166_v48 = vadd.f32 %v2165_v23, %v10651_v34  ;;  %v5694_v53 = vrot.slane %v4823_v7, 5  ;;  %v5697_v13 = vrot.slane %v9889_v22, 5  ;;  %v9905_v16 = vadd.f32 %v9640_v27, %v2147_v43  ;;  %v10653_v43 = vld [vmem:[#allocation17_spill] sm:$0xff]  ;;  %v4825_v23 = vld [vmem:[#allocation2 + $0xc0] sm:$0xf] }
 0x251   : > { %v6940_v3 = vpop.f32.mrf.mxu1  ;;  %v9908_v45 = vadd.f32 %v9680_v30, %v2158_v11  ;;  %v9912_v55 = vpop.f32.mrf.mxu0  ;;  %v9914_v8 = vrot.slane %v5126_v40, 4  ;;  %v5144_v57 = vshrl.u32 %v4822_v28, 16  ;;  %v5147_v31 = vshll.u32 %v4822_v28, 16  ;;  %v5551_v40 = vld [vmem:[#allocation2 + $0xc0] sm:$0xe] }
 0x252   : > { %v2187_v10 = vadd.f32 %v6940_v3, %v10652_v61  ;;  %v5153_v26 = vshll.u32 %v4823_v7, 16  ;;  %v9917_v44 = vadd.f32 %v9693_v60, %v2150_v49  ;;  %v9920_v27 = vadd.f32 %v9713_v5, %v2171_v21 }
 0x253   : > { %7227 = vmatmul.mubr.bf16.gmra.mxu1 %v9704_v51  ;;  %v2178_v51 = vpop.f32.mrf.mxu1  ;;  %v9923_v30 = vadd.f32 %v9729_v38, %v2163_v32  ;;  %v9926_v11 = vpop.f32.mrf.mxu0  ;;  %v5701_v18 = vrot.slane %v4826_v29, 5  ;;  %v9929_v28 = vadd.f32 %v9741_v35, %v2174_v37  ;;  %v9932_v36 = vadd.f32 %v9747_v59, %v2166_v48  ;;  %v9941_v32 = vld [vmem:[#allocation2 + $0xc8] sm:$0x1]  ;;  %v10655_v35 = vld [vmem:[#allocation19_spill] sm:$0xff] }
 0x254   : > { %7230 = vmatprep.mubr.bf16.mxu1 %v9708_v0  ;;  %v2179_v0 = vadd.f32 %v2178_v51, %v10653_v43  ;;  %v10654_v5 = vcombine.low %v9751_v46, %v9776_v47  ;;  %v5137_v38 = vrot.slane %v5136_v12, 4  ;;  %v9939_v49 = vsel %vm8383_vm4, %v6570_v9, %v5694_v53  ;;  %v10656_v46 = vld [vmem:[#allocation36_spill] sm:$0xff] }
 0x255   : > { %v6941_v60 = vpop.f32.mrf.mxu1  ;;  %v5157_v21 = vshrl.u32 %v4823_v7, 16  ;;  %v9944_v34 = vadd.f32 %v9766_v63, %v2187_v10  ;;  %v5696_v48 = vrot.slane %v5694_v53, 4  ;;  %v9949_v3 = vrot.slane %v5144_v57, 4  ;;  %v10658_v10 = vld [vmem:[#allocation21_spill] sm:$0xff] }
 0x256   : > { %7283 = vmatmul.mubr.bf16.gmra.mxu0 %v10654_v5  ;;  %v2190_v37 = vadd.f32 %v6941_v60, %v10655_v35  ;;  %v9947_v59 = vpop.f32.mrf.mxu0  ;;  %v9952_v47 = vadd.f32 %v10656_v46, %v2179_v0  ;;  %v5132_v9 = vsel %vm7573_vm2, %v9914_v8, %v9867_v14  ;;  %v6571_v7 = vrot.slane %v5551_v40, 9  ;;  %v10659_v57 = vld [vmem:[#allocation37_spill] sm:$0xff]  ;;  %v10661_v5 = vld [vmem:[#allocation31_spill] sm:$0xff] }
 0x257   : > { %7286 = vmatprep.mubr.bf16.mxu0 %v6599_v2  ;;  %v2181_v12 = vpop.f32.mrf.mxu1  ;;  %v5168_v63 = vshrl.u32 %v4825_v23, 16  ;;  %v5171_v61 = vshll.u32 %v4825_v23, 16  ;;  %v5703_v43 = vrot.slane %v5701_v18, 4  ;;  %v5704_v53 = vrot.slane %v9941_v32, 5  ;;  %v10662_v40 = vld [vmem:[#allocation23_spill] sm:$0xff] }
 0x258   : > { %10657 = vst [vmem:[#allocation3_spill] sm:$0xff] %v9952_v47  ;;  %v2182_v51 = vadd.f32 %v2181_v12, %v10658_v10  ;;  %v9959_v2 = vpop.f32.mrf.mxu0  ;;  %v9963_v60 = vadd.f32 %v10659_v57, %v2190_v37  ;;  %v5149_v35 = vrot.slane %v5147_v31, 5  ;;  %v9966_v46 = vrot.slane %v5153_v26, 5  ;;  %v10664_v57 = vld [vmem:[#allocation39_spill] sm:$0xff] }
 0x259   : > { %v6944_v0 = vpop.f32.mrf.mxu1  ;;  %v5177_v14 = vshll.u32 %v4826_v29, 16  ;;  %v5181_v8 = vshrl.u32 %v4826_v29, 16  ;;  %v5142_v10 = vsel %vm7573_vm2, %v5137_v38, %v9887_v6  ;;  %v5159_v37 = vrot.slane %v5157_v21, 4  ;;  %v4829_v38 = vld [vmem:[#allocation2 + $0xd0] sm:$0xf] }
 0x25a   : > { %10660 = vst [vmem:[#allocation6_spill] sm:$0xff] %v9963_v60  ;;  %v2203_v23 = vadd.f32 %v6944_v0, %v10662_v40  ;;  %v9970_v12 = vpop.f32.mrf.mxu0  ;;  %v9976_v20 = vadd.f32 %v10664_v57, %v2182_v51  ;;  %v5698_v31 = vsel %vm8383_vm4, %v5696_v48, %v5697_v13  ;;  %v5163_v26 = vshll.u32 %v9889_v22, 16  ;;  %v10665_v40 = vld [vmem:[#allocation24_spill] sm:$0xff]  ;;  %v9988_v21 = vld [vmem:[#allocation2 + $0xd4] sm:$0x1] }
 0x25b   : > { %7231 = vmatmul.mubr.bf16.gmra.mxu1 %v10661_v5  ;;  %v2194_v5 = vpop.f32.mrf.mxu1  ;;  %v5170_v29 = vrot.slane %v5168_v63, 4  ;;  %v5173_v0 = vrot.slane %v5171_v61, 5  ;;  %v5702_v47 = vsel %vm8383_vm4, %v6571_v7, %v5701_v18  ;;  %v5705_v6 = vsel %vm8383_vm4, %v5703_v43, %v5704_v53  ;;  %v5552_v18 = vld [vmem:[#allocation2 + $0xcc] sm:$0xe]  ;;  %v10667_v57 = vld [vmem:[#allocation26_spill] sm:$0xff] }
 0x25c   : > { %7234 = vmatprep.mubr.bf16.mxu1 %v10663_v24  ;;  %v2195_v24 = vadd.f32 %v2194_v5, %v10665_v40  ;;  %v9982_v60 = vpop.f32.mrf.mxu0  ;;  %v9991_v51 = vadd.f32 %v9817_v4, %v2203_v23  ;;  %v10666_v22 = vcombine.low %v9839_v42, %v9846_v62  ;;  %v9996_v48 = vcombine.low %v5132_v9, %v5142_v10  ;;  %v4828_v62 = vld [vmem:[#allocation2 + $0xcc] sm:$0xf] }
 0x25d   : > { %v6945_v13 = vpop.f32.mrf.mxu1  ;;  %v9998_v63 = vrot.slane %v5177_v14, 5  ;;  %v5183_v61 = vrot.slane %v5181_v8, 4  ;;  %v5708_v7 = vrot.slane %v4829_v38, 5  ;;  %v10668_v53 = vcombine.low %v9855_v54, %v9859_v56 }
 0x25e   : > { %7287 = vmatmul.mubr.bf16.gmra.mxu0 %v10666_v22  ;;  %v2206_v43 = vadd.f32 %v6945_v13, %v10667_v57  ;;  %v10004_v4 = vpop.f32.mrf.mxu0  ;;  %v6602_v23 = vcombine.low %v9939_v49, %v5698_v31  ;;  %v5150_v42 = vor.u32 %v5149_v35, %v9949_v3  ;;  %v10009_v9 = vadd.f32 %v9819_v1, %v2195_v24  ;;  %v10669_v13 = vld [vmem:[#allocation27_spill] sm:$0xff] }
 0x25f   : > { %7290 = vmatprep.mubr.bf16.mxu0 %v10668_v53  ;;  %v2197_v14 = vpop.f32.mrf.mxu1  ;;  %v5160_v8 = vor.u32 %v5159_v37, %v9966_v46  ;;  %v6603_v10 = vcombine.low %v5702_v47, %v5705_v6  ;;  %v5174_v5 = vor.u32 %v5173_v0, %v5170_v29  ;;  %v5187_v40 = vshll.u32 %v9941_v32, 16  ;;  %v10670_v29 = vld [vmem:[#allocation8_spill] sm:$0xff] }
 0x260   : > { %v2198_v54 = vadd.f32 %v2197_v14, %v10669_v13  ;;  %v10014_v56 = vpop.f32.mrf.mxu0  ;;  %v6572_v22 = vrot.slane %v5552_v18, 9  ;;  %v5711_v49 = vrot.slane %v9988_v21, 5  ;;  %v10018_v3 = vadd.f32 %v9842_v41, %v2206_v43 }
 0x261   : > { %v5184_v1 = vor.u32 %v5183_v61, %v9998_v63  ;;  %v5710_v37 = vrot.slane %v5708_v7, 4  ;;  %v5192_v47 = vshrl.u32 %v4828_v62, 16  ;;  %v5195_v31 = vshll.u32 %v4828_v62, 16  ;;  %v10671_v61 = vld [vmem:[#allocation9_spill] sm:$0xff] }
 0x262   : > { %v6948_v35 = vpop.f32.mrf.mxu1  ;;  %v10024_v0 = vpop.f32.mrf.mxu0  ;;  %v5201_v24 = vshll.u32 %v4829_v38, 16  ;;  %v5205_v6 = vshrl.u32 %v4829_v38, 16  ;;  %v10027_v18 = vadd.f32 %v9863_v50, %v2198_v54  ;;  %v5151_v57 = vrot.slane %v5150_v42, 4 }
 0x263   : > { %7235 = vmatmul.mubr.bf16.gmra.mxu1 %v9830_v39  ;;  %v2219_v32 = vadd.f32 %v6948_v35, %v10670_v29  ;;  %v5161_v43 = vrot.slane %v5160_v8, 4  ;;  %v5165_v39 = vrot.slane %v5163_v26, 5  ;;  %v5189_v53 = vrot.slane %v5187_v40, 5  ;;  %v10672_v40 = vld [vmem:[#allocation11_spill] sm:$0xff] }
 0x264   : > { %7238 = vmatprep.mubr.bf16.mxu1 %v9874_v15  ;;  %v2210_v41 = vpop.f32.mrf.mxu1  ;;  %v10030_v13 = vpop.f32.mrf.mxu0  ;;  %v5175_v62 = vrot.slane %v5174_v5, 4  ;;  %v5709_v15 = vsel %vm8383_vm4, %v6572_v22, %v5708_v7  ;;  %v5185_v50 = vrot.slane %v5184_v1, 4  ;;  %v5712_v42 = vsel %vm8383_vm4, %v5710_v37, %v5711_v49  ;;  %v10673_v22 = vld [vmem:[#allocation14_spill] sm:$0xff] }
 0x265   : > { %v2211_v14 = vadd.f32 %v2210_v41, %v10671_v61  ;;  %v10035_v35 = vadd.f32 %v9881_v33, %v2219_v32  ;;  %v5194_v8 = vrot.slane %v5192_v47, 4  ;;  %v5197_v26 = vrot.slane %v5195_v31, 5  ;;  %v10674_v31 = vld [vmem:[#allocation16_spill] sm:$0xff] }
 0x266   : > { %v6949_v38 = vpop.f32.mrf.mxu1  ;;  %7291 = vmatmul.mubr.bf16.gmra.mxu0 %v6602_v23  ;;  %v10040_v29 = vpop.f32.mrf.mxu0  ;;  %v5203_v5 = vrot.slane %v5201_v24, 5  ;;  %v5207_v41 = vrot.slane %v5205_v6, 4  ;;  %v5156_v52 = vsel %vm7573_vm2, %v5151_v57, %v9966_v46  ;;  %v5166_v23 = vsel %vm7573_vm2, %v5161_v43, %v5165_v39  ;;  %v10675_v39 = vld [vmem:[#allocation18_spill] sm:$0xff] }
 0x267   : > { %v2222_v54 = vadd.f32 %v6949_v38, %v10672_v40  ;;  %7294 = vmatprep.mubr.bf16.mxu0 %v6603_v10  ;;  %v10043_v7 = vadd.f32 %v9896_v19, %v2211_v14  ;;  %v5180_v19 = vsel %vm7573_vm2, %v5175_v62, %v9998_v63  ;;  %v5190_v37 = vsel %vm7573_vm2, %v5185_v50, %v5189_v53  ;;  %v10676_v38 = vld [vmem:[#allocation20_spill] sm:$0xff]  ;;  %v10677_v40 = vld [vmem:[#allocation22_spill] sm:$0xff] }
 0x268   : > { %v2213_v33 = vpop.f32.mrf.mxu1  ;;  %v10051_v49 = vpop.f32.mrf.mxu0  ;;  %v6604_v47 = vcombine.low %v5709_v15, %v5712_v42  ;;  %v5211_v46 = vshll.u32 %v9988_v21, 16  ;;  %v5198_v6 = vor.u32 %v5197_v26, %v5194_v8  ;;  %v6546_v62 = vcombine.low %v5156_v52, %v5166_v23 }
 0x269   : > { %v2214_v32 = vadd.f32 %v2213_v33, %v10673_v22  ;;  %v10054_v10 = vadd.f32 %v9912_v55, %v2222_v54  ;;  %v5208_v55 = vor.u32 %v5207_v41, %v5203_v5  ;;  %v6547_v21 = vcombine.low %v5180_v19, %v5190_v37  ;;  %v10678_v22 = vld [vmem:[#allocation25_spill] sm:$0xff]  ;;  %v10679_v37 = vld [vmem:[#allocation28_spill] sm:$0xff] }
 0x26a   : > { %v6952_v1 = vpop.f32.mrf.mxu1  ;;  %v7009_v57 = vpop.f32.mrf.mxu0  ;;  %v5213_v15 = vrot.slane %v5211_v46, 5  ;;  %v5199_v50 = vrot.slane %v5198_v6, 4  ;;  %v10680_v6 = vld [vmem:[#allocation29_spill] sm:$0xff] }
 0x26b   : > { %7239 = vmatmul.mubr.bf16.gmra.mxu1 %v9883_v17  ;;  %v2235_v24 = vadd.f32 %v6952_v1, %v10674_v31  ;;  %v10066_v43 = vadd.f32 %v9926_v11, %v2214_v32  ;;  %v5209_v42 = vrot.slane %v5208_v55, 4 }
 0x26c   : > { %7242 = vmatprep.mubr.bf16.mxu1 %v9996_v48  ;;  %v2226_v17 = vpop.f32.mrf.mxu1  ;;  %v2714_v63 = vpop.f32.mrf.mxu0  ;;  %v5204_v52 = vsel %vm7573_vm2, %v5199_v50, %v5203_v5  ;;  %v10683_v50 = vld [vmem:[#allocation33_spill] sm:$0xff] }
 0x26d   : > { %v2227_v61 = vadd.f32 %v2226_v17, %v10675_v39  ;;  %v10070_v14 = vadd.f32 %v9947_v59, %v2235_v24  ;;  %v5214_v23 = vsel %vm7573_vm2, %v5209_v42, %v5213_v15  ;;  %v10681_v39 = vld [vmem:[#allocation30_spill] sm:$0xff] }
 0x26e   : > { %v6953_v53 = vpop.f32.mrf.mxu1  ;;  %7295 = vmatmul.mubr.bf16.gmra.mxu0 %v6604_v47  ;;  %v7076_v8 = vpop.f32.mrf.mxu0  ;;  %v6548_v24 = vcombine.low %v5204_v52, %v5214_v23  ;;  %v10685_v52 = vld [vmem:[#allocation35_spill] sm:$0xff] }
 0x26f   : > { %v2238_v48 = vadd.f32 %v6953_v53, %v10676_v38  ;;  %v10074_v11 = vadd.f32 %v9959_v2, %v2227_v61 }
 0x270   : > { %v2229_v26 = vpop.f32.mrf.mxu1  ;;  %v3739_v41 = vpop.f32.mrf.mxu0 }
 0x271   : > { %v2230_v54 = vadd.f32 %v2229_v26, %v10677_v40  ;;  %v10078_v59 = vadd.f32 %v9970_v12, %v2238_v48 }
 0x272   : > { %v7077_v2 = vpop.f32.mrf.mxu0 }
 0x273   : > { %v6956_v33 = vpop.f32.mrf.mxu1  ;;  %7243 = vmatmul.mubr.bf16.gmra.mxu1 %v6546_v62  ;;  %v10086_v1 = vadd.f32 %v9982_v60, %v2230_v54  ;;  %v10684_v54 = vld [vmem:[#allocation34_spill] sm:$0xff] }
 0x274   : > { %v2251_v32 = vadd.f32 %v6956_v33, %v10678_v22  ;;  %7246 = vmatprep.mubr.bf16.mxu1 %v6547_v21  ;;  %v3742_v12 = vpop.f32.mrf.mxu0  ;;  %v10682_v21 = vld [vmem:[#allocation32_spill] sm:$0xff] }
 0x275   : > { %v2242_v19 = vpop.f32.mrf.mxu1 }
 0x276   : > { %v2243_v47 = vadd.f32 %v2242_v19, %v10679_v37  ;;  %v10090_v46 = vadd.f32 %v10004_v4, %v2251_v32  ;;  %v7080_v17 = vpop.f32.mrf.mxu0 }
 0x277   : > { %v6957_v31 = vpop.f32.mrf.mxu1 }
 0x278   : > { %v2254_v55 = vadd.f32 %v6957_v31, %v10680_v6  ;;  %v10094_v5 = vadd.f32 %v10014_v56, %v2243_v47  ;;  %v3755_v60 = vpop.f32.mrf.mxu0 }
 0x279   : > { %v2245_v25 = vpop.f32.mrf.mxu1 }
 0x27a   : > { %v2246_v61 = vadd.f32 %v2245_v25, %v10681_v39  ;;  %v10098_v53 = vadd.f32 %v10024_v0, %v2254_v55  ;;  %v7081_v15 = vpop.f32.mrf.mxu0 }
 0x27b   : > { %v6960_v62 = vpop.f32.mrf.mxu1  ;;  %7247 = vmatmul.mubr.bf16.gmra.mxu1 %v6548_v24 }
 0x27c   : > { %v2267_v4 = vadd.f32 %v6960_v62, %v10682_v21  ;;  %v10102_v38 = vadd.f32 %v10030_v13, %v2246_v61  ;;  %v3758_v56 = vpop.f32.mrf.mxu0 }
 0x27d   : > { %v2258_v48 = vpop.f32.mrf.mxu1 }
 0x27e   : > { %v2259_v42 = vadd.f32 %v2258_v48, %v10683_v50  ;;  %v10106_v26 = vadd.f32 %v10040_v29, %v2267_v4  ;;  %v7084_v0 = vpop.f32.mrf.mxu0 }
 0x27f   : > { %v6961_v40 = vpop.f32.mrf.mxu1 }
 0x280   : > { %v2270_v33 = vadd.f32 %v6961_v40, %v10684_v54  ;;  %v10110_v22 = vadd.f32 %v10051_v49, %v2259_v42  ;;  %v3771_v19 = vpop.f32.mrf.mxu0 }
 0x281   : > { %v2261_v32 = vpop.f32.mrf.mxu1 }
 0x282   : > { %v2262_v23 = vadd.f32 %v2261_v32, %v10685_v52  ;;  %v10113_v13 = vadd.f32 %v7009_v57, %v2270_v33  ;;  %v7085_v31 = vpop.f32.mrf.mxu0 }
 0x283   : > { %v7028_v37 = vpop.f32.mrf.mxu1 }
 0x284   : > { %v3114_v47 = vadd.f32 %v7028_v37, %v9900_v58  ;;  %v10116_v24 = vadd.f32 %v2714_v63, %v2262_v23  ;;  %v3774_v55 = vpop.f32.mrf.mxu0 }
 0x285   : > { %v2985_v29 = vpop.f32.mrf.mxu1 }
 0x286   : > { %v3112_v6 = vadd.f32 %v2985_v29, %v9905_v16  ;;  %v10119_v25 = vadd.f32 %v7076_v8, %v3114_v47  ;;  %v7088_v61 = vpop.f32.mrf.mxu0  ;;  %v10686_v47 = vld [vmem:[#allocation3_spill] sm:$0xff] }
 0x287   : > { %v7029_v49 = vpop.f32.mrf.mxu1 }
 0x288   : > { %v3115_v39 = vadd.f32 %v7029_v49, %v9908_v45  ;;  %v10122_v62 = vadd.f32 %v3739_v41, %v3112_v6  ;;  %v3787_v4 = vpop.f32.mrf.mxu0  ;;  %v10687_v49 = vld [vmem:[#allocation6_spill] sm:$0xff] }
 0x289   : > { %v2988_v57 = vpop.f32.mrf.mxu1 }
 0x28a   : > { %v3113_v21 = vadd.f32 %v2988_v57, %v9917_v44  ;;  %v10125_v58 = vadd.f32 %v7077_v2, %v3115_v39  ;;  %v7089_v50 = vpop.f32.mrf.mxu0 }
 0x28b   : > { %v7032_v63 = vpop.f32.mrf.mxu1 }
 0x28c   : > { %v3118_v48 = vadd.f32 %v7032_v63, %v9920_v27  ;;  %v10128_v16 = vadd.f32 %v3742_v12, %v3113_v21  ;;  %v3790_v40 = vpop.f32.mrf.mxu0 }
 0x28d   : > { %v3001_v8 = vpop.f32.mrf.mxu1 }
 0x28e   : > { %v3116_v42 = vadd.f32 %v3001_v8, %v9923_v30  ;;  %v10131_v45 = vadd.f32 %v7080_v17, %v3118_v48  ;;  %v7092_v33 = vpop.f32.mrf.mxu0 }
 0x28f   : > { %v7033_v41 = vpop.f32.mrf.mxu1 }
 0x290   : > { %v3119_v54 = vadd.f32 %v7033_v41, %v9929_v28  ;;  %v10134_v44 = vadd.f32 %v3755_v60, %v3116_v42  ;;  %v3803_v52 = vpop.f32.mrf.mxu0 }
 0x291   : > { %v3004_v2 = vpop.f32.mrf.mxu1 }
 0x292   : > { %v3117_v32 = vadd.f32 %v3004_v2, %v9932_v36  ;;  %v10137_v27 = vadd.f32 %v7081_v15, %v3119_v54  ;;  %v7093_v37 = vpop.f32.mrf.mxu0 }
 0x293   : > { %v7036_v12 = vpop.f32.mrf.mxu1 }
 0x294   : > { %v3122_v23 = vadd.f32 %v7036_v12, %v9944_v34  ;;  %v10140_v30 = vadd.f32 %v3758_v56, %v3117_v32  ;;  %v3806_v6 = vpop.f32.mrf.mxu0 }
 0x295   : > { %v3017_v17 = vpop.f32.mrf.mxu1 }
 0x296   : > { %v3120_v29 = vadd.f32 %v3017_v17, %v10686_v47  ;;  %v10143_v28 = vadd.f32 %v7084_v0, %v3122_v23  ;;  %v7096_v57 = vpop.f32.mrf.mxu0 }
 0x297   : > { %v7037_v60 = vpop.f32.mrf.mxu1 }
 0x298   : > { %v3123_v39 = vadd.f32 %v7037_v60, %v10687_v49  ;;  %v10146_v36 = vadd.f32 %v3771_v19, %v3120_v29  ;;  %v3819_v63 = vpop.f32.mrf.mxu0 }
 0x299   : > { %v3020_v15 = vpop.f32.mrf.mxu1 }
 0x29a   : > { %v3121_v21 = vadd.f32 %v3020_v15, %v9976_v20  ;;  %v10149_v34 = vadd.f32 %v7085_v31, %v3123_v39  ;;  %v7097_v8 = vpop.f32.mrf.mxu0 }
 0x29b   : > { %v7040_v56 = vpop.f32.mrf.mxu1 }
 0x29c   : > { %v3126_v48 = vadd.f32 %v7040_v56, %v9991_v51  ;;  %v10152_v42 = vadd.f32 %v3774_v55, %v3121_v21  ;;  %v3822_v54 = vpop.f32.mrf.mxu0 }
 0x29d   : > { %v3033_v0 = vpop.f32.mrf.mxu1 }
 0x29e   : > { %v3124_v41 = vadd.f32 %v3033_v0, %v10009_v9  ;;  %v10155_v2 = vadd.f32 %v7088_v61, %v3126_v48  ;;  %v7100_v12 = vpop.f32.mrf.mxu0 }
 0x29f   : > { %v7041_v19 = vpop.f32.mrf.mxu1 }
 0x2a0   : > { %v3127_v32 = vadd.f32 %v7041_v19, %v10018_v3  ;;  %v10158_v20 = vadd.f32 %v3787_v4, %v3124_v41  ;;  %v3835_v55 = vpop.f32.mrf.mxu0 }
 0x2a1   : > { %v3036_v31 = vpop.f32.mrf.mxu1 }
 0x2a2   : > { %v3125_v23 = vadd.f32 %v3036_v31, %v10027_v18  ;;  %v10161_v17 = vadd.f32 %v7089_v50, %v3127_v32  ;;  %v7101_v49 = vpop.f32.mrf.mxu0 }
 0x2a3   : > { %v7044_v51 = vpop.f32.mrf.mxu1 }
 0x2a4   : > { %v3130_v47 = vadd.f32 %v7044_v51, %v10035_v35  ;;  %v10164_v29 = vadd.f32 %v3790_v40, %v3125_v23  ;;  %v3838_v35 = vpop.f32.mrf.mxu0 }
 0x2a5   : > { %v3049_v9 = vpop.f32.mrf.mxu1 }
 0x2a6   : > { %v3128_v61 = vadd.f32 %v3049_v9, %v10043_v7  ;;  %v10167_v60 = vadd.f32 %v7092_v33, %v3130_v47 }
 0x2a7   : > { %v7045_v3 = vpop.f32.mrf.mxu1 }
 0x2a8   : > { %v3131_v4 = vadd.f32 %v7045_v3, %v10054_v10  ;;  %v10170_v39 = vadd.f32 %v3803_v52, %v3128_v61 }
 0x2a9   : > { %v3052_v18 = vpop.f32.mrf.mxu1 }
 0x2aa   : > { %10688 = vst [vmem:[#allocation4_spill] sm:$0xff] %v10170_v39  ;;  %v3129_v50 = vadd.f32 %v3052_v18, %v10066_v43  ;;  %v10173_v15 = vadd.f32 %v7093_v37, %v3131_v4 }
 0x2ab   : > { %v7048_v21 = vpop.f32.mrf.mxu1 }
 0x2ac   : > { %10689 = vst [vmem:[#allocation5_spill] sm:$0xff] %v10173_v15  ;;  %v3134_v40 = vadd.f32 %v7048_v21, %v10070_v14  ;;  %v10176_v56 = vadd.f32 %v3806_v6, %v3129_v50 }
 0x2ad   : > { %v3065_v7 = vpop.f32.mrf.mxu1 }
 0x2ae   : > { %10690 = vst [vmem:[#allocation12_spill] sm:$0xff] %v10176_v56  ;;  %v3132_v33 = vadd.f32 %v3065_v7, %v10074_v11  ;;  %v10179_v48 = vadd.f32 %v7096_v57, %v3134_v40  ;;  %v7104_v10 = vpop.f32.mrf.mxu0 }
 0x2af   : > { %v7049_v0 = vpop.f32.mrf.mxu1 }
 0x2b0   : > { %10691 = vst [vmem:[#allocation7_spill] sm:$0xff] %v10179_v48  ;;  %v3135_v52 = vadd.f32 %v7049_v0, %v10078_v59  ;;  %v10182_v41 = vadd.f32 %v3819_v63, %v3132_v33  ;;  %v3851_v37 = vpop.f32.mrf.mxu0 }
 0x2b1   : > { %v3068_v43 = vpop.f32.mrf.mxu1 }
 0x2b2   : > { %10692 = vst [vmem:[#allocation10_spill] sm:$0xff] %v10182_v41  ;;  %v3133_v19 = vadd.f32 %v3068_v43, %v10086_v1  ;;  %v10185_v32 = vadd.f32 %v7097_v8, %v3135_v52  ;;  %v7105_v6 = vpop.f32.mrf.mxu0 }
 0x2b3   : > { %v7052_v14 = vpop.f32.mrf.mxu1 }
 0x2b4   : > { %10693 = vst [vmem:[#allocation13_spill] sm:$0xff] %v10185_v32  ;;  %v3138_v31 = vadd.f32 %v7052_v14, %v10090_v46  ;;  %v10188_v23 = vadd.f32 %v3822_v54, %v3133_v19  ;;  %v3854_v57 = vpop.f32.mrf.mxu0 }
 0x2b5   : > { %v3081_v11 = vpop.f32.mrf.mxu1 }
 0x2b6   : > { %10694 = vst [vmem:[#allocation15_spill] sm:$0xff] %v10188_v23  ;;  %v3136_v51 = vadd.f32 %v3081_v11, %v10094_v5  ;;  %v10191_v47 = vadd.f32 %v7100_v12, %v3138_v31  ;;  %v10193_v63 = vpop.f32.mrf.mxu0 }
 0x2b7   : > { %v7053_v59 = vpop.f32.mrf.mxu1 }
 0x2b8   : > { %10695 = vst [vmem:[#allocation17_spill] sm:$0xff] %v10191_v47  ;;  %v3139_v9 = vadd.f32 %v7053_v59, %v10098_v53  ;;  %v10196_v1 = vadd.f32 %v3835_v55, %v3136_v51  ;;  %v10198_v61 = vpop.f32.mrf.mxu0 }
 0x2b9   : > { %v3084_v8 = vpop.f32.mrf.mxu1 }
 0x2ba   : > { %10696 = vst [vmem:[#allocation19_spill] sm:$0xff] %v10196_v1  ;;  %v3137_v46 = vadd.f32 %v3084_v8, %v10102_v38  ;;  %v10201_v54 = vadd.f32 %v7101_v49, %v3139_v9  ;;  %v10203_v4 = vpop.f32.mrf.mxu0 }
 0x2bb   : > { %v7056_v3 = vpop.f32.mrf.mxu1 }
 0x2bc   : > { %10697 = vst [vmem:[#allocation36_spill] sm:$0xff] %v10201_v54  ;;  %v3142_v5 = vadd.f32 %v7056_v3, %v10106_v26  ;;  %v10206_v12 = vadd.f32 %v3838_v35, %v3137_v46  ;;  %v10208_v50 = vpop.f32.mrf.mxu0 }
 0x2bd   : > { %v3097_v18 = vpop.f32.mrf.mxu1 }
 0x2be   : > { %10698 = vst [vmem:[#allocation21_spill] sm:$0xff] %v10206_v12  ;;  %v3140_v53 = vadd.f32 %v3097_v18, %v10110_v22  ;;  %v10211_v55 = vadd.f32 %v7104_v10, %v3142_v5  ;;  %v10213_v40 = vpop.f32.mrf.mxu0 }
 0x2bf   : > { %v7057_v21 = vpop.f32.mrf.mxu1 }
 0x2c0   : > { %10699 = vst [vmem:[#allocation37_spill] sm:$0xff] %v10211_v55  ;;  %v3143_v38 = vadd.f32 %v7057_v21, %v10113_v13  ;;  %v10216_v49 = vadd.f32 %v3851_v37, %v3140_v53  ;;  %v10218_v33 = vpop.f32.mrf.mxu0 }
 0x2c1   : > { %v3100_v7 = vpop.f32.mrf.mxu1 }
 0x2c2   : > { %10700 = vst [vmem:[#allocation31_spill] sm:$0xff] %v10216_v49  ;;  %v3141_v26 = vadd.f32 %v3100_v7, %v10116_v24  ;;  %v10221_v35 = vadd.f32 %v7105_v6, %v3143_v38  ;;  %v10223_v52 = vpop.f32.mrf.mxu0 }
 0x2c3   : > { %v7124_v0 = vpop.f32.mrf.mxu1 }
 0x2c4   : > { %10701 = vst [vmem:[#allocation23_spill] sm:$0xff] %v10221_v35  ;;  %v10225_v22 = vadd.f32 %v3854_v57, %v3141_v26  ;;  %v10227_v43 = vpop.f32.mrf.mxu0 }
 0x2c5   : > { %v4237_v10 = vpop.f32.mrf.mxu1 }
 0x2c6   : > { %10702 = vst [vmem:[#allocation38_spill] sm:$0xff] %v10225_v22  ;;  %v10229_v14 = vpop.f32.mrf.mxu0 }
 0x2c7   : > { %v7125_v19 = vpop.f32.mrf.mxu1 }
 0x2c8   : > { %v10233_v37 = vpop.f32.mrf.mxu0 }
 0x2c9   : > { %v10231_v13 = vpop.f32.mrf.mxu1 }
 0x2ca   : > { %v10237_v24 = vpop.f32.mrf.mxu0 }
 0x2cb   : > { %v10235_v31 = vpop.f32.mrf.mxu1 }
 0x2cc   : > { %v10241_v11 = vpop.f32.mrf.mxu0 }
 0x2cd   : > { %v10239_v6 = vpop.f32.mrf.mxu1 }
 0x2ce   : > { %v10245_v51 = vpop.f32.mrf.mxu0 }
 0x2cf   : > { %v10243_v57 = vpop.f32.mrf.mxu1 }
 0x2d0   : > { %v10249_v9 = vpop.f32.mrf.mxu0 }
 0x2d1   : > { %v10247_v59 = vpop.f32.mrf.mxu1 }
 0x2d2   : > { %v10253_v46 = vpop.f32.mrf.mxu0 }
 0x2d3   : > { %v10251_v8 = vpop.f32.mrf.mxu1  ;;  %10703 = vst [vmem:[#allocation39_spill] sm:$0xff] %v10253_v46 }
 0x2d4   : > { %v10257_v5 = vpop.f32.mrf.mxu0 }
 0x2d5   : > { %v10255_v3 = vpop.f32.mrf.mxu1  ;;  %10704 = vst [vmem:[#allocation24_spill] sm:$0xff] %v10257_v5 }
 0x2d6   : > { %v10261_v53 = vpop.f32.mrf.mxu0 }
 0x2d7   : > { %v10259_v18 = vpop.f32.mrf.mxu1  ;;  %10705 = vst [vmem:[#allocation26_spill] sm:$0xff] %v10261_v53 }
 0x2d8   : > { %v10265_v38 = vpop.f32.mrf.mxu0 }
 0x2d9   : > { %v10263_v21 = vpop.f32.mrf.mxu1  ;;  %10706 = vst [vmem:[#allocation27_spill] sm:$0xff] %v10265_v38 }
 0x2da   : > { %v10269_v26 = vpop.f32.mrf.mxu0 }
 0x2db   : > { %v10267_v7 = vpop.f32.mrf.mxu1  ;;  %10707 = vst [vmem:[#allocation8_spill] sm:$0xff] %v10269_v26 }
 0x2dc   : > { %v10273_v35 = vpop.f32.mrf.mxu0 }
 0x2dd   : > { %v10271_v22 = vpop.f32.mrf.mxu1  ;;  %10708 = vst [vmem:[#allocation9_spill] sm:$0xff] %v10273_v35 }
 0x2de   : > { %v10277_v55 = vpop.f32.mrf.mxu0 }
 0x2df   : > { %v10275_v49 = vpop.f32.mrf.mxu1  ;;  %10709 = vst [vmem:[#allocation11_spill] sm:$0xff] %v10277_v55 }
 0x2e0   : > { %v10281_v54 = vpop.f32.mrf.mxu0 }
 0x2e1   : > { %v10279_v12 = vpop.f32.mrf.mxu1  ;;  %10710 = vst [vmem:[#allocation14_spill] sm:$0xff] %v10281_v54 }
 0x2e2   : > { %v10285_v47 = vpop.f32.mrf.mxu0 }
 0x2e3   : > { %v10283_v1 = vpop.f32.mrf.mxu1  ;;  %10711 = vst [vmem:[#allocation16_spill] sm:$0xff] %v10285_v47 }
 0x2e4   : > { %v10289_v32 = vpop.f32.mrf.mxu0 }
 0x2e5   : > { %v10287_v23 = vpop.f32.mrf.mxu1  ;;  %10713 = vst [vmem:[#allocation20_spill] sm:$0xff] %v10289_v32 }
 0x2e6   : > { %10712 = vst [vmem:[#allocation18_spill] sm:$0xff] %v10287_v23  ;;  %v10293_v26 = vpop.f32.mrf.mxu0 }
 0x2e7   : > { %v10291_v41 = vpop.f32.mrf.mxu1  ;;  %10715 = vst [vmem:[#allocation25_spill] sm:$0xff] %v10293_v26 }
 0x2e8   : > { %10714 = vst [vmem:[#allocation22_spill] sm:$0xff] %v10291_v41  ;;  %v10297_v48 = vpop.f32.mrf.mxu0 }
 0x2e9   : > { %v10295_v35 = vpop.f32.mrf.mxu1  ;;  %10717 = vst [vmem:[#allocation29_spill] sm:$0xff] %v10297_v48 }
 0x2ea   : > { %10716 = vst [vmem:[#allocation28_spill] sm:$0xff] %v10295_v35  ;;  %v10301_v56 = vpop.f32.mrf.mxu0 }
 0x2eb   : > { %v10299_v55 = vpop.f32.mrf.mxu1  ;;  %10719 = vst [vmem:[#allocation32_spill] sm:$0xff] %v10301_v56 }
 0x2ec   : > { %10718 = vst [vmem:[#allocation30_spill] sm:$0xff] %v10299_v55  ;;  %v10305_v38 = vpop.f32.mrf.mxu0 }
 0x2ed   : > { %v10303_v54 = vpop.f32.mrf.mxu1  ;;  %10721 = vst [vmem:[#allocation34_spill] sm:$0xff] %v10305_v38 }
 0x2ee   : > { %10720 = vst [vmem:[#allocation33_spill] sm:$0xff] %v10303_v54  ;;  %v10309_v15 = vpop.f32.mrf.mxu0 }
 0x2ef   : > { %v10307_v47 = vpop.f32.mrf.mxu1  ;;  %10723 = vst [vmem:[#allocation3_spill] sm:$0xff] %v10309_v15 }
 0x2f0   : > { %10722 = vst [vmem:[#allocation35_spill] sm:$0xff] %v10307_v47  ;;  %v10313_v41 = vpop.f32.mrf.mxu0 }
 0x2f1   : > { %v10311_v32 = vpop.f32.mrf.mxu1  ;;  %10725 = vst [vmem:[#allocation40_spill] sm:$0xff] %v10313_v41 }
 0x2f2   : > { %10724 = vst [vmem:[#allocation6_spill] sm:$0xff] %v10311_v32  ;;  %v10317_v35 = vpop.f32.mrf.mxu0 }
 0x2f3   : > { %v10315_v26 = vpop.f32.mrf.mxu1  ;;  %10727 = vst [vmem:[#allocation42_spill] sm:$0xff] %v10317_v35 }
 0x2f4   : > { %10726 = vst [vmem:[#allocation41_spill] sm:$0xff] %v10315_v26  ;;  %v10321_v55 = vpop.f32.mrf.mxu0  ;;  %v4366_v26 = vadd.f32 %v7124_v0, %v10119_v25  ;;  %v4370_v0 = vadd.f32 %v10235_v31, %v10131_v45 }
 0x2f5   : > { %v10319_v48 = vpop.f32.mrf.mxu1  ;;  %10729 = vst [vmem:[#allocation44_spill] sm:$0xff] %v10321_v55 }
 0x2f6   : > { %10728 = vst [vmem:[#allocation43_spill] sm:$0xff] %v10319_v48  ;;  %v7268_v54 = vpop.f32.mrf.mxu0  ;;  %v4364_v48 = vadd.f32 %v4237_v10, %v10122_v62  ;;  %v4753_v23 = vadd.f32 %v10193_v63, %v4366_v26  ;;  %v10347_v62 = vld [vmem:[%s10511_s4] ss:$0 sm:$0xff]  ;;  %v4757_v31 = vadd.f32 %v10213_v40, %v4370_v0 }
 0x2f7   : > { %v10323_v56 = vpop.f32.mrf.mxu1 }
 0x2f8   : > { %10730 = vst [vmem:[#allocation45_spill] sm:$0xff] %v10323_v56  ;;  %v5876_v47 = vpop.f32.mrf.mxu0  ;;  %v4751_v25 = vadd.f32 %v10198_v61, %v4364_v48 }
 0x2f9   : > { %v10325_v38 = vpop.f32.mrf.mxu1 }
 0x2fa   : > { %10731 = vst [vmem:[#allocation46_spill] sm:$0xff] %v10325_v38  ;;  %v7269_v15 = vpop.f32.mrf.mxu0  ;;  %v4367_v38 = vadd.f32 %v7125_v19, %v10125_v58 }
 0x2fb   : > { %v10327_v53 = vpop.f32.mrf.mxu1 }
 0x2fc   : > { %10732 = vst [vmem:[#allocation47_spill] sm:$0xff] %v10327_v53  ;;  %v5879_v41 = vpop.f32.mrf.mxu0  ;;  %v4754_v26 = vadd.f32 %v10203_v4, %v4367_v38 }
 0x2fd   : > { %v10329_v32 = vpop.f32.mrf.mxu1 }
 0x2fe   : > { %10733 = vst [vmem:[#allocation48_spill] sm:$0xff] %v10329_v32  ;;  %v7272_v35 = vpop.f32.mrf.mxu0  ;;  %v4365_v32 = vadd.f32 %v10231_v13, %v10128_v16  ;;  %v4368_v16 = vadd.f32 %v10239_v6, %v10134_v44  ;;  %v4371_v6 = vadd.f32 %v10243_v57, %v10137_v27  ;;  %v4374_v27 = vadd.f32 %v10251_v8, %v10143_v28 }
 0x2ff   : > { %v10332_v5 = vpop.f32.mrf.mxu1 }
 0x300   : > { %v5892_v56 = vpop.f32.mrf.mxu0  ;;  %v4752_v13 = vadd.f32 %v10208_v50, %v4365_v32  ;;  %v4369_v32 = vadd.f32 %v10247_v59, %v10140_v30  ;;  %v4372_v30 = vadd.f32 %v10255_v3, %v10146_v36 }
 0x301   : > { %v10335_v55 = vpop.f32.mrf.mxu1 }
 0x302   : > { %v7273_v39 = vpop.f32.mrf.mxu0 }
 0x303   : > { %v7220_v53 = vpop.f32.mrf.mxu1 }
 0x304   : > { %v5507_v46 = vadd.f32 %v7220_v53, %v4753_v23  ;;  %v5895_v58 = vpop.f32.mrf.mxu0 }
 0x305   : > { %v5378_v10 = vpop.f32.mrf.mxu1 }
 0x306   : > { %v6005_v19 = vadd.f32 %v7268_v54, %v5507_v46  ;;  %v5505_v63 = vadd.f32 %v5378_v10, %v4751_v25  ;;  %v7276_v48 = vpop.f32.mrf.mxu0  ;;  %v4755_v10 = vadd.f32 %v10218_v33, %v4368_v16 }
 0x307   : > { %v7221_v45 = vpop.f32.mrf.mxu1 }
 0x308   : > { %v6044_v23 = vadd.f32 %v10347_v62, %v6005_v19  ;;  %v6003_v61 = vadd.f32 %v5876_v47, %v5505_v63  ;;  %v5508_v54 = vadd.f32 %v7221_v45, %v4754_v26  ;;  %v5908_v44 = vpop.f32.mrf.mxu0  ;;  %v4758_v26 = vadd.f32 %v10223_v52, %v4371_v6 }
 0x309   : > { %v5381_v4 = vpop.f32.mrf.mxu1  ;;  %v4756_v45 = vadd.f32 %v10227_v43, %v4369_v32  ;;  %v4375_v52 = vadd.f32 %v10259_v18, %v10149_v34  ;;  %v4373_v43 = vadd.f32 %v10263_v21, %v10152_v42  ;;  %v4378_v34 = vadd.f32 %v10267_v7, %v10155_v2 }
 0x30a   : > { %6076 = vst [vmem:[%s10357_s7 + $0x10] sm:$0xff] %v6044_v23  ;;  %v6042_v46 = vadd.f32 %v10347_v62, %v6003_v61  ;;  %v6006_v53 = vadd.f32 %v7269_v15, %v5508_v54  ;;  %v5506_v38 = vadd.f32 %v5381_v4, %v4752_v13  ;;  %v7277_v47 = vpop.f32.mrf.mxu0  ;;  %v4761_v61 = vadd.f32 %v10229_v14, %v4374_v27 }
 0x30b   : > { %v7224_v25 = vpop.f32.mrf.mxu1  ;;  %v4759_v4 = vadd.f32 %v10233_v37, %v4372_v30  ;;  %v4376_v42 = vadd.f32 %v10271_v22, %v10158_v20 }
 0x30c   : > { %6074 = vst [vmem:[%s10357_s7] sm:$0xff] %v6042_v46  ;;  %v6045_v50 = vadd.f32 %v10347_v62, %v6006_v53  ;;  %v6004_v40 = vadd.f32 %v5879_v41, %v5506_v38  ;;  %v5511_v0 = vadd.f32 %v7224_v25, %v4757_v31  ;;  %v5911_v19 = vpop.f32.mrf.mxu0  ;;  %v4762_v38 = vadd.f32 %v10237_v24, %v4375_v52 }
 0x30d   : > { %v5394_v57 = vpop.f32.mrf.mxu1  ;;  %v4379_v24 = vadd.f32 %v10275_v49, %v10161_v17  ;;  %v4763_v27 = vadd.f32 %v10249_v9, %v4376_v42  ;;  %v4382_v17 = vadd.f32 %v10283_v1, %v10167_v60  ;;  %v10744_v42 = vld [vmem:[#allocation7_spill] sm:$0xff] }
 0x30e   : > { %6077 = vst [vmem:[%s10357_s7 + $0x18] sm:$0xff] %v6045_v50  ;;  %v6043_v15 = vadd.f32 %v10347_v62, %v6004_v40  ;;  %v6009_v33 = vadd.f32 %v7272_v35, %v5511_v0  ;;  %v5509_v63 = vadd.f32 %v5394_v57, %v4755_v10  ;;  %v7280_v16 = vpop.f32.mrf.mxu0  ;;  %v4760_v10 = vadd.f32 %v10241_v11, %v4373_v43 }
 0x30f   : > { %v7225_v59 = vpop.f32.mrf.mxu1  ;;  %v4765_v50 = vadd.f32 %v10245_v51, %v4378_v34  ;;  %v4377_v11 = vadd.f32 %v10279_v12, %v10164_v29  ;;  %v10735_v29 = vld [vmem:[#allocation4_spill] sm:$0xff]  ;;  %v10736_v12 = vld [vmem:[#allocation18_spill] sm:$0xff] }
 0x310   : > { %6075 = vst [vmem:[%s10357_s7 + $0x8] sm:$0xff] %v6043_v15  ;;  %v6048_v41 = vadd.f32 %v10347_v62, %v6009_v33  ;;  %v6007_v28 = vadd.f32 %v5892_v56, %v5509_v63  ;;  %v5512_v8 = vadd.f32 %v7225_v59, %v4758_v26  ;;  %v5924_v35 = vpop.f32.mrf.mxu0  ;;  %v10734_v26 = vld [vmem:[#allocation39_spill] sm:$0xff]  ;;  %v4380_v59 = vadd.f32 %v10736_v12, %v10735_v29  ;;  %v10742_v34 = vld [vmem:[#allocation12_spill] sm:$0xff] }
 0x311   : > { %v5397_v23 = vpop.f32.mrf.mxu1  ;;  %v4766_v30 = vadd.f32 %v10734_v26, %v4379_v24 }
 0x312   : > { %6080 = vst [vmem:[%s10357_s7 + $0x30] sm:$0xff] %v6048_v41  ;;  %v6046_v36 = vadd.f32 %v10347_v62, %v6007_v28  ;;  %v6010_v3 = vadd.f32 %v7273_v39, %v5512_v8  ;;  %v5510_v54 = vadd.f32 %v5397_v23, %v4756_v45  ;;  %v7281_v56 = vpop.f32.mrf.mxu0  ;;  %v10737_v8 = vld [vmem:[#allocation24_spill] sm:$0xff] }
 0x313   : > { %v7228_v13 = vpop.f32.mrf.mxu1  ;;  %v4764_v45 = vadd.f32 %v10737_v8, %v4377_v11 }
 0x314   : > { %6078 = vst [vmem:[%s10357_s7 + $0x20] sm:$0xff] %v6046_v36  ;;  %v6049_v14 = vadd.f32 %v10347_v62, %v6010_v3  ;;  %v6008_v31 = vadd.f32 %v5895_v58, %v5510_v54  ;;  %v5515_v6 = vadd.f32 %v7228_v13, %v4761_v61  ;;  %v5927_v46 = vpop.f32.mrf.mxu0  ;;  %v10738_v61 = vld [vmem:[#allocation26_spill] sm:$0xff]  ;;  %v10739_v36 = vld [vmem:[#allocation5_spill] sm:$0xff] }
 0x315   : > { %v5410_v18 = vpop.f32.mrf.mxu1  ;;  %v4769_v52 = vadd.f32 %v10738_v61, %v4382_v17  ;;  %v10740_v3 = vld [vmem:[#allocation22_spill] sm:$0xff]  ;;  %v10756_v61 = vld [vmem:[#allocation17_spill] sm:$0xff] }
 0x316   : > { %6081 = vst [vmem:[%s10357_s7 + $0x38] sm:$0xff] %v6049_v14  ;;  %v6047_v39 = vadd.f32 %v10347_v62, %v6008_v31  ;;  %v6013_v37 = vadd.f32 %v7276_v48, %v5515_v6  ;;  %v5513_v53 = vadd.f32 %v5410_v18, %v4759_v4  ;;  %v7284_v25 = vpop.f32.mrf.mxu0  ;;  %v4383_v54 = vadd.f32 %v10740_v3, %v10739_v36  ;;  %v10741_v31 = vld [vmem:[#allocation27_spill] sm:$0xff]  ;;  %v10743_v18 = vld [vmem:[#allocation28_spill] sm:$0xff] }
 0x317   : > { %v7229_v21 = vpop.f32.mrf.mxu1  ;;  %v4767_v6 = vadd.f32 %v10741_v31, %v4380_v59  ;;  %v10753_v59 = vld [vmem:[#allocation14_spill] sm:$0xff]  ;;  %v10760_v31 = vld [vmem:[#allocation43_spill] sm:$0xff] }
 0x318   : > { %6079 = vst [vmem:[%s10357_s7 + $0x28] sm:$0xff] %v6047_v39  ;;  %v6052_v58 = vadd.f32 %v10347_v62, %v6013_v37  ;;  %v6011_v2 = vadd.f32 %v5908_v44, %v5513_v53  ;;  %v5516_v7 = vadd.f32 %v7229_v21, %v4762_v38  ;;  %v5940_v48 = vpop.f32.mrf.mxu0  ;;  %v4381_v39 = vadd.f32 %v10743_v18, %v10742_v34  ;;  %v10745_v21 = vld [vmem:[#allocation30_spill] sm:$0xff] }
 0x319   : > { %v5413_v32 = vpop.f32.mrf.mxu1 }
 0x31a   : > { %6084 = vst [vmem:[%s10357_s7 + $0x50] sm:$0xff] %v6052_v58  ;;  %v6050_v20 = vadd.f32 %v10347_v62, %v6011_v2  ;;  %v6014_v22 = vadd.f32 %v7277_v47, %v5516_v7  ;;  %v5514_v40 = vadd.f32 %v5413_v32, %v4760_v10  ;;  %v7285_v44 = vpop.f32.mrf.mxu0  ;;  %v4386_v58 = vadd.f32 %v10745_v21, %v10744_v42  ;;  %v10762_v21 = vld [vmem:[#allocation25_spill] sm:$0xff] }
 0x31b   : > { %v7232_v0 = vpop.f32.mrf.mxu1 }
 0x31c   : > { %6082 = vst [vmem:[%s10357_s7 + $0x40] sm:$0xff] %v6050_v20  ;;  %v6053_v51 = vadd.f32 %v10347_v62, %v6014_v22  ;;  %v6012_v57 = vadd.f32 %v5911_v19, %v5514_v40  ;;  %v5519_v15 = vadd.f32 %v7232_v0, %v4765_v50  ;;  %v5943_v33 = vpop.f32.mrf.mxu0  ;;  %v10746_v50 = vld [vmem:[#allocation8_spill] sm:$0xff]  ;;  %v10747_v20 = vld [vmem:[#allocation10_spill] sm:$0xff]  ;;  %v10748_v22 = vld [vmem:[#allocation33_spill] sm:$0xff] }
 0x31d   : > { %v5426_v49 = vpop.f32.mrf.mxu1  ;;  %v4770_v24 = vadd.f32 %v10746_v50, %v4383_v54  ;;  %v4384_v40 = vadd.f32 %v10748_v22, %v10747_v20  ;;  %v10765_v20 = vld [vmem:[#allocation29_spill] sm:$0xff] }
 0x31e   : > { %6085 = vst [vmem:[%s10357_s7 + $0x58] sm:$0xff] %v6053_v51  ;;  %v6051_v47 = vadd.f32 %v10347_v62, %v6012_v57  ;;  %v6017_v9 = vadd.f32 %v7280_v16, %v5519_v15  ;;  %v5517_v63 = vadd.f32 %v5426_v49, %v4763_v27  ;;  %v7288_v28 = vpop.f32.mrf.mxu0  ;;  %v10749_v57 = vld [vmem:[#allocation9_spill] sm:$0xff]  ;;  %v10750_v49 = vld [vmem:[#allocation11_spill] sm:$0xff] }
 0x31f   : > { %v7233_v41 = vpop.f32.mrf.mxu1  ;;  %v4768_v15 = vadd.f32 %v10749_v57, %v4381_v39 }
 0x320   : > { %6083 = vst [vmem:[%s10357_s7 + $0x48] sm:$0xff] %v6051_v47  ;;  %v6056_v19 = vadd.f32 %v10347_v62, %v6017_v9  ;;  %v6015_v60 = vadd.f32 %v5924_v35, %v5517_v63  ;;  %v5520_v1 = vadd.f32 %v7233_v41, %v4766_v30  ;;  %v5956_v16 = vpop.f32.mrf.mxu0  ;;  %v4773_v47 = vadd.f32 %v10750_v49, %v4386_v58  ;;  %v10752_v9 = vld [vmem:[#allocation35_spill] sm:$0xff] }
 0x321   : > { %v5429_v23 = vpop.f32.mrf.mxu1  ;;  %v4771_v41 = vadd.f32 %v10753_v59, %v4384_v40 }
 0x322   : > { %6088 = vst [vmem:[%s10357_s7 + $0x70] sm:$0xff] %v6056_v19  ;;  %v6054_v13 = vadd.f32 %v10347_v62, %v6015_v60  ;;  %v6018_v4 = vadd.f32 %v7281_v56, %v5520_v1  ;;  %v5518_v43 = vadd.f32 %v5429_v23, %v4764_v45  ;;  %v7289_v35 = vpop.f32.mrf.mxu0  ;;  %v10755_v60 = vld [vmem:[#allocation6_spill] sm:$0xff] }
 0x323   : > { %v7236_v14 = vpop.f32.mrf.mxu1 }
 0x324   : > { %6086 = vst [vmem:[%s10357_s7 + $0x60] sm:$0xff] %v6054_v13  ;;  %v6057_v37 = vadd.f32 %v10347_v62, %v6018_v4  ;;  %v6016_v53 = vadd.f32 %v5927_v46, %v5518_v43  ;;  %v5523_v38 = vadd.f32 %v7236_v14, %v4769_v52  ;;  %v5959_v7 = vpop.f32.mrf.mxu0  ;;  %v10757_v52 = vld [vmem:[#allocation41_spill] sm:$0xff]  ;;  %v10758_v4 = vld [vmem:[#allocation16_spill] sm:$0xff]  ;;  %v10759_v14 = vld [vmem:[#allocation19_spill] sm:$0xff] }
 0x325   : > { %v5442_v2 = vpop.f32.mrf.mxu1  ;;  %v4390_v36 = vadd.f32 %v10757_v52, %v10756_v61  ;;  %v10775_v61 = vld [vmem:[#allocation23_spill] sm:$0xff] }
 0x326   : > { %6089 = vst [vmem:[%s10357_s7 + $0x78] sm:$0xff] %v6057_v37  ;;  %v6055_v56 = vadd.f32 %v10347_v62, %v6016_v53  ;;  %v6021_v10 = vadd.f32 %v7284_v25, %v5523_v38  ;;  %v5521_v32 = vadd.f32 %v5442_v2, %v4767_v6  ;;  %v7292_v27 = vpop.f32.mrf.mxu0  ;;  %v10751_v25 = vld [vmem:[#allocation13_spill] sm:$0xff]  ;;  %v4388_v6 = vadd.f32 %v10760_v31, %v10759_v14  ;;  %v10761_v53 = vld [vmem:[#allocation20_spill] sm:$0xff] }
 0x327   : > { %v7237_v0 = vpop.f32.mrf.mxu1  ;;  %v4387_v63 = vadd.f32 %v10752_v9, %v10751_v25  ;;  %v4777_v58 = vadd.f32 %v10762_v21, %v4390_v36  ;;  %v10764_v2 = vld [vmem:[#allocation45_spill] sm:$0xff]  ;;  %v4395_v52 = vadd.f32 %v10332_v5, %v10775_v61 }
 0x328   : > { %6087 = vst [vmem:[%s10357_s7 + $0x68] sm:$0xff] %v6055_v56  ;;  %v6060_v46 = vadd.f32 %v10347_v62, %v6021_v10  ;;  %v6019_v11 = vadd.f32 %v5940_v48, %v5521_v32  ;;  %v5524_v51 = vadd.f32 %v7237_v0, %v4770_v24  ;;  %v5972_v19 = vpop.f32.mrf.mxu0  ;;  %v10754_v48 = vld [vmem:[#allocation15_spill] sm:$0xff]  ;;  %v4775_v22 = vadd.f32 %v10765_v20, %v4388_v6  ;;  %v10767_v0 = vld [vmem:[#allocation46_spill] sm:$0xff] }
 0x329   : > { %v5445_v17 = vpop.f32.mrf.mxu1  ;;  %v4385_v1 = vadd.f32 %v10755_v60, %v10754_v48  ;;  %v4774_v43 = vadd.f32 %v10758_v4, %v4387_v63  ;;  %v10770_v63 = vld [vmem:[#allocation32_spill] sm:$0xff] }
 0x32a   : > { %6092 = vst [vmem:[%s10357_s7 + $0x90] sm:$0xff] %v6060_v46  ;;  %v6058_v26 = vadd.f32 %v10347_v62, %v6019_v11  ;;  %v6022_v30 = vadd.f32 %v7285_v44, %v5524_v51  ;;  %v5522_v29 = vadd.f32 %v5445_v17, %v4768_v15  ;;  %v7293_v18 = vpop.f32.mrf.mxu0  ;;  %v10768_v15 = vld [vmem:[#allocation37_spill] sm:$0xff]  ;;  %v10769_v17 = vld [vmem:[#allocation47_spill] sm:$0xff]  ;;  %v10776_v4 = vld [vmem:[#allocation40_spill] sm:$0xff] }
 0x32b   : > { %v7240_v12 = vpop.f32.mrf.mxu1  ;;  %v4772_v38 = vadd.f32 %v10761_v53, %v4385_v1  ;;  %v4394_v49 = vadd.f32 %v10769_v17, %v10768_v15  ;;  %v10773_v1 = vld [vmem:[#allocation34_spill] sm:$0xff] }
 0x32c   : > { %6090 = vst [vmem:[%s10357_s7 + $0x80] sm:$0xff] %v6058_v26  ;;  %v6061_v8 = vadd.f32 %v10347_v62, %v6022_v30  ;;  %v6020_v45 = vadd.f32 %v5943_v33, %v5522_v29  ;;  %v5527_v23 = vadd.f32 %v7240_v12, %v4773_v47  ;;  %v5975_v40 = vpop.f32.mrf.mxu0  ;;  %v10771_v30 = vld [vmem:[#allocation31_spill] sm:$0xff]  ;;  %v10772_v29 = vld [vmem:[#allocation48_spill] sm:$0xff] }
 0x32d   : > { %v5458_v3 = vpop.f32.mrf.mxu1  ;;  %v4392_v12 = vadd.f32 %v10772_v29, %v10771_v30 }
 0x32e   : > { %6093 = vst [vmem:[%s10357_s7 + $0x98] sm:$0xff] %v6061_v8  ;;  %v6059_v44 = vadd.f32 %v10347_v62, %v6020_v45  ;;  %v6025_v54 = vadd.f32 %v7288_v28, %v5527_v23  ;;  %v5525_v13 = vadd.f32 %v5458_v3, %v4771_v41  ;;  %v10763_v28 = vld [vmem:[#allocation36_spill] sm:$0xff]  ;;  %v7296_v41 = vpop.f32.mrf.mxu0  ;;  %v10774_v23 = vld [vmem:[#allocation3_spill] sm:$0xff] }
 0x32f   : > { %v7241_v34 = vpop.f32.mrf.mxu1  ;;  %v4391_v56 = vadd.f32 %v10764_v2, %v10763_v28  ;;  %v10779_v28 = vld [vmem:[#allocation44_spill] sm:$0xff] }
 0x330   : > { %6091 = vst [vmem:[%s10357_s7 + $0x88] sm:$0xff] %v6059_v44  ;;  %v6064_v33 = vadd.f32 %v10347_v62, %v6025_v54  ;;  %v6023_v39 = vadd.f32 %v5956_v16, %v5525_v13  ;;  %v5528_v37 = vadd.f32 %v7241_v34, %v4774_v43  ;;  %v10766_v16 = vld [vmem:[#allocation21_spill] sm:$0xff]  ;;  %v5988_v13 = vpop.f32.mrf.mxu0  ;;  %v10777_v43 = vld [vmem:[#allocation38_spill] sm:$0xff] }
 0x331   : > { %v5461_v42 = vpop.f32.mrf.mxu1  ;;  %v4389_v46 = vadd.f32 %v10767_v0, %v10766_v16  ;;  %v4778_v26 = vadd.f32 %v10770_v63, %v4391_v56  ;;  %v4393_v14 = vadd.f32 %v10335_v55, %v10777_v43 }
 0x332   : > { %6096 = vst [vmem:[%s10357_s7 + $0xb0] sm:$0xff] %v6064_v33  ;;  %v6062_v10 = vadd.f32 %v10347_v62, %v6023_v39  ;;  %v6026_v32 = vadd.f32 %v7289_v35, %v5528_v37  ;;  %v5526_v50 = vadd.f32 %v5461_v42, %v4772_v38  ;;  %v10778_v37 = vld [vmem:[#allocation42_spill] sm:$0xff]  ;;  %v7297_v38 = vpop.f32.mrf.mxu0 }
 0x333   : > { %v7244_v24 = vpop.f32.mrf.mxu1  ;;  %v4776_v8 = vadd.f32 %v10773_v1, %v4389_v46  ;;  %v4782_v53 = vadd.f32 %v10778_v37, %v4395_v52  ;;  %v4780_v2 = vadd.f32 %v10779_v28, %v4393_v14 }
 0x334   : > { %6094 = vst [vmem:[%s10357_s7 + $0xa0] sm:$0xff] %v6062_v10  ;;  %v6065_v11 = vadd.f32 %v10347_v62, %v6026_v32  ;;  %v6024_v51 = vadd.f32 %v5959_v7, %v5526_v50  ;;  %v5531_v57 = vadd.f32 %v7244_v24, %v4777_v58  ;;  %v5991_v24 = vpop.f32.mrf.mxu0 }
 0x335   : > { %v5474_v47 = vpop.f32.mrf.mxu1 }
 0x336   : > { %6097 = vst [vmem:[%s10357_s7 + $0xb8] sm:$0xff] %v6065_v11  ;;  %v6063_v35 = vadd.f32 %v10347_v62, %v6024_v51  ;;  %v6029_v25 = vadd.f32 %v7292_v27, %v5531_v57  ;;  %v5529_v9 = vadd.f32 %v5474_v47, %v4775_v22  ;;  %v4781_v27 = vadd.f32 %v10774_v23, %v4394_v49 }
 0x337   : > { %v7245_v59 = vpop.f32.mrf.mxu1 }
 0x338   : > { %6095 = vst [vmem:[%s10357_s7 + $0xa8] sm:$0xff] %v6063_v35  ;;  %v6068_v7 = vadd.f32 %v10347_v62, %v6029_v25  ;;  %v6027_v48 = vadd.f32 %v5972_v19, %v5529_v9  ;;  %v5532_v60 = vadd.f32 %v7245_v59, %v4778_v26  ;;  %v4779_v19 = vadd.f32 %v10776_v4, %v4392_v12 }
 0x339   : > { %v5477_v45 = vpop.f32.mrf.mxu1 }
 0x33a   : > { %6100 = vst [vmem:[%s10357_s7 + $0xd0] sm:$0xff] %v6068_v7  ;;  %v6066_v36 = vadd.f32 %v10347_v62, %v6027_v48  ;;  %v6030_v3 = vadd.f32 %v7293_v18, %v5532_v60  ;;  %v5530_v44 = vadd.f32 %v5477_v45, %v4776_v8 }
 0x33b   : > { %v7248_v54 = vpop.f32.mrf.mxu1 }
 0x33c   : > { %6098 = vst [vmem:[%s10357_s7 + $0xc0] sm:$0xff] %v6066_v36  ;;  %v6069_v31 = vadd.f32 %v10347_v62, %v6030_v3  ;;  %v6028_v6 = vadd.f32 %v5975_v40, %v5530_v44  ;;  %v5535_v34 = vadd.f32 %v7248_v54, %v4781_v27 }
 0x33d   : > { %v5490_v5 = vpop.f32.mrf.mxu1 }
 0x33e   : > { %6101 = vst [vmem:[%s10357_s7 + $0xd8] sm:$0xff] %v6069_v31  ;;  %v6067_v33 = vadd.f32 %v10347_v62, %v6028_v6  ;;  %v6033_v18 = vadd.f32 %v7296_v41, %v5535_v34  ;;  %v5533_v39 = vadd.f32 %v5490_v5, %v4779_v19 }
 0x33f   : > { %v7249_v42 = vpop.f32.mrf.mxu1 }
 0x340   : > { %6099 = vst [vmem:[%s10357_s7 + $0xc8] sm:$0xff] %v6067_v33  ;;  %v6072_v55 = vadd.f32 %v10347_v62, %v6033_v18  ;;  %v6031_v21 = vadd.f32 %v5988_v13, %v5533_v39  ;;  %v5536_v58 = vadd.f32 %v7249_v42, %v4782_v53 }
 0x341   : > { %v5493_v56 = vpop.f32.mrf.mxu1 }
 0x342   : > { %6104 = vst [vmem:[%s10357_s7 + $0xf0] sm:$0xff] %v6072_v55  ;;  %v6070_v10 = vadd.f32 %v10347_v62, %v6031_v21  ;;  %v6034_v32 = vadd.f32 %v7297_v38, %v5536_v58  ;;  %v5534_v50 = vadd.f32 %v5493_v56, %v4780_v2 }
 0x344   : > { %6102 = vst [vmem:[%s10357_s7 + $0xe0] sm:$0xff] %v6070_v10  ;;  %v6073_v20 = vadd.f32 %v10347_v62, %v6034_v32  ;;  %v6032_v22 = vadd.f32 %v5991_v24, %v5534_v50 }
 0x346   : > { %6105 = vst [vmem:[%s10357_s7 + $0xf8] sm:$0xff] %v6073_v20  ;;  %v6071_v40 = vadd.f32 %v10347_v62, %v6032_v22 }
 0x348   : > { %6103 = vst [vmem:[%s10357_s7 + $0xe8] sm:$0xff] %v6071_v40 }
 0x349 PF: > { %s15_s18 = sadd.s32 1, %s7481_s18  }
 0x34a   : > { %p12_p4 = scmp.ge.s32.totalorder %s15_s18, 4  }
 0x34c   :  { %14 = sbr.rel (!%p12_p4) target bundleno = 1 (0x1), region = 86 }

// kernel: adain_resblk_forward.3
= control target key start
LH: loop header
LB: loop body
LE: loop exit
PB: predicated region body
PF: predicated region fallthrough
CT: control target
= control target key end

     0   :  { %s8008_s24 = smov 0   ;;  %s10831_s0 = inlined_call_operand.vmem [shape: f32[2,256,128], index: 0, kind: input, shape index: {}]   ;;  %s10832_s1 = inlined_call_operand.vmem [shape: f32[2,1,128], index: 1, kind: input, shape index: {}]   ;;  %s10833_s2 = inlined_call_operand.vmem [shape: f32[2,1,128], index: 2, kind: input, shape index: {}]   ;;  %s10834_s3 = inlined_call_operand.vmem [shape: bf16[9,128,128], index: 3, kind: input, shape index: {}]   ;;  %s10835_s4 = inlined_call_operand.vmem [shape: f32[1,128], index: 4, kind: input, shape index: {}]   ;;  %s10836_s5 = inlined_call_operand.vmem [shape: f32[2,256,128], index: 5, kind: input, shape index: {}]   ;;  %s10837_s6 = inlined_call_operand.vmem [shape: bf16[128,128], index: 6, kind: input, shape index: {}]   ;;  %s10838_s7 = inlined_call_operand.vmem [shape: f32[2,256,128], index: 7, kind: output, shape index: {}]  }
   0x1 LB: > { %s6602_s25 = sadd.s32 4294967295, %s7965_s24   ;;  %p6606_p0 = scmp.ge.s32.totalorder %s7965_s24, 1  ;;  %s7965_s24 = sphi %s8008_s24, %s17_s24  }
   0x2   : > { %p263_p1 = scmp.lt.s32.totalorder %s7965_s24, 3 }
   0x4   : > { %p264_p2 = pnand %p6606_p0, %p263_p1 }
   0x6   : > { %267 = sbr.rel (%p264_p2) target bundleno = 845 (0x34d), region = 48 }
   0xb   : > { %v7813_v0 = vld [vmem:[%s10834_s3 + $0x38] sm:$0xff]   ;;  %v7967_v2 = vmov 0   ;;  %v7815_v3 = vld [vmem:[%s10834_s3 + $0x30] sm:$0xff]   ;;  %p306_p3 = scmp.lt.s32.totalorder %s6602_s25, 1  ;;  %v7817_v5 = vld [vmem:[%s10834_s3 + $0x28] sm:$0xff]   ;;  %vm1184_vm5 = vcmask 1043456  }
   0xc   : > { %v7814_v1 = vld [vmem:[%s10834_s3 + $0x78] sm:$0xff]   ;;  %726 = vst [vmem:[#allocation2] sm:$0xf] %v7967_v2  ;;  %727 = vst [vmem:[#allocation2 + $0x4] sm:$0xf] %v7967_v2  ;;  %7372 = vmatprep.subr.bf16.mxu1 %v7813_v0  ;;  %v7816_v4 = vld [vmem:[%s10834_s3 + $0x70] sm:$0xff]  }
   0xd   : > { %728 = vst [vmem:[#allocation2 + $0x8] sm:$0x1] %v7967_v2  ;;  %729 = vst [vmem:[#allocation2 + $0xc] sm:$0xf] %v7967_v2  ;;  %7324 = vmatprep.subr.bf16.mxu0 %v7814_v1  ;;  %7373 = vmatpush3.bf16.msra.mxu1 %v7813_v0  ;;  %v7818_v6 = vld [vmem:[%s10834_s3 + $0x68] sm:$0xff]   ;;  %s11060_s25 = smov (!%p306_p3, %s6602_s25), 1 }
   0xe   : > { %730 = vst [vmem:[#allocation2 + $0x10] sm:$0xf] %v7967_v2  ;;  %731 = vst [vmem:[#allocation2 + $0x14] sm:$0x1] %v7967_v2  ;;  %7325 = vmatpush3.bf16.msra.mxu0 %v7814_v1  ;;  %7374 = vmatprep.subr.bf16.mxu1 %v7815_v3  ;;  %v7819_v7 = vld [vmem:[%s10834_s3 + $0x20] sm:$0xff]   ;;  %s8047_s19 = sshll.u32 %s11060_s25, 8  ;;  %s313_s27 = scalar_lea.vmem %s10832_s1, %s11060_s25 }
   0xf   : > { %732 = vst [vmem:[#allocation2 + $0x18] sm:$0xf] %v7967_v2  ;;  %733 = vst [vmem:[#allocation2 + $0x1c] sm:$0xf] %v7967_v2  ;;  %7326 = vmatprep.subr.bf16.mxu0 %v7816_v4  ;;  %v7820_v8 = vld [vmem:[%s10834_s3 + $0x60] sm:$0xff]   ;;  %v7821_v9 = vld [vmem:[%s10834_s3 + $0x18] sm:$0xff]   ;;  %s8059_s28 = scalar_lea.vmem %s10831_s0, %s8047_s19  ;;  %s8443_s30 = scalar_lea.vmem %s10833_s2, %s11060_s25 }
  0x10   : > { %734 = vst [vmem:[#allocation2 + $0x20] sm:$0x1] %v7967_v2  ;;  %735 = vst [vmem:[#allocation2 + $0x24] sm:$0xf] %v7967_v2  ;;  %v7822_v10 = vld [vmem:[%s10834_s3 + $0x58] sm:$0xff]   ;;  %v7823_v11 = vld [vmem:[%s10834_s3 + $0x10] sm:$0xff]   ;;  %s10068_s13 = scalar_lea.vmem %s10836_s5, %s8047_s19  ;;  %s10686_s17 = scalar_lea.vmem %s10838_s7, %s8047_s19 }
  0x11   : > { %736 = vst [vmem:[#allocation2 + $0x28] sm:$0xf] %v7967_v2  ;;  %737 = vst [vmem:[#allocation2 + $0x2c] sm:$0x1] %v7967_v2  ;;  %7375 = vmatpush3.bf16.msra.mxu1 %v7815_v3  ;;  %v8069_v14 = vld [vmem:[%s8059_s28] sm:$0xff]  ;;  %v7824_v15 = vld [vmem:[%s10834_s3 + $0x50] sm:$0xff]  }
  0x12   : > { %738 = vst [vmem:[#allocation2 + $0x30] sm:$0xf] %v7967_v2  ;;  %739 = vst [vmem:[#allocation2 + $0x34] sm:$0xf] %v7967_v2  ;;  %7327 = vmatpush3.bf16.msra.mxu0 %v7816_v4  ;;  %7376 = vmatprep.subr.bf16.mxu1 %v7817_v5  ;;  %v8077_v17 = vld [vmem:[%s8059_s28 + $0x8] sm:$0xff]  ;;  %v8080_v18 = vld [vmem:[%s8059_s28 + $0x10] sm:$0xff] }
  0x13   : > { %740 = vst [vmem:[#allocation2 + $0x38] sm:$0x1] %v7967_v2  ;;  %741 = vst [vmem:[#allocation2 + $0x3c] sm:$0xf] %v7967_v2  ;;  %7328 = vmatprep.subr.bf16.mxu0 %v7818_v6  ;;  %v8064_v12 = vld [vmem:[#allocation2] sm:$0xf]  ;;  %v360_v19 = vadd.f32 %v8077_v17, %v8069_v14 }
  0x14   : > { %742 = vst [vmem:[#allocation2 + $0x40] sm:$0xf] %v7967_v2  ;;  %743 = vst [vmem:[#allocation2 + $0x44] sm:$0x1] %v7967_v2  ;;  %v8066_v13 = vld [vmem:[#allocation2 + $0x4] sm:$0xf] }
  0x15   : > { %744 = vst [vmem:[#allocation2 + $0x48] sm:$0xf] %v7967_v2  ;;  %745 = vst [vmem:[#allocation2 + $0x4c] sm:$0xf] %v7967_v2  ;;  %7377 = vmatpush3.bf16.msra.mxu1 %v7817_v5  ;;  %v6686_v16 = vcombine.low %v8064_v12, %v8066_v13  ;;  %v8085_v20 = vld [vmem:[%s8059_s28 + $0x18] sm:$0xff]  ;;  %v7825_v21 = vld [vmem:[%s10834_s3 + $0x8] sm:$0xff]   ;;  %v361_v22 = vadd.f32 %v360_v19, %v8080_v18 }
  0x16   : > { %746 = vst [vmem:[#allocation2 + $0x50] sm:$0x1] %v7967_v2  ;;  %747 = vst [vmem:[#allocation2 + $0x54] sm:$0xf] %v7967_v2  ;;  %7329 = vmatpush3.bf16.msra.mxu0 %v7818_v6  ;;  %7378 = vmatprep.subr.bf16.mxu1 %v7819_v7  ;;  %v7826_v23 = vld [vmem:[%s10834_s3 + $0x48] sm:$0xff]   ;;  %v8095_v24 = vld [vmem:[%s8059_s28 + $0x20] sm:$0xff] }
  0x17   : > { %748 = vst [vmem:[#allocation2 + $0x58] sm:$0xf] %v7967_v2  ;;  %749 = vst [vmem:[#allocation2 + $0x5c] sm:$0x1] %v7967_v2  ;;  %7330 = vmatprep.subr.bf16.mxu0 %v7820_v8  ;;  %7388 = vmatprep.mubr.bf16.mxu1 %v6686_v16  ;;  %v362_v25 = vadd.f32 %v361_v22, %v8085_v20  ;;  %v8099_v26 = vld [vmem:[%s8059_s28 + $0x28] sm:$0xff]  ;;  %v7827_v27 = vld [vmem:[%s10834_s3] sm:$0xff]  }
  0x18   : > { %750 = vst [vmem:[#allocation2 + $0x60] sm:$0xf] %v7967_v2  ;;  %751 = vst [vmem:[#allocation2 + $0x64] sm:$0xf] %v7967_v2  ;;  %v7828_v29 = vld [vmem:[%s10834_s3 + $0x40] sm:$0xff]   ;;  %v8109_v30 = vld [vmem:[%s8059_s28 + $0x30] sm:$0xff] }
  0x19   : > { %752 = vst [vmem:[#allocation2 + $0x68] sm:$0x1] %v7967_v2  ;;  %753 = vst [vmem:[#allocation2 + $0x6c] sm:$0xf] %v7967_v2  ;;  %7379 = vmatpush3.bf16.msra.mxu1 %v7819_v7  ;;  %v363_v28 = vadd.f32 %v362_v25, %v8095_v24  ;;  %v8112_v31 = vld [vmem:[%s8059_s28 + $0x38] sm:$0xff]  ;;  %v8116_v33 = vld [vmem:[%s8059_s28 + $0x40] sm:$0xff] }
  0x1a   : > { %754 = vst [vmem:[#allocation2 + $0x70] sm:$0xf] %v7967_v2  ;;  %755 = vst [vmem:[#allocation2 + $0x74] sm:$0x1] %v7967_v2  ;;  %7331 = vmatpush3.bf16.msra.mxu0 %v7820_v8  ;;  %7380 = vmatprep.subr.bf16.mxu1 %v7821_v9  ;;  %v8120_v35 = vld [vmem:[%s8059_s28 + $0x48] sm:$0xff]  ;;  %v8124_v37 = vld [vmem:[%s8059_s28 + $0x50] sm:$0xff] }
  0x1b   : > { %756 = vst [vmem:[#allocation2 + $0x78] sm:$0xf] %v7967_v2  ;;  %757 = vst [vmem:[#allocation2 + $0x7c] sm:$0xf] %v7967_v2  ;;  %7332 = vmatprep.subr.bf16.mxu0 %v7822_v10  ;;  %v364_v32 = vadd.f32 %v363_v28, %v8099_v26  ;;  %v8128_v39 = vld [vmem:[%s8059_s28 + $0x58] sm:$0xff]  ;;  %v8132_v41 = vld [vmem:[%s8059_s28 + $0x60] sm:$0xff] }
  0x1c   : > { %758 = vst [vmem:[#allocation2 + $0x80] sm:$0x1] %v7967_v2  ;;  %759 = vst [vmem:[#allocation2 + $0x84] sm:$0xf] %v7967_v2  ;;  %v8136_v43 = vld [vmem:[%s8059_s28 + $0x68] sm:$0xff]  ;;  %v8140_v45 = vld [vmem:[%s8059_s28 + $0x70] sm:$0xff] }
  0x1d   : > { %760 = vst [vmem:[#allocation2 + $0x88] sm:$0xf] %v7967_v2  ;;  %761 = vst [vmem:[#allocation2 + $0x8c] sm:$0x1] %v7967_v2  ;;  %7381 = vmatpush3.bf16.msra.mxu1 %v7821_v9  ;;  %v365_v34 = vadd.f32 %v364_v32, %v8109_v30  ;;  %v8144_v47 = vld [vmem:[%s8059_s28 + $0x78] sm:$0xff]  ;;  %v8148_v49 = vld [vmem:[%s8059_s28 + $0x80] sm:$0xff] }
  0x1e   : > { %762 = vst [vmem:[#allocation2 + $0x90] sm:$0xf] %v7967_v2  ;;  %763 = vst [vmem:[#allocation2 + $0x94] sm:$0xf] %v7967_v2  ;;  %7333 = vmatpush3.bf16.msra.mxu0 %v7822_v10  ;;  %7382 = vmatprep.subr.bf16.mxu1 %v7823_v11  ;;  %v8152_v51 = vld [vmem:[%s8059_s28 + $0x88] sm:$0xff]  ;;  %v8156_v53 = vld [vmem:[%s8059_s28 + $0x90] sm:$0xff] }
  0x1f   : > { %764 = vst [vmem:[#allocation2 + $0x98] sm:$0x1] %v7967_v2  ;;  %765 = vst [vmem:[#allocation2 + $0x9c] sm:$0xf] %v7967_v2  ;;  %7334 = vmatprep.subr.bf16.mxu0 %v7824_v15  ;;  %v366_v36 = vadd.f32 %v365_v34, %v8112_v31  ;;  %v8160_v55 = vld [vmem:[%s8059_s28 + $0x98] sm:$0xff]  ;;  %v8164_v57 = vld [vmem:[%s8059_s28 + $0xa0] sm:$0xff] }
  0x20   : > { %766 = vst [vmem:[#allocation2 + $0xa0] sm:$0xf] %v7967_v2  ;;  %767 = vst [vmem:[#allocation2 + $0xa4] sm:$0x1] %v7967_v2  ;;  %v8168_v59 = vld [vmem:[%s8059_s28 + $0xa8] sm:$0xff]  ;;  %v8172_v61 = vld [vmem:[%s8059_s28 + $0xb0] sm:$0xff] }
  0x21   : > { %768 = vst [vmem:[#allocation2 + $0xa8] sm:$0xf] %v7967_v2  ;;  %769 = vst [vmem:[#allocation2 + $0xac] sm:$0xf] %v7967_v2  ;;  %7383 = vmatpush3.bf16.msra.mxu1 %v7823_v11  ;;  %v367_v38 = vadd.f32 %v366_v36, %v8116_v33  ;;  %v8176_v63 = vld [vmem:[%s8059_s28 + $0xb8] sm:$0xff]  ;;  %v8180_v1 = vld [vmem:[%s8059_s28 + $0xc0] sm:$0xff] }
  0x22   : > { %770 = vst [vmem:[#allocation2 + $0xb0] sm:$0x1] %v7967_v2  ;;  %771 = vst [vmem:[#allocation2 + $0xb4] sm:$0xf] %v7967_v2  ;;  %7335 = vmatpush3.bf16.msra.mxu0 %v7824_v15  ;;  %7384 = vmatprep.subr.bf16.mxu1 %v7825_v21  ;;  %v8184_v3 = vld [vmem:[%s8059_s28 + $0xc8] sm:$0xff]  ;;  %v8188_v5 = vld [vmem:[%s8059_s28 + $0xd0] sm:$0xff] }
  0x23   : > { %772 = vst [vmem:[#allocation2 + $0xb8] sm:$0xf] %v7967_v2  ;;  %773 = vst [vmem:[#allocation2 + $0xbc] sm:$0x1] %v7967_v2  ;;  %7336 = vmatprep.subr.bf16.mxu0 %v7826_v23  ;;  %v368_v40 = vadd.f32 %v367_v38, %v8120_v35  ;;  %v8192_v7 = vld [vmem:[%s8059_s28 + $0xd8] sm:$0xff]  ;;  %v8196_v9 = vld [vmem:[%s8059_s28 + $0xe0] sm:$0xff] }
  0x24   : > { %774 = vst [vmem:[#allocation2 + $0xc0] sm:$0xf] %v7967_v2  ;;  %775 = vst [vmem:[#allocation2 + $0xc4] sm:$0xf] %v7967_v2  ;;  %v8201_v15 = vld [vmem:[%s8059_s28 + $0xe8] sm:$0xff]  ;;  %v8205_v19 = vld [vmem:[%s8059_s28 + $0xf0] sm:$0xff] }
  0x25   : > { %776 = vst [vmem:[#allocation2 + $0xc8] sm:$0x1] %v7967_v2  ;;  %777 = vst [vmem:[#allocation2 + $0xcc] sm:$0xf] %v7967_v2  ;;  %7385 = vmatpush3.bf16.msra.mxu1 %v7825_v21  ;;  %v369_v42 = vadd.f32 %v368_v40, %v8124_v37  ;;  %v8209_v22 = vld [vmem:[%s8059_s28 + $0xf8] sm:$0xff]  ;;  %v1369_v40 = vshrl.u32 %v8064_v12, 16 }
  0x26   : > { %778 = vst [vmem:[#allocation2 + $0xd0] sm:$0xf] %v7967_v2  ;;  %779 = vst [vmem:[#allocation2 + $0xd4] sm:$0x1] %v7967_v2  ;;  %7337 = vmatpush3.bf16.msra.mxu0 %v7826_v23  ;;  %7386 = vmatprep.subr.bf16.mxu1 %v7827_v27  ;;  %vm1365_vm0 = vsmask.f32 3328 }
  0x27   : > { %7338 = vmatprep.subr.bf16.mxu0 %v7828_v29  ;;  %v370_v44 = vadd.f32 %v369_v42, %v8128_v39  ;;  %v1372_v42 = vshll.u32 %v8064_v12, 16  ;;  %vm1366_vm1 = vsmask.f32 7440  ;;  %vm860_vm3 = vsmask.f32 256 }
  0x28   : > { %vm8278_vm2 = vmor %vm1365_vm0, %vm1366_vm1  ;;  %vm861_vm4 = vsmask.f32 4368  ;;  %vm1185_vm6 = vsmask.f32 7938  ;;  %vm1191_vm7 = vcmask 1040384  }
  0x29   : > { %7387 = vmatpush3.bf16.msra.mxu1 %v7827_v27  ;;  %v371_v46 = vadd.f32 %v370_v44, %v8132_v41  ;;  %v1374_v12 = vrot.slane %v1372_v42, 5  ;;  %vm8492_vm14 = vmor %vm860_vm3, %vm861_vm4 }
  0x2a   : > { %7339 = vmatpush3.bf16.msra.mxu0 %v7828_v29  ;;  %vm8498_vm15 = vmand %vm1184_vm5, %vm1185_vm6 }
  0x2b   : > { %v372_v48 = vadd.f32 %v371_v46, %v8136_v43  ;;  %vm8506_vm0 = vmand %vm1191_vm7, %vm860_vm3 }
  0x2d   : > { %v373_v50 = vadd.f32 %v372_v48, %v8140_v45  ;;  %v8228_v48 = vld [vmem:[%s10834_s3 + $0xb8] sm:$0xff]  }
  0x2e   : > { %7420 = vmatprep.subr.bf16.mxu0 %v8228_v48 }
  0x2f   : > { %v374_v52 = vadd.f32 %v373_v50, %v8144_v47 }
  0x31   : > { %v375_v54 = vadd.f32 %v374_v52, %v8148_v49  ;;  %v1371_v52 = vrot.slane %v1369_v40, 4 }
  0x33   : > { %v376_v56 = vadd.f32 %v375_v54, %v8152_v51 }
  0x35   : > { %v377_v58 = vadd.f32 %v376_v56, %v8156_v53  ;;  %v1382_v56 = vshrl.u32 %v8066_v13, 16 }
  0x37   : > { %v378_v60 = vadd.f32 %v377_v58, %v8160_v55 }
  0x39   : > { %v379_v62 = vadd.f32 %v378_v60, %v8164_v57  ;;  %v8250_v60 = vld [vmem:[#allocation2 + $0x8] sm:$0x1] }
  0x3a   : > { %10850 = vst [vmem:[#allocation3_spill] sm:$0xff] %v8250_v60 }
  0x3b   : > { %v380_v0 = vadd.f32 %v379_v62, %v8168_v59 }
  0x3d   : > { %v381_v2 = vadd.f32 %v380_v0, %v8172_v61 }
  0x3f   : > { %v382_v4 = vadd.f32 %v381_v2, %v8176_v63  ;;  %v1375_v2 = vor.u32 %v1374_v12, %v1371_v52 }
  0x41   : > { %v383_v6 = vadd.f32 %v382_v4, %v8180_v1  ;;  %v1378_v4 = vshll.u32 %v8066_v13, 16 }
  0x43   : > { %v384_v8 = vadd.f32 %v383_v6, %v8184_v3  ;;  %v1388_v6 = vshll.u32 %v8250_v60, 16 }
  0x45   : > { %v385_v10 = vadd.f32 %v384_v8, %v8188_v5 }
  0x47   : > { %v386_v11 = vadd.f32 %v385_v10, %v8192_v7 }
  0x49   : > { %v387_v16 = vadd.f32 %v386_v11, %v8196_v9  ;;  %v1376_v11 = vrot.slane %v1375_v2, 4 }
  0x4b   : > { %v388_v21 = vadd.f32 %v387_v16, %v8201_v15  ;;  %v1380_v16 = vrot.slane %v1378_v4, 5 }
  0x4d   : > { %v389_v23 = vadd.f32 %v388_v21, %v8205_v19  ;;  %v8269_v21 = vld [vmem:[%s10834_s3 + $0xf8] sm:$0xff]  }
  0x4e   : > { %7468 = vmatprep.subr.bf16.mxu1 %v8269_v21 }
  0x4f   : > { %v390_v25 = vadd.f32 %v389_v23, %v8209_v22 }
  0x51   : > { %v391_v27 = vrot.slane %v390_v25, 4 }
  0x53   : > { %v392_v28 = vadd.f32 %v391_v27, %v390_v25 }
  0x55   : > { %v393_v29 = vrot.slane %v392_v28, 2 }
  0x57   : > { %v394_v32 = vadd.f32 %v393_v29, %v392_v28  ;;  %v1390_v29 = vrot.slane %v1388_v6, 5 }
  0x59   : > { %v395_v34 = vrot.slane %v394_v32, 1 }
  0x5b   : > { %v396_v36 = vadd.f32 %v395_v34, %v394_v32 }
  0x5d   : > { %v8213_v38 = vmul.f32 0.00390625, %v396_v36  ;;  %v1381_v36 = vsel %vm8278_vm2, %v1376_v11, %v1380_v16 }
  0x5f   : > { %v8219_v44 = vsub.f32 %v8069_v14, %v8213_v38  ;;  %v8223_v46 = vsub.f32 %v8077_v17, %v8213_v38  ;;  %v8232_v50 = vsub.f32 %v8080_v18, %v8213_v38  ;;  %v8237_v14 = vsub.f32 %v8085_v20, %v8213_v38 }
  0x60   : > { %v8246_v18 = vsub.f32 %v8095_v24, %v8213_v38  ;;  %v8254_v20 = vsub.f32 %v8099_v26, %v8213_v38  ;;  %v1384_v24 = vrot.slane %v1382_v56, 4  ;;  %v8262_v8 = vsub.f32 %v8109_v30, %v8213_v38 }
  0x61   : > { %v431_v17 = vmul.f32 %v8219_v44, %v8219_v44  ;;  %v432_v54 = vmul.f32 %v8223_v46, %v8223_v46  ;;  %v433_v58 = vmul.f32 %v8232_v50, %v8232_v50  ;;  %v434_v62 = vmul.f32 %v8237_v14, %v8237_v14 }
  0x62   : > { %v435_v26 = vmul.f32 %v8246_v18, %v8246_v18  ;;  %v8273_v23 = vsub.f32 %v8112_v31, %v8213_v38  ;;  %v436_v25 = vmul.f32 %v8254_v20, %v8254_v20  ;;  %v1385_v28 = vor.u32 %v1384_v24, %v1380_v16 }
  0x63   : > { %v463_v0 = vadd.f32 %v432_v54, %v431_v17  ;;  %v8285_v32 = vsub.f32 %v8116_v33, %v8213_v38  ;;  %v437_v31 = vmul.f32 %v8262_v8, %v8262_v8  ;;  %v8293_v42 = vsub.f32 %v8120_v35, %v8213_v38 }
  0x64   : > { %v1386_v40 = vrot.slane %v1385_v28, 4  ;;  %v438_v52 = vmul.f32 %v8273_v23, %v8273_v23  ;;  %v8301_v17 = vsub.f32 %v8124_v37, %v8213_v38  ;;  %v8307_v35 = vsub.f32 %v8128_v39, %v8213_v38 }
  0x65   : > { %v464_v10 = vadd.f32 %v463_v0, %v433_v58  ;;  %v439_v54 = vmul.f32 %v8285_v32, %v8285_v32  ;;  %v8313_v2 = vsub.f32 %v8132_v41, %v8213_v38  ;;  %v8319_v24 = vsub.f32 %v8136_v43, %v8213_v38 }
  0x66   : > { %v1391_v33 = vsel %vm8278_vm2, %v1386_v40, %v1390_v29  ;;  %v441_v37 = vmul.f32 %v8301_v17, %v8301_v17  ;;  %v442_v39 = vmul.f32 %v8307_v35, %v8307_v35  ;;  %v8331_v11 = vsub.f32 %v8144_v47, %v8213_v38 }
  0x67   : > { %v465_v30 = vadd.f32 %v464_v10, %v434_v62  ;;  %v6662_v58 = vcombine.low %v1381_v36, %v1391_v33  ;;  %v440_v62 = vmul.f32 %v8293_v42, %v8293_v42  ;;  %v443_v41 = vmul.f32 %v8313_v2, %v8313_v2 }
  0x68   : > { %v444_v43 = vmul.f32 %v8319_v24, %v8319_v24  ;;  %v8343_v28 = vsub.f32 %v8152_v51, %v8213_v38  ;;  %v446_v47 = vmul.f32 %v8331_v11, %v8331_v11  ;;  %v8355_v36 = vsub.f32 %v8160_v55, %v8213_v38 }
  0x69   : > { %v466_v34 = vadd.f32 %v465_v30, %v435_v26  ;;  %7340 = vmatprep.mubr.bf16.mxu0 %v6662_v58  ;;  %v8325_v26 = vsub.f32 %v8140_v45, %v8213_v38  ;;  %v8367_v33 = vsub.f32 %v8168_v59, %v8213_v38 }
  0x6a   : > { %v448_v51 = vmul.f32 %v8343_v28, %v8343_v28  ;;  %v450_v55 = vmul.f32 %v8355_v36, %v8355_v36 }
  0x6b   : > { %v467_v12 = vadd.f32 %v466_v34, %v436_v25  ;;  %v8337_v25 = vsub.f32 %v8148_v49, %v8213_v38  ;;  %v445_v45 = vmul.f32 %v8325_v26, %v8325_v26  ;;  %v452_v59 = vmul.f32 %v8367_v33, %v8367_v33 }
  0x6d   : > { %v468_v56 = vadd.f32 %v467_v12, %v437_v31  ;;  %v8349_v31 = vsub.f32 %v8156_v53, %v8213_v38  ;;  %v447_v49 = vmul.f32 %v8337_v25, %v8337_v25 }
  0x6f   : > { %v469_v0 = vadd.f32 %v468_v56, %v438_v52  ;;  %v8361_v52 = vsub.f32 %v8164_v57, %v8213_v38  ;;  %v449_v53 = vmul.f32 %v8349_v31, %v8349_v31  ;;  %v8373_v56 = vsub.f32 %v8172_v61, %v8213_v38 }
  0x71   : > { %v470_v4 = vadd.f32 %v469_v0, %v439_v54  ;;  %v451_v57 = vmul.f32 %v8361_v52, %v8361_v52  ;;  %v453_v61 = vmul.f32 %v8373_v56, %v8373_v56 }
  0x73   : > { %v471_v6 = vadd.f32 %v470_v4, %v440_v62  ;;  %v8379_v62 = vsub.f32 %v8176_v63, %v8213_v38 }
  0x75   : > { %v472_v10 = vadd.f32 %v471_v6, %v441_v37  ;;  %v8385_v37 = vsub.f32 %v8180_v1, %v8213_v38  ;;  %v454_v63 = vmul.f32 %v8379_v62, %v8379_v62 }
  0x77   : > { %v473_v16 = vadd.f32 %v472_v10, %v442_v39  ;;  %v8391_v39 = vsub.f32 %v8184_v3, %v8213_v38  ;;  %v455_v1 = vmul.f32 %v8385_v37, %v8385_v37 }
  0x79   : > { %v474_v30 = vadd.f32 %v473_v16, %v443_v41  ;;  %v8397_v41 = vsub.f32 %v8188_v5, %v8213_v38  ;;  %v456_v3 = vmul.f32 %v8391_v39, %v8391_v39 }
  0x7b   : > { %v475_v29 = vadd.f32 %v474_v30, %v444_v43  ;;  %v8403_v43 = vsub.f32 %v8192_v7, %v8213_v38  ;;  %v457_v5 = vmul.f32 %v8397_v41, %v8397_v41 }
  0x7d   : > { %v476_v34 = vadd.f32 %v475_v29, %v445_v45  ;;  %v8409_v45 = vsub.f32 %v8196_v9, %v8213_v38  ;;  %v458_v7 = vmul.f32 %v8403_v43, %v8403_v43 }
  0x7f   : > { %v477_v40 = vadd.f32 %v476_v34, %v446_v47  ;;  %v8415_v47 = vsub.f32 %v8201_v15, %v8213_v38  ;;  %v459_v9 = vmul.f32 %v8409_v45, %v8409_v45 }
  0x81   : > { %v478_v12 = vadd.f32 %v477_v40, %v447_v49  ;;  %v8421_v49 = vsub.f32 %v8205_v19, %v8213_v38  ;;  %v460_v15 = vmul.f32 %v8415_v47, %v8415_v47 }
  0x83   : > { %v479_v54 = vadd.f32 %v478_v12, %v448_v51  ;;  %v8427_v51 = vsub.f32 %v8209_v22, %v8213_v38 }
  0x85   : > { %v480_v58 = vadd.f32 %v479_v54, %v449_v53  ;;  %10853 = vst [vmem:[#allocation4_spill] sm:$0xff] %v8427_v51  ;;  %v461_v53 = vmul.f32 %v8421_v49, %v8421_v49  ;;  %v462_v19 = vmul.f32 %v8427_v51, %v8427_v51 }
  0x87   : > { %v481_v0 = vadd.f32 %v480_v58, %v450_v55 }
  0x89   : > { %v482_v4 = vadd.f32 %v481_v0, %v451_v57 }
  0x8b   : > { %v483_v6 = vadd.f32 %v482_v4, %v452_v59 }
  0x8d   : > { %v484_v10 = vadd.f32 %v483_v6, %v453_v61  ;;  %v538_v6 = vlaneseq }
  0x8f   : > { %v485_v16 = vadd.f32 %v484_v10, %v454_v63  ;;  %v535_v10 = vld [vmem:[%s313_s27] sm:$0x1] }
  0x91   : > { %v486_v30 = vadd.f32 %v485_v16, %v455_v1  ;;  %v539_v1 = vshrl.u32 %v538_v6, 7 }
  0x93   : > { %v487_v29 = vadd.f32 %v486_v30, %v456_v3  ;;  %v536_v3 = vadd.f32 1.0, %v535_v10  ;;  %v540_v16 = vsub.s32 0, %v539_v1 }
  0x95   : > { %v488_v34 = vadd.f32 %v487_v29, %v457_v5  ;;  %v8445_v5 = vrot.slane %v536_v3, %v540_v16  ;;  %v1200_v29 = vld [vmem:[#allocation2 + $0x20] sm:$0x1] }
  0x97   : > { %v489_v40 = vadd.f32 %v488_v34, %v458_v7 }
  0x99   : > { %v490_v12 = vadd.f32 %v489_v40, %v459_v9 }
  0x9b   : > { %v491_v55 = vadd.f32 %v490_v12, %v460_v15 }
  0x9d   : > { %v492_v54 = vadd.f32 %v491_v55, %v461_v53  ;;  %v8460_v53 = vld [vmem:[%s8443_s30] ss:$0 sm:$0xff] }
  0x9f   : > { %v493_v57 = vadd.f32 %v492_v54, %v462_v19 }
  0xa1   : > { %v494_v58 = vrot.slane %v493_v57, 4 }
  0xa3   : > { %v495_v59 = vadd.f32 %v494_v58, %v493_v57 }
  0xa5   : > { %v496_v22 = vrot.slane %v495_v59, 2 }
  0xa7   : > { %v497_v38 = vadd.f32 %v496_v22, %v495_v59 }
  0xa9   : > { %v498_v0 = vrot.slane %v497_v38, 1 }
  0xab   : > { %v499_v61 = vadd.f32 %v498_v0, %v497_v38 }
  0xad   : > { %v500_v4 = vmul.f32 0.00390625, %v499_v61 }
  0xaf   : > { %v501_v63 = vadd.f32 1e-05, %v500_v4 }
  0xb1   : > { %7941 = vrsqrt.f32 %v501_v63 }
  0xbe   : > { %v8447_v30 = vpop.eup %7941 }
  0xbf   : > { %v503_v9 = vmul.f32 %v8447_v30, %v8219_v44  ;;  %v504_v34 = vmul.f32 %v8447_v30, %v8223_v46  ;;  %v505_v15 = vmul.f32 %v8447_v30, %v8232_v50  ;;  %v506_v40 = vmul.f32 %v8447_v30, %v8237_v14 }
  0xc0   : > { %v507_v12 = vmul.f32 %v8447_v30, %v8246_v18  ;;  %v508_v19 = vmul.f32 %v8447_v30, %v8254_v20  ;;  %v509_v44 = vmul.f32 %v8447_v30, %v8262_v8  ;;  %v510_v46 = vmul.f32 %v8447_v30, %v8273_v23 }
  0xc1   : > { %v543_v50 = vmul.f32 %v8445_v5, %v503_v9  ;;  %v544_v14 = vmul.f32 %v8445_v5, %v504_v34  ;;  %v545_v55 = vmul.f32 %v8445_v5, %v505_v15  ;;  %v546_v54 = vmul.f32 %v8445_v5, %v506_v40 }
  0xc2   : > { %v547_v18 = vmul.f32 %v8445_v5, %v507_v12  ;;  %v548_v20 = vmul.f32 %v8445_v5, %v508_v19  ;;  %v549_v8 = vmul.f32 %v8445_v5, %v509_v44  ;;  %v550_v57 = vmul.f32 %v8445_v5, %v510_v46 }
  0xc3   : > { %v582_v23 = vadd.f32 %v8460_v53, %v543_v50  ;;  %v583_v58 = vadd.f32 %v8460_v53, %v544_v14  ;;  %v584_v59 = vadd.f32 %v8460_v53, %v545_v55  ;;  %v585_v22 = vadd.f32 %v8460_v53, %v546_v54 }
  0xc4   : > { %v586_v38 = vadd.f32 %v8460_v53, %v547_v18  ;;  %v587_v0 = vadd.f32 %v8460_v53, %v548_v20  ;;  %v8485_v61 = vadd.f32 %v8460_v53, %v549_v8  ;;  %v8488_v4 = vadd.f32 %v8460_v53, %v550_v57 }
  0xc5   : > { %vm614_vm8 = vcmp.ge.f32.partialorder %v582_v23, 0.0  ;;  %vm615_vm9 = vcmp.ge.f32.partialorder %v583_v58, 0.0  ;;  %v646_v63 = vmul.f32 0.2, %v582_v23  ;;  %v647_v6 = vmul.f32 0.2, %v583_v58 }
  0xc6   : > { %vm616_vm10 = vcmp.ge.f32.partialorder %v584_v59, 0.0  ;;  %vm617_vm11 = vcmp.ge.f32.partialorder %v585_v22, 0.0  ;;  %v648_v1 = vmul.f32 0.2, %v584_v59  ;;  %v649_v10 = vmul.f32 0.2, %v585_v22 }
  0xc7   : > { %v678_v3 = vsel %vm614_vm8, %v582_v23, %v646_v63  ;;  %v679_v16 = vsel %vm615_vm9, %v583_v58, %v647_v6  ;;  %vm618_vm12 = vcmp.ge.f32.partialorder %v586_v38, 0.0  ;;  %vm619_vm13 = vcmp.ge.f32.partialorder %v587_v0, 0.0 }
  0xc8   : > { %v7052_v9 = vpack.c.bf16 %v678_v3, %v678_v3  ;;  %v7053_v34 = vpack.c.bf16 %v679_v16, %v679_v16  ;;  %v680_v15 = vsel %vm616_vm10, %v584_v59, %v648_v1  ;;  %v681_v40 = vsel %vm617_vm11, %v585_v22, %v649_v10  ;;  %v1187_v1 = vld [vmem:[#allocation2 + $0xc] sm:$0xf]  ;;  %v1193_v3 = vld [vmem:[#allocation2 + $0x14] sm:$0x1] }
  0xc9   : > { %v7054_v12 = vpack.c.bf16 %v680_v15, %v680_v15  ;;  %v7055_v19 = vpack.c.bf16 %v681_v40, %v681_v40  ;;  %v650_v44 = vmul.f32 0.2, %v586_v38  ;;  %v651_v46 = vmul.f32 0.2, %v587_v0 }
  0xca   : > { %v864_v50 = vshrl.u32 %v7052_v9, 16  ;;  %v867_v14 = vshll.u32 %v7052_v9, 16  ;;  %v872_v55 = vshrl.u32 %v7053_v34, 16  ;;  %v875_v54 = vshll.u32 %v7053_v34, 16 }
  0xcb   : > { %v881_v20 = vshrl.u32 %v7054_v12, 16  ;;  %v884_v8 = vshll.u32 %v7054_v12, 16  ;;  %v889_v57 = vshrl.u32 %v7055_v19, 16  ;;  %v892_v23 = vshll.u32 %v7055_v19, 16 }
  0xcc   : > { %v866_v58 = vrot.slane %v864_v50, 7  ;;  %v874_v59 = vrot.slane %v872_v55, 7  ;;  %v682_v63 = vsel %vm618_vm12, %v586_v38, %v650_v44  ;;  %v683_v6 = vsel %vm619_vm13, %v587_v0, %v651_v46  ;;  %v1196_v55 = vld [vmem:[#allocation2 + $0x18] sm:$0xf] }
  0xcd   : > { %v883_v16 = vrot.slane %v881_v20, 7  ;;  %v891_v9 = vrot.slane %v889_v57, 7  ;;  %v7056_v34 = vpack.c.bf16 %v682_v63, %v682_v63  ;;  %v7057_v15 = vpack.c.bf16 %v683_v6, %v683_v6  ;;  %v1203_v63 = vld [vmem:[#allocation2 + $0x24] sm:$0xf] }
  0xce   : > { %v869_v40 = vor.u32 %v867_v14, %v866_v58  ;;  %v870_v12 = vrot.slane %v866_v58, 4  ;;  %v877_v19 = vor.u32 %v875_v54, %v874_v59  ;;  %v879_v50 = vrot.slane %v874_v59, 4 }
  0xcf   : > { %v886_v38 = vor.u32 %v884_v8, %v883_v16  ;;  %v887_v44 = vrot.slane %v883_v16, 4  ;;  %v894_v0 = vor.u32 %v892_v23, %v891_v9  ;;  %v896_v46 = vrot.slane %v891_v9, 4  ;;  %v1207_v9 = vld [vmem:[#allocation2 + $0x2c] sm:$0x1] }
  0xd0   : > { %v878_v7 = vsel %vm8492_vm14, %v870_v12, %v877_v19  ;;  %v1188_v51 = vsel %vm8498_vm15, %v869_v40, %v1187_v1  ;;  %v1194_v20 = vsel %vm8506_vm0, %v879_v50, %v1193_v3  ;;  %v898_v57 = vshrl.u32 %v7056_v34, 16 }
  0xd1   : > { %1189 = vst [vmem:[#allocation2 + $0xc] sm:$0xf] %v1188_v51  ;;  %1190 = vst [vmem:[#allocation2 + $0x10] sm:$0xf] %v878_v7  ;;  %v895_v14 = vsel %vm8492_vm14, %v887_v44, %v894_v0  ;;  %v1197_v54 = vsel %vm8498_vm15, %v886_v38, %v1196_v55  ;;  %v901_v8 = vshll.u32 %v7056_v34, 16  ;;  %v906_v23 = vshrl.u32 %v7057_v15, 16 }
  0xd2   : > { %1195 = vst [vmem:[#allocation2 + $0x14] sm:$0x1] %v1194_v20  ;;  %1198 = vst [vmem:[#allocation2 + $0x18] sm:$0xf] %v1197_v54  ;;  %v900_v58 = vrot.slane %v898_v57, 7  ;;  %v909_v59 = vshll.u32 %v7057_v15, 16  ;;  %v1201_v6 = vsel %vm8506_vm0, %v896_v46, %v1200_v29  ;;  %v511_v34 = vmul.f32 %v8447_v30, %v8285_v32 }
  0xd3   : > { %1199 = vst [vmem:[#allocation2 + $0x1c] sm:$0xf] %v895_v14  ;;  %vm620_vm1 = vcmp.ge.f32.partialorder %v8485_v61, 0.0  ;;  %v908_v51 = vrot.slane %v906_v23, 7  ;;  %1202 = vst [vmem:[#allocation2 + $0x20] sm:$0x1] %v1201_v6  ;;  %v512_v15 = vmul.f32 %v8447_v30, %v8293_v42  ;;  %v8559_v14 = vmul.f32 %v8447_v30, %v8307_v35 }
  0xd4   : > { %vm621_vm3 = vcmp.ge.f32.partialorder %v8488_v4, 0.0  ;;  %v652_v7 = vmul.f32 0.2, %v8485_v61  ;;  %v653_v1 = vmul.f32 0.2, %v8488_v4  ;;  %v903_v3 = vor.u32 %v901_v8, %v900_v58  ;;  %v7836_v35 = vld [vmem:[%s10834_s3 + $0xf0] sm:$0xff]  }
  0xd5   : > { %v904_v16 = vrot.slane %v900_v58, 4  ;;  %v911_v29 = vor.u32 %v909_v59, %v908_v51  ;;  %v913_v40 = vrot.slane %v908_v51, 4  ;;  %v551_v44 = vmul.f32 %v8445_v5, %v511_v34 }
  0xd6   : > { %v684_v12 = vsel %vm620_vm1, %v8485_v61, %v652_v7  ;;  %v685_v19 = vsel %vm621_vm3, %v8488_v4, %v653_v1  ;;  %v1204_v50 = vsel %vm8498_vm15, %v903_v3, %v1203_v63  ;;  %v8544_v61 = vmul.f32 %v8445_v5, %v512_v15  ;;  %v7840_v15 = vld [vmem:[%s10834_s3 + $0xe8] sm:$0xff]  }
  0xd7   : > { %v8534_v55 = vpack.c.bf16 %v684_v12, %v684_v12  ;;  %v8536_v38 = vpack.c.bf16 %v685_v19, %v685_v19  ;;  %v912_v32 = vsel %vm8492_vm14, %v904_v16, %v911_v29  ;;  %1205 = vst [vmem:[#allocation2 + $0x24] sm:$0xf] %v1204_v50  ;;  %v1208_v42 = vsel %vm8506_vm0, %v913_v40, %v1207_v9 }
  0xd8   : > { %v8548_v4 = vmul.f32 %v8447_v30, %v8301_v17  ;;  %v1303_v0 = vld [vmem:[#allocation2 + $0xc] sm:$0xf]  ;;  %v8550_v46 = vld [vmem:[#allocation2 + $0x10] sm:$0xf]  ;;  %1206 = vst [vmem:[#allocation2 + $0x28] sm:$0xf] %v912_v32  ;;  %v8555_v57 = vadd.f32 %v8460_v53, %v551_v44  ;;  %v8563_v54 = vmul.f32 %v8447_v30, %v8313_v2  ;;  %v8567_v17 = vmul.f32 %v8447_v30, %v8319_v24 }
  0xd9   : > { %10860 = vst [vmem:[#allocation5_spill] sm:$0xff] %v8550_v46  ;;  %v8552_v20 = vld [vmem:[#allocation2 + $0x14] sm:$0x1]  ;;  %1209 = vst [vmem:[#allocation2 + $0x2c] sm:$0x1] %v1208_v42  ;;  %v1393_v8 = vshrl.u32 %v1303_v0, 16  ;;  %v6687_v59 = vcombine.low %v1303_v0, %v8550_v46 }
  0xda   : > { %10861 = vst [vmem:[#allocation6_spill] sm:$0xff] %v8552_v20  ;;  %v1396_v23 = vshll.u32 %v1303_v0, 16  ;;  %v1406_v58 = vshrl.u32 %v8550_v46, 16  ;;  %v1305_v63 = vld [vmem:[#allocation2 + $0x18] sm:$0xf]  ;;  %v10841_v6 = vrot.slane %v8550_v46, 5 }
  0xdb   : > { %v1402_v2 = vshll.u32 %v8550_v46, 16  ;;  %v1412_v51 = vshll.u32 %v8552_v20, 16  ;;  %v1306_v7 = vld [vmem:[#allocation2 + $0x1c] sm:$0xf]  ;;  %v1395_v1 = vrot.slane %v1393_v8, 4  ;;  %7389 = vmatmul.mubr.bf16.vlgmr.msra.gmra.mxu1 %v6687_v59  ;;  %v1417_v9 = vshrl.u32 %v1305_v63, 16 }
  0xdc   : > { %v1398_v3 = vrot.slane %v1396_v23, 5  ;;  %v1408_v16 = vrot.slane %v1406_v58, 4  ;;  %v1351_v34 = vld [vmem:[#allocation2 + $0x20] sm:$0x1]  ;;  %v8583_v29 = vrot.slane %v10841_v6, 4  ;;  %7469 = vmatpush3.bf16.msra.mxu1 %v8269_v21  ;;  %v1420_v19 = vshll.u32 %v1305_v63, 16 }
  0xdd   : > { %v1404_v40 = vrot.slane %v1402_v2, 5  ;;  %v1414_v12 = vrot.slane %v1412_v51, 5  ;;  %v1419_v44 = vrot.slane %v1417_v9, 4  ;;  %v1430_v32 = vshrl.u32 %v1306_v7, 16  ;;  %7470 = vmatprep.subr.bf16.mxu1 %v7836_v35 }
  0xde   : > { %10862 = vst [vmem:[#allocation7_spill] sm:$0xff] %v8583_v29  ;;  %v1399_v50 = vor.u32 %v1398_v3, %v1395_v1  ;;  %v6688_v42 = vcombine.low %v1305_v63, %v1306_v7  ;;  %v1422_v8 = vrot.slane %v1420_v19, 5  ;;  %v1307_v23 = vld [vmem:[#allocation2 + $0x24] sm:$0xf]  ;;  %v1426_v58 = vshll.u32 %v1306_v7, 16 }
  0xdf   : > { %v1409_v0 = vor.u32 %v1408_v16, %v1404_v40  ;;  %v1436_v59 = vshll.u32 %v1351_v34, 16  ;;  %v1308_v46 = vld [vmem:[#allocation2 + $0x28] sm:$0xf]  ;;  %v1441_v6 = vshrl.u32 %v1307_v23, 16  ;;  %v1444_v60 = vshll.u32 %v1307_v23, 16  ;;  %v7844_v7 = vld [vmem:[%s10834_s3 + $0xe0] sm:$0xff]  }
  0xe0   : > { %v1400_v24 = vrot.slane %v1399_v50, 4  ;;  %7392 = vmatprep.mubr.bf16.mxu1 %v6688_v42  ;;  %v1432_v2 = vrot.slane %v1430_v32, 4  ;;  %v1454_v29 = vshrl.u32 %v1308_v46, 16  ;;  %v6689_v21 = vcombine.low %v1307_v23, %v1308_v46  ;;  %v1352_v1 = vld [vmem:[#allocation2 + $0x2c] sm:$0x1]  ;;  %7471 = vmatpush3.bf16.msra.mxu1 %v7836_v35 }
  0xe1   : > { %v1410_v51 = vrot.slane %v1409_v0, 4  ;;  %v1423_v20 = vor.u32 %v1422_v8, %v1419_v44  ;;  %v1443_v3 = vrot.slane %v1441_v6, 4  ;;  %v1446_v16 = vrot.slane %v1444_v60, 5  ;;  %7472 = vmatprep.subr.bf16.mxu1 %v7840_v15  ;;  %v7835_v6 = vld [vmem:[%s10834_s3 + $0xb0] sm:$0xff]  }
  0xe2   : > { %v1405_v63 = vsel %vm8278_vm2, %v1400_v24, %v1404_v40  ;;  %v1428_v9 = vrot.slane %v1426_v58, 5  ;;  %v1438_v50 = vrot.slane %v1436_v59, 5  ;;  %v1450_v32 = vshll.u32 %v1308_v46, 16  ;;  %v7848_v46 = vld [vmem:[%s10834_s3 + $0xd8] sm:$0xff]  }
  0xe3   : > { %v1415_v34 = vsel %vm8278_vm2, %v1410_v51, %v1414_v12  ;;  %v1424_v19 = vrot.slane %v1423_v20, 4  ;;  %7393 = vmatmul.mubr.bf16.gmra.mxu1 %v6689_v21  ;;  %v1447_v60 = vor.u32 %v1446_v16, %v1443_v3  ;;  %v1456_v24 = vrot.slane %v1454_v29, 4 }
  0xe4   : > { %v6663_v44 = vcombine.low %v1405_v63, %v1415_v34  ;;  %v1433_v35 = vor.u32 %v1432_v2, %v1428_v9  ;;  %v1452_v42 = vrot.slane %v1450_v32, 5  ;;  %v1460_v0 = vshll.u32 %v1352_v1, 16  ;;  %7473 = vmatpush3.bf16.msra.mxu1 %v7840_v15  ;;  %v1210_v63 = vld [vmem:[#allocation2 + $0x30] sm:$0xf]  ;;  %v1214_v34 = vld [vmem:[#allocation2 + $0x38] sm:$0x1] }
  0xe5   : > { %v1429_v40 = vsel %vm8278_vm2, %v1424_v19, %v1428_v9  ;;  %v915_v8 = vshrl.u32 %v8534_v55, 16  ;;  %v1448_v12 = vrot.slane %v1447_v60, 4  ;;  %v918_v23 = vshll.u32 %v8534_v55, 16  ;;  %7474 = vmatprep.subr.bf16.mxu1 %v7844_v7 }
  0xe6   : > { %7341 = vmatmul.mubr.bf16.vlgmr.msra.gmra.mxu0 %v6663_v44  ;;  %v1434_v20 = vrot.slane %v1433_v35, 4  ;;  %v923_v58 = vshrl.u32 %v8536_v38, 16  ;;  %v1457_v29 = vor.u32 %v1456_v24, %v1452_v42  ;;  %v1462_v59 = vrot.slane %v1460_v0, 5 }
  0xe7   : > { %7421 = vmatpush3.bf16.msra.mxu0 %v8228_v48  ;;  %v917_v2 = vrot.slane %v915_v8, 7  ;;  %v926_v51 = vshll.u32 %v8536_v38, 16  ;;  %v1453_v21 = vsel %vm8278_vm2, %v1448_v12, %v1452_v42  ;;  %v591_v55 = vadd.f32 %v8460_v53, %v8544_v61  ;;  %v7839_v48 = vld [vmem:[%s10834_s3 + $0xa8] sm:$0xff]   ;;  %v7852_v42 = vld [vmem:[%s10834_s3 + $0xd0] sm:$0xff]  }
  0xe8   : > { %v1439_v15 = vsel %vm8278_vm2, %v1434_v20, %v1438_v50  ;;  %7422 = vmatprep.subr.bf16.mxu0 %v7835_v6  ;;  %v925_v1 = vrot.slane %v923_v58, 7  ;;  %v1458_v16 = vrot.slane %v1457_v29, 4  ;;  %7475 = vmatpush3.bf16.msra.mxu1 %v7844_v7  ;;  %vm622_vm4 = vcmp.ge.f32.partialorder %v8555_v57, 0.0 }
  0xe9   : > { %v6664_v3 = vcombine.low %v1429_v40, %v1439_v15  ;;  %v920_v9 = vor.u32 %v918_v23, %v917_v2  ;;  %v921_v38 = vrot.slane %v917_v2, 4  ;;  %vm623_vm5 = vcmp.ge.f32.partialorder %v591_v55, 0.0  ;;  %7476 = vmatprep.subr.bf16.mxu1 %v7848_v46 }
  0xea   : > { %v928_v19 = vor.u32 %v926_v51, %v925_v1  ;;  %v930_v50 = vrot.slane %v925_v1, 4  ;;  %v1463_v61 = vsel %vm8278_vm2, %v1458_v16, %v1462_v59  ;;  %v654_v44 = vmul.f32 0.2, %v8555_v57  ;;  %v1217_v1 = vld [vmem:[#allocation2 + $0x3c] sm:$0xf] }
  0xeb   : > { %7344 = vmatprep.mubr.bf16.mxu0 %v6664_v3  ;;  %7423 = vmatpush3.bf16.msra.mxu0 %v7835_v6  ;;  %v1211_v32 = vsel %vm8498_vm15, %v920_v9, %v1210_v63  ;;  %v655_v35 = vmul.f32 0.2, %v591_v55  ;;  %v6665_v60 = vcombine.low %v1453_v21, %v1463_v61  ;;  %v553_v40 = vmul.f32 %v8445_v5, %v8548_v4  ;;  %v7843_v6 = vld [vmem:[%s10834_s3 + $0xa0] sm:$0xff]   ;;  %v7847_v21 = vld [vmem:[%s10834_s3 + $0x98] sm:$0xff]  }
  0xec   : > { %v929_v7 = vsel %vm8492_vm14, %v921_v38, %v928_v19  ;;  %1212 = vst [vmem:[#allocation2 + $0x30] sm:$0xf] %v1211_v32  ;;  %v1215_v24 = vsel %vm8506_vm0, %v930_v50, %v1214_v34  ;;  %7424 = vmatprep.subr.bf16.mxu0 %v7839_v48  ;;  %v686_v0 = vsel %vm622_vm4, %v8555_v57, %v654_v44  ;;  %v7856_v57 = vld [vmem:[%s10834_s3 + $0xc8] sm:$0xff]  }
  0xed   : > { %1213 = vst [vmem:[#allocation2 + $0x34] sm:$0xf] %v929_v7  ;;  %v687_v8 = vsel %vm623_vm5, %v591_v55, %v655_v35  ;;  %1216 = vst [vmem:[#allocation2 + $0x38] sm:$0x1] %v1215_v24  ;;  %v554_v20 = vmul.f32 %v8445_v5, %v8559_v14  ;;  %v555_v4 = vmul.f32 %v8445_v5, %v8563_v54  ;;  %7477 = vmatpush3.bf16.msra.mxu1 %v7848_v46 }
  0xee   : > { %7345 = vmatmul.mubr.bf16.gmra.mxu0 %v6665_v60  ;;  %v7060_v12 = vpack.c.bf16 %v686_v0, %v686_v0  ;;  %v7061_v23 = vpack.c.bf16 %v687_v8, %v687_v8  ;;  %v592_v58 = vadd.f32 %v8460_v53, %v553_v40  ;;  %v556_v29 = vmul.f32 %v8445_v5, %v8567_v17  ;;  %v7851_v60 = vld [vmem:[%s10834_s3 + $0x90] sm:$0xff]  }
  0xef   : > { %7425 = vmatpush3.bf16.msra.mxu0 %v7839_v48  ;;  %v593_v59 = vadd.f32 %v8460_v53, %v554_v20  ;;  %v8649_v14 = vadd.f32 %v8460_v53, %v555_v4  ;;  %v517_v54 = vmul.f32 %v8447_v30, %v8325_v26  ;;  %v8655_v46 = vmul.f32 %v8447_v30, %v8331_v11  ;;  %v1221_v11 = vld [vmem:[#allocation2 + $0x44] sm:$0x1] }
  0xf0   : > { %v932_v2 = vshrl.u32 %v7060_v12, 16  ;;  %v935_v51 = vshll.u32 %v7060_v12, 16  ;;  %v940_v17 = vshrl.u32 %v7061_v23, 16  ;;  %v943_v15 = vshll.u32 %v7061_v23, 16  ;;  %7426 = vmatprep.subr.bf16.mxu0 %v7843_v6  ;;  %7478 = vmatprep.subr.bf16.mxu1 %v7852_v42 }
  0xf1   : > { %vm624_vm6 = vcmp.ge.f32.partialorder %v592_v58, 0.0  ;;  %vm625_vm7 = vcmp.ge.f32.partialorder %v593_v59, 0.0  ;;  %v656_v63 = vmul.f32 0.2, %v592_v58  ;;  %v657_v55 = vmul.f32 0.2, %v593_v59  ;;  %7479 = vmatpush3.bf16.msra.mxu1 %v7852_v42 }
  0xf2   : > { %v934_v26 = vrot.slane %v932_v2, 7  ;;  %v942_v48 = vrot.slane %v940_v17, 7  ;;  %v595_v3 = vadd.f32 %v8460_v53, %v556_v29  ;;  %vm626_vm8 = vcmp.ge.f32.partialorder %v8649_v14, 0.0  ;;  %7480 = vmatprep.subr.bf16.mxu1 %v7856_v57 }
  0xf3   : > { %v1309_v16 = vld [vmem:[#allocation2 + $0x30] sm:$0xf]  ;;  %v688_v9 = vsel %vm624_vm6, %v592_v58, %v656_v63  ;;  %v689_v38 = vsel %vm625_vm7, %v593_v59, %v657_v55  ;;  %v658_v34 = vmul.f32 0.2, %v8649_v14  ;;  %7427 = vmatpush3.bf16.msra.mxu0 %v7843_v6  ;;  %v8664_v19 = vmul.f32 %v8445_v5, %v517_v54 }
  0xf4   : > { %v1310_v50 = vld [vmem:[#allocation2 + $0x34] sm:$0xf]  ;;  %v1465_v61 = vshrl.u32 %v1309_v16, 16  ;;  %v1468_v32 = vshll.u32 %v1309_v16, 16  ;;  %v937_v44 = vor.u32 %v935_v51, %v934_v26  ;;  %v938_v35 = vrot.slane %v934_v26, 4  ;;  %7428 = vmatprep.subr.bf16.mxu0 %v7847_v21  ;;  %v7855_v51 = vld [vmem:[%s10834_s3 + $0x88] sm:$0xff]  }
  0xf5   : > { %v1478_v7 = vshrl.u32 %v1310_v50, 16  ;;  %v6690_v24 = vcombine.low %v1309_v16, %v1310_v50  ;;  %v945_v40 = vor.u32 %v943_v15, %v942_v48  ;;  %v947_v42 = vrot.slane %v942_v48, 4  ;;  %v1353_v0 = vld [vmem:[#allocation2 + $0x38] sm:$0x1]  ;;  %7481 = vmatpush3.bf16.msra.mxu1 %v7856_v57  ;;  %v7860_v48 = vld [vmem:[%s10834_s3 + $0xc0] sm:$0xff]  }
  0xf6   : > { %v1467_v6 = vrot.slane %v1465_v61, 4  ;;  %v1470_v8 = vrot.slane %v1468_v32, 5  ;;  %v1218_v20 = vsel %vm8498_vm15, %v937_v44, %v1217_v1  ;;  %v1474_v4 = vshll.u32 %v1310_v50, 16  ;;  %7482 = vmatprep.subr.bf16.mxu1 %v7860_v48 }
  0xf7   : > { %7396 = vmatprep.mubr.bf16.mxu1 %v6690_v24  ;;  %v946_v12 = vsel %vm8492_vm14, %v938_v35, %v945_v40  ;;  %1219 = vst [vmem:[#allocation2 + $0x3c] sm:$0xf] %v1218_v20  ;;  %v1480_v23 = vrot.slane %v1478_v7, 4  ;;  %v1484_v58 = vshll.u32 %v1353_v0, 16  ;;  %v1222_v29 = vsel %vm8506_vm0, %v947_v42, %v1221_v11  ;;  %7429 = vmatpush3.bf16.msra.mxu0 %v7847_v21  ;;  %v1224_v35 = vld [vmem:[#allocation2 + $0x48] sm:$0xf] }
  0xf8   : > { %1220 = vst [vmem:[#allocation2 + $0x40] sm:$0xf] %v946_v12  ;;  %v1471_v59 = vor.u32 %v1470_v8, %v1467_v6  ;;  %v1476_v57 = vrot.slane %v1474_v4, 5  ;;  %1223 = vst [vmem:[#allocation2 + $0x44] sm:$0x1] %v1222_v29  ;;  %v7062_v54 = vpack.c.bf16 %v688_v9, %v688_v9  ;;  %v7063_v2 = vpack.c.bf16 %v689_v38, %v689_v38 }
  0xf9   : > { %7430 = vmatprep.subr.bf16.mxu0 %v7851_v60  ;;  %v1486_v17 = vrot.slane %v1484_v58, 5  ;;  %vm627_vm9 = vcmp.ge.f32.partialorder %v595_v3, 0.0  ;;  %v659_v15 = vmul.f32 0.2, %v595_v3  ;;  %v690_v1 = vsel %vm626_vm8, %v8649_v14, %v658_v34  ;;  %v7859_v14 = vld [vmem:[%s10834_s3 + $0x80] sm:$0xff]   ;;  %7483 = vmatpush3.bf16.msra.mxu1 %v7860_v48 }
  0xfa   : > { %v1472_v63 = vrot.slane %v1471_v59, 4  ;;  %v1481_v21 = vor.u32 %v1480_v23, %v1476_v57  ;;  %v949_v55 = vshrl.u32 %v7062_v54, 16  ;;  %v952_v26 = vshll.u32 %v7062_v54, 16  ;;  %v1228_v29 = vld [vmem:[#allocation2 + $0x50] sm:$0x1] }
  0xfb   : > { %v957_v11 = vshrl.u32 %v7063_v2, 16  ;;  %v960_v16 = vshll.u32 %v7063_v2, 16  ;;  %v691_v9 = vsel %vm627_vm9, %v595_v3, %v659_v15  ;;  %v7064_v38 = vpack.c.bf16 %v690_v1, %v690_v1  ;;  %7431 = vmatpush3.bf16.msra.mxu0 %v7851_v60  ;;  %v7863_v2 = vld [vmem:[%s10834_s3 + $0x138] sm:$0xff]  }
  0xfc   : > { %v1477_v50 = vsel %vm8278_vm2, %v1472_v63, %v1476_v57  ;;  %v1482_v61 = vrot.slane %v1481_v21, 4  ;;  %v951_v32 = vrot.slane %v949_v55, 7  ;;  %v7065_v44 = vpack.c.bf16 %v691_v9, %v691_v9  ;;  %7432 = vmatprep.subr.bf16.mxu0 %v7855_v51 }
  0xfd   : > { %v959_v34 = vrot.slane %v957_v11, 7  ;;  %v966_v7 = vshrl.u32 %v7064_v38, 16  ;;  %v969_v24 = vshll.u32 %v7064_v38, 16  ;;  %v558_v3 = vmul.f32 %v8445_v5, %v8655_v46  ;;  %v7864_v38 = vld [vmem:[%s10834_s3 + $0x178] sm:$0xff]  }
  0xfe   : > { %v1311_v60 = vld [vmem:[#allocation2 + $0x3c] sm:$0xf]  ;;  %v1487_v40 = vsel %vm8278_vm2, %v1482_v61, %v1486_v17  ;;  %v954_v42 = vor.u32 %v952_v26, %v951_v32  ;;  %v955_v0 = vrot.slane %v951_v32, 4  ;;  %v974_v6 = vshrl.u32 %v7065_v44, 16  ;;  %v1231_v61 = vld [vmem:[#allocation2 + $0x54] sm:$0xf]  ;;  %7564 = vmatprep.subr.bf16.mxu1 %v7864_v38 }
  0xff   : > { %v1312_v8 = vld [vmem:[#allocation2 + $0x40] sm:$0xf]  ;;  %v1489_v20 = vshrl.u32 %v1311_v60, 16  ;;  %v1492_v4 = vshll.u32 %v1311_v60, 16  ;;  %v6666_v12 = vcombine.low %v1477_v50, %v1487_v40  ;;  %v1354_v23 = vld [vmem:[#allocation2 + $0x44] sm:$0x1]  ;;  %v962_v58 = vor.u32 %v960_v16, %v959_v34  ;;  %7433 = vmatpush3.bf16.msra.mxu0 %v7855_v51 }
 0x100   : > { %v1502_v59 = vshrl.u32 %v1312_v8, 16  ;;  %v6691_v57 = vcombine.low %v1311_v60, %v1312_v8  ;;  %v1498_v54 = vshll.u32 %v1312_v8, 16  ;;  %v1508_v46 = vshll.u32 %v1354_v23, 16  ;;  %7434 = vmatprep.subr.bf16.mxu0 %v7859_v14 }
 0x101   : > { %v1491_v17 = vrot.slane %v1489_v20, 4  ;;  %v1494_v15 = vrot.slane %v1492_v4, 5  ;;  %7348 = vmatprep.mubr.bf16.mxu0 %v6666_v12  ;;  %v963_v1 = vsel %vm8492_vm14, %v955_v0, %v962_v58  ;;  %v964_v63 = vrot.slane %v959_v34, 4 }
 0x102   : > { %7397 = vmatmul.mubr.bf16.gmra.mxu1 %v6691_v57  ;;  %v1500_v21 = vrot.slane %v1498_v54, 5  ;;  %v1504_v55 = vrot.slane %v1502_v59, 4  ;;  %v1510_v51 = vrot.slane %v1508_v46, 5  ;;  %v1225_v26 = vsel %vm8498_vm15, %v954_v42, %v1224_v35  ;;  %1227 = vst [vmem:[#allocation2 + $0x4c] sm:$0xf] %v963_v1 }
 0x103   : > { %v1495_v48 = vor.u32 %v1494_v15, %v1491_v17  ;;  %1226 = vst [vmem:[#allocation2 + $0x48] sm:$0xf] %v1225_v26  ;;  %v968_v11 = vrot.slane %v966_v7, 7  ;;  %v976_v16 = vrot.slane %v974_v6, 7  ;;  %v977_v9 = vshll.u32 %v7065_v44, 16  ;;  %7435 = vmatpush3.bf16.msra.mxu0 %v7859_v14 }
 0x104   : > { %v1505_v50 = vor.u32 %v1504_v55, %v1500_v21  ;;  %v1229_v32 = vsel %vm8506_vm0, %v964_v63, %v1228_v29  ;;  %v596_v34 = vadd.f32 %v8460_v53, %v8664_v19  ;;  %v597_v35 = vadd.f32 %v8460_v53, %v558_v3  ;;  %7516 = vmatprep.subr.bf16.mxu0 %v7863_v2  ;;  %v1235_v14 = vld [vmem:[#allocation2 + $0x5c] sm:$0x1] }
 0x105   : > { %v1496_v60 = vrot.slane %v1495_v48, 4  ;;  %v971_v7 = vor.u32 %v969_v24, %v968_v11  ;;  %v972_v40 = vrot.slane %v968_v11, 4  ;;  %v979_v44 = vor.u32 %v977_v9, %v976_v16  ;;  %1230 = vst [vmem:[#allocation2 + $0x50] sm:$0x1] %v1229_v32 }
 0x106   : > { %v1506_v42 = vrot.slane %v1505_v50, 4  ;;  %v981_v0 = vrot.slane %v976_v16, 4  ;;  %vm628_vm10 = vcmp.ge.f32.partialorder %v596_v34, 0.0  ;;  %vm629_vm11 = vcmp.ge.f32.partialorder %v597_v35, 0.0 }
 0x107   : > { %v1501_v6 = vsel %vm8278_vm2, %v1496_v60, %v1500_v21  ;;  %v980_v19 = vsel %vm8492_vm14, %v972_v40, %v979_v44  ;;  %v1232_v3 = vsel %vm8498_vm15, %v971_v7, %v1231_v61  ;;  %v660_v8 = vmul.f32 0.2, %v596_v34 }
 0x108   : > { %v1511_v24 = vsel %vm8278_vm2, %v1506_v42, %v1510_v51  ;;  %1233 = vst [vmem:[#allocation2 + $0x54] sm:$0xf] %v1232_v3  ;;  %1234 = vst [vmem:[#allocation2 + $0x58] sm:$0xf] %v980_v19  ;;  %v1236_v20 = vsel %vm8506_vm0, %v981_v0, %v1235_v14  ;;  %v661_v4 = vmul.f32 0.2, %v597_v35  ;;  %v519_v12 = vmul.f32 %v8447_v30, %v8337_v25 }
 0x109   : > { %v6667_v23 = vcombine.low %v1501_v6, %v1511_v24  ;;  %v1314_v58 = vld [vmem:[#allocation2 + $0x4c] sm:$0xf]  ;;  %1237 = vst [vmem:[#allocation2 + $0x5c] sm:$0x1] %v1236_v20  ;;  %v692_v29 = vsel %vm628_vm10, %v596_v34, %v660_v8  ;;  %v520_v59 = vmul.f32 %v8447_v30, %v8343_v28  ;;  %v8724_v57 = vmul.f32 %v8447_v30, %v8349_v31  ;;  %v1238_v3 = vld [vmem:[#allocation2 + $0x60] sm:$0xf] }
 0x10a   : > { %v1313_v54 = vld [vmem:[#allocation2 + $0x48] sm:$0xf]  ;;  %v1526_v46 = vshrl.u32 %v1314_v58, 16  ;;  %v1522_v2 = vshll.u32 %v1314_v58, 16  ;;  %v693_v17 = vsel %vm629_vm11, %v597_v35, %v661_v4  ;;  %v7066_v15 = vpack.c.bf16 %v692_v29, %v692_v29 }
 0x10b   : > { %7349 = vmatmul.mubr.bf16.gmra.mxu0 %v6667_v23  ;;  %v1513_v1 = vshrl.u32 %v1313_v54, 16  ;;  %v1516_v25 = vshll.u32 %v1313_v54, 16  ;;  %v6692_v63 = vcombine.low %v1313_v54, %v1314_v58  ;;  %v7067_v21 = vpack.c.bf16 %v693_v17, %v693_v17 }
 0x10c   : > { %v1355_v55 = vld [vmem:[#allocation2 + $0x50] sm:$0x1]  ;;  %v1524_v51 = vrot.slane %v1522_v2, 5  ;;  %v1528_v26 = vrot.slane %v1526_v46, 4  ;;  %v983_v48 = vshrl.u32 %v7066_v15, 16  ;;  %v986_v28 = vshll.u32 %v7066_v15, 16 }
 0x10d   : > { %v1515_v11 = vrot.slane %v1513_v1, 4  ;;  %v1518_v16 = vrot.slane %v1516_v25, 5  ;;  %7400 = vmatprep.mubr.bf16.mxu1 %v6692_v63  ;;  %v1532_v31 = vshll.u32 %v1355_v55, 16  ;;  %v991_v9 = vshrl.u32 %v7067_v21, 16  ;;  %v1242_v63 = vld [vmem:[#allocation2 + $0x68] sm:$0x1] }
 0x10e   : > { %v1529_v38 = vor.u32 %v1528_v26, %v1524_v51  ;;  %v985_v50 = vrot.slane %v983_v48, 7  ;;  %v994_v61 = vshll.u32 %v7067_v21, 16  ;;  %v559_v32 = vmul.f32 %v8445_v5, %v519_v12 }
 0x10f   : > { %v1315_v34 = vld [vmem:[#allocation2 + $0x54] sm:$0xf]  ;;  %v1316_v35 = vld [vmem:[#allocation2 + $0x58] sm:$0xf]  ;;  %v1519_v60 = vor.u32 %v1518_v16, %v1515_v11  ;;  %v1534_v7 = vrot.slane %v1532_v31, 5  ;;  %v993_v40 = vrot.slane %v991_v9, 7  ;;  %v560_v44 = vmul.f32 %v8445_v5, %v520_v59 }
 0x110   : > { %v1537_v14 = vshrl.u32 %v1315_v34, 16  ;;  %v1540_v42 = vshll.u32 %v1315_v34, 16  ;;  %v1550_v0 = vshrl.u32 %v1316_v35, 16  ;;  %v6693_v6 = vcombine.low %v1315_v34, %v1316_v35  ;;  %v1356_v19 = vld [vmem:[#allocation2 + $0x5c] sm:$0x1] }
 0x111   : > { %v1520_v8 = vrot.slane %v1519_v60, 4  ;;  %v1530_v24 = vrot.slane %v1529_v38, 4  ;;  %v1546_v20 = vshll.u32 %v1316_v35, 16  ;;  %v1556_v4 = vshll.u32 %v1356_v19, 16 }
 0x112   : > { %v1539_v23 = vrot.slane %v1537_v14, 4  ;;  %v1542_v58 = vrot.slane %v1540_v42, 5  ;;  %7401 = vmatmul.mubr.bf16.gmra.mxu1 %v6693_v6  ;;  %v1552_v12 = vrot.slane %v1550_v0, 4  ;;  %v988_v29 = vor.u32 %v986_v28, %v985_v50 }
 0x113   : > { %v1525_v54 = vsel %vm8278_vm2, %v1520_v8, %v1524_v51  ;;  %v1535_v59 = vsel %vm8278_vm2, %v1530_v24, %v1534_v7  ;;  %v1548_v46 = vrot.slane %v1546_v20, 5  ;;  %v1558_v2 = vrot.slane %v1556_v4, 5  ;;  %v1245_v4 = vld [vmem:[#allocation2 + $0x6c] sm:$0xf] }
 0x114   : > { %v6668_v17 = vcombine.low %v1525_v54, %v1535_v59  ;;  %v1543_v15 = vor.u32 %v1542_v58, %v1539_v23  ;;  %v989_v1 = vrot.slane %v985_v50, 4  ;;  %v996_v25 = vor.u32 %v994_v61, %v993_v40 }
 0x115   : > { %v1553_v21 = vor.u32 %v1552_v12, %v1548_v46  ;;  %v998_v55 = vrot.slane %v993_v40, 4  ;;  %v1239_v26 = vsel %vm8498_vm15, %v988_v29, %v1238_v3  ;;  %v598_v48 = vadd.f32 %v8460_v53, %v559_v32 }
 0x116   : > { %7352 = vmatprep.mubr.bf16.mxu0 %v6668_v17  ;;  %v1544_v28 = vrot.slane %v1543_v15, 4  ;;  %v997_v51 = vsel %vm8492_vm14, %v989_v1, %v996_v25  ;;  %1240 = vst [vmem:[#allocation2 + $0x60] sm:$0xf] %v1239_v26  ;;  %v599_v11 = vadd.f32 %v8460_v53, %v560_v44  ;;  %v522_v16 = vmul.f32 %v8447_v30, %v8355_v36  ;;  %v8753_v44 = vld [vmem:[%s8443_s30] ss:$0 sm:$0xff] }
 0x117   : > { %v1554_v31 = vrot.slane %v1553_v21, 4  ;;  %1241 = vst [vmem:[#allocation2 + $0x64] sm:$0xf] %v997_v51  ;;  %vm630_vm12 = vcmp.ge.f32.partialorder %v598_v48, 0.0  ;;  %v662_v9 = vmul.f32 0.2, %v598_v48  ;;  %v1243_v38 = vsel %vm8506_vm0, %v998_v55, %v1242_v63 }
 0x118   : > { %v1549_v50 = vsel %vm8278_vm2, %v1544_v28, %v1548_v46  ;;  %vm631_vm13 = vcmp.ge.f32.partialorder %v599_v11, 0.0  ;;  %v663_v61 = vmul.f32 0.2, %v599_v11  ;;  %1244 = vst [vmem:[#allocation2 + $0x68] sm:$0x1] %v1243_v38  ;;  %v561_v53 = vmul.f32 %v8445_v5, %v8724_v57 }
 0x119   : > { %v1559_v36 = vsel %vm8278_vm2, %v1554_v31, %v1558_v2  ;;  %v694_v32 = vsel %vm630_vm12, %v598_v48, %v662_v9  ;;  %v562_v34 = vmul.f32 %v8445_v5, %v522_v16  ;;  %v523_v35 = vmul.f32 %v8447_v30, %v8361_v52 }
 0x11a   : > { %v6669_v60 = vcombine.low %v1549_v50, %v1559_v36  ;;  %v695_v7 = vsel %vm631_vm13, %v599_v11, %v663_v61  ;;  %v7068_v40 = vpack.c.bf16 %v694_v32, %v694_v32  ;;  %v600_v14 = vadd.f32 %v8753_v44, %v561_v53 }
 0x11b   : > { %v7069_v42 = vpack.c.bf16 %v695_v7, %v695_v7  ;;  %v601_v0 = vadd.f32 %v8753_v44, %v562_v34  ;;  %v524_v57 = vmul.f32 %v8447_v30, %v8367_v33  ;;  %v563_v6 = vmul.f32 %v8445_v5, %v523_v35  ;;  %v1249_v33 = vld [vmem:[#allocation2 + $0x74] sm:$0x1] }
 0x11c   : > { %7353 = vmatmul.mubr.bf16.gmra.mxu0 %v6669_v60  ;;  %v1000_v19 = vshrl.u32 %v7068_v40, 16  ;;  %v1003_v3 = vshll.u32 %v7068_v40, 16  ;;  %vm632_vm1 = vcmp.ge.f32.partialorder %v600_v14, 0.0  ;;  %v664_v52 = vmul.f32 0.2, %v600_v14 }
 0x11d   : > { %v1317_v8 = vld [vmem:[#allocation2 + $0x60] sm:$0xf]  ;;  %v1008_v24 = vshrl.u32 %v7069_v42, 16  ;;  %v1011_v20 = vshll.u32 %v7069_v42, 16  ;;  %vm633_vm3 = vcmp.ge.f32.partialorder %v601_v0, 0.0  ;;  %v564_v23 = vmul.f32 %v8445_v5, %v524_v57 }
 0x11e   : > { %v8761_v58 = vld [vmem:[#allocation2 + $0x64] sm:$0xf]  ;;  %v1561_v12 = vshrl.u32 %v1317_v8, 16  ;;  %v1564_v29 = vshll.u32 %v1317_v8, 16  ;;  %v1002_v54 = vrot.slane %v1000_v19, 7  ;;  %v696_v59 = vsel %vm632_vm1, %v600_v14, %v664_v52 }
 0x11f   : > { %v1574_v46 = vshrl.u32 %v8761_v58, 16  ;;  %v6694_v2 = vcombine.low %v1317_v8, %v8761_v58  ;;  %v1010_v17 = vrot.slane %v1008_v24, 7  ;;  %v8765_v15 = vld [vmem:[#allocation2 + $0x68] sm:$0x1]  ;;  %v1570_v1 = vshll.u32 %v8761_v58, 16 }
 0x120   : > { %v1563_v25 = vrot.slane %v1561_v12, 4  ;;  %v1566_v63 = vrot.slane %v1564_v29, 5  ;;  %v1005_v21 = vor.u32 %v1003_v3, %v1002_v54  ;;  %v1006_v55 = vrot.slane %v1002_v54, 4 }
 0x121   : > { %7404 = vmatprep.mubr.bf16.mxu1 %v6694_v2  ;;  %v1013_v26 = vor.u32 %v1011_v20, %v1010_v17  ;;  %v1015_v48 = vrot.slane %v1010_v17, 4  ;;  %v1572_v28 = vrot.slane %v1570_v1, 5  ;;  %v1576_v51 = vrot.slane %v1574_v46, 4  ;;  %v1252_v20 = vld [vmem:[#allocation2 + $0x78] sm:$0xf] }
 0x122   : > { %v1246_v11 = vsel %vm8498_vm15, %v1005_v21, %v1245_v4  ;;  %v1567_v16 = vor.u32 %v1566_v63, %v1563_v25  ;;  %v1580_v31 = vshll.u32 %v8765_v15, 16  ;;  %v665_v9 = vmul.f32 0.2, %v601_v0  ;;  %v1256_v46 = vld [vmem:[#allocation2 + $0x80] sm:$0x1] }
 0x123   : > { %v1014_v38 = vsel %vm8492_vm14, %v1006_v55, %v1013_v26  ;;  %1247 = vst [vmem:[#allocation2 + $0x6c] sm:$0xf] %v1246_v11  ;;  %v1577_v50 = vor.u32 %v1576_v51, %v1572_v28  ;;  %v1250_v61 = vsel %vm8506_vm0, %v1015_v48, %v1249_v33  ;;  %v7070_v53 = vpack.c.bf16 %v696_v59, %v696_v59 }
 0x124   : > { %1248 = vst [vmem:[#allocation2 + $0x70] sm:$0xf] %v1014_v38  ;;  %v1568_v36 = vrot.slane %v1567_v16, 4  ;;  %v1582_v32 = vrot.slane %v1580_v31, 5  ;;  %1251 = vst [vmem:[#allocation2 + $0x74] sm:$0x1] %v1250_v61  ;;  %v697_v34 = vsel %vm633_vm3, %v601_v0, %v665_v9  ;;  %v602_v35 = vadd.f32 %v8753_v44, %v563_v6 }
 0x125   : > { %v1578_v60 = vrot.slane %v1577_v50, 4  ;;  %v7071_v7 = vpack.c.bf16 %v697_v34, %v697_v34  ;;  %v1017_v40 = vshrl.u32 %v7070_v53, 16  ;;  %v1020_v14 = vshll.u32 %v7070_v53, 16 }
 0x126   : > { %v1573_v42 = vsel %vm8278_vm2, %v1568_v36, %v1572_v28  ;;  %v603_v57 = vadd.f32 %v8753_v44, %v564_v23  ;;  %vm634_vm4 = vcmp.ge.f32.partialorder %v602_v35, 0.0  ;;  %v666_v19 = vmul.f32 0.2, %v602_v35 }
 0x127   : > { %v1583_v3 = vsel %vm8278_vm2, %v1578_v60, %v1582_v32  ;;  %v1019_v52 = vrot.slane %v1017_v40, 7  ;;  %v1025_v8 = vshrl.u32 %v7071_v7, 16  ;;  %v1028_v24 = vshll.u32 %v7071_v7, 16 }
 0x128   : > { %v6670_v0 = vcombine.low %v1573_v42, %v1583_v3  ;;  %vm635_vm5 = vcmp.ge.f32.partialorder %v603_v57, 0.0  ;;  %v667_v6 = vmul.f32 0.2, %v603_v57  ;;  %v698_v4 = vsel %vm634_vm4, %v602_v35, %v666_v19 }
 0x129   : > { %v1022_v12 = vor.u32 %v1020_v14, %v1019_v52  ;;  %v1023_v29 = vrot.slane %v1019_v52, 4  ;;  %v1027_v54 = vrot.slane %v1025_v8, 7  ;;  %v7072_v33 = vpack.c.bf16 %v698_v4, %v698_v4  ;;  %v1259_v8 = vld [vmem:[#allocation2 + $0x84] sm:$0xf] }
 0x12a   : > { %v1319_v59 = vld [vmem:[#allocation2 + $0x6c] sm:$0xf]  ;;  %7356 = vmatprep.mubr.bf16.mxu0 %v6670_v0  ;;  %v699_v23 = vsel %vm635_vm5, %v603_v57, %v667_v6  ;;  %v525_v2 = vmul.f32 %v8447_v30, %v8373_v56  ;;  %v526_v17 = vmul.f32 %v8447_v30, %v8379_v62  ;;  %v527_v1 = vmul.f32 %v8447_v30, %v8385_v37 }
 0x12b   : > { %v8788_v25 = vld [vmem:[#allocation2 + $0x70] sm:$0xf]  ;;  %v1585_v63 = vshrl.u32 %v1319_v59, 16  ;;  %v1588_v21 = vshll.u32 %v1319_v59, 16  ;;  %v8790_v55 = vld [vmem:[#allocation2 + $0x74] sm:$0x1]  ;;  %v1030_v26 = vor.u32 %v1028_v24, %v1027_v54  ;;  %v1253_v48 = vsel %vm8498_vm15, %v1022_v12, %v1252_v20 }
 0x12c   : > { %v1598_v28 = vshrl.u32 %v8788_v25, 16  ;;  %v6695_v56 = vcombine.low %v1319_v59, %v8788_v25  ;;  %v1594_v51 = vshll.u32 %v8788_v25, 16  ;;  %v1604_v62 = vshll.u32 %v8790_v55, 16  ;;  %1254 = vst [vmem:[#allocation2 + $0x78] sm:$0xf] %v1253_v48 }
 0x12d   : > { %v1587_v37 = vrot.slane %v1585_v63, 4  ;;  %v1590_v11 = vrot.slane %v1588_v21, 5  ;;  %v1031_v16 = vsel %vm8492_vm14, %v1023_v29, %v1030_v26  ;;  %v1032_v31 = vrot.slane %v1027_v54, 4 }
 0x12e   : > { %7405 = vmatmul.mubr.bf16.gmra.mxu1 %v6695_v56  ;;  %v1596_v9 = vrot.slane %v1594_v51, 5  ;;  %v1600_v38 = vrot.slane %v1598_v28, 4  ;;  %v1606_v50 = vrot.slane %v1604_v62, 5  ;;  %1255 = vst [vmem:[#allocation2 + $0x7c] sm:$0xf] %v1031_v16  ;;  %v7073_v61 = vpack.c.bf16 %v699_v23, %v699_v23 }
 0x12f   : > { %v1591_v53 = vor.u32 %v1590_v11, %v1587_v37  ;;  %v1034_v36 = vshrl.u32 %v7072_v33, 16  ;;  %v1037_v32 = vshll.u32 %v7072_v33, 16  ;;  %v1257_v34 = vsel %vm8506_vm0, %v1032_v31, %v1256_v46  ;;  %v1263_v23 = vld [vmem:[#allocation2 + $0x8c] sm:$0x1] }
 0x130   : > { %v1601_v35 = vor.u32 %v1600_v38, %v1596_v9  ;;  %v1042_v60 = vshrl.u32 %v7073_v61, 16  ;;  %v1045_v7 = vshll.u32 %v7073_v61, 16  ;;  %1258 = vst [vmem:[#allocation2 + $0x80] sm:$0x1] %v1257_v34  ;;  %v565_v40 = vmul.f32 %v8445_v5, %v525_v2 }
 0x131   : > { %v1592_v14 = vrot.slane %v1591_v53, 4  ;;  %v1036_v42 = vrot.slane %v1034_v36, 7  ;;  %v566_v57 = vmul.f32 %v8445_v5, %v526_v17  ;;  %v528_v19 = vmul.f32 %v8447_v30, %v8391_v39 }
 0x132   : > { %v1602_v3 = vrot.slane %v1601_v35, 4  ;;  %v1044_v52 = vrot.slane %v1042_v60, 7  ;;  %v604_v24 = vadd.f32 %v8753_v44, %v565_v40  ;;  %v567_v0 = vmul.f32 %v8445_v5, %v527_v1 }
 0x133   : > { %v1597_v20 = vsel %vm8278_vm2, %v1592_v14, %v1596_v9  ;;  %v1321_v6 = vld [vmem:[#allocation2 + $0x78] sm:$0xf]  ;;  %v1039_v4 = vor.u32 %v1037_v32, %v1036_v42  ;;  %v1040_v12 = vrot.slane %v1036_v42, 4  ;;  %v605_v29 = vadd.f32 %v8753_v44, %v566_v57 }
 0x134   : > { %v1607_v54 = vsel %vm8278_vm2, %v1602_v3, %v1606_v50  ;;  %v1609_v33 = vshrl.u32 %v1321_v6, 16  ;;  %v1612_v39 = vshll.u32 %v1321_v6, 16  ;;  %v1047_v59 = vor.u32 %v1045_v7, %v1044_v52 }
 0x135   : > { %v6671_v46 = vcombine.low %v1597_v20, %v1607_v54  ;;  %v8813_v2 = vld [vmem:[#allocation2 + $0x7c] sm:$0xf]  ;;  %v1049_v17 = vrot.slane %v1044_v52, 4  ;;  %v1260_v1 = vsel %vm8498_vm15, %v1039_v4, %v1259_v8  ;;  %vm636_vm6 = vcmp.ge.f32.partialorder %v604_v24, 0.0 }
 0x136   : > { %v1611_v63 = vrot.slane %v1609_v33, 4  ;;  %v1614_v21 = vrot.slane %v1612_v39, 5  ;;  %v1622_v26 = vshrl.u32 %v8813_v2, 16  ;;  %v6696_v48 = vcombine.low %v1321_v6, %v8813_v2  ;;  %1261 = vst [vmem:[#allocation2 + $0x84] sm:$0xf] %v1260_v1 }
 0x137   : > { %7357 = vmatmul.mubr.bf16.gmra.mxu0 %v6671_v46  ;;  %v1048_v28 = vsel %vm8492_vm14, %v1040_v12, %v1047_v59  ;;  %v8821_v56 = vld [vmem:[#allocation2 + $0x80] sm:$0x1]  ;;  %v1618_v51 = vshll.u32 %v8813_v2, 16  ;;  %v1264_v62 = vsel %vm8506_vm0, %v1049_v17, %v1263_v23  ;;  %vm637_vm7 = vcmp.ge.f32.partialorder %v605_v29, 0.0  ;;  %v1266_v6 = vld [vmem:[#allocation2 + $0x90] sm:$0xf] }
 0x138   : > { %7408 = vmatprep.mubr.bf16.mxu1 %v6696_v48  ;;  %1262 = vst [vmem:[#allocation2 + $0x88] sm:$0xf] %v1048_v28  ;;  %v1615_v37 = vor.u32 %v1614_v21, %v1611_v63  ;;  %v1624_v11 = vrot.slane %v1622_v26, 4  ;;  %v1628_v16 = vshll.u32 %v8821_v56, 16  ;;  %1265 = vst [vmem:[#allocation2 + $0x8c] sm:$0x1] %v1264_v62  ;;  %v568_v50 = vmul.f32 %v8445_v5, %v528_v19 }
 0x139   : > { %v668_v31 = vmul.f32 0.2, %v604_v24  ;;  %v1620_v9 = vrot.slane %v1618_v51, 5  ;;  %v669_v38 = vmul.f32 0.2, %v605_v29  ;;  %v606_v61 = vadd.f32 %v8753_v44, %v567_v0 }
 0x13a   : > { %v1616_v53 = vrot.slane %v1615_v37, 4  ;;  %v1630_v36 = vrot.slane %v1628_v16, 5  ;;  %v529_v34 = vmul.f32 %v8447_v30, %v8397_v41  ;;  %v607_v40 = vadd.f32 %v8753_v44, %v568_v50 }
 0x13b   : > { %v700_v32 = vsel %vm636_vm6, %v604_v24, %v668_v31  ;;  %v1625_v35 = vor.u32 %v1624_v11, %v1620_v9  ;;  %v701_v60 = vsel %vm637_vm7, %v605_v29, %v669_v38  ;;  %vm638_vm8 = vcmp.ge.f32.partialorder %v606_v61, 0.0 }
 0x13c   : > { %v7074_v7 = vpack.c.bf16 %v700_v32, %v700_v32  ;;  %v1621_v14 = vsel %vm8278_vm2, %v1616_v53, %v1620_v9  ;;  %v7075_v42 = vpack.c.bf16 %v701_v60, %v701_v60  ;;  %v670_v57 = vmul.f32 0.2, %v606_v61 }
 0x13d   : > { %v1323_v19 = vld [vmem:[#allocation2 + $0x84] sm:$0xf]  ;;  %v1626_v3 = vrot.slane %v1625_v35, 4  ;;  %vm639_vm9 = vcmp.ge.f32.partialorder %v607_v40, 0.0  ;;  %v530_v39 = vmul.f32 %v8447_v30, %v8403_v43  ;;  %v671_v16 = vmul.f32 0.2, %v607_v40 }
 0x13e   : > { %v1051_v52 = vshrl.u32 %v7074_v7, 16  ;;  %v1054_v8 = vshll.u32 %v7074_v7, 16  ;;  %v1633_v24 = vshrl.u32 %v1323_v19, 16  ;;  %v1636_v0 = vshll.u32 %v1323_v19, 16 }
 0x13f   : > { %v1059_v41 = vshrl.u32 %v7075_v42, 16  ;;  %v1062_v20 = vshll.u32 %v7075_v42, 16  ;;  %v8836_v4 = vld [vmem:[#allocation2 + $0x88] sm:$0xf]  ;;  %v1631_v12 = vsel %vm8278_vm2, %v1626_v3, %v1630_v36  ;;  %v8840_v29 = vld [vmem:[#allocation2 + $0x8c] sm:$0x1]  ;;  %v702_v33 = vsel %vm638_vm8, %v606_v61, %v670_v57 }
 0x140   : > { %v1053_v54 = vrot.slane %v1051_v52, 7  ;;  %v1635_v59 = vrot.slane %v1633_v24, 4  ;;  %v1638_v23 = vrot.slane %v1636_v0, 5  ;;  %v1646_v46 = vshrl.u32 %v8836_v4, 16  ;;  %v1270_v61 = vld [vmem:[#allocation2 + $0x98] sm:$0x1] }
 0x141   : > { %v6697_v17 = vcombine.low %v1323_v19, %v8836_v4  ;;  %v6672_v1 = vcombine.low %v1621_v14, %v1631_v12  ;;  %v1642_v63 = vshll.u32 %v8836_v4, 16  ;;  %v1652_v21 = vshll.u32 %v8840_v29, 16 }
 0x142   : > { %v1056_v26 = vor.u32 %v1054_v8, %v1053_v54  ;;  %v1639_v48 = vor.u32 %v1638_v23, %v1635_v59  ;;  %v1648_v28 = vrot.slane %v1646_v46, 4  ;;  %v1057_v51 = vrot.slane %v1053_v54, 4  ;;  %v1277_v59 = vld [vmem:[#allocation2 + $0xa4] sm:$0x1] }
 0x143   : > { %7409 = vmatmul.mubr.bf16.gmra.mxu1 %v6697_v17  ;;  %v1061_v62 = vrot.slane %v1059_v41, 7  ;;  %7360 = vmatprep.mubr.bf16.mxu0 %v6672_v1  ;;  %v1644_v37 = vrot.slane %v1642_v63, 5  ;;  %v1654_v43 = vrot.slane %v1652_v21, 5  ;;  %v7076_v50 = vpack.c.bf16 %v702_v33, %v702_v33 }
 0x144   : > { %v1267_v11 = vsel %vm8498_vm15, %v1056_v26, %v1266_v6  ;;  %v1640_v31 = vrot.slane %v1639_v48, 4  ;;  %v703_v36 = vsel %vm639_vm9, %v607_v40, %v671_v16  ;;  %v569_v32 = vmul.f32 %v8445_v5, %v529_v34 }
 0x145   : > { %v1064_v9 = vor.u32 %v1062_v20, %v1061_v62  ;;  %v1066_v38 = vrot.slane %v1061_v62, 4  ;;  %1268 = vst [vmem:[#allocation2 + $0x90] sm:$0xf] %v1267_v11  ;;  %v1649_v53 = vor.u32 %v1648_v28, %v1644_v37  ;;  %v570_v35 = vmul.f32 %v8445_v5, %v530_v39  ;;  %v1273_v39 = vld [vmem:[#allocation2 + $0x9c] sm:$0xf] }
 0x146   : > { %v1645_v60 = vsel %vm8278_vm2, %v1640_v31, %v1644_v37  ;;  %v7077_v14 = vpack.c.bf16 %v703_v36, %v703_v36  ;;  %v1068_v42 = vshrl.u32 %v7076_v50, 16  ;;  %v1071_v19 = vshll.u32 %v7076_v50, 16 }
 0x147   : > { %v1065_v7 = vsel %vm8492_vm14, %v1057_v51, %v1064_v9  ;;  %v1650_v57 = vrot.slane %v1649_v53, 4  ;;  %v1271_v3 = vsel %vm8506_vm0, %v1066_v38, %v1270_v61  ;;  %v608_v40 = vadd.f32 %v8753_v44, %v569_v32 }
 0x148   : > { %1269 = vst [vmem:[#allocation2 + $0x94] sm:$0xf] %v1065_v7  ;;  %v1070_v52 = vrot.slane %v1068_v42, 7  ;;  %v1076_v34 = vshrl.u32 %v7077_v14, 16  ;;  %v1079_v8 = vshll.u32 %v7077_v14, 16  ;;  %v609_v24 = vadd.f32 %v8753_v44, %v570_v35 }
 0x149   : > { %1272 = vst [vmem:[#allocation2 + $0x98] sm:$0x1] %v1271_v3  ;;  %v1655_v0 = vsel %vm8278_vm2, %v1650_v57, %v1654_v43  ;;  %vm640_vm10 = vcmp.ge.f32.partialorder %v608_v40, 0.0  ;;  %v672_v41 = vmul.f32 0.2, %v608_v40  ;;  %v531_v20 = vmul.f32 %v8447_v30, %v8409_v45 }
 0x14a   : > { %v6673_v6 = vcombine.low %v1645_v60, %v1655_v0  ;;  %v1073_v12 = vor.u32 %v1071_v19, %v1070_v52  ;;  %v1074_v54 = vrot.slane %v1070_v52, 4  ;;  %v1078_v33 = vrot.slane %v1076_v34, 7 }
 0x14b   : > { %vm641_vm11 = vcmp.ge.f32.partialorder %v609_v24, 0.0  ;;  %v673_v46 = vmul.f32 0.2, %v609_v24  ;;  %v704_v17 = vsel %vm640_vm10, %v608_v40, %v672_v41  ;;  %v532_v1 = vmul.f32 %v8447_v30, %v8415_v47 }
 0x14c   : > { %v1325_v23 = vld [vmem:[#allocation2 + $0x90] sm:$0xf]  ;;  %7361 = vmatmul.mubr.bf16.gmra.mxu0 %v6673_v6  ;;  %v1081_v26 = vor.u32 %v1079_v8, %v1078_v33  ;;  %v1083_v48 = vrot.slane %v1078_v33, 4  ;;  %v1274_v45 = vsel %vm8498_vm15, %v1073_v12, %v1273_v39  ;;  %v7078_v51 = vpack.c.bf16 %v704_v17, %v704_v17  ;;  %v1280_v8 = vld [vmem:[#allocation2 + $0xa8] sm:$0xf] }
 0x14d   : > { %v1657_v63 = vshrl.u32 %v1325_v23, 16  ;;  %v1660_v21 = vshll.u32 %v1325_v23, 16  ;;  %v705_v28 = vsel %vm641_vm11, %v609_v24, %v673_v46  ;;  %v571_v62 = vmul.f32 %v8445_v5, %v531_v20  ;;  %1275 = vst [vmem:[#allocation2 + $0x9c] sm:$0xf] %v1274_v45 }
 0x14e   : > { %v1082_v16 = vsel %vm8492_vm14, %v1074_v54, %v1081_v26  ;;  %v1278_v47 = vsel %vm8506_vm0, %v1083_v48, %v1277_v59  ;;  %v7079_v61 = vpack.c.bf16 %v705_v28, %v705_v28  ;;  %v1085_v32 = vshrl.u32 %v7078_v51, 16 }
 0x14f   : > { %v8871_v37 = vld [vmem:[#allocation2 + $0x94] sm:$0xf]  ;;  %v1659_v43 = vrot.slane %v1657_v63, 4  ;;  %v1662_v11 = vrot.slane %v1660_v21, 5  ;;  %1276 = vst [vmem:[#allocation2 + $0xa0] sm:$0xf] %v1082_v16  ;;  %v572_v40 = vmul.f32 %v8445_v5, %v532_v1  ;;  %v610_v24 = vadd.f32 %v8753_v44, %v571_v62 }
 0x150   : > { %v1670_v31 = vshrl.u32 %v8871_v37, 16  ;;  %v6698_v9 = vcombine.low %v1325_v23, %v8871_v37  ;;  %v8879_v38 = vld [vmem:[#allocation2 + $0x98] sm:$0x1]  ;;  %v1666_v50 = vshll.u32 %v8871_v37, 16  ;;  %1279 = vst [vmem:[#allocation2 + $0xa4] sm:$0x1] %v1278_v47 }
 0x151   : > { %v1663_v53 = vor.u32 %v1662_v11, %v1659_v43  ;;  %v1676_v36 = vshll.u32 %v8879_v38, 16  ;;  %v1088_v35 = vshll.u32 %v7078_v51, 16  ;;  %v1093_v14 = vshrl.u32 %v7079_v61, 16  ;;  %v1284_v63 = vld [vmem:[#allocation2 + $0xb0] sm:$0x1] }
 0x152   : > { %7412 = vmatprep.mubr.bf16.mxu1 %v6698_v9  ;;  %v1668_v60 = vrot.slane %v1666_v50, 5  ;;  %v1672_v7 = vrot.slane %v1670_v31, 4  ;;  %v1096_v42 = vshll.u32 %v7079_v61, 16  ;;  %v1087_v3 = vrot.slane %v1085_v32, 7  ;;  %v2347_v43 = vld [vmem:[#allocation2] sm:$0xe] }
 0x153   : > { %v1664_v57 = vrot.slane %v1663_v53, 4  ;;  %v1678_v19 = vrot.slane %v1676_v36, 5  ;;  %v1095_v34 = vrot.slane %v1093_v14, 7  ;;  %vm2395_vm12 = vcmask 1042432  }
 0x154   : > { %v1673_v52 = vor.u32 %v1672_v7, %v1668_v60  ;;  %v1090_v41 = vor.u32 %v1088_v35, %v1087_v3  ;;  %v1091_v20 = vrot.slane %v1087_v3, 4  ;;  %v611_v6 = vadd.f32 %v8753_v44, %v572_v40  ;;  %v1327_v12 = vld [vmem:[#allocation2 + $0x9c] sm:$0xf]  ;;  %v2348_v35 = vld [vmem:[#allocation2 + $0xc] sm:$0xe] }
 0x155   : > { %v1669_v0 = vsel %vm8278_vm2, %v1664_v57, %v1668_v60  ;;  %v1098_v33 = vor.u32 %v1096_v42, %v1095_v34  ;;  %v1100_v39 = vrot.slane %v1095_v34, 4  ;;  %vm642_vm13 = vcmp.ge.f32.partialorder %v610_v24, 0.0 }
 0x156   : > { %v1674_v54 = vrot.slane %v1673_v52, 4  ;;  %v8888_v59 = vld [vmem:[#allocation2 + $0xa0] sm:$0xf]  ;;  %v1681_v23 = vshrl.u32 %v1327_v12, 16  ;;  %v1684_v46 = vshll.u32 %v1327_v12, 16  ;;  %v1281_v1 = vsel %vm8498_vm15, %v1090_v41, %v1280_v8 }
 0x157   : > { %v8890_v17 = vld [vmem:[#allocation2 + $0xa4] sm:$0x1]  ;;  %v1694_v21 = vshrl.u32 %v8888_v59, 16  ;;  %v6699_v26 = vcombine.low %v1327_v12, %v8888_v59  ;;  %v1690_v48 = vshll.u32 %v8888_v59, 16  ;;  %1282 = vst [vmem:[#allocation2 + $0xa8] sm:$0xf] %v1281_v1  ;;  %v1099_v47 = vsel %vm8492_vm14, %v1091_v20, %v1098_v33 }
 0x158   : > { %v1679_v44 = vsel %vm8278_vm2, %v1674_v54, %v1678_v19  ;;  %v1683_v45 = vrot.slane %v1681_v23, 4  ;;  %v1686_v28 = vrot.slane %v1684_v46, 5  ;;  %v1700_v62 = vshll.u32 %v8890_v17, 16  ;;  %1283 = vst [vmem:[#allocation2 + $0xac] sm:$0xf] %v1099_v47  ;;  %v10869_v12 = vld [vmem:[#allocation7_spill] sm:$0xff] }
 0x159   : > { %v6674_v51 = vcombine.low %v1669_v0, %v1679_v44  ;;  %7413 = vmatmul.mubr.bf16.gmra.mxu1 %v6699_v26  ;;  %v1692_v11 = vrot.slane %v1690_v48, 5  ;;  %v1696_v16 = vrot.slane %v1694_v21, 4  ;;  %vm643_vm1 = vcmp.ge.f32.partialorder %v611_v6, 0.0  ;;  %v1287_v26 = vld [vmem:[#allocation2 + $0xb4] sm:$0xf] }
 0x15a   : > { %v1687_v31 = vor.u32 %v1686_v28, %v1683_v45  ;;  %v1702_v9 = vrot.slane %v1700_v62, 5  ;;  %v674_v50 = vmul.f32 0.2, %v610_v24  ;;  %v675_v61 = vmul.f32 0.2, %v611_v6  ;;  %v10870_v62 = vld [vmem:[#allocation3_spill] sm:$0xff] }
 0x15b   : > { %7364 = vmatprep.mubr.bf16.mxu0 %v6674_v51  ;;  %v1697_v53 = vor.u32 %v1696_v16, %v1692_v11  ;;  %v1285_v36 = vsel %vm8506_vm0, %v1100_v39, %v1284_v63  ;;  %vm2396_vm3 = vcmask 1046532   ;;  %v6710_v32 = vrot.slane %v2347_v43, 9  ;;  %v1291_v51 = vld [vmem:[#allocation2 + $0xbc] sm:$0x1] }
 0x15c   : > { %v1688_v60 = vrot.slane %v1687_v31, 4  ;;  %v706_v7 = vsel %vm642_vm13, %v610_v24, %v674_v50  ;;  %v707_v14 = vsel %vm643_vm1, %v611_v6, %v675_v61  ;;  %1286 = vst [vmem:[#allocation2 + $0xb0] sm:$0x1] %v1285_v36  ;;  %vm8906_vm4 = vmor %vm2395_vm12, %vm2396_vm3  ;;  %v8912_v57 = vmul.f32 %v8447_v30, %v8421_v49  ;;  %v10867_v6 = vld [vmem:[#allocation6_spill] sm:$0xff] }
 0x15d   : > { %v1698_v19 = vrot.slane %v1697_v53, 4  ;;  %v7080_v3 = vpack.c.bf16 %v706_v7, %v706_v7  ;;  %v7081_v40 = vpack.c.bf16 %v707_v14, %v707_v14  ;;  %v10865_v52 = vrot.slane %v8066_v13, 5  ;;  %v2349_v7 = vld [vmem:[#allocation2 + $0x18] sm:$0xe] }
 0x15e   : > { %v1693_v8 = vsel %vm8278_vm2, %v1688_v60, %v1692_v11  ;;  %v1329_v24 = vld [vmem:[#allocation2 + $0xa8] sm:$0xf]  ;;  %v6711_v20 = vrot.slane %v2348_v35, 9  ;;  %v10868_v49 = vrot.slane %v10867_v6, 5  ;;  %v10871_v43 = vrot.slane %v10870_v62, 5 }
 0x15f   : > { %v2402_v34 = vrot.slane %v10865_v52, 4  ;;  %v10866_v0 = vmov %v10865_v52  ;;  %v1703_v33 = vsel %vm8278_vm2, %v1698_v19, %v1702_v9  ;;  %v1705_v39 = vshrl.u32 %v1329_v24, 16  ;;  %v8933_v44 = vld [vmem:[#allocation2 + $0xac] sm:$0xf] }
 0x160   : > { %v8922_v41 = vsel %vm8906_vm4, %v6710_v32, %v10866_v0  ;;  %v8929_v54 = vsel %vm8906_vm4, %v10869_v12, %v10868_v49  ;;  %v1708_v23 = vshll.u32 %v1329_v24, 16  ;;  %v1102_v46 = vshrl.u32 %v7080_v3, 16  ;;  %v10872_v32 = vld [vmem:[#allocation5_spill] sm:$0xff]  ;;  %v2350_v0 = vld [vmem:[#allocation2 + $0x24] sm:$0xe] }
 0x161   : > { %v6675_v1 = vcombine.low %v1693_v8, %v1703_v33  ;;  %v1105_v13 = vshll.u32 %v7080_v3, 16  ;;  %v1110_v63 = vshrl.u32 %v7081_v40, 16  ;;  %v1113_v21 = vshll.u32 %v7081_v40, 16  ;;  %v2351_v33 = vld [vmem:[#allocation2 + $0x30] sm:$0xe] }
 0x162   : > { %v1707_v48 = vrot.slane %v1705_v39, 4  ;;  %v1710_v45 = vrot.slane %v1708_v23, 5  ;;  %v1104_v28 = vrot.slane %v1102_v46, 7  ;;  %v8939_v11 = vsel %vm8906_vm4, %v2402_v34, %v10871_v43  ;;  %v7944_v46 = vld [vmem:[#allocation2 + $0x1c] sm:$0xf] }
 0x163   : > { %7365 = vmatmul.mubr.bf16.gmra.mxu0 %v6675_v1  ;;  %v1718_v16 = vshrl.u32 %v8933_v44, 16  ;;  %v6700_v47 = vcombine.low %v1329_v24, %v8933_v44  ;;  %v1112_v31 = vrot.slane %v1110_v63, 7  ;;  %v1714_v9 = vshll.u32 %v8933_v44, 16  ;;  %v8944_v53 = vld [vmem:[#allocation2 + $0xb0] sm:$0x1] }
 0x164   : > { %v1107_v50 = vor.u32 %v1105_v13, %v1104_v28  ;;  %v1108_v61 = vrot.slane %v1104_v28, 4  ;;  %v1711_v36 = vor.u32 %v1710_v45, %v1707_v48  ;;  %v10873_v35 = vrot.slane %v10872_v32, 5  ;;  %v7945_v13 = vld [vmem:[#allocation2 + $0x20] sm:$0x1]  ;;  %v7946_v48 = vld [vmem:[#allocation2 + $0x28] sm:$0xf] }
 0x165   : > { %7416 = vmatprep.mubr.bf16.mxu1 %v6700_v47  ;;  %v1115_v14 = vor.u32 %v1113_v21, %v1112_v31  ;;  %v1117_v19 = vrot.slane %v1112_v31, 4  ;;  %v1716_v3 = vrot.slane %v1714_v9, 5  ;;  %v1720_v40 = vrot.slane %v1718_v16, 4  ;;  %v7947_v28 = vld [vmem:[#allocation2 + $0x2c] sm:$0x1] }
 0x166   : > { %v8950_v60 = vsel %vm8906_vm4, %v6711_v20, %v10873_v35  ;;  %v1288_v52 = vsel %vm8498_vm15, %v1107_v50, %v1287_v26  ;;  %v1712_v34 = vrot.slane %v1711_v36, 4  ;;  %v1724_v8 = vshll.u32 %v8944_v53, 16  ;;  %v7948_v47 = vld [vmem:[#allocation2 + $0x34] sm:$0xf]  ;;  %v2352_v9 = vld [vmem:[#allocation2 + $0x3c] sm:$0xe] }
 0x167   : > { %v6743_v24 = vcombine.low %v8950_v60, %v8929_v54  ;;  %v1116_v20 = vsel %vm8492_vm14, %v1108_v61, %v1115_v14  ;;  %1289 = vst [vmem:[#allocation2 + $0xb4] sm:$0xf] %v1288_v52  ;;  %v1721_v6 = vor.u32 %v1720_v40, %v1716_v3  ;;  %v1292_v49 = vsel %vm8506_vm0, %v1117_v19, %v1291_v51  ;;  %v7949_v32 = vld [vmem:[#allocation2 + $0x38] sm:$0x1]  ;;  %v7861_v52 = vld [vmem:[#allocation2 + $0xc] sm:$0xff]  }
 0x168   : > { %v6712_v12 = vrot.slane %v2349_v7, 9  ;;  %1290 = vst [vmem:[#allocation2 + $0xb8] sm:$0xf] %v1116_v20  ;;  %v1717_v39 = vsel %vm8278_vm2, %v1712_v34, %v1716_v3  ;;  %v1726_v23 = vrot.slane %v1724_v8, 5  ;;  %1293 = vst [vmem:[#allocation2 + $0xbc] sm:$0x1] %v1292_v49  ;;  %v6742_v34 = vcombine.low %v8922_v41, %v8939_v11 }
 0x169   : > { %v2414_v1 = vrot.slane %v7944_v46, 5  ;;  %v2417_v63 = vrot.slane %v7945_v13, 5  ;;  %v1722_v21 = vrot.slane %v1721_v6, 4  ;;  %v6713_v26 = vrot.slane %v2350_v0, 9  ;;  %v2353_v7 = vld [vmem:[#allocation2 + $0x48] sm:$0xe] }
 0x16a   : > { %v2421_v45 = vrot.slane %v7946_v48, 5  ;;  %v2424_v62 = vrot.slane %v7947_v28, 5  ;;  %v6714_v16 = vrot.slane %v2351_v33, 9  ;;  %v2428_v31 = vrot.slane %v7948_v47, 5  ;;  %v7950_v20 = vld [vmem:[#allocation2 + $0x40] sm:$0xf] }
 0x16b   : > { %v8965_v51 = vsel %vm8906_vm4, %v6712_v12, %v2414_v1  ;;  %v2416_v43 = vrot.slane %v2414_v1, 4  ;;  %v1727_v50 = vsel %vm8278_vm2, %v1722_v21, %v1726_v23  ;;  %v2431_v35 = vrot.slane %v7949_v32, 5  ;;  %v7870_v54 = vld [vmem:[#allocation2 + $0x48] sm:$0xff]  }
 0x16c   : > { %v8971_v61 = vsel %vm8906_vm4, %v6713_v26, %v2421_v45  ;;  %v2423_v36 = vrot.slane %v2421_v45, 4  ;;  %v6676_v14 = vcombine.low %v1717_v39, %v1727_v50  ;;  %v8979_v3 = vsel %vm8906_vm4, %v6714_v16, %v2428_v31  ;;  %v7951_v39 = vld [vmem:[#allocation2 + $0x44] sm:$0x1] }
 0x16d   : > { %v8975_v19 = vsel %vm8906_vm4, %v2416_v43, %v2417_v63  ;;  %v2430_v40 = vrot.slane %v2428_v31, 4  ;;  %v6715_v0 = vrot.slane %v2352_v9, 9  ;;  %v2435_v6 = vrot.slane %v7950_v20, 5  ;;  %v7952_v9 = vld [vmem:[#allocation2 + $0x4c] sm:$0xf] }
 0x16e   : > { %v8985_v8 = vsel %vm8906_vm4, %v2423_v36, %v2424_v62  ;;  %v1331_v49 = vld [vmem:[#allocation2 + $0xb4] sm:$0xf]  ;;  %7368 = vmatprep.mubr.bf16.mxu0 %v6676_v14  ;;  %v6744_v12 = vcombine.low %v8965_v51, %v8975_v19  ;;  %v2438_v23 = vrot.slane %v7951_v39, 5  ;;  %v6716_v46 = vrot.slane %v2353_v7, 9  ;;  %v7953_v14 = vld [vmem:[#allocation2 + $0x50] sm:$0x1] }
 0x16f   : > { %v8991_v33 = vsel %vm8906_vm4, %v2430_v40, %v2431_v35  ;;  %v8993_v1 = vld [vmem:[#allocation2 + $0xb8] sm:$0xf]  ;;  %v1729_v13 = vshrl.u32 %v1331_v49, 16  ;;  %v1732_v63 = vshll.u32 %v1331_v49, 16  ;;  %v8995_v21 = vld [vmem:[#allocation2 + $0xbc] sm:$0x1]  ;;  %v6745_v26 = vcombine.low %v8971_v61, %v8985_v8 }
 0x170   : > { %v1742_v45 = vshrl.u32 %v8993_v1, 16  ;;  %v6701_v28 = vcombine.low %v1331_v49, %v8993_v1  ;;  %v1738_v62 = vshll.u32 %v8993_v1, 16  ;;  %v1748_v43 = vshll.u32 %v8995_v21, 16  ;;  %v2354_v36 = vld [vmem:[#allocation2 + $0x54] sm:$0xe]  ;;  %v7880_v51 = vld [vmem:[%s10834_s3 + $0x158] sm:$0xff]  }
 0x171   : > { %v1731_v16 = vrot.slane %v1729_v13, 4  ;;  %v1734_v47 = vrot.slane %v1732_v63, 5  ;;  %v2437_v31 = vrot.slane %v2435_v6, 4  ;;  %v2442_v50 = vrot.slane %v7952_v9, 5  ;;  %v2355_v20 = vld [vmem:[#allocation2 + $0x60] sm:$0xe] }
 0x172   : > { %7417 = vmatmul.mubr.bf16.gmra.mxu1 %v6701_v28  ;;  %v1740_v32 = vrot.slane %v1738_v62, 5  ;;  %v1744_v35 = vrot.slane %v1742_v45, 4  ;;  %v9007_v7 = vsel %vm8906_vm4, %v6715_v0, %v2435_v6  ;;  %v2445_v40 = vrot.slane %v7953_v14, 5  ;;  %v7954_v9 = vld [vmem:[#allocation2 + $0x58] sm:$0xf] }
 0x173   : > { %v1735_v49 = vor.u32 %v1734_v47, %v1731_v16  ;;  %7484 = vmatprep.mubr.bf16.mxu1 %v7861_v52  ;;  %v9011_v39 = vsel %vm8906_vm4, %v2437_v31, %v2438_v23  ;;  %v9015_v13 = vsel %vm8906_vm4, %v6716_v46, %v2442_v50  ;;  %v2444_v63 = vrot.slane %v2442_v50, 4  ;;  %v2356_v6 = vld [vmem:[#allocation2 + $0x6c] sm:$0xe]  ;;  %v7955_v52 = vld [vmem:[#allocation2 + $0x5c] sm:$0x1] }
 0x174   : > { %v1745_v28 = vor.u32 %v1744_v35, %v1740_v32  ;;  %v1750_v45 = vrot.slane %v1748_v43, 5  ;;  %v6717_v62 = vrot.slane %v2354_v36, 9  ;;  %v2449_v0 = vrot.slane %v7954_v9, 5  ;;  %v7862_v14 = vld [vmem:[#allocation2 + $0x18] sm:$0xff]   ;;  %v2358_v46 = vld [vmem:[#allocation2 + $0x84] sm:$0xe] }
 0x175   : > { %v1736_v48 = vrot.slane %v1735_v49, 4  ;;  %v9019_v16 = vsel %vm8906_vm4, %v2444_v63, %v2445_v40  ;;  %v2452_v47 = vrot.slane %v7955_v52, 5  ;;  %v6718_v23 = vrot.slane %v2355_v20, 9  ;;  %v2357_v63 = vld [vmem:[#allocation2 + $0x78] sm:$0xe] }
 0x176   : > { %v1746_v31 = vrot.slane %v1745_v28, 4  ;;  %v2451_v50 = vrot.slane %v2449_v0, 4  ;;  %v2456_v35 = vrot.slane %v8761_v58, 5  ;;  %v2459_v40 = vrot.slane %v8765_v15, 5  ;;  %v7865_v28 = vld [vmem:[#allocation2 + $0x24] sm:$0xff]   ;;  %v7868_v58 = vld [vmem:[%s10834_s3 + $0x170] sm:$0xff]  }
 0x177   : > { %v1741_v36 = vsel %vm8278_vm2, %v1736_v48, %v1740_v32  ;;  %v6719_v49 = vrot.slane %v2356_v6, 9  ;;  %v9033_v9 = vsel %vm8906_vm4, %v6717_v62, %v2449_v0  ;;  %v2463_v52 = vrot.slane %v8788_v25, 5  ;;  %v7956_v6 = vld [vmem:[%s10834_s3 + $0x178] sm:$0xff]  }
 0x178   : > { %v1751_v20 = vsel %vm8278_vm2, %v1746_v31, %v1750_v45  ;;  %v2466_v43 = vrot.slane %v8790_v55, 5  ;;  %v9042_v15 = vsel %vm8906_vm4, %v2451_v50, %v2452_v47  ;;  %v9046_v32 = vsel %vm8906_vm4, %v6718_v23, %v2456_v35  ;;  %v2359_v50 = vld [vmem:[#allocation2 + $0x90] sm:$0xe]  ;;  %v7879_v61 = vld [vmem:[%s10834_s3 + $0x118] sm:$0xff]  }
 0x179   : > { %v6677_v48 = vcombine.low %v1741_v36, %v1751_v20  ;;  %v2458_v45 = vrot.slane %v2456_v35, 4  ;;  %v9050_v25 = vsel %vm8906_vm4, %v6719_v49, %v2463_v52  ;;  %v2465_v55 = vrot.slane %v2463_v52, 4 }
 0x17a   : > { %7485 = vmatmul.mubr.bf16.vlgmr.msra.gmra.mxu1 %v7862_v14  ;;  %v6720_v62 = vrot.slane %v2357_v63, 9  ;;  %v2470_v0 = vrot.slane %v8813_v2, 5  ;;  %v2473_v23 = vrot.slane %v8821_v56, 5  ;;  %v6721_v31 = vrot.slane %v2358_v46, 9  ;;  %v7872_v2 = vld [vmem:[%s10834_s3 + $0x168] sm:$0xff]   ;;  %v7869_v63 = vld [vmem:[#allocation2 + $0x3c] sm:$0xff]  }
 0x17b   : > { %7369 = vmatmul.mubr.bf16.gmra.mxu0 %v6677_v48  ;;  %7565 = vmatpush3.bf16.msra.mxu1 %v7956_v6  ;;  %v9058_v47 = vsel %vm8906_vm4, %v2458_v45, %v2459_v40  ;;  %v2477_v14 = vrot.slane %v8836_v4, 5  ;;  %v6749_v36 = vcombine.low %v9033_v9, %v9042_v15  ;;  %v9074_v56 = vsel %vm8906_vm4, %v2465_v55, %v2466_v43  ;;  %v2360_v46 = vld [vmem:[#allocation2 + $0x9c] sm:$0xe]  ;;  %v7866_v40 = vld [vmem:[#allocation2 + $0x30] sm:$0xff]   ;;  %v2361_v48 = vld [vmem:[#allocation2 + $0xa8] sm:$0xe] }
 0x17c   : > { %7436 = vmatprep.mubr.bf16.mxu0 %v6742_v34  ;;  %7488 = vmatprep.mubr.bf16.mxu1 %v7865_v28  ;;  %v6750_v35 = vcombine.low %v9046_v32, %v9058_v47  ;;  %v2472_v4 = vrot.slane %v2470_v0, 4  ;;  %v9078_v41 = vsel %vm8906_vm4, %v6720_v62, %v2470_v0  ;;  %v2480_v49 = vrot.slane %v8840_v29, 5  ;;  %v2362_v6 = vld [vmem:[#allocation2 + $0xb4] sm:$0xe] }
 0x17d   : > { %7566 = vmatprep.subr.bf16.mxu1 %v7868_v58  ;;  %v9082_v11 = vsel %vm8906_vm4, %v6721_v31, %v2477_v14  ;;  %v2479_v34 = vrot.slane %v2477_v14, 4  ;;  %v6751_v43 = vcombine.low %v9050_v25, %v9074_v56  ;;  %v6722_v20 = vrot.slane %v2359_v50, 9  ;;  %v10874_v14 = vld [vmem:[#allocation4_spill] sm:$0xff] }
 0x17e   : > { %v2484_v28 = vrot.slane %v8871_v37, 5  ;;  %v2487_v52 = vrot.slane %v8879_v38, 5  ;;  %v9091_v45 = vsel %vm8906_vm4, %v2472_v4, %v2473_v23  ;;  %v6723_v29 = vrot.slane %v2360_v46, 9  ;;  %v7867_v23 = vld [vmem:[%s10834_s3 + $0x130] sm:$0xff]   ;;  %v3972_v46 = vld [vmem:[#allocation2 + $0xc] sm:$0xe] }
 0x17f   : > { %7567 = vmatpush3.bf16.msra.mxu1 %v7868_v58  ;;  %v9095_v55 = vsel %vm8906_vm4, %v2479_v34, %v2480_v49  ;;  %v2491_v62 = vrot.slane %v8888_v59, 5  ;;  %v2494_v58 = vrot.slane %v8890_v17, 5  ;;  %v534_v50 = vmul.f32 %v8447_v30, %v10874_v14  ;;  %v7876_v17 = vld [vmem:[%s10834_s3 + $0x160] sm:$0xff]  }
 0x180   : > { %7568 = vmatprep.subr.bf16.mxu1 %v7872_v2  ;;  %v9102_v37 = vsel %vm8906_vm4, %v6722_v20, %v2484_v28  ;;  %v2486_v38 = vrot.slane %v2484_v28, 4  ;;  %v573_v4 = vmul.f32 %v8445_v5, %v8912_v57  ;;  %v6724_v49 = vrot.slane %v2361_v48, 9 }
 0x181   : > { %v9110_v31 = vsel %vm8906_vm4, %v6723_v29, %v2491_v62  ;;  %v2493_v59 = vrot.slane %v2491_v62, 4  ;;  %v2498_v20 = vrot.slane %v8933_v44, 5  ;;  %v2501_v28 = vrot.slane %v8944_v53, 5  ;;  %v7957_v44 = vld [vmem:[%s10834_s3 + $0x138] sm:$0xff]   ;;  %v7871_v53 = vld [vmem:[%s10834_s3 + $0x128] sm:$0xff]  }
 0x182   : > { %7489 = vmatmul.mubr.bf16.gmra.mxu1 %v7866_v40  ;;  %v9121_v34 = vsel %vm8906_vm4, %v2486_v38, %v2487_v52  ;;  %v574_v40 = vmul.f32 %v8445_v5, %v534_v50  ;;  %v6725_v52 = vrot.slane %v2362_v6, 9  ;;  %v7873_v29 = vld [vmem:[#allocation2 + $0x54] sm:$0xff]   ;;  %v2508_v62 = vrot.slane %v8995_v21, 5  ;;  %v9156_v38 = vld [vmem:[#allocation2 + $0x10] sm:$0xf] }
 0x183   : > { %7437 = vmatmul.mubr.bf16.vlgmr.msra.gmra.mxu0 %v6743_v24  ;;  %7492 = vmatprep.mubr.bf16.mxu1 %v7869_v63  ;;  %v9132_v57 = vsel %vm8906_vm4, %v2493_v59, %v2494_v58  ;;  %v7958_v24 = vld [vmem:[%s8443_s30] ss:$0 sm:$0xff]  ;;  %v9149_v63 = vsel %vm8906_vm4, %v6724_v49, %v2498_v20  ;;  %v2500_v48 = vrot.slane %v2498_v20, 4  ;;  %v6846_v58 = vrot.slane %v3972_v46, 9  ;;  %v9172_v46 = vld [vmem:[#allocation2 + $0x1c] sm:$0xf] }
 0x184   : > { %7517 = vmatpush3.bf16.msra.mxu0 %v7957_v44  ;;  %7440 = vmatprep.mubr.bf16.mxu0 %v6744_v12  ;;  %v612_v5 = vadd.f32 %v7958_v24, %v573_v4  ;;  %v613_v19 = vadd.f32 %v7958_v24, %v574_v40  ;;  %v2505_v12 = vrot.slane %v8993_v1, 5  ;;  %v4038_v14 = vrot.slane %v9156_v38, 5  ;;  %v7875_v1 = vld [vmem:[%s10834_s3 + $0x120] sm:$0xff]   ;;  %v3973_v49 = vld [vmem:[#allocation2 + $0x18] sm:$0xe] }
 0x185   : > { %7518 = vmatprep.subr.bf16.mxu0 %v7867_v23  ;;  %7569 = vmatpush3.bf16.msra.mxu1 %v7872_v2  ;;  %v9160_v59 = vsel %vm8906_vm4, %v2500_v48, %v2501_v28  ;;  %v9162_v2 = vld [vmem:[#allocation2 + $0x14] sm:$0x1]  ;;  %v3218_v24 = vld [vmem:[#allocation2 + $0xc] sm:$0xf]  ;;  %v10876_v22 = vcombine.low %v9007_v7, %v9011_v39  ;;  %v10877_v7 = vcombine.low %v9015_v13, %v9019_v16 }
 0x186   : > { %7570 = vmatprep.subr.bf16.mxu1 %v7876_v17  ;;  %vm644_vm5 = vcmp.ge.f32.partialorder %v612_v5, 0.0  ;;  %v676_v6 = vmul.f32 0.2, %v612_v5  ;;  %vm645_vm6 = vcmp.ge.f32.partialorder %v613_v19, 0.0  ;;  %v677_v50 = vmul.f32 0.2, %v613_v19 }
 0x187   : > { %v9176_v28 = vsel %vm8906_vm4, %v6725_v52, %v2505_v12  ;;  %v2507_v40 = vrot.slane %v2505_v12, 4  ;;  %v4040_v44 = vrot.slane %v4038_v14, 4  ;;  %v7884_v48 = vld [vmem:[%s10834_s3 + $0x150] sm:$0xff]   ;;  %v9183_v30 = vsel %vm8906_vm4, %v6846_v58, %v4038_v14 }
 0x188   : > { %7519 = vmatpush3.bf16.msra.mxu0 %v7867_v23  ;;  %v708_v20 = vsel %vm644_vm5, %v612_v5, %v676_v6  ;;  %v709_v60 = vsel %vm645_vm6, %v613_v19, %v677_v50  ;;  %v4041_v23 = vrot.slane %v9162_v2, 5  ;;  %v9186_v5 = vld [vmem:[#allocation2 + $0x20] sm:$0x1]  ;;  %v6847_v12 = vrot.slane %v3973_v49, 9 }
 0x189   : > { %7520 = vmatprep.subr.bf16.mxu0 %v7871_v53  ;;  %7571 = vmatpush3.bf16.msra.mxu1 %v7876_v17  ;;  %v7082_v4 = vpack.c.bf16 %v708_v20, %v708_v20  ;;  %v7083_v52 = vpack.c.bf16 %v709_v60, %v709_v60  ;;  %v9190_v17 = vsel %vm8906_vm4, %v2507_v40, %v2508_v62  ;;  %v4045_v6 = vrot.slane %v9172_v46, 5 }
 0x18a   : > { %7493 = vmatmul.mubr.bf16.gmra.mxu1 %v7870_v54  ;;  %7572 = vmatprep.subr.bf16.mxu1 %v7880_v51  ;;  %v9200_v54 = vsel %vm8906_vm4, %v4040_v44, %v4041_v23  ;;  %v10875_v60 = vcombine.low %v8979_v3, %v8991_v33  ;;  %v4048_v62 = vrot.slane %v9186_v5, 5  ;;  %v3267_v20 = vshrl.u32 %v3218_v24, 16  ;;  %v7874_v33 = vld [vmem:[#allocation2 + $0x60] sm:$0xff]  }
 0x18b   : > { %7441 = vmatmul.mubr.bf16.gmra.mxu0 %v6745_v26  ;;  %7496 = vmatprep.mubr.bf16.mxu1 %v7873_v29  ;;  %v1119_v19 = vshrl.u32 %v7082_v4, 16  ;;  %v1122_v58 = vshll.u32 %v7082_v4, 16  ;;  %v1127_v8 = vshrl.u32 %v7083_v52, 16  ;;  %v1130_v26 = vshll.u32 %v7083_v52, 16  ;;  %v1294_v4 = vld [vmem:[#allocation2 + $0xc0] sm:$0xf] }
 0x18c   : > { %7444 = vmatprep.mubr.bf16.mxu0 %v10875_v60  ;;  %7521 = vmatpush3.bf16.msra.mxu0 %v7871_v53  ;;  %v4047_v49 = vrot.slane %v4045_v6, 4  ;;  %v3270_v3 = vshll.u32 %v3218_v24, 16  ;;  %v7888_v53 = vld [vmem:[%s10834_s3 + $0x148] sm:$0xff]   ;;  %v3276_v44 = vshll.u32 %v9156_v38, 16  ;;  %v3280_v23 = vshrl.u32 %v9156_v38, 16 }
 0x18d   : > { %7522 = vmatprep.subr.bf16.mxu0 %v7875_v1  ;;  %7573 = vmatpush3.bf16.msra.mxu1 %v7880_v51  ;;  %v1121_v50 = vrot.slane %v1119_v19, 7  ;;  %v9214_v40 = vrot.slane %v1127_v8, 7  ;;  %v3286_v52 = vshll.u32 %v9162_v2, 16  ;;  %v7877_v51 = vld [vmem:[#allocation2 + $0x6c] sm:$0xff]   ;;  %v9221_v24 = vsel %vm8906_vm4, %v6847_v12, %v4045_v6  ;;  %v3221_v29 = vld [vmem:[#allocation2 + $0x18] sm:$0xf] }
 0x18e   : > { %7574 = vmatprep.subr.bf16.mxu1 %v7884_v48  ;;  %v3269_v14 = vrot.slane %v3267_v20, 4  ;;  %v9227_v21 = vsel %vm8906_vm4, %v4047_v49, %v4048_v62  ;;  %v3272_v38 = vrot.slane %v3270_v3, 5  ;;  %v7883_v2 = vld [vmem:[%s10834_s3 + $0x110] sm:$0xff]   ;;  %v3278_v6 = vrot.slane %v3276_v44, 5 }
 0x18f   : > { %v1124_v19 = vor.u32 %v1122_v58, %v1121_v50  ;;  %v1125_v60 = vrot.slane %v1121_v50, 4  ;;  %v1132_v0 = vor.u32 %v1130_v26, %v9214_v40  ;;  %v1134_v8 = vrot.slane %v9214_v40, 4  ;;  %v3974_v26 = vld [vmem:[#allocation2 + $0x24] sm:$0xe] }
 0x190   : > { %7523 = vmatpush3.bf16.msra.mxu0 %v7875_v1  ;;  %v3282_v1 = vrot.slane %v3280_v23, 4  ;;  %v3288_v58 = vrot.slane %v3286_v52, 5  ;;  %v7892_v50 = vld [vmem:[%s10834_s3 + $0x140] sm:$0xff]   ;;  %v3273_v49 = vor.u32 %v3272_v38, %v3269_v14  ;;  %v3291_v20 = vshrl.u32 %v3221_v29, 16  ;;  %v9248_v14 = vld [vmem:[#allocation2 + $0x28] sm:$0xf] }
 0x191   : > { %7524 = vmatprep.subr.bf16.mxu0 %v7879_v61  ;;  %7575 = vmatpush3.bf16.msra.mxu1 %v7884_v48  ;;  %v1295_v12 = vsel %vm8498_vm15, %v1124_v19, %v1294_v4  ;;  %v1133_v62 = vsel %vm8492_vm14, %v1125_v60, %v1132_v0  ;;  %v3294_v48 = vshll.u32 %v3221_v29, 16  ;;  %v7887_v4 = vld [vmem:[%s10834_s3 + $0x108] sm:$0xff]   ;;  %v3300_v0 = vshll.u32 %v9172_v46, 16  ;;  %v7878_v19 = vld [vmem:[#allocation2 + $0x78] sm:$0xff]  }
 0x192   : > { %7497 = vmatmul.mubr.bf16.gmra.mxu1 %v7874_v33  ;;  %7576 = vmatprep.subr.bf16.mxu1 %v7888_v53  ;;  %1296 = vst [vmem:[#allocation2 + $0xc0] sm:$0xf] %v1295_v12  ;;  %1297 = vst [vmem:[#allocation2 + $0xc4] sm:$0xf] %v1133_v62  ;;  %v3283_v18 = vor.u32 %v3282_v1, %v3278_v6  ;;  %v3304_v3 = vshrl.u32 %v9172_v46, 16  ;;  %v3310_v33 = vshll.u32 %v9186_v5, 16 }
 0x193   : > { %7445 = vmatmul.mubr.bf16.gmra.mxu0 %v10876_v22  ;;  %7500 = vmatprep.mubr.bf16.mxu1 %v7877_v51  ;;  %v9250_v29 = vld [vmem:[#allocation2 + $0x2c] sm:$0x1]  ;;  %v3274_v39 = vrot.slane %v3273_v49, 4  ;;  %v3293_v44 = vrot.slane %v3291_v20, 4  ;;  %v3296_v23 = vrot.slane %v3294_v48, 5  ;;  %v6848_v52 = vrot.slane %v3974_v26, 9 }
 0x194   : > { %7448 = vmatprep.mubr.bf16.mxu0 %v10877_v7  ;;  %7525 = vmatpush3.bf16.msra.mxu0 %v7879_v61  ;;  %v3975_v51 = vld [vmem:[#allocation2 + $0x30] sm:$0xe]  ;;  %v3284_v46 = vrot.slane %v3283_v18, 4  ;;  %v3302_v60 = vrot.slane %v3300_v0, 5  ;;  %v3306_v5 = vrot.slane %v3304_v3, 4  ;;  %v3312_v38 = vrot.slane %v3310_v33, 5 }
 0x195   : > { %7526 = vmatprep.subr.bf16.mxu0 %v7883_v2  ;;  %7577 = vmatpush3.bf16.msra.mxu1 %v7888_v53  ;;  %v9258_v12 = vld [vmem:[%s10834_s3 + $0x1f8] sm:$0xff]   ;;  %v3279_v13 = vsel %vm8278_vm2, %v3274_v39, %v3278_v6  ;;  %v3297_v16 = vor.u32 %v3296_v23, %v3293_v44  ;;  %v4052_v61 = vrot.slane %v9248_v14, 5  ;;  %v4055_v1 = vrot.slane %v9250_v29, 5  ;;  %v3228_v26 = vld [vmem:[#allocation2 + $0x34] sm:$0xf]  ;;  %v7881_v62 = vld [vmem:[#allocation2 + $0x84] sm:$0xff]  }
 0x196   : > { %7578 = vmatprep.subr.bf16.mxu1 %v7892_v50  ;;  %v9264_v53 = vld [vmem:[#allocation2 + $0x38] sm:$0x1]  ;;  %v3289_v49 = vsel %vm8278_vm2, %v3284_v46, %v3288_v58  ;;  %v3307_v20 = vor.u32 %v3306_v5, %v3302_v60  ;;  %v6849_v48 = vrot.slane %v3975_v51, 9  ;;  %v4059_v22 = vrot.slane %v3228_v26, 5  ;;  %v3224_v18 = vld [vmem:[#allocation2 + $0x24] sm:$0xf] }
 0x197   : > { %v6879_v6 = vcombine.low %v9221_v24, %v9227_v21  ;;  %v3298_v0 = vrot.slane %v3297_v16, 4  ;;  %v9272_v3 = vsel %vm8906_vm4, %v6848_v52, %v4052_v61  ;;  %v4054_v33 = vrot.slane %v4052_v61, 4  ;;  %v7891_v7 = vld [vmem:[%s10834_s3 + $0x100] sm:$0xff]   ;;  %v3227_v5 = vld [vmem:[#allocation2 + $0x30] sm:$0xf]  ;;  %v9311_v16 = vld [vmem:[%s10834_s3 + $0x1b8] sm:$0xff]  }
 0x198   : > { %7527 = vmatpush3.bf16.msra.mxu0 %v7883_v2  ;;  %v9277_v58 = vcombine.low %v3279_v13, %v3289_v49  ;;  %v3308_v39 = vrot.slane %v3307_v20, 4  ;;  %v4061_v44 = vrot.slane %v4059_v22, 4  ;;  %v4062_v2 = vrot.slane %v9264_v53, 5  ;;  %v3246_v24 = vld [vmem:[#allocation2 + $0x7c] sm:$0xf] }
 0x199   : > { %7528 = vmatprep.subr.bf16.mxu0 %v7887_v4  ;;  %7579 = vmatpush3.bf16.msra.mxu1 %v7892_v50  ;;  %v3303_v23 = vsel %vm8278_vm2, %v3298_v0, %v3302_v60  ;;  %v9285_v52 = vsel %vm8906_vm4, %v4054_v33, %v4055_v1  ;;  %v3315_v51 = vshrl.u32 %v3224_v18, 16  ;;  %v3318_v46 = vshll.u32 %v3224_v18, 16 }
 0x19a   : > { %7501 = vmatmul.mubr.bf16.gmra.mxu1 %v7878_v19  ;;  %7660 = vmatprep.subr.bf16.mxu1 %v9258_v12  ;;  %v3313_v50 = vsel %vm8278_vm2, %v3308_v39, %v3312_v38  ;;  %v6880_v19 = vcombine.low %v9272_v3, %v9285_v52  ;;  %v9296_v60 = vsel %vm8906_vm4, %v6849_v48, %v4059_v22  ;;  %v3324_v13 = vshll.u32 %v9248_v14, 16  ;;  %v3976_v48 = vld [vmem:[#allocation2 + $0x3c] sm:$0xe] }
 0x19b   : > { %7449 = vmatmul.mubr.bf16.gmra.mxu0 %v6749_v36  ;;  %7504 = vmatprep.mubr.bf16.mxu1 %v7881_v62  ;;  %v9302_v9 = vcombine.low %v3303_v23, %v3313_v50  ;;  %v9306_v15 = vsel %vm8906_vm4, %v4061_v44, %v4062_v2  ;;  %v3317_v36 = vrot.slane %v3315_v51, 4  ;;  %v3320_v38 = vrot.slane %v3318_v46, 5  ;;  %v7885_v22 = vld [vmem:[#allocation2 + $0x9c] sm:$0xff]   ;;  %v9318_v44 = vld [vmem:[#allocation2 + $0x44] sm:$0x1] }
 0x19c   : > { %7452 = vmatprep.mubr.bf16.mxu0 %v6750_v35  ;;  %7529 = vmatpush3.bf16.msra.mxu0 %v7887_v4  ;;  %v3326_v61 = vrot.slane %v3324_v13, 5  ;;  %v3328_v1 = vshrl.u32 %v9248_v14, 16  ;;  %v3334_v32 = vshll.u32 %v9250_v29, 16  ;;  %v3339_v47 = vshrl.u32 %v3227_v5, 16  ;;  %v7882_v35 = vld [vmem:[#allocation2 + $0x90] sm:$0xff]  }
 0x19d   : > { %7530 = vmatprep.subr.bf16.mxu0 %v7891_v7  ;;  %v3321_v4 = vor.u32 %v3320_v38, %v3317_v36  ;;  %v3342_v62 = vshll.u32 %v3227_v5, 16  ;;  %v3348_v49 = vshll.u32 %v3228_v26, 16  ;;  %v3352_v20 = vshrl.u32 %v3228_v26, 16  ;;  %v3231_v51 = vld [vmem:[#allocation2 + $0x40] sm:$0xf] }
 0x19e   : > { %v6881_v18 = vcombine.low %v9296_v60, %v9306_v15  ;;  %v3330_v0 = vrot.slane %v3328_v1, 4  ;;  %v3341_v33 = vrot.slane %v3339_v47, 4  ;;  %v3358_v39 = vshll.u32 %v9264_v53, 16  ;;  %v3977_v13 = vld [vmem:[#allocation2 + $0x48] sm:$0xe] }
 0x19f   : > { %v3322_v14 = vrot.slane %v3321_v4, 4  ;;  %v3344_v29 = vrot.slane %v3342_v62, 5  ;;  %v3350_v2 = vrot.slane %v3348_v49, 5  ;;  %v3354_v23 = vrot.slane %v3352_v20, 4  ;;  %v3230_v47 = vld [vmem:[#allocation2 + $0x3c] sm:$0xf] }
 0x1a0   : > { %7531 = vmatpush3.bf16.msra.mxu0 %v7891_v7  ;;  %v3331_v26 = vor.u32 %v3330_v0, %v3326_v61  ;;  %v3336_v46 = vrot.slane %v3334_v32, 5  ;;  %v6850_v5 = vrot.slane %v3976_v48, 9  ;;  %v4066_v50 = vrot.slane %v3231_v51, 5  ;;  %v3234_v62 = vld [vmem:[#allocation2 + $0x4c] sm:$0xf] }
 0x1a1   : > { %7612 = vmatprep.subr.bf16.mxu0 %v9311_v16  ;;  %v3345_v36 = vor.u32 %v3344_v29, %v3341_v33  ;;  %v3355_v38 = vor.u32 %v3354_v23, %v3350_v2  ;;  %v3360_v1 = vrot.slane %v3358_v39, 5  ;;  %v4069_v53 = vrot.slane %v9318_v44, 5  ;;  %v3235_v49 = vld [vmem:[#allocation2 + $0x50] sm:$0x1]  ;;  %v7886_v39 = vld [vmem:[#allocation2 + $0xa8] sm:$0xff]  }
 0x1a2   : > { %7505 = vmatmul.mubr.bf16.gmra.mxu1 %v7882_v35  ;;  %v3327_v7 = vsel %vm8278_vm2, %v3322_v14, %v3326_v61  ;;  %v3332_v4 = vrot.slane %v3331_v26, 4  ;;  %v9329_v32 = vsel %vm8906_vm4, %v6850_v5, %v4066_v50  ;;  %v4068_v35 = vrot.slane %v4066_v50, 4  ;;  %v3233_v23 = vld [vmem:[#allocation2 + $0x48] sm:$0xf]  ;;  %v7889_v26 = vld [vmem:[#allocation2 + $0xb4] sm:$0xff]  }
 0x1a3   : > { %7453 = vmatmul.mubr.bf16.gmra.mxu0 %v6751_v43  ;;  %7508 = vmatprep.mubr.bf16.mxu1 %v7885_v22  ;;  %v10878_v20 = vcombine.low %v9078_v41, %v9091_v45  ;;  %v3346_v48 = vrot.slane %v3345_v36, 4  ;;  %v3356_v0 = vrot.slane %v3355_v38, 4  ;;  %v6851_v25 = vrot.slane %v3977_v13, 9  ;;  %v9485_v15 = vld [vmem:[#allocation2 + $0x8c] sm:$0x1] }
 0x1a4   : > { %v4073_v56 = vrot.slane %v3234_v62, 5  ;;  %v3337_v43 = vsel %vm8278_vm2, %v3332_v4, %v3336_v46  ;;  %v9338_v61 = vsel %vm8906_vm4, %v4068_v35, %v4069_v53  ;;  %v3363_v22 = vshrl.u32 %v3230_v47, 16 }
 0x1a5   : > { %7456 = vmatprep.mubr.bf16.mxu0 %v10878_v20  ;;  %v3366_v33 = vshll.u32 %v3230_v47, 16  ;;  %v9340_v14 = vcombine.low %v3327_v7, %v3337_v43  ;;  %v3351_v41 = vsel %vm8278_vm2, %v3346_v48, %v3350_v2  ;;  %v3361_v45 = vsel %vm8278_vm2, %v3356_v0, %v3360_v1  ;;  %v3238_v43 = vld [vmem:[#allocation2 + $0x5c] sm:$0x1] }
 0x1a6   : > { %v4076_v29 = vrot.slane %v3235_v49, 5  ;;  %v9346_v5 = vcombine.low %v3351_v41, %v3361_v45  ;;  %v6882_v46 = vcombine.low %v9329_v32, %v9338_v61  ;;  %v4075_v50 = vrot.slane %v4073_v56, 4  ;;  %v3237_v41 = vld [vmem:[#allocation2 + $0x58] sm:$0xf]  ;;  %v7897_v32 = vld [vmem:[%s10834_s3 + $0x1a8] sm:$0xff]  }
 0x1a7   : > { %v3365_v13 = vrot.slane %v3363_v22, 4  ;;  %v3368_v36 = vrot.slane %v3366_v33, 5  ;;  %v3372_v38 = vshll.u32 %v3231_v51, 16  ;;  %v3376_v53 = vshrl.u32 %v3231_v51, 16  ;;  %v3978_v22 = vld [vmem:[#allocation2 + $0x54] sm:$0xe] }
 0x1a8   : > { %v3382_v47 = vshll.u32 %v9318_v44, 16  ;;  %v9353_v2 = vsel %vm8906_vm4, %v6851_v25, %v4073_v56  ;;  %v3387_v1 = vshrl.u32 %v3233_v23, 16  ;;  %v3390_v7 = vshll.u32 %v3233_v23, 16 }
 0x1a9   : > { %v3396_v4 = vshll.u32 %v3234_v62, 16  ;;  %v9357_v35 = vsel %vm8906_vm4, %v4075_v50, %v4076_v29  ;;  %v3369_v20 = vor.u32 %v3368_v36, %v3365_v13  ;;  %v3374_v48 = vrot.slane %v3372_v38, 5  ;;  %v9365_v13 = vld [vmem:[#allocation2 + $0x68] sm:$0x1] }
 0x1aa   : > { %7509 = vmatmul.mubr.bf16.gmra.mxu1 %v7886_v39  ;;  %v3378_v0 = vrot.slane %v3376_v53, 4  ;;  %v10879_v44 = vcombine.low %v9082_v11, %v9095_v55  ;;  %v3384_v51 = vrot.slane %v3382_v47, 5  ;;  %v3389_v25 = vrot.slane %v3387_v1, 4  ;;  %v7890_v53 = vld [vmem:[#allocation2 + $0xc0] sm:$0xff]  }
 0x1ab   : > { %7512 = vmatprep.mubr.bf16.mxu1 %v7889_v26  ;;  %v3392_v56 = vrot.slane %v3390_v7, 5  ;;  %v3398_v33 = vrot.slane %v3396_v4, 5  ;;  %v10880_v39 = vcombine.low %v9102_v37, %v9121_v34  ;;  %v3370_v45 = vrot.slane %v3369_v20, 4  ;;  %v3979_v26 = vld [vmem:[#allocation2 + $0x60] sm:$0xe] }
 0x1ac   : > { %7457 = vmatmul.mubr.bf16.gmra.mxu0 %v10879_v44  ;;  %v3379_v29 = vor.u32 %v3378_v0, %v3374_v48  ;;  %v3400_v23 = vshrl.u32 %v3234_v62, 16  ;;  %v3406_v50 = vshll.u32 %v3235_v49, 16  ;;  %v6852_v38 = vrot.slane %v3978_v22, 9  ;;  %v3236_v7 = vld [vmem:[#allocation2 + $0x54] sm:$0xf] }
 0x1ad   : > { %7460 = vmatprep.mubr.bf16.mxu0 %v10880_v39  ;;  %v3393_v36 = vor.u32 %v3392_v56, %v3389_v25  ;;  %v4080_v11 = vrot.slane %v3237_v41, 5  ;;  %v4083_v55 = vrot.slane %v3238_v43, 5  ;;  %v6883_v47 = vcombine.low %v9353_v2, %v9357_v35  ;;  %v3240_v0 = vld [vmem:[#allocation2 + $0x64] sm:$0xf] }
 0x1ae   : > { %v3375_v1 = vsel %vm8278_vm2, %v3370_v45, %v3374_v48  ;;  %v3380_v37 = vrot.slane %v3379_v29, 4  ;;  %v3402_v34 = vrot.slane %v3400_v23, 4  ;;  %v3408_v62 = vrot.slane %v3406_v50, 5  ;;  %v3239_v23 = vld [vmem:[#allocation2 + $0x60] sm:$0xf] }
 0x1af   : > { %v3394_v4 = vrot.slane %v3393_v36, 4  ;;  %v9373_v49 = vsel %vm8906_vm4, %v6852_v38, %v4080_v11  ;;  %v4082_v20 = vrot.slane %v4080_v11, 4  ;;  %v6853_v25 = vrot.slane %v3979_v26, 9 }
 0x1b0   : > { %v3385_v22 = vsel %vm8278_vm2, %v3380_v37, %v3384_v51  ;;  %v3403_v44 = vor.u32 %v3402_v34, %v3398_v33  ;;  %v4087_v56 = vrot.slane %v3240_v0, 5  ;;  %v4090_v45 = vrot.slane %v9365_v13, 5 }
 0x1b1   : > { %v9377_v39 = vcombine.low %v3375_v1, %v3385_v22  ;;  %v9381_v48 = vsel %vm8906_vm4, %v4082_v20, %v4083_v55  ;;  %v3411_v29 = vshrl.u32 %v3236_v7, 16  ;;  %v3399_v50 = vsel %vm8278_vm2, %v3394_v4, %v3398_v33 }
 0x1b2   : > { %7513 = vmatmul.mubr.bf16.gmra.mxu1 %v7890_v53  ;;  %v3404_v36 = vrot.slane %v3403_v44, 4  ;;  %v6884_v51 = vcombine.low %v9373_v49, %v9381_v48  ;;  %v4089_v38 = vrot.slane %v4087_v56, 4  ;;  %v10881_v11 = vcombine.low %v9110_v31, %v9132_v57 }
 0x1b3   : > { %v10882_v55 = vcombine.low %v9183_v30, %v9200_v54  ;;  %v3413_v26 = vrot.slane %v3411_v29, 4  ;;  %v3414_v1 = vshll.u32 %v3236_v7, 16  ;;  %v3420_v37 = vshll.u32 %v3237_v41, 16  ;;  %v3980_v7 = vld [vmem:[#allocation2 + $0x6c] sm:$0xe] }
 0x1b4   : > { %7461 = vmatmul.mubr.bf16.gmra.mxu0 %v10881_v11  ;;  %v3424_v53 = vshrl.u32 %v3237_v41, 16  ;;  %v10883_v33 = vcombine.low %v9149_v63, %v9160_v59  ;;  %v3409_v34 = vsel %vm8278_vm2, %v3404_v36, %v3408_v62  ;;  %v9401_v4 = vsel %vm8906_vm4, %v6853_v25, %v4087_v56  ;;  %v9409_v62 = vld [vmem:[#allocation2 + $0x70] sm:$0xf] }
 0x1b5   : > { %7580 = vmatprep.mubr.bf16.mxu1 %v10882_v55  ;;  %v3430_v31 = vshll.u32 %v3238_v43, 16  ;;  %v3435_v57 = vshrl.u32 %v3239_v23, 16  ;;  %v9403_v20 = vcombine.low %v3399_v50, %v3409_v34  ;;  %v9407_v30 = vsel %vm8906_vm4, %v4089_v38, %v4090_v45  ;;  %v3244_v50 = vld [vmem:[#allocation2 + $0x74] sm:$0x1]  ;;  %v9413_v38 = vld [vmem:[#allocation2 + $0x80] sm:$0x1] }
 0x1b6   : > { %7464 = vmatprep.mubr.bf16.mxu0 %v10883_v33  ;;  %v3416_v54 = vrot.slane %v3414_v1, 5  ;;  %v3422_v41 = vrot.slane %v3420_v37, 5  ;;  %v3426_v63 = vrot.slane %v3424_v53, 4  ;;  %v3438_v44 = vshll.u32 %v3239_v23, 16  ;;  %v7896_v1 = vld [vmem:[%s10834_s3 + $0x1f0] sm:$0xff]  }
 0x1b7   : > { %v3432_v59 = vrot.slane %v3430_v31, 5  ;;  %v3437_v22 = vrot.slane %v3435_v57, 4  ;;  %v3444_v25 = vshll.u32 %v3240_v0, 16  ;;  %v3448_v56 = vshrl.u32 %v3240_v0, 16  ;;  %v3981_v53 = vld [vmem:[#allocation2 + $0x78] sm:$0xe] }
 0x1b8   : > { %v3417_v29 = vor.u32 %v3416_v54, %v3413_v26  ;;  %v3454_v43 = vshll.u32 %v9365_v13, 16  ;;  %v3427_v36 = vor.u32 %v3426_v63, %v3422_v41  ;;  %v3440_v11 = vrot.slane %v3438_v44, 5  ;;  %v3242_v57 = vld [vmem:[#allocation2 + $0x6c] sm:$0xf] }
 0x1b9   : > { %v6854_v55 = vrot.slane %v3980_v7, 9  ;;  %v4094_v45 = vrot.slane %v9409_v62, 5  ;;  %v6885_v23 = vcombine.low %v9401_v4, %v9407_v30  ;;  %v3446_v37 = vrot.slane %v3444_v25, 5 }
 0x1ba   : > { %v3418_v26 = vrot.slane %v3417_v29, 4  ;;  %v3450_v0 = vrot.slane %v3448_v56, 4  ;;  %7581 = vmatmul.mubr.bf16.vlgmr.msra.gmra.mxu1 %v6879_v6  ;;  %v3428_v13 = vrot.slane %v3427_v36, 4  ;;  %v3441_v33 = vor.u32 %v3440_v11, %v3437_v22  ;;  %v3245_v56 = vld [vmem:[#allocation2 + $0x78] sm:$0xf] }
 0x1bb   : > { %v3456_v34 = vrot.slane %v3454_v43, 5  ;;  %v4096_v31 = vrot.slane %v4094_v45, 4  ;;  %v10884_v54 = vcombine.low %v9176_v28, %v9190_v17  ;;  %7661 = vmatpush3.bf16.msra.mxu1 %v9258_v12  ;;  %v9431_v44 = vsel %vm8906_vm4, %v6854_v55, %v4094_v45  ;;  %7584 = vmatprep.mubr.bf16.mxu1 %v6880_v19  ;;  %v7898_v28 = vld [vmem:[%s10834_s3 + $0x1e8] sm:$0xff]   ;;  %v7895_v45 = vld [vmem:[%s10834_s3 + $0x1b0] sm:$0xff]  }
 0x1bc   : > { %v3423_v7 = vsel %vm8278_vm2, %v3418_v26, %v3422_v41  ;;  %v3451_v63 = vor.u32 %v3450_v0, %v3446_v37  ;;  %v4097_v21 = vrot.slane %v3244_v50, 5  ;;  %v3433_v17 = vsel %vm8278_vm2, %v3428_v13, %v3432_v59  ;;  %7662 = vmatprep.subr.bf16.mxu1 %v7896_v1 }
 0x1bd   : > { %7465 = vmatmul.mubr.bf16.gmra.mxu0 %v10884_v54  ;;  %v3442_v12 = vrot.slane %v3441_v33, 4  ;;  %v6855_v6 = vrot.slane %v3981_v53, 9  ;;  %v4101_v41 = vrot.slane %v3246_v24, 5  ;;  %v3459_v3 = vshrl.u32 %v3242_v57, 16  ;;  %v7900_v53 = vld [vmem:[%s10834_s3 + $0x1e0] sm:$0xff]  }
 0x1be   : > { %7532 = vmatprep.mubr.bf16.mxu0 %v9277_v58  ;;  %v3452_v22 = vrot.slane %v3451_v63, 4  ;;  %v9444_v29 = vsel %vm8906_vm4, %v4096_v31, %v4097_v21  ;;  %v4104_v58 = vrot.slane %v9413_v38, 5  ;;  %v9447_v52 = vcombine.low %v3423_v7, %v3433_v17  ;;  %v9476_v63 = vld [vmem:[#allocation2 + $0x88] sm:$0xf]  ;;  %v9478_v21 = vpop.f32.mrf.mxu1 }
 0x1bf   : > { %v3447_v19 = vsel %vm8278_vm2, %v3442_v12, %v3446_v37  ;;  %v6886_v59 = vcombine.low %v9431_v44, %v9444_v29  ;;  %v4103_v25 = vrot.slane %v4101_v41, 4  ;;  %7663 = vmatpush3.bf16.msra.mxu1 %v7896_v1  ;;  %v3461_v36 = vrot.slane %v3459_v3, 4  ;;  %v9491_v3 = vld [vmem:[#allocation2 + $0x98] sm:$0x1] }
 0x1c0   : > { %v3457_v43 = vsel %vm8278_vm2, %v3452_v22, %v3456_v34  ;;  %v3462_v11 = vshll.u32 %v3242_v57, 16  ;;  %v3468_v55 = vshll.u32 %v9409_v62, 16  ;;  %7664 = vmatprep.subr.bf16.mxu1 %v7898_v28  ;;  %v9463_v37 = vsel %vm8906_vm4, %v6855_v6, %v4101_v41  ;;  %v3982_v57 = vld [vmem:[#allocation2 + $0x84] sm:$0xe] }
 0x1c1   : > { %v9459_v26 = vcombine.low %v3447_v19, %v3457_v43  ;;  %v3472_v1 = vshrl.u32 %v9409_v62, 16  ;;  %v3478_v0 = vshll.u32 %v3244_v50, 16  ;;  %v9471_v13 = vsel %vm8906_vm4, %v4103_v25, %v4104_v58 }
 0x1c2   : > { %v3464_v33 = vrot.slane %v3462_v11, 5  ;;  %v3470_v34 = vrot.slane %v3468_v55, 5  ;;  %v3483_v31 = vshrl.u32 %v3245_v56, 16  ;;  %7585 = vmatmul.mubr.bf16.gmra.mxu1 %v6881_v18  ;;  %v3486_v62 = vshll.u32 %v3245_v56, 16  ;;  %v9487_v18 = vpop.f32.mrf.mxu0  ;;  %v7902_v56 = vld [vmem:[%s10834_s3 + $0x1d8] sm:$0xff]  }
 0x1c3   : > { %v3474_v54 = vrot.slane %v3472_v1, 4  ;;  %v3480_v7 = vrot.slane %v3478_v0, 5  ;;  %v3492_v50 = vshll.u32 %v3246_v24, 16  ;;  %7588 = vmatprep.mubr.bf16.mxu1 %v6882_v46  ;;  %v3496_v6 = vshrl.u32 %v3246_v24, 16  ;;  %7665 = vmatpush3.bf16.msra.mxu1 %v7898_v28  ;;  %v9503_v28 = vpop.f32.mrf.mxu1 }
 0x1c4   : > { %v3465_v17 = vor.u32 %v3464_v33, %v3461_v36  ;;  %v3485_v12 = vrot.slane %v3483_v31, 4  ;;  %v3502_v60 = vshll.u32 %v9413_v38, 16  ;;  %v3488_v22 = vrot.slane %v3486_v62, 5  ;;  %7666 = vmatprep.subr.bf16.mxu1 %v7900_v53  ;;  %v3248_v36 = vld [vmem:[#allocation2 + $0x84] sm:$0xf]  ;;  %v9513_v31 = vpop.f32.mrf.mxu0 }
 0x1c5   : > { %7533 = vmatmul.mubr.bf16.vlgmr.msra.gmra.mxu0 %v9302_v9  ;;  %v3475_v41 = vor.u32 %v3474_v54, %v3470_v34  ;;  %v3494_v9 = vrot.slane %v3492_v50, 5  ;;  %v6856_v58 = vrot.slane %v3982_v57, 9  ;;  %v6887_v61 = vcombine.low %v9463_v37, %v9471_v13  ;;  %v9511_v33 = vld [vmem:[#allocation2 + $0x94] sm:$0xf] }
 0x1c6   : > { %7613 = vmatpush3.bf16.msra.mxu0 %v9311_v16  ;;  %7536 = vmatprep.mubr.bf16.mxu0 %v9340_v14  ;;  %v3466_v46 = vrot.slane %v3465_v17, 4  ;;  %v3498_v38 = vrot.slane %v3496_v6, 4  ;;  %v4108_v16 = vrot.slane %v9476_v63, 5  ;;  %v3983_v14 = vld [vmem:[#allocation2 + $0x90] sm:$0xe]  ;;  %v3489_v19 = vor.u32 %v3488_v22, %v3485_v12 }
 0x1c7   : > { %7614 = vmatprep.subr.bf16.mxu0 %v7895_v45  ;;  %v3476_v24 = vrot.slane %v3475_v41, 4  ;;  %v3504_v25 = vrot.slane %v3502_v60, 5  ;;  %v4111_v43 = vrot.slane %v9485_v15, 5  ;;  %v6857_v62 = vrot.slane %v3983_v14, 9  ;;  %7667 = vmatpush3.bf16.msra.mxu1 %v7900_v53  ;;  %v3251_v22 = vld [vmem:[#allocation2 + $0x90] sm:$0xf] }
 0x1c8   : > { %v3471_v11 = vsel %vm8278_vm2, %v3466_v46, %v3470_v34  ;;  %v3499_v55 = vor.u32 %v3498_v38, %v3494_v9  ;;  %v9509_v1 = vsel %vm8906_vm4, %v6856_v58, %v4108_v16  ;;  %v4110_v0 = vrot.slane %v4108_v16, 4  ;;  %v7899_v34 = vld [vmem:[%s10834_s3 + $0x1a0] sm:$0xff]   ;;  %7668 = vmatprep.subr.bf16.mxu1 %v7902_v56  ;;  %v7904_v58 = vld [vmem:[%s10834_s3 + $0x1d0] sm:$0xff]   ;;  %v9538_v46 = vpop.f32.mrf.mxu1  ;;  %v9547_v38 = vpop.f32.mrf.mxu0 }
 0x1c9   : > { %v3481_v57 = vsel %vm8278_vm2, %v3476_v24, %v3480_v7  ;;  %v3490_v54 = vrot.slane %v3489_v19, 4  ;;  %v4115_v50 = vrot.slane %v9511_v33, 5  ;;  %v3507_v6 = vshrl.u32 %v3248_v36, 16  ;;  %v3984_v19 = vld [vmem:[#allocation2 + $0x9c] sm:$0xe] }
 0x1ca   : > { %7615 = vmatpush3.bf16.msra.mxu0 %v7895_v45  ;;  %v3500_v17 = vrot.slane %v3499_v55, 4  ;;  %v9523_v12 = vsel %vm8906_vm4, %v4110_v0, %v4111_v43  ;;  %v4118_v45 = vrot.slane %v9491_v3, 5  ;;  %7589 = vmatmul.mubr.bf16.gmra.mxu1 %v6883_v47  ;;  %v9529_v7 = vcombine.low %v3471_v11, %v3481_v57  ;;  %v9571_v11 = vpop.f32.mrf.mxu1 }
 0x1cb   : > { %7616 = vmatprep.subr.bf16.mxu0 %v7897_v32  ;;  %v3495_v60 = vsel %vm8278_vm2, %v3490_v54, %v3494_v9  ;;  %v6888_v53 = vcombine.low %v9509_v1, %v9523_v12  ;;  %v4117_v41 = vrot.slane %v4115_v50, 4  ;;  %7592 = vmatprep.mubr.bf16.mxu1 %v6884_v51  ;;  %v3509_v35 = vrot.slane %v3507_v6, 4  ;;  %v7901_v51 = vld [vmem:[%s10834_s3 + $0x198] sm:$0xff]   ;;  %10885 = vst [vmem:[#allocation6_spill] sm:$0xff] %v9571_v11  ;;  %v9964_v11 = vld [vmem:[#allocation2 + $0x94] sm:$0xf] }
 0x1cc   : > { %v3505_v2 = vsel %vm8278_vm2, %v3500_v17, %v3504_v25  ;;  %v3510_v47 = vshll.u32 %v3248_v36, 16  ;;  %v3516_v9 = vshll.u32 %v9476_v63, 16  ;;  %v3520_v49 = vshrl.u32 %v9476_v63, 16  ;;  %7669 = vmatpush3.bf16.msra.mxu1 %v7902_v56  ;;  %v7906_v56 = vld [vmem:[%s10834_s3 + $0x1c8] sm:$0xff]   ;;  %v9678_v1 = vld [vmem:[%s10834_s3 + $0x238] sm:$0xff]  }
 0x1cd   : > { %7537 = vmatmul.mubr.bf16.gmra.mxu0 %v9346_v5  ;;  %v9550_v16 = vcombine.low %v3495_v60, %v3505_v2  ;;  %v9554_v5 = vsel %vm8906_vm4, %v6857_v62, %v4115_v50  ;;  %v3526_v48 = vshll.u32 %v9485_v15, 16  ;;  %v3531_v24 = vshrl.u32 %v3251_v22, 16  ;;  %7670 = vmatprep.subr.bf16.mxu1 %v7904_v58  ;;  %v9566_v15 = vld [vmem:[#allocation2 + $0xa0] sm:$0xf]  ;;  %v9575_v62 = vld [vmem:[#allocation2 + $0xa4] sm:$0x1]  ;;  %v9577_v50 = vpop.f32.mrf.mxu0 }
 0x1ce   : > { %7540 = vmatprep.mubr.bf16.mxu0 %v9377_v39  ;;  %7617 = vmatpush3.bf16.msra.mxu0 %v7897_v32  ;;  %v9563_v39 = vsel %vm8906_vm4, %v4117_v41, %v4118_v45  ;;  %v3512_v32 = vrot.slane %v3510_v47, 5  ;;  %v3518_v14 = vrot.slane %v3516_v9, 5  ;;  %v3522_v25 = vrot.slane %v3520_v49, 4  ;;  %10886 = vst [vmem:[#allocation7_spill] sm:$0xff] %v9577_v50  ;;  %v9579_v41 = vld [vmem:[#allocation2 + $0xb0] sm:$0x1] }
 0x1cf   : > { %7618 = vmatprep.subr.bf16.mxu0 %v7899_v34  ;;  %v3528_v43 = vrot.slane %v3526_v48, 5  ;;  %v3534_v36 = vshll.u32 %v3251_v22, 16  ;;  %v3540_v63 = vshll.u32 %v9511_v33, 16  ;;  %v3533_v0 = vrot.slane %v3531_v24, 4  ;;  %v7908_v24 = vld [vmem:[%s10834_s3 + $0x1c0] sm:$0xff]  }
 0x1d0   : > { %v3513_v55 = vor.u32 %v3512_v32, %v3509_v35  ;;  %v3544_v57 = vshrl.u32 %v9511_v33, 16  ;;  %v3550_v54 = vshll.u32 %v9491_v3, 16  ;;  %v3523_v17 = vor.u32 %v3522_v25, %v3518_v14  ;;  %v7903_v3 = vld [vmem:[%s10834_s3 + $0x190] sm:$0xff]   ;;  %7671 = vmatpush3.bf16.msra.mxu1 %v7904_v58  ;;  %v3254_v32 = vld [vmem:[#allocation2 + $0x9c] sm:$0xf] }
 0x1d1   : > { %v3536_v45 = vrot.slane %v3534_v36, 5  ;;  %v3542_v6 = vrot.slane %v3540_v63, 5  ;;  %v6858_v60 = vrot.slane %v3984_v19, 9  ;;  %v6889_v22 = vcombine.low %v9554_v5, %v9563_v39  ;;  %7672 = vmatprep.subr.bf16.mxu1 %v7906_v56  ;;  %v9594_v19 = vpop.f32.mrf.mxu1  ;;  %v9606_v25 = vld [vmem:[#allocation2 + $0xac] sm:$0xf]  ;;  %v9608_v36 = vpop.f32.mrf.mxu0 }
 0x1d2   : > { %7619 = vmatpush3.bf16.msra.mxu0 %v7899_v34  ;;  %v3514_v2 = vrot.slane %v3513_v55, 4  ;;  %v3546_v33 = vrot.slane %v3544_v57, 4  ;;  %v4122_v35 = vrot.slane %v9566_v15, 5  ;;  %v3985_v34 = vld [vmem:[#allocation2 + $0xa8] sm:$0xe]  ;;  %7593 = vmatmul.mubr.bf16.gmra.mxu1 %v6885_v23  ;;  %v3524_v47 = vrot.slane %v3523_v17, 4 }
 0x1d3   : > { %7620 = vmatprep.subr.bf16.mxu0 %v7901_v51  ;;  %v3537_v9 = vor.u32 %v3536_v45, %v3533_v0  ;;  %v3552_v49 = vrot.slane %v3550_v54, 5  ;;  %v4125_v48 = vrot.slane %v9575_v62, 5  ;;  %10887 = vst [vmem:[#allocation3_spill] sm:$0xff] %v9594_v19  ;;  %7596 = vmatprep.mubr.bf16.mxu1 %v6886_v59  ;;  %10888 = vst [vmem:[#allocation5_spill] sm:$0xff] %v9608_v36  ;;  %v6859_v29 = vrot.slane %v3985_v34, 9  ;;  %v9631_v45 = vld [vmem:[%s10837_s6 + $0x38] sm:$0xff]  }
 0x1d4   : > { %v3519_v4 = vsel %vm8278_vm2, %v3514_v2, %v3518_v14  ;;  %v3547_v30 = vor.u32 %v3546_v33, %v3542_v6  ;;  %v9604_v23 = vsel %vm8906_vm4, %v6858_v60, %v4122_v35  ;;  %v4124_v58 = vrot.slane %v4122_v35, 4  ;;  %7673 = vmatpush3.bf16.msra.mxu1 %v7906_v56  ;;  %v3257_v17 = vld [vmem:[#allocation2 + $0xa8] sm:$0xf]  ;;  %v9633_v60 = vpop.f32.mrf.mxu1  ;;  %v9638_v35 = vpop.f32.mrf.mxu0 }
 0x1d5   : > { %7541 = vmatmul.mubr.bf16.gmra.mxu0 %v9403_v20  ;;  %v3529_v20 = vsel %vm8278_vm2, %v3524_v47, %v3528_v43  ;;  %v3538_v44 = vrot.slane %v3537_v9, 4  ;;  %v4129_v59 = vrot.slane %v9606_v25, 5  ;;  %v4132_v55 = vrot.slane %v9579_v41, 5  ;;  %7674 = vmatprep.subr.bf16.mxu1 %v7908_v24  ;;  %10889 = vst [vmem:[#allocation4_spill] sm:$0xff] %v9633_v60  ;;  %10890 = vst [vmem:[#allocation8_spill] sm:$0xff] %v9638_v35 }
 0x1d6   : > { %7544 = vmatprep.mubr.bf16.mxu0 %v9447_v52  ;;  %7621 = vmatpush3.bf16.msra.mxu0 %v7901_v51  ;;  %v3548_v14 = vrot.slane %v3547_v30, 4  ;;  %v9616_v63 = vsel %vm8906_vm4, %v4124_v58, %v4125_v48  ;;  %v3555_v0 = vshrl.u32 %v3254_v32, 16  ;;  %v7905_v52 = vld [vmem:[%s10834_s3 + $0x188] sm:$0xff]   ;;  %v9622_v51 = vcombine.low %v3519_v4, %v3529_v20  ;;  %v3986_v58 = vld [vmem:[#allocation2 + $0xb4] sm:$0xe] }
 0x1d7   : > { %7622 = vmatprep.subr.bf16.mxu0 %v7903_v3  ;;  %v3543_v43 = vsel %vm8278_vm2, %v3538_v44, %v3542_v6  ;;  %v6890_v57 = vcombine.low %v9604_v23, %v9616_v63  ;;  %v4131_v54 = vrot.slane %v4129_v59, 4  ;;  %v3558_v33 = vshll.u32 %v3254_v32, 16  ;;  %v9887_v60 = vld [vmem:[#allocation2 + $0x74] sm:$0x1] }
 0x1d8   : > { %v3553_v56 = vsel %vm8278_vm2, %v3548_v14, %v3552_v49  ;;  %v3557_v2 = vrot.slane %v3555_v0, 4  ;;  %v3564_v6 = vshll.u32 %v9566_v15, 16  ;;  %v9644_v47 = vsel %vm8906_vm4, %v6859_v29, %v4129_v59  ;;  %7675 = vmatpush3.bf16.msra.mxu1 %v7908_v24  ;;  %v9659_v29 = vld [vmem:[#allocation2 + $0xbc] sm:$0x1]  ;;  %v9662_v59 = vpop.f32.mrf.mxu1  ;;  %v1298_v14 = vld [vmem:[#allocation2 + $0xc8] sm:$0x1] }
 0x1d9   : > { %v9640_v34 = vcombine.low %v3543_v43, %v3553_v56  ;;  %v3568_v9 = vshrl.u32 %v9566_v15, 16  ;;  %v3574_v48 = vshll.u32 %v9575_v62, 16  ;;  %v9650_v49 = vsel %vm8906_vm4, %v4131_v54, %v4132_v55  ;;  %7756 = vmatprep.subr.bf16.mxu1 %v9631_v45  ;;  %10891 = vst [vmem:[#allocation9_spill] sm:$0xff] %v9662_v59  ;;  %v9670_v55 = vpop.f32.mrf.mxu0  ;;  %v3987_v56 = vld [vmem:[#allocation2 + $0xc0] sm:$0xe] }
 0x1da   : > { %7623 = vmatpush3.bf16.msra.mxu0 %v7903_v3  ;;  %v3560_v32 = vrot.slane %v3558_v33, 5  ;;  %v3566_v4 = vrot.slane %v3564_v6, 5  ;;  %v3579_v30 = vshrl.u32 %v3257_v17, 16  ;;  %v7907_v3 = vld [vmem:[%s10834_s3 + $0x180] sm:$0xff]   ;;  %7597 = vmatmul.mubr.bf16.gmra.mxu1 %v6887_v61  ;;  %v3582_v20 = vshll.u32 %v3257_v17, 16  ;;  %10892 = vst [vmem:[#allocation10_spill] sm:$0xff] %v9670_v55 }
 0x1db   : > { %7624 = vmatprep.subr.bf16.mxu0 %v7905_v52  ;;  %v3570_v15 = vrot.slane %v3568_v9, 4  ;;  %v3576_v62 = vrot.slane %v3574_v48, 5  ;;  %v3588_v44 = vshll.u32 %v9606_v25, 16  ;;  %7600 = vmatprep.mubr.bf16.mxu1 %v6888_v53  ;;  %v3592_v13 = vshrl.u32 %v9606_v25, 16  ;;  %v3260_v6 = vld [vmem:[#allocation2 + $0xb4] sm:$0xf]  ;;  %v9687_v9 = vpop.f32.mrf.mxu1 }
 0x1dc   : > { %v3561_v24 = vor.u32 %v3560_v32, %v3557_v2  ;;  %v3581_v37 = vrot.slane %v3579_v30, 4  ;;  %v3598_v61 = vshll.u32 %v9579_v41, 16  ;;  %v3584_v43 = vrot.slane %v3582_v20, 5  ;;  %10893 = vst [vmem:[#allocation11_spill] sm:$0xff] %v9687_v9  ;;  %v9696_v20 = vpop.f32.mrf.mxu0 }
 0x1dd   : > { %7545 = vmatmul.mubr.bf16.gmra.mxu0 %v9459_v26  ;;  %v3571_v0 = vor.u32 %v3570_v15, %v3566_v4  ;;  %v9673_v54 = vrot.slane %v3588_v44, 5  ;;  %v3261_v26 = vld [vmem:[#allocation2 + $0xb8] sm:$0xf]  ;;  %v6860_v17 = vrot.slane %v3986_v58, 9  ;;  %v3594_v53 = vrot.slane %v3592_v13, 4  ;;  %10894 = vst [vmem:[#allocation12_spill] sm:$0xff] %v9696_v20 }
 0x1de   : > { %7548 = vmatprep.mubr.bf16.mxu0 %v9529_v7  ;;  %7625 = vmatpush3.bf16.msra.mxu0 %v7905_v52  ;;  %v3562_v12 = vrot.slane %v3561_v24, 4  ;;  %v9680_v41 = vrot.slane %v3598_v61, 5  ;;  %v4136_v25 = vrot.slane %v3261_v26, 5  ;;  %v3585_v2 = vor.u32 %v3584_v43, %v3581_v37  ;;  %v3264_v15 = vld [vmem:[#allocation2 + $0xc4] sm:$0xf]  ;;  %v9722_v43 = vpop.f32.mrf.mxu0 }
 0x1df   : > { %7626 = vmatprep.subr.bf16.mxu0 %v7907_v3  ;;  %v3572_v7 = vrot.slane %v3571_v0, 4  ;;  %v4139_v33 = vrot.slane %v9659_v29, 5  ;;  %v1299_v52 = vsel %vm8506_vm0, %v1134_v8, %v1298_v14  ;;  %v3595_v32 = vor.u32 %v3594_v53, %v9673_v54  ;;  %v3263_v61 = vld [vmem:[#allocation2 + $0xc0] sm:$0xf]  ;;  %10896 = vst [vmem:[#allocation14_spill] sm:$0xff] %v9722_v43 }
 0x1e0   : > { %v3567_v48 = vsel %vm8278_vm2, %v3562_v12, %v3566_v4  ;;  %v9694_v30 = vsel %vm8906_vm4, %v6860_v17, %v4136_v25  ;;  %v4138_v58 = vrot.slane %v4136_v25, 4  ;;  %1300 = vst [vmem:[#allocation2 + $0xc8] sm:$0x1] %v1299_v52  ;;  %v3586_v40 = vrot.slane %v3585_v2, 4 }
 0x1e1   : > { %v3577_v10 = vsel %vm8278_vm2, %v3572_v7, %v3576_v62  ;;  %v6861_v8 = vrot.slane %v3987_v56, 9  ;;  %v4143_v44 = vrot.slane %v3264_v15, 5  ;;  %v6891_v4 = vcombine.low %v9644_v47, %v9650_v49  ;;  %v9716_v49 = vpop.f32.mrf.mxu1 }
 0x1e2   : > { %7627 = vmatpush3.bf16.msra.mxu0 %v7907_v3  ;;  %v3596_v24 = vrot.slane %v3595_v32, 4  ;;  %v4140_v37 = vsel %vm8906_vm4, %v4138_v58, %v4139_v33  ;;  %v3603_v13 = vshrl.u32 %v3260_v6, 16  ;;  %7601 = vmatmul.mubr.bf16.gmra.mxu1 %v6889_v22  ;;  %v6834_v62 = vcombine.low %v3567_v48, %v3577_v10  ;;  %10895 = vst [vmem:[#allocation13_spill] sm:$0xff] %v9716_v49 }
 0x1e3   : > { %7708 = vmatprep.subr.bf16.mxu0 %v9678_v1  ;;  %v3591_v3 = vsel %vm8278_vm2, %v3586_v40, %v9673_v54  ;;  %v6892_v14 = vcombine.low %v9694_v30, %v4140_v37  ;;  %v9714_v47 = vsel %vm8906_vm4, %v6861_v8, %v4143_v44  ;;  %7604 = vmatprep.mubr.bf16.mxu1 %v6890_v57  ;;  %v4145_v5 = vrot.slane %v4143_v44, 4  ;;  %v4857_v57 = vld [vmem:[#allocation2 + $0x18] sm:$0xf] }
 0x1e4   : > { %v3605_v39 = vrot.slane %v3603_v13, 4  ;;  %v3606_v22 = vshll.u32 %v3260_v6, 16  ;;  %v3612_v0 = vshll.u32 %v3261_v26, 16  ;;  %v3601_v54 = vsel %vm8278_vm2, %v3596_v24, %v9680_v41  ;;  %v9729_v6 = vpop.f32.mrf.mxu1  ;;  %v9737_v24 = vld [vmem:[#allocation2 + $0x1c] sm:$0xf] }
 0x1e5   : > { %7549 = vmatmul.mubr.bf16.gmra.mxu0 %v9550_v16  ;;  %v3616_v17 = vshrl.u32 %v3261_v26, 16  ;;  %v3622_v12 = vshll.u32 %v9659_v29, 16  ;;  %v3627_v16 = vshrl.u32 %v3263_v61, 16  ;;  %v3630_v23 = vshll.u32 %v3263_v61, 16  ;;  %v9733_v26 = vpop.f32.mrf.mxu0  ;;  %v9740_v61 = vld [vmem:[#allocation2 + $0x20] sm:$0x1] }
 0x1e6   : > { %7552 = vmatprep.mubr.bf16.mxu0 %v9622_v51  ;;  %v3608_v53 = vrot.slane %v3606_v22, 5  ;;  %v3614_v25 = vrot.slane %v3612_v0, 5  ;;  %v3636_v63 = vshll.u32 %v3264_v15, 16  ;;  %v3640_v52 = vshrl.u32 %v3264_v15, 16 }
 0x1e7   : > { %v3265_v56 = vld [vmem:[#allocation2 + $0xc8] sm:$0x1]  ;;  %v3618_v7 = vrot.slane %v3616_v17, 4  ;;  %v3624_v2 = vrot.slane %v3622_v12, 5  ;;  %v3629_v33 = vrot.slane %v3627_v16, 4  ;;  %v3632_v32 = vrot.slane %v3630_v23, 5  ;;  %v9746_v16 = vpop.f32.mrf.mxu0 }
 0x1e8   : > { %v4146_v51 = vrot.slane %v3265_v56, 5  ;;  %v3609_v48 = vor.u32 %v3608_v53, %v3605_v39  ;;  %v9731_v41 = vrot.slane %v3636_v63, 5  ;;  %v3642_v30 = vrot.slane %v3640_v52, 4  ;;  %v9742_v39 = vpop.f32.mrf.mxu1  ;;  %v4860_v12 = vld [vmem:[#allocation2 + $0x24] sm:$0xf] }
 0x1e9   : > { %v3619_v29 = vor.u32 %v3618_v7, %v3614_v25  ;;  %v3646_v58 = vshll.u32 %v3265_v56, 16  ;;  %v4906_v10 = vshrl.u32 %v4857_v57, 16  ;;  %v3633_v44 = vor.u32 %v3632_v32, %v3629_v33  ;;  %v9755_v63 = vld [vmem:[#allocation2 + $0x28] sm:$0xf]  ;;  %v9757_v7 = vld [vmem:[#allocation2 + $0x2c] sm:$0x1]  ;;  %v9761_v32 = vpop.f32.mrf.mxu0 }
 0x1ea   : > { %v4147_v40 = vsel %vm8906_vm4, %v4145_v5, %v4146_v51  ;;  %v3610_v8 = vrot.slane %v3609_v48, 4  ;;  %v4909_v15 = vshll.u32 %v4857_v57, 16  ;;  %7605 = vmatmul.mubr.bf16.gmra.mxu1 %v6891_v4  ;;  %v3643_v13 = vor.u32 %v3642_v30, %v9731_v41  ;;  %v9759_v33 = vpop.f32.mrf.mxu1  ;;  %10898 = vst [vmem:[#allocation16_spill] sm:$0xff] %v9761_v32 }
 0x1eb   : > { %v3620_v37 = vrot.slane %v3619_v29, 4  ;;  %v6835_v22 = vcombine.low %v3591_v3, %v3601_v54  ;;  %7608 = vmatprep.mubr.bf16.mxu1 %v6892_v14  ;;  %v6893_v0 = vcombine.low %v9714_v47, %v4147_v40  ;;  %v4908_v5 = vrot.slane %v4906_v10, 4  ;;  %10897 = vst [vmem:[#allocation15_spill] sm:$0xff] %v9759_v33 }
 0x1ec   : > { %v4911_v17 = vrot.slane %v4909_v15, 5  ;;  %v3615_v4 = vsel %vm8278_vm2, %v3610_v8, %v3614_v25  ;;  %v4915_v23 = vshll.u32 %v9737_v24, 16  ;;  %v3634_v3 = vrot.slane %v3633_v44, 4  ;;  %v4863_v44 = vld [vmem:[#allocation2 + $0x30] sm:$0xf] }
 0x1ed   : > { %7553 = vmatmul.mubr.bf16.gmra.mxu0 %v9640_v34  ;;  %v3625_v53 = vsel %vm8278_vm2, %v3620_v37, %v3624_v2  ;;  %v4919_v34 = vshrl.u32 %v9737_v24, 16  ;;  %v3648_v14 = vrot.slane %v3646_v58, 5  ;;  %v4925_v47 = vshll.u32 %v9740_v61, 16 }
 0x1ee   : > { %7556 = vmatprep.mubr.bf16.mxu0 %v6834_v62  ;;  %v4912_v54 = vor.u32 %v4911_v17, %v4908_v5  ;;  %v3644_v57 = vrot.slane %v3643_v13, 4  ;;  %v4917_v56 = vrot.slane %v4915_v23, 5  ;;  %v4930_v25 = vshrl.u32 %v4860_v12, 16  ;;  %v9768_v17 = vld [vmem:[#allocation2 + $0x34] sm:$0xf] }
 0x1ef   : > { %v4921_v62 = vrot.slane %v4919_v34, 4  ;;  %v6836_v2 = vcombine.low %v3615_v4, %v3625_v53  ;;  %v4927_v51 = vrot.slane %v4925_v47, 5  ;;  %v4933_v48 = vshll.u32 %v4860_v12, 16  ;;  %v9770_v12 = vpop.f32.mrf.mxu1  ;;  %v9779_v34 = vpop.f32.mrf.mxu0 }
 0x1f0   : > { %v4913_v52 = vrot.slane %v4912_v54, 4  ;;  %v4932_v30 = vrot.slane %v4930_v25, 4  ;;  %v4939_v58 = vshll.u32 %v9755_v63, 16  ;;  %v4943_v10 = vshrl.u32 %v9755_v63, 16 }
 0x1f1   : > { %v4922_v29 = vor.u32 %v4921_v62, %v4917_v56  ;;  %v4935_v40 = vrot.slane %v4933_v48, 5  ;;  %v4949_v8 = vshll.u32 %v9757_v7, 16  ;;  %v3639_v4 = vsel %vm8278_vm2, %v3634_v3, %v9731_v41  ;;  %v4866_v3 = vld [vmem:[#allocation2 + $0x3c] sm:$0xf] }
 0x1f2   : > { %7609 = vmatmul.mubr.bf16.gmra.mxu1 %v6893_v0  ;;  %v4918_v15 = vsel %vm8278_vm2, %v4913_v52, %v4917_v56  ;;  %v4941_v13 = vrot.slane %v4939_v58, 5  ;;  %v4945_v5 = vrot.slane %v4943_v10, 4  ;;  %v3649_v53 = vsel %vm8278_vm2, %v3644_v57, %v3648_v14  ;;  %v9777_v0 = vld [vmem:[#allocation2 + $0x38] sm:$0x1] }
 0x1f3   : > { %v4923_v37 = vrot.slane %v4922_v29, 4  ;;  %v4936_v23 = vor.u32 %v4935_v40, %v4932_v30  ;;  %v4951_v56 = vrot.slane %v4949_v8, 5  ;;  %v4954_v62 = vshrl.u32 %v4863_v44, 16  ;;  %v9786_v30 = vld [vmem:[#allocation2 + $0x40] sm:$0xf] }
 0x1f4   : > { %v4946_v47 = vor.u32 %v4945_v5, %v4941_v13  ;;  %v4957_v52 = vshll.u32 %v4863_v44, 16  ;;  %v4963_v41 = vshll.u32 %v9768_v17, 16  ;;  %v4967_v57 = vshrl.u32 %v9768_v17, 16  ;;  %v9792_v8 = vld [vmem:[#allocation2 + $0x44] sm:$0x1]  ;;  %v9794_v44 = vpop.f32.mrf.mxu0 }
 0x1f5   : > { %7557 = vmatmul.mubr.bf16.gmra.mxu0 %v6835_v22  ;;  %v4928_v54 = vsel %vm8278_vm2, %v4923_v37, %v4927_v51  ;;  %v4937_v25 = vrot.slane %v4936_v23, 4  ;;  %v4956_v14 = vrot.slane %v4954_v62, 4  ;;  %v4973_v29 = vshll.u32 %v9777_v0, 16  ;;  %v7909_v37 = vld [vmem:[#allocation2 + $0x18] sm:$0xff]  }
 0x1f6   : > { %7560 = vmatprep.mubr.bf16.mxu0 %v6836_v2  ;;  %v6958_v22 = vcombine.low %v4918_v15, %v4928_v54  ;;  %v4947_v48 = vrot.slane %v4946_v47, 4  ;;  %v9788_v2 = vpop.f32.mrf.mxu1  ;;  %v6837_v51 = vcombine.low %v3639_v4, %v3649_v53  ;;  %v4959_v10 = vrot.slane %v4957_v52, 5 }
 0x1f7   : > { %v4942_v58 = vsel %vm8278_vm2, %v4937_v25, %v4941_v13  ;;  %v4965_v40 = vrot.slane %v4963_v41, 5  ;;  %v4969_v5 = vrot.slane %v4967_v57, 4  ;;  %v4975_v23 = vrot.slane %v4973_v29, 5  ;;  %v7916_v13 = vld [vmem:[%s10837_s6 + $0x30] sm:$0xff]   ;;  %v9806_v29 = vpop.f32.mrf.mxu0 }
 0x1f8   : > { %7676 = vmatprep.mubr.bf16.mxu1 %v6958_v22  ;;  %v4952_v15 = vsel %vm8278_vm2, %v4947_v48, %v4951_v56  ;;  %v4978_v54 = vshrl.u32 %v4866_v3, 16  ;;  %v4960_v62 = vor.u32 %v4959_v10, %v4956_v14  ;;  %v4981_v4 = vshll.u32 %v4866_v3, 16  ;;  %v9804_v56 = vpop.f32.mrf.mxu1  ;;  %v4869_v3 = vld [vmem:[#allocation2 + $0x48] sm:$0xf] }
 0x1f9   : > { %v6959_v47 = vcombine.low %v4942_v58, %v4952_v15  ;;  %v4987_v53 = vshll.u32 %v9786_v30, 16  ;;  %v4970_v22 = vor.u32 %v4969_v5, %v4965_v40  ;;  %v4991_v52 = vshrl.u32 %v9786_v30, 16  ;;  %v9809_v15 = vld [vmem:[#allocation2 + $0x4c] sm:$0xf]  ;;  %v9824_v32 = vpop.f32.mrf.mxu0 }
 0x1fa   : > { %v4980_v25 = vrot.slane %v4978_v54, 4  ;;  %v4997_v41 = vshll.u32 %v9792_v8, 16  ;;  %v4961_v48 = vrot.slane %v4960_v62, 4  ;;  %v4983_v57 = vrot.slane %v4981_v4, 5  ;;  %v7911_v62 = vld [vmem:[#allocation2 + $0x24] sm:$0xff]   ;;  %10900 = vst [vmem:[#allocation18_spill] sm:$0xff] %v9824_v32 }
 0x1fb   : > { %7677 = vmatmul.mubr.bf16.vlgmr.msra.gmra.mxu1 %v6959_v47  ;;  %v4989_v14 = vrot.slane %v4987_v53, 5  ;;  %v4971_v58 = vrot.slane %v4970_v22, 4  ;;  %v4993_v10 = vrot.slane %v4991_v52, 4  ;;  %v7920_v47 = vld [vmem:[%s10837_s6 + $0x28] sm:$0xff]   ;;  %v5002_v4 = vshrl.u32 %v4869_v3, 16  ;;  %v9820_v22 = vpop.f32.mrf.mxu1 }
 0x1fc   : > { %7757 = vmatpush3.bf16.msra.mxu1 %v9631_v45  ;;  %v4966_v5 = vsel %vm8278_vm2, %v4961_v48, %v4965_v40  ;;  %v4984_v54 = vor.u32 %v4983_v57, %v4980_v25  ;;  %v4999_v33 = vrot.slane %v4997_v41, 5  ;;  %v5005_v53 = vshll.u32 %v4869_v3, 16  ;;  %10899 = vst [vmem:[#allocation17_spill] sm:$0xff] %v9820_v22  ;;  %v7913_v25 = vld [vmem:[#allocation2 + $0x30] sm:$0xff]  }
 0x1fd   : > { %7561 = vmatmul.mubr.bf16.gmra.mxu0 %v6837_v51  ;;  %7758 = vmatprep.subr.bf16.mxu1 %v7916_v13  ;;  %v9813_v51 = vld [vmem:[#allocation2 + $0x50] sm:$0x1]  ;;  %v4976_v45 = vsel %vm8278_vm2, %v4971_v58, %v4975_v23  ;;  %v5011_v41 = vshll.u32 %v9809_v15, 16  ;;  %v5015_v48 = vshrl.u32 %v9809_v15, 16  ;;  %v4872_v57 = vld [vmem:[#allocation2 + $0x54] sm:$0xf]  ;;  %v9838_v22 = vpop.f32.mrf.mxu1  ;;  %v9864_v20 = vadd.f32 %v9729_v6, %v9733_v26 }
 0x1fe   : > { %7628 = vmatprep.mubr.bf16.mxu0 %v7909_v37  ;;  %v4994_v37 = vor.u32 %v4993_v10, %v4989_v14  ;;  %v6960_v52 = vcombine.low %v4966_v5, %v4976_v45  ;;  %v4985_v40 = vrot.slane %v4984_v54, 4  ;;  %v5004_v43 = vrot.slane %v5002_v4, 4  ;;  %v9827_v58 = vld [vmem:[#allocation2 + $0x58] sm:$0xf]  ;;  %v7914_v10 = vld [vmem:[%s10834_s3 + $0x230] sm:$0xff]  }
 0x1ff   : > { %v5007_v9 = vrot.slane %v5005_v53, 5  ;;  %v5021_v23 = vshll.u32 %v9813_v51, 16  ;;  %v5013_v5 = vrot.slane %v5011_v41, 5  ;;  %v5017_v54 = vrot.slane %v5015_v48, 4  ;;  %v9834_v45 = vld [vmem:[#allocation2 + $0x5c] sm:$0x1]  ;;  %v9844_v48 = vpop.f32.mrf.mxu0 }
 0x200   : > { %v4995_v49 = vrot.slane %v4994_v37, 4  ;;  %7759 = vmatpush3.bf16.msra.mxu1 %v7916_v13  ;;  %7680 = vmatprep.mubr.bf16.mxu1 %v6960_v52  ;;  %v4990_v3 = vsel %vm8278_vm2, %v4985_v40, %v4989_v14  ;;  %v5026_v53 = vshrl.u32 %v4872_v57, 16  ;;  %v5029_v40 = vshll.u32 %v4872_v57, 16  ;;  %v7924_v41 = vld [vmem:[%s10837_s6 + $0x20] sm:$0xff]   ;;  %10901 = vst [vmem:[#allocation19_spill] sm:$0xff] %v9864_v20 }
 0x201   : > { %7760 = vmatprep.subr.bf16.mxu1 %v7920_v47  ;;  %v5008_v37 = vor.u32 %v5007_v9, %v5004_v43  ;;  %v5023_v4 = vrot.slane %v5021_v23, 5  ;;  %v5018_v14 = vor.u32 %v5017_v54, %v5013_v5  ;;  %v5035_v32 = vshll.u32 %v9827_v58, 16  ;;  %v4875_v54 = vld [vmem:[#allocation2 + $0x60] sm:$0xf] }
 0x202   : > { %v5000_v13 = vsel %vm8278_vm2, %v4995_v49, %v4999_v33  ;;  %v5028_v49 = vrot.slane %v5026_v53, 4  ;;  %v5039_v43 = vshrl.u32 %v9827_v58, 16  ;;  %v5045_v33 = vshll.u32 %v9834_v45, 16  ;;  %v9856_v53 = vld [vmem:[#allocation2 + $0x68] sm:$0x1] }
 0x203   : > { %v6961_v52 = vcombine.low %v4990_v3, %v5000_v13  ;;  %v5009_v9 = vrot.slane %v5008_v37, 4  ;;  %v5031_v57 = vrot.slane %v5029_v40, 5  ;;  %v5037_v23 = vrot.slane %v5035_v32, 5  ;;  %v7918_v3 = vld [vmem:[%s10834_s3 + $0x228] sm:$0xff]   ;;  %v9854_v37 = vld [vmem:[#allocation2 + $0x64] sm:$0xf] }
 0x204   : > { %v5047_v13 = vrot.slane %v5045_v33, 5  ;;  %7761 = vmatpush3.bf16.msra.mxu1 %v7920_v47  ;;  %v9870_v47 = vpop.f32.mrf.mxu0  ;;  %v5059_v26 = vshll.u32 %v9854_v37, 16 }
 0x205   : > { %7629 = vmatmul.mubr.bf16.vlgmr.msra.gmra.mxu0 %v7911_v62  ;;  %7681 = vmatmul.mubr.bf16.gmra.mxu1 %v6961_v52  ;;  %v5019_v62 = vrot.slane %v5018_v14, 4  ;;  %v9858_v52 = vpop.f32.mrf.mxu1  ;;  %v7915_v14 = vld [vmem:[#allocation2 + $0x3c] sm:$0xff]   ;;  %v5032_v40 = vor.u32 %v5031_v57, %v5028_v49  ;;  %v5050_v49 = vshrl.u32 %v4875_v54, 16  ;;  %v4878_v57 = vld [vmem:[#allocation2 + $0x6c] sm:$0xf] }
 0x206   : > { %7709 = vmatpush3.bf16.msra.mxu0 %v9678_v1  ;;  %7632 = vmatprep.mubr.bf16.mxu0 %v7913_v25  ;;  %v5014_v1 = vsel %vm8278_vm2, %v5009_v9, %v5013_v5  ;;  %v5041_v25 = vrot.slane %v5039_v43, 4  ;;  %v9868_v5 = vadd.f32 %v9742_v39, %v9746_v16  ;;  %v7928_v9 = vld [vmem:[%s10837_s6 + $0x18] sm:$0xff]   ;;  %v5063_v39 = vshrl.u32 %v9854_v37, 16  ;;  %v9889_v35 = vpop.f32.mrf.mxu0 }
 0x207   : > { %7710 = vmatprep.subr.bf16.mxu0 %v7914_v10  ;;  %v5024_v32 = vsel %vm8278_vm2, %v5019_v62, %v5023_v4  ;;  %7762 = vmatprep.subr.bf16.mxu1 %v7924_v41  ;;  %v7917_v4 = vld [vmem:[#allocation2 + $0x48] sm:$0xff]   ;;  %v5053_v62 = vshll.u32 %v4875_v54, 16  ;;  %v5033_v6 = vrot.slane %v5032_v40, 4  ;;  %v5069_v16 = vshll.u32 %v9856_v53, 16  ;;  %v9883_v54 = vpop.f32.mrf.mxu1 }
 0x208   : > { %10902 = vst [vmem:[#allocation20_spill] sm:$0xff] %v9868_v5  ;;  %v6962_v43 = vcombine.low %v5014_v1, %v5024_v32  ;;  %v5042_v33 = vor.u32 %v5041_v25, %v5037_v23  ;;  %v7922_v5 = vld [vmem:[%s10834_s3 + $0x220] sm:$0xff]   ;;  %v5052_v1 = vrot.slane %v5050_v49, 4  ;;  %v9881_v32 = vld [vmem:[#allocation2 + $0x70] sm:$0xf]  ;;  %7763 = vmatpush3.bf16.msra.mxu1 %v7924_v41  ;;  %v5061_v20 = vrot.slane %v5059_v26, 5 }
 0x209   : > { %v5055_v25 = vrot.slane %v5053_v62, 5  ;;  %v5038_v40 = vsel %vm8278_vm2, %v5033_v6, %v5037_v23  ;;  %v5065_v59 = vrot.slane %v5063_v39, 4  ;;  %v5071_v55 = vrot.slane %v5069_v16, 5  ;;  %7764 = vmatprep.subr.bf16.mxu1 %v7928_v9  ;;  %v7926_v39 = vld [vmem:[%s10834_s3 + $0x218] sm:$0xff]  }
 0x20a   : > { %7711 = vmatpush3.bf16.msra.mxu0 %v7914_v10  ;;  %7684 = vmatprep.mubr.bf16.mxu1 %v6962_v43  ;;  %v5043_v10 = vrot.slane %v5042_v33, 4  ;;  %v7932_v43 = vld [vmem:[%s10837_s6 + $0x10] sm:$0xff]   ;;  %v5074_v33 = vshrl.u32 %v4878_v57, 16  ;;  %v5077_v23 = vshll.u32 %v4878_v57, 16  ;;  %v5083_v6 = vshll.u32 %v9881_v32, 16 }
 0x20b   : > { %7712 = vmatprep.subr.bf16.mxu0 %v7918_v3  ;;  %v5066_v62 = vor.u32 %v5065_v59, %v5061_v20  ;;  %v5087_v26 = vshrl.u32 %v9881_v32, 16  ;;  %v7919_v16 = vld [vmem:[#allocation2 + $0x54] sm:$0xff]  }
 0x20c   : > { %v5048_v41 = vsel %vm8278_vm2, %v5043_v10, %v5047_v13  ;;  %v5076_v36 = vrot.slane %v5074_v33, 4  ;;  %v5079_v13 = vrot.slane %v5077_v23, 5  ;;  %7765 = vmatpush3.bf16.msra.mxu1 %v7928_v9  ;;  %v5085_v57 = vrot.slane %v5083_v6, 5  ;;  %v7921_v23 = vld [vmem:[#allocation2 + $0x60] sm:$0xff]  }
 0x20d   : > { %7633 = vmatmul.mubr.bf16.gmra.mxu0 %v7915_v14  ;;  %v5056_v14 = vor.u32 %v5055_v25, %v5052_v1  ;;  %v6963_v49 = vcombine.low %v5038_v40, %v5048_v41  ;;  %v5067_v59 = vrot.slane %v5066_v62, 4  ;;  %v5089_v10 = vrot.slane %v5087_v26, 4  ;;  %v4881_v1 = vld [vmem:[#allocation2 + $0x78] sm:$0xf]  ;;  %v9904_v25 = vpop.f32.mrf.mxu0  ;;  %7766 = vmatprep.subr.bf16.mxu1 %v7932_v43  ;;  %v7936_v40 = vld [vmem:[%s10837_s6 + $0x8] sm:$0xff]  }
 0x20e   : > { %7636 = vmatprep.mubr.bf16.mxu0 %v7917_v4  ;;  %7713 = vmatpush3.bf16.msra.mxu0 %v7918_v3  ;;  %v5093_v3 = vshll.u32 %v9887_v60, 16  ;;  %v9902_v4 = vpop.f32.mrf.mxu1  ;;  %10904 = vst [vmem:[#allocation22_spill] sm:$0xff] %v9904_v25  ;;  %v9913_v9 = vadd.f32 %v9770_v12, %v9779_v34  ;;  %v9917_v62 = vld [vmem:[#allocation2 + $0x80] sm:$0x1]  ;;  %v5098_v12 = vshrl.u32 %v4881_v1, 16  ;;  %v5101_v34 = vshll.u32 %v4881_v1, 16 }
 0x20f   : > { %7714 = vmatprep.subr.bf16.mxu0 %v7922_v5  ;;  %v5057_v19 = vrot.slane %v5056_v14, 4  ;;  %10903 = vst [vmem:[#allocation21_spill] sm:$0xff] %v9902_v4  ;;  %7685 = vmatmul.mubr.bf16.gmra.mxu1 %v6963_v49  ;;  %v5080_v14 = vor.u32 %v5079_v13, %v5076_v36  ;;  %v9915_v49 = vld [vmem:[#allocation2 + $0x7c] sm:$0xf]  ;;  %v5072_v6 = vsel %vm8278_vm2, %v5067_v59, %v5071_v55  ;;  %v7930_v55 = vld [vmem:[%s10834_s3 + $0x210] sm:$0xff]   ;;  %v7940_v59 = vld [vmem:[%s10837_s6] sm:$0xff]  }
 0x210   : > { %v5095_v33 = vrot.slane %v5093_v3, 5  ;;  %10905 = vst [vmem:[#allocation23_spill] sm:$0xff] %v9913_v9  ;;  %v5090_v26 = vor.u32 %v5089_v10, %v5085_v57  ;;  %v9923_v4 = vadd.f32 %v9788_v2, %v9794_v44  ;;  %v9929_v13 = vpop.f32.mrf.mxu1  ;;  %7767 = vmatpush3.bf16.msra.mxu1 %v7932_v43  ;;  %v5107_v44 = vshll.u32 %v9915_v49, 16  ;;  %v9937_v3 = vpop.f32.mrf.mxu0  ;;  %v9944_v1 = vld [vmem:[#allocation2 + $0x88] sm:$0xf] }
 0x211   : > { %v5062_v41 = vsel %vm8278_vm2, %v5057_v19, %v5061_v20  ;;  %v9927_v19 = vadd.f32 %v9804_v56, %v9806_v29  ;;  %v5081_v20 = vrot.slane %v5080_v14, 4  ;;  %v5111_v56 = vshrl.u32 %v9915_v49, 16  ;;  %7768 = vmatprep.subr.bf16.mxu1 %v7936_v40 }
 0x212   : > { %7715 = vmatpush3.bf16.msra.mxu0 %v7922_v5  ;;  %10906 = vst [vmem:[#allocation24_spill] sm:$0xff] %v9923_v4  ;;  %v6964_v36 = vcombine.low %v5062_v41, %v5072_v6  ;;  %v4884_v5 = vld [vmem:[#allocation2 + $0x84] sm:$0xf]  ;;  %v5091_v2 = vrot.slane %v5090_v26, 4  ;;  %v5117_v29 = vshll.u32 %v9917_v62, 16  ;;  %v5100_v43 = vrot.slane %v5098_v12, 4 }
 0x213   : > { %10907 = vst [vmem:[#allocation25_spill] sm:$0xff] %v9927_v19  ;;  %7716 = vmatprep.subr.bf16.mxu0 %v7926_v39  ;;  %v5086_v10 = vsel %vm8278_vm2, %v5081_v20, %v5085_v57  ;;  %v9946_v41 = vld [vmem:[#allocation2 + $0x8c] sm:$0x1]  ;;  %v5109_v6 = vrot.slane %v5107_v44, 5  ;;  %v5113_v26 = vrot.slane %v5111_v56, 4  ;;  %v5125_v9 = vshll.u32 %v4884_v5, 16  ;;  %v9950_v57 = vpop.f32.mrf.mxu1 }
 0x214   : > { %7688 = vmatprep.mubr.bf16.mxu1 %v6964_v36  ;;  %v5096_v14 = vsel %vm8278_vm2, %v5091_v2, %v5095_v33  ;;  %v5119_v25 = vrot.slane %v5117_v29, 5  ;;  %v5122_v36 = vshrl.u32 %v4884_v5, 16  ;;  %7769 = vmatpush3.bf16.msra.mxu1 %v7936_v40  ;;  %v7923_v20 = vld [vmem:[#allocation2 + $0x6c] sm:$0xff]   ;;  %v5131_v33 = vshll.u32 %v9944_v1, 16  ;;  %v9958_v2 = vpop.f32.mrf.mxu0  ;;  %v7925_v29 = vld [vmem:[#allocation2 + $0x78] sm:$0xff]  }
 0x215   : > { %7637 = vmatmul.mubr.bf16.gmra.mxu0 %v7919_v16  ;;  %v5103_v16 = vrot.slane %v5101_v34, 5  ;;  %v6965_v19 = vcombine.low %v5086_v10, %v5096_v14  ;;  %v5114_v12 = vor.u32 %v5113_v26, %v5109_v6  ;;  %v5135_v34 = vshrl.u32 %v9944_v1, 16  ;;  %7770 = vmatprep.subr.bf16.mxu1 %v7940_v59  ;;  %v4887_v40 = vld [vmem:[#allocation2 + $0x90] sm:$0xf] }
 0x216   : > { %7640 = vmatprep.mubr.bf16.mxu0 %v7921_v23  ;;  %7717 = vmatpush3.bf16.msra.mxu0 %v7926_v39  ;;  %v7934_v23 = vld [vmem:[%s10834_s3 + $0x208] sm:$0xff]   ;;  %v5141_v39 = vshll.u32 %v9946_v41, 16  ;;  %v5124_v44 = vrot.slane %v5122_v36, 4  ;;  %v5127_v56 = vrot.slane %v5125_v9, 5  ;;  %v9962_v10 = vadd.f32 %v9838_v22, %v9844_v48  ;;  %v9976_v48 = vld [vmem:[#allocation2 + $0x98] sm:$0x1]  ;;  %v9978_v9 = vpop.f32.mrf.mxu1 }
 0x217   : > { %v5104_v4 = vor.u32 %v5103_v16, %v5100_v43  ;;  %7718 = vmatprep.subr.bf16.mxu0 %v7930_v55  ;;  %7689 = vmatmul.mubr.bf16.gmra.mxu1 %v6965_v19  ;;  %v5115_v43 = vrot.slane %v5114_v12, 4  ;;  %v5133_v16 = vrot.slane %v5131_v33, 5  ;;  %v5137_v14 = vrot.slane %v5135_v34, 4  ;;  %10911 = vst [vmem:[#allocation29_spill] sm:$0xff] %v9976_v48  ;;  %v7363_v12 = vpop.f32.mrf.mxu0 }
 0x218   : > { %10908 = vst [vmem:[#allocation26_spill] sm:$0xff] %v9962_v10  ;;  %v5143_v26 = vrot.slane %v5141_v39, 5  ;;  %v5128_v19 = vor.u32 %v5127_v56, %v5124_v44  ;;  %v9974_v22 = vadd.f32 %v9883_v54, %v9889_v35  ;;  %7771 = vmatpush3.bf16.msra.mxu1 %v7940_v59  ;;  %v5155_v33 = vshll.u32 %v9964_v11, 16  ;;  %v4890_v39 = vld [vmem:[#allocation2 + $0x9c] sm:$0xf] }
 0x219   : > { %v5105_v5 = vrot.slane %v5104_v4, 4  ;;  %v9970_v4 = vadd.f32 %v9858_v52, %v9870_v47  ;;  %v5138_v36 = vor.u32 %v5137_v14, %v5133_v16  ;;  %v5146_v52 = vshrl.u32 %v4887_v40, 16  ;;  %v7927_v14 = vld [vmem:[#allocation2 + $0x84] sm:$0xff]  }
 0x21a   : > { %7719 = vmatpush3.bf16.msra.mxu0 %v7930_v55  ;;  %10910 = vst [vmem:[#allocation28_spill] sm:$0xff] %v9974_v22  ;;  %v7938_v55 = vld [vmem:[%s10834_s3 + $0x200] sm:$0xff]   ;;  %v5149_v47 = vshll.u32 %v4887_v40, 16  ;;  %v5129_v54 = vrot.slane %v5128_v19, 4  ;;  %v5159_v34 = vshrl.u32 %v9964_v11, 16  ;;  %v2303_v40 = vpop.f32.mrf.mxu1 }
 0x21b   : > { %v5110_v50 = vsel %vm8278_vm2, %v5105_v5, %v5109_v6  ;;  %10909 = vst [vmem:[#allocation27_spill] sm:$0xff] %v9970_v4  ;;  %7720 = vmatprep.subr.bf16.mxu0 %v7934_v23  ;;  %v5120_v6 = vsel %vm8278_vm2, %v5115_v43, %v5119_v25  ;;  %v5139_v5 = vrot.slane %v5138_v36, 4  ;;  %v5148_v44 = vrot.slane %v5146_v52, 4  ;;  %v9988_v22 = vld [vmem:[#allocation2 + $0xa0] sm:$0xf]  ;;  %v1998_v52 = vpop.f32.mrf.mxu0 }
 0x21c   : > { %v6966_v35 = vcombine.low %v5110_v50, %v5120_v6  ;;  %v5151_v56 = vrot.slane %v5149_v47, 5  ;;  %v5134_v25 = vsel %vm8278_vm2, %v5129_v54, %v5133_v16  ;;  %v5157_v50 = vrot.slane %v5155_v33, 5  ;;  %v7929_v16 = vld [vmem:[#allocation2 + $0x90] sm:$0xff]  }
 0x21d   : > { %7641 = vmatmul.mubr.bf16.gmra.mxu0 %v7923_v20  ;;  %v5165_v20 = vshll.u32 %v9976_v48, 16  ;;  %v5161_v59 = vrot.slane %v5159_v34, 4  ;;  %v5144_v43 = vsel %vm8278_vm2, %v5139_v5, %v5143_v26  ;;  %v5170_v36 = vshrl.u32 %v4890_v39, 16  ;;  %v4893_v48 = vld [vmem:[#allocation2 + $0xa8] sm:$0xf] }
 0x21e   : > { %7644 = vmatprep.mubr.bf16.mxu0 %v7925_v29  ;;  %7721 = vmatpush3.bf16.msra.mxu0 %v7934_v23  ;;  %v9992_v29 = vld [vmem:[#allocation2 + $0xa4] sm:$0x1]  ;;  %v5152_v19 = vor.u32 %v5151_v56, %v5148_v44  ;;  %v6967_v47 = vcombine.low %v5134_v25, %v5144_v43  ;;  %v5179_v4 = vshll.u32 %v9988_v22, 16  ;;  %v5183_v34 = vshrl.u32 %v9988_v22, 16 }
 0x21f   : > { %7692 = vmatprep.mubr.bf16.mxu1 %v6966_v35  ;;  %7722 = vmatprep.subr.bf16.mxu0 %v7938_v55  ;;  %v5167_v6 = vrot.slane %v5165_v20, 5  ;;  %v5162_v23 = vor.u32 %v5161_v59, %v5157_v50  ;;  %v5173_v35 = vshll.u32 %v4890_v39, 16  ;;  %v5172_v33 = vrot.slane %v5170_v36, 4  ;;  %v10003_v39 = vld [vmem:[#allocation2 + $0xac] sm:$0xf]  ;;  %v7414_v20 = vpop.f32.mrf.mxu1 }
 0x220   : > { %v5153_v54 = vrot.slane %v5152_v19, 4  ;;  %v5189_v10 = vshll.u32 %v9992_v29, 16  ;;  %7693 = vmatmul.mubr.bf16.gmra.mxu1 %v6967_v47  ;;  %v5181_v44 = vrot.slane %v5179_v4, 5  ;;  %v10001_v56 = vadd.f32 %v9929_v13, %v9937_v3  ;;  %10913 = vst [vmem:[#allocation31_spill] sm:$0xff] %v10003_v39  ;;  %v10011_v19 = vld [vmem:[#allocation2 + $0xb0] sm:$0x1] }
 0x221   : > { %v5163_v26 = vrot.slane %v5162_v23, 4  ;;  %v5175_v5 = vrot.slane %v5173_v35, 5  ;;  %v5185_v59 = vrot.slane %v5183_v34, 4  ;;  %10915 = vst [vmem:[#allocation33_spill] sm:$0xff] %v10011_v19  ;;  %v10016_v36 = vadd.f32 %v9978_v9, %v7363_v12  ;;  %v4896_v35 = vld [vmem:[#allocation2 + $0xb4] sm:$0xf] }
 0x222   : > { %7723 = vmatpush3.bf16.msra.mxu0 %v7938_v55  ;;  %10912 = vst [vmem:[#allocation30_spill] sm:$0xff] %v10001_v56  ;;  %v5158_v25 = vsel %vm8278_vm2, %v5153_v54, %v5157_v50  ;;  %v5191_v43 = vrot.slane %v5189_v10, 5  ;;  %v10009_v55 = vadd.f32 %v9950_v57, %v9958_v2  ;;  %v5197_v23 = vshll.u32 %v4893_v48, 16  ;;  %v7931_v12 = vld [vmem:[#allocation2 + $0x9c] sm:$0xff]  }
 0x223   : > { %v7366_v4 = vpop.f32.mrf.mxu0  ;;  %v5168_v13 = vsel %vm8278_vm2, %v5163_v26, %v5167_v6  ;;  %v5176_v3 = vor.u32 %v5175_v5, %v5172_v33  ;;  %10916 = vst [vmem:[#allocation34_spill] sm:$0xff] %v10016_v36  ;;  %v5186_v50 = vor.u32 %v5185_v59, %v5181_v44  ;;  %v5203_v10 = vshll.u32 %v10003_v39, 16  ;;  %v2316_v6 = vpop.f32.mrf.mxu1 }
 0x224   : > { %10914 = vst [vmem:[#allocation32_spill] sm:$0xff] %v10009_v55  ;;  %v6968_v47 = vcombine.low %v5158_v25, %v5168_v13  ;;  %v5207_v54 = vshrl.u32 %v10003_v39, 16  ;;  %v5213_v34 = vshll.u32 %v10011_v19, 16  ;;  %v10021_v55 = vld [vmem:[#allocation2 + $0xb8] sm:$0xf]  ;;  %v5199_v33 = vrot.slane %v5197_v23, 5 }
 0x225   : > { %7645 = vmatmul.mubr.bf16.gmra.mxu0 %v7927_v14  ;;  %v5194_v14 = vshrl.u32 %v4893_v48, 16  ;;  %v5177_v57 = vrot.slane %v5176_v3, 4  ;;  %v5187_v9 = vrot.slane %v5186_v50, 4  ;;  %v5205_v26 = vrot.slane %v5203_v10, 5  ;;  %v10027_v13 = vld [vmem:[#allocation2 + $0xbc] sm:$0x1] }
 0x226   : > { %7648 = vmatprep.mubr.bf16.mxu0 %v7929_v16  ;;  %v2011_v16 = vpop.f32.mrf.mxu0  ;;  %7696 = vmatprep.mubr.bf16.mxu1 %v6968_v47  ;;  %v10023_v5 = vadd.f32 %v2303_v40, %v1998_v52  ;;  %v5209_v25 = vrot.slane %v5207_v54, 4  ;;  %v5215_v59 = vrot.slane %v5213_v34, 5  ;;  %v5218_v3 = vshrl.u32 %v4896_v35, 16  ;;  %v4899_v39 = vld [vmem:[#allocation2 + $0xc0] sm:$0xf] }
 0x227   : > { %v5196_v2 = vrot.slane %v5194_v14, 4  ;;  %v5182_v48 = vsel %vm8278_vm2, %v5177_v57, %v5181_v44  ;;  %v7933_v14 = vld [vmem:[#allocation2 + $0xa8] sm:$0xff]   ;;  %v5192_v36 = vsel %vm8278_vm2, %v5187_v9, %v5191_v43  ;;  %v5221_v47 = vshll.u32 %v4896_v35, 16  ;;  %v10038_v9 = vld [vmem:[#allocation2 + $0xc4] sm:$0xf] }
 0x228   : > { %10917 = vst [vmem:[#allocation35_spill] sm:$0xff] %v10023_v5  ;;  %v5227_v50 = vshll.u32 %v10021_v55, 16  ;;  %v6969_v23 = vcombine.low %v5182_v48, %v5192_v36  ;;  %v5210_v10 = vor.u32 %v5209_v25, %v5205_v26  ;;  %v5220_v40 = vrot.slane %v5218_v3, 4  ;;  %v7415_v5 = vpop.f32.mrf.mxu1  ;;  %v7367_v44 = vpop.f32.mrf.mxu0  ;;  %v10044_v25 = vld [vmem:[#allocation2 + $0xc8] sm:$0x1] }
 0x229   : > { %v5200_v56 = vor.u32 %v5199_v33, %v5196_v2  ;;  %v5231_v52 = vshrl.u32 %v10021_v55, 16  ;;  %v5223_v54 = vrot.slane %v5221_v47, 5  ;;  %v5237_v19 = vshll.u32 %v10027_v13, 16  ;;  %10921 = vst [vmem:[#allocation39_spill] sm:$0xff] %v10044_v25 }
 0x22a   : > { %v5229_v34 = vrot.slane %v5227_v50, 5  ;;  %7697 = vmatmul.mubr.bf16.gmra.mxu1 %v6969_v23  ;;  %v5211_v43 = vrot.slane %v5210_v10, 4  ;;  %v10034_v35 = vadd.f32 %v7414_v20, %v7366_v4  ;;  %v10036_v36 = vadd.f32 %v2316_v6, %v2011_v16  ;;  %v2014_v6 = vpop.f32.mrf.mxu0  ;;  %v4902_v16 = vld [vmem:[#allocation2 + $0xcc] sm:$0xf]  ;;  %v7935_v10 = vld [vmem:[#allocation2 + $0xb4] sm:$0xff]  }
 0x22b   : > { %v5201_v57 = vrot.slane %v5200_v56, 4  ;;  %v5233_v2 = vrot.slane %v5231_v52, 4  ;;  %v5239_v56 = vrot.slane %v5237_v19, 5  ;;  %v10042_v48 = vadd.f32 %v7415_v5, %v7367_v44  ;;  %v10050_v5 = vld [vmem:[#allocation2 + $0xd0] sm:$0xf] }
 0x22c   : > { %10918 = vst [vmem:[#allocation36_spill] sm:$0xff] %v10034_v35  ;;  %10919 = vst [vmem:[#allocation37_spill] sm:$0xff] %v10036_v36  ;;  %v5216_v3 = vsel %vm8278_vm2, %v5211_v43, %v5215_v59  ;;  %v5242_v20 = vshrl.u32 %v4899_v39, 16  ;;  %v5245_v4 = vshll.u32 %v4899_v39, 16  ;;  %v5255_v19 = vshrl.u32 %v10038_v9, 16  ;;  %v6148_v35 = vld [vmem:[%s10068_s13] sm:$0xff] }
 0x22d   : > { %7649 = vmatmul.mubr.bf16.gmra.mxu0 %v7931_v12  ;;  %v5206_v33 = vsel %vm8278_vm2, %v5201_v57, %v5205_v26  ;;  %v5224_v12 = vor.u32 %v5223_v54, %v5220_v40  ;;  %10920 = vst [vmem:[#allocation38_spill] sm:$0xff] %v10042_v48  ;;  %v5234_v47 = vor.u32 %v5233_v2, %v5229_v34  ;;  %v5251_v26 = vshll.u32 %v10038_v9, 16  ;;  %v7937_v57 = vld [vmem:[#allocation2 + $0xc0] sm:$0xff]  }
 0x22e   : > { %7652 = vmatprep.mubr.bf16.mxu0 %v7933_v14  ;;  %v2319_v14 = vpop.f32.mrf.mxu1  ;;  %v6970_v50 = vcombine.low %v5206_v33, %v5216_v3  ;;  %10922 = vst [vmem:[#allocation40_spill] sm:$0xff] %v10050_v5  ;;  %v5244_v52 = vrot.slane %v5242_v20, 4  ;;  %v5247_v44 = vrot.slane %v5245_v4, 5  ;;  %v5261_v59 = vshll.u32 %v10044_v25, 16  ;;  %v10057_v33 = vld [vmem:[#allocation2 + $0xd4] sm:$0x1] }
 0x22f   : > { %v5225_v23 = vrot.slane %v5224_v12, 4  ;;  %v5235_v40 = vrot.slane %v5234_v47, 4  ;;  %v5253_v54 = vrot.slane %v5251_v26, 5  ;;  %v5257_v43 = vrot.slane %v5255_v19, 4  ;;  %10924 = vst [vmem:[#allocation42_spill] sm:$0xff] %v10057_v33 }
 0x230   : > { %7700 = vmatprep.mubr.bf16.mxu1 %v6970_v50  ;;  %v10055_v2 = vadd.f32 %v2319_v14, %v2014_v6  ;;  %v5248_v3 = vor.u32 %v5247_v44, %v5244_v52  ;;  %v5263_v47 = vrot.slane %v5261_v59, 5  ;;  %v5266_v4 = vshrl.u32 %v4902_v16, 16  ;;  %v5612_v44 = vld [vmem:[#allocation2 + $0x24] sm:$0xe] }
 0x231   : > { %v5230_v39 = vsel %vm8278_vm2, %v5225_v23, %v5229_v34  ;;  %v5240_v12 = vsel %vm8278_vm2, %v5235_v40, %v5239_v56  ;;  %v5258_v50 = vor.u32 %v5257_v43, %v5253_v54  ;;  %v5269_v36 = vshll.u32 %v4902_v16, 16  ;;  %v5611_v56 = vld [vmem:[#allocation2 + $0x18] sm:$0xe] }
 0x232   : > { %10923 = vst [vmem:[#allocation41_spill] sm:$0xff] %v10055_v2  ;;  %v7418_v20 = vpop.f32.mrf.mxu1  ;;  %v6971_v48 = vcombine.low %v5230_v39, %v5240_v12  ;;  %v5275_v34 = vshll.u32 %v10050_v5, 16  ;;  %v5249_v23 = vrot.slane %v5248_v3, 4  ;;  %v5268_v26 = vrot.slane %v5266_v4, 4  ;;  %v7939_v2 = vld [vmem:[#allocation2 + $0xcc] sm:$0xff]  }
 0x233   : > { %v5279_v14 = vshrl.u32 %v10050_v5, 16  ;;  %v5285_v6 = vshll.u32 %v10057_v33, 16  ;;  %v5684_v16 = vrot.slane %v9755_v63, 5  ;;  %v5271_v40 = vrot.slane %v5269_v36, 5  ;;  %v6149_v63 = vld [vmem:[%s10068_s13 + $0x8] sm:$0xff] }
 0x234   : > { %v2332_v19 = vpop.f32.mrf.mxu1  ;;  %7701 = vmatmul.mubr.bf16.gmra.mxu1 %v6971_v48  ;;  %v5277_v52 = vrot.slane %v5275_v34, 5  ;;  %v5687_v59 = vrot.slane %v9757_v7, 5  ;;  %v6982_v48 = vrot.slane %v5611_v56, 9  ;;  %v5677_v36 = vrot.slane %v9737_v24, 5 }
 0x235   : > { %7653 = vmatmul.mubr.bf16.gmra.mxu0 %v7935_v10  ;;  %v5259_v10 = vrot.slane %v5258_v50, 4  ;;  %v5281_v39 = vrot.slane %v5279_v14, 4  ;;  %v5287_v43 = vrot.slane %v5285_v6, 5  ;;  %v5272_v4 = vor.u32 %v5271_v40, %v5268_v26 }
 0x236   : > { %7656 = vmatprep.mubr.bf16.mxu0 %v7937_v57  ;;  %v5254_v57 = vsel %vm8278_vm2, %v5249_v23, %v5253_v54  ;;  %v7419_v12 = vpop.f32.mrf.mxu1  ;;  %v5680_v7 = vrot.slane %v9740_v61, 5  ;;  %v6983_v5 = vrot.slane %v5612_v44, 9  ;;  %v5613_v54 = vld [vmem:[#allocation2 + $0x30] sm:$0xe]  ;;  %v5678_v14 = vsel %vm8906_vm4, %v6982_v48, %v5677_v36 }
 0x237   : > { %v5264_v3 = vsel %vm8278_vm2, %v5259_v10, %v5263_v47  ;;  %v5282_v34 = vor.u32 %v5281_v39, %v5277_v52  ;;  %v5273_v23 = vrot.slane %v5272_v4, 4  ;;  %v5679_v6 = vrot.slane %v5677_v36, 4 }
 0x238   : > { %v6972_v50 = vcombine.low %v5254_v57, %v5264_v3  ;;  %v2335_v33 = vpop.f32.mrf.mxu1  ;;  %v5686_v47 = vrot.slane %v5684_v16, 4  ;;  %v6180_v10 = vpack.c.bf16 %v6149_v63, %v6148_v35  ;;  %v5685_v24 = vsel %vm8906_vm4, %v6983_v5, %v5684_v16  ;;  %v5614_v3 = vld [vmem:[#allocation2 + $0x3c] sm:$0xe] }
 0x239   : > { %v5283_v26 = vrot.slane %v5282_v34, 4  ;;  %v5278_v56 = vsel %vm8278_vm2, %v5273_v23, %v5277_v52  ;;  %v5681_v44 = vsel %vm8906_vm4, %v5679_v6, %v5680_v7  ;;  %v6984_v39 = vrot.slane %v5613_v54, 9  ;;  %v5615_v52 = vld [vmem:[#allocation2 + $0x48] sm:$0xe]  ;;  %v5616_v34 = vld [vmem:[#allocation2 + $0x54] sm:$0xe] }
 0x23a   : > { %7704 = vmatprep.mubr.bf16.mxu1 %v6972_v50  ;;  %v10082_v40 = vpop.f32.mrf.mxu1  ;;  %v5688_v57 = vsel %vm8906_vm4, %v5686_v47, %v5687_v59  ;;  %v7014_v63 = vcombine.low %v5678_v14, %v5681_v44  ;;  %v5691_v36 = vrot.slane %v9768_v17, 5  ;;  %v5694_v50 = vrot.slane %v9777_v0, 5  ;;  %v6150_v54 = vld [vmem:[%s10068_s13 + $0x10] sm:$0xff]  ;;  %v6151_v47 = vld [vmem:[%s10068_s13 + $0x18] sm:$0xff] }
 0x23b   : > { %v7370_v61 = vpop.f32.mrf.mxu0  ;;  %v5288_v35 = vsel %vm8278_vm2, %v5283_v26, %v5287_v43  ;;  %v7015_v16 = vcombine.low %v5685_v24, %v5688_v57  ;;  %v5698_v43 = vrot.slane %v9786_v30, 5  ;;  %v6986_v0 = vrot.slane %v5615_v52, 9  ;;  %v6152_v30 = vld [vmem:[%s10068_s13 + $0x20] sm:$0xff]  ;;  %v6153_v24 = vld [vmem:[%s10068_s13 + $0x28] sm:$0xff] }
 0x23c   : > { %v10094_v4 = vadd.f32 %v7418_v20, %v7370_v61  ;;  %v10096_v5 = vpop.f32.mrf.mxu1  ;;  %v6985_v20 = vrot.slane %v5614_v3, 9  ;;  %v5692_v17 = vsel %vm8906_vm4, %v6984_v39, %v5691_v36  ;;  %v5693_v23 = vrot.slane %v5691_v36, 4  ;;  %v5618_v52 = vld [vmem:[#allocation2 + $0x6c] sm:$0xe] }
 0x23d   : > { %7657 = vmatmul.mubr.bf16.gmra.mxu0 %v7939_v2  ;;  %v6973_v2 = vcombine.low %v5278_v56, %v5288_v35  ;;  %v2027_v48 = vpop.f32.mrf.mxu0  ;;  %v5701_v14 = vrot.slane %v9792_v8, 5  ;;  %v5700_v56 = vrot.slane %v5698_v43, 4  ;;  %v5708_v61 = vrot.slane %v9813_v51, 5  ;;  %v5617_v51 = vld [vmem:[#allocation2 + $0x60] sm:$0xe] }
 0x23e   : > { %10925 = vst [vmem:[#allocation43_spill] sm:$0xff] %v10094_v4  ;;  %v10100_v59 = vadd.f32 %v2332_v19, %v2027_v48  ;;  %7724 = vmatprep.mubr.bf16.mxu0 %v7014_v63  ;;  %v10102_v27 = vpop.f32.mrf.mxu1  ;;  %v5705_v19 = vrot.slane %v9809_v15, 5  ;;  %v5695_v57 = vsel %vm8906_vm4, %v5693_v23, %v5694_v50  ;;  %v5712_v63 = vrot.slane %v9827_v58, 5  ;;  %v10940_v4 = vld [vmem:[#allocation13_spill] sm:$0xff] }
 0x23f   : > { %7705 = vmatmul.mubr.bf16.gmra.mxu1 %v6973_v2  ;;  %v7371_v7 = vpop.f32.mrf.mxu0  ;;  %v7016_v35 = vcombine.low %v5692_v17, %v5695_v57  ;;  %v6181_v2 = vpack.c.bf16 %v6151_v47, %v6150_v54  ;;  %v6182_v36 = vpack.c.bf16 %v6153_v24, %v6152_v30  ;;  %v5699_v50 = vsel %vm8906_vm4, %v6985_v20, %v5698_v43  ;;  %v5620_v24 = vld [vmem:[#allocation2 + $0x84] sm:$0xe] }
 0x240   : > { %10926 = vst [vmem:[#allocation44_spill] sm:$0xff] %v10100_v59  ;;  %v10110_v6 = vadd.f32 %v7419_v12, %v7371_v7  ;;  %7772 = vmatprep.mubr.bf16.mxu1 %v6180_v10  ;;  %v10113_v26 = vpop.f32.mrf.mxu1  ;;  %v10122_v15 = vsel %vm8906_vm4, %v6986_v0, %v5705_v19  ;;  %v5707_v8 = vrot.slane %v5705_v19, 4  ;;  %v6987_v12 = vrot.slane %v5616_v34, 9  ;;  %v5619_v0 = vld [vmem:[#allocation2 + $0x78] sm:$0xe] }
 0x241   : > { %v2030_v44 = vpop.f32.mrf.mxu0  ;;  %v5715_v10 = vrot.slane %v9834_v45, 5  ;;  %v5702_v34 = vsel %vm8906_vm4, %v5700_v56, %v5701_v14  ;;  %v6988_v20 = vrot.slane %v5617_v51, 9  ;;  %v5719_v43 = vrot.slane %v9854_v37, 5  ;;  %v6154_v37 = vld [vmem:[%s10068_s13 + $0x30] sm:$0xff] }
 0x242   : > { %10927 = vst [vmem:[#allocation45_spill] sm:$0xff] %v10110_v6  ;;  %v10125_v39 = vadd.f32 %v2335_v33, %v2030_v44  ;;  %v10127_v3 = vpop.f32.mrf.mxu1  ;;  %v5709_v45 = vsel %vm8906_vm4, %v5707_v8, %v5708_v61  ;;  %v10143_v7 = vsel %vm8906_vm4, %v6987_v12, %v5712_v63  ;;  %v5722_v17 = vrot.slane %v9856_v53, 5  ;;  %v6155_v53 = vld [vmem:[%s10068_s13 + $0x38] sm:$0xff] }
 0x243   : > { %v10130_v48 = vpop.f32.mrf.mxu0  ;;  %v7018_v58 = vcombine.low %v10122_v15, %v5709_v45  ;;  %v6989_v23 = vrot.slane %v5618_v52, 9  ;;  %v5729_v19 = vrot.slane %v9887_v60, 5  ;;  %v5726_v30 = vrot.slane %v9881_v32, 5  ;;  %v10938_v6 = vld [vmem:[#allocation11_spill] sm:$0xff] }
 0x244   : > { %10928 = vst [vmem:[#allocation46_spill] sm:$0xff] %v10125_v39  ;;  %v10136_v33 = vpop.f32.mrf.mxu1  ;;  %v7017_v61 = vcombine.low %v5699_v50, %v5702_v34  ;;  %v10165_v44 = vsel %vm8906_vm4, %v6988_v20, %v5719_v43  ;;  %v5721_v57 = vrot.slane %v5719_v43, 4  ;;  %v6990_v12 = vrot.slane %v5619_v0, 9  ;;  %v10937_v39 = vld [vmem:[#allocation12_spill] sm:$0xff] }
 0x245   : > { %7725 = vmatmul.mubr.bf16.vlgmr.msra.gmra.mxu0 %v7015_v16  ;;  %v5714_v16 = vrot.slane %v5712_v63, 4  ;;  %v10145_v54 = vpop.f32.mrf.mxu0  ;;  %v10171_v32 = vsel %vm8906_vm4, %v6989_v23, %v5726_v30  ;;  %v5728_v8 = vrot.slane %v5726_v30, 4  ;;  %v6157_v63 = vld [vmem:[%s10068_s13 + $0x48] sm:$0xff]  ;;  %v5733_v52 = vrot.slane %v9915_v49, 5 }
 0x246   : > { %7728 = vmatprep.mubr.bf16.mxu0 %v7016_v35  ;;  %v10150_v14 = vpop.f32.mrf.mxu1  ;;  %v6156_v35 = vld [vmem:[%s10068_s13 + $0x40] sm:$0xff]  ;;  %v5723_v51 = vsel %vm8906_vm4, %v5721_v57, %v5722_v17  ;;  %v6183_v50 = vpack.c.bf16 %v6155_v53, %v6154_v37  ;;  %v5740_v20 = vrot.slane %v9944_v1, 5  ;;  %v5743_v23 = vrot.slane %v9946_v41, 5 }
 0x247   : > { %v10154_v47 = vsel %vm8906_vm4, %v5714_v16, %v5715_v10  ;;  %7773 = vmatmul.mubr.bf16.vlgmr.msra.gmra.mxu1 %v6181_v2  ;;  %v10157_v56 = vpop.f32.mrf.mxu0  ;;  %v5736_v2 = vrot.slane %v9917_v62, 5  ;;  %v7020_v34 = vcombine.low %v10165_v44, %v5723_v51  ;;  %v10186_v16 = vsel %vm8906_vm4, %v5728_v8, %v5729_v19  ;;  %v6158_v8 = vld [vmem:[%s10068_s13 + $0x50] sm:$0xff] }
 0x248   : > { %7776 = vmatprep.mubr.bf16.mxu1 %v6182_v36  ;;  %v10167_v15 = vpop.f32.mrf.mxu1  ;;  %v6991_v36 = vrot.slane %v5620_v24, 9  ;;  %v10195_v62 = vsel %vm8906_vm4, %v6990_v12, %v5733_v52  ;;  %v5735_v17 = vrot.slane %v5733_v52, 4  ;;  %v6184_v0 = vpack.c.bf16 %v6157_v63, %v6156_v35  ;;  %v5622_v24 = vld [vmem:[#allocation2 + $0x9c] sm:$0xe] }
 0x249   : > { %v10173_v10 = vpop.f32.mrf.mxu0  ;;  %v5742_v30 = vrot.slane %v5740_v20, 4  ;;  %v2229_v44 = vadd.f32 %v9478_v21, %v9487_v18  ;;  %v6159_v12 = vld [vmem:[%s10068_s13 + $0x58] sm:$0xff]  ;;  %v6993_v63 = vrot.slane %v5622_v24, 9  ;;  %v2221_v51 = vadd.f32 %v9503_v28, %v9513_v31  ;;  %v6161_v21 = vld [vmem:[%s10068_s13 + $0x68] sm:$0xff]  ;;  %v10933_v28 = vld [vmem:[#allocation8_spill] sm:$0xff] }
 0x24a   : > { %v10181_v45 = vpop.f32.mrf.mxu1  ;;  %v10202_v1 = vsel %vm8906_vm4, %v6991_v36, %v5740_v20  ;;  %v10206_v53 = vsel %vm8906_vm4, %v5735_v17, %v5736_v2  ;;  %v2232_v52 = vadd.f32 %v9538_v46, %v9547_v38  ;;  %v6160_v36 = vld [vmem:[%s10068_s13 + $0x60] sm:$0xff]  ;;  %v5754_v18 = vrot.slane %v9988_v22, 5  ;;  %v5624_v20 = vld [vmem:[#allocation2 + $0xb4] sm:$0xe]  ;;  %v10929_v17 = vld [vmem:[#allocation7_spill] sm:$0xff] }
 0x24b   : > { %v10189_v43 = vpop.f32.mrf.mxu0  ;;  %v10931_v24 = vld [vmem:[#allocation5_spill] sm:$0xff]  ;;  %v10932_v35 = vld [vmem:[#allocation3_spill] sm:$0xff]  ;;  %v10934_v31 = vld [vmem:[#allocation4_spill] sm:$0xff]  ;;  %v2240_v59 = vadd.f32 %v10938_v6, %v10937_v39  ;;  %v6995_v6 = vrot.slane %v5624_v20, 9 }
 0x24c   : > { %v10198_v19 = vpop.f32.mrf.mxu1  ;;  %v2245_v41 = vadd.f32 %v10932_v35, %v10931_v24  ;;  %v2237_v49 = vadd.f32 %v10934_v31, %v10933_v28  ;;  %v10935_v46 = vld [vmem:[#allocation10_spill] sm:$0xff]  ;;  %v10936_v38 = vld [vmem:[#allocation9_spill] sm:$0xff]  ;;  %v5756_v35 = vrot.slane %v5754_v18, 4  ;;  %v10941_v28 = vcombine.low %v10143_v7, %v10154_v47  ;;  %v10943_v7 = vld [vmem:[#allocation15_spill] sm:$0xff] }
 0x24d   : > { %7729 = vmatmul.mubr.bf16.gmra.mxu0 %v7017_v61  ;;  %v2689_v37 = vpop.f32.mrf.mxu0  ;;  %v10939_v22 = vld [vmem:[#allocation14_spill] sm:$0xff]  ;;  %v6186_v31 = vpack.c.bf16 %v6161_v21, %v6160_v36  ;;  %v10944_v20 = vld [vmem:[#allocation19_spill] sm:$0xff] }
 0x24e   : > { %7732 = vmatprep.mubr.bf16.mxu0 %v7018_v58  ;;  %v10208_v61 = vpop.f32.mrf.mxu1  ;;  %v10214_v58 = vsel %vm8906_vm4, %v5742_v30, %v5743_v23  ;;  %v10930_v23 = vld [vmem:[#allocation6_spill] sm:$0xff] }
 0x24f   : > { %7777 = vmatmul.mubr.bf16.gmra.mxu1 %v6183_v50  ;;  %v10218_v57 = vpop.f32.mrf.mxu0  ;;  %v5757_v50 = vrot.slane %v9992_v29, 5  ;;  %v2224_v30 = vadd.f32 %v10930_v23, %v10929_v17  ;;  %v2261_v29 = vadd.f32 %v10940_v4, %v10939_v22  ;;  %v10250_v17 = vsel %vm8906_vm4, %v6993_v63, %v5754_v18  ;;  %v10942_v18 = vld [vmem:[#allocation16_spill] sm:$0xff] }
 0x250   : > { %7780 = vmatprep.mubr.bf16.mxu1 %v6184_v0  ;;  %v10228_v2 = vpop.f32.mrf.mxu1  ;;  %v2248_v0 = vadd.f32 %v10936_v38, %v10935_v46  ;;  %v6185_v23 = vpack.c.bf16 %v6159_v12, %v6158_v8  ;;  %v5747_v46 = vrot.slane %v9964_v11, 5  ;;  %v5621_v38 = vld [vmem:[#allocation2 + $0x90] sm:$0xe]  ;;  %v5768_v8 = vrot.slane %v10021_v55, 5 }
 0x251   : > { %v2692_v60 = vpop.f32.mrf.mxu0  ;;  %v10260_v63 = vsel %vm8906_vm4, %v5756_v35, %v5757_v50  ;;  %v5771_v12 = vrot.slane %v10027_v13, 5  ;;  %v2256_v47 = vadd.f32 %v10943_v7, %v10942_v18  ;;  %v2802_v11 = vadd.f32 %v10130_v48, %v2229_v44  ;;  %v6162_v35 = vld [vmem:[%s10068_s13 + $0x70] sm:$0xff]  ;;  %v6164_v7 = vld [vmem:[%s10068_s13 + $0x80] sm:$0xff] }
 0x252   : > { %v10246_v25 = vpop.f32.mrf.mxu1  ;;  %v7025_v21 = vcombine.low %v10250_v17, %v10260_v63  ;;  %v2803_v50 = vadd.f32 %v10157_v56, %v2232_v52  ;;  %v10276_v22 = vsel %vm8906_vm4, %v6995_v6, %v5768_v8  ;;  %v2801_v48 = vadd.f32 %v10173_v10, %v2224_v30  ;;  %v6163_v56 = vld [vmem:[%s10068_s13 + $0x78] sm:$0xff]  ;;  %v10965_v63 = vld [vmem:[#allocation32_spill] sm:$0xff] }
 0x253   : > { %v7446_v24 = vpop.f32.mrf.mxu0  ;;  %v2804_v44 = vadd.f32 %v2689_v37, %v2237_v49  ;;  %v6992_v52 = vrot.slane %v5621_v38, 9  ;;  %v5749_v6 = vrot.slane %v5747_v46, 4  ;;  %v2805_v49 = vadd.f32 %v2692_v60, %v2240_v59 }
 0x254   : > { %v2810_v39 = vadd.f32 %v7446_v24, %v2261_v29  ;;  %v10256_v4 = vpop.f32.mrf.mxu1  ;;  %v5770_v29 = vrot.slane %v5768_v8, 4  ;;  %v10945_v24 = vld [vmem:[#allocation20_spill] sm:$0xff]  ;;  %v10296_v30 = vadd.f32 %v10082_v40, %v2802_v11  ;;  %v10305_v59 = vadd.f32 %v10102_v27, %v2803_v50 }
 0x255   : > { %7733 = vmatmul.mubr.bf16.gmra.mxu0 %v10941_v28  ;;  %v2705_v36 = vpop.f32.mrf.mxu0  ;;  %v10308_v60 = vadd.f32 %v10113_v26, %v2801_v48 }
 0x256   : > { %7736 = vmatprep.mubr.bf16.mxu0 %v7020_v34  ;;  %v2800_v34 = vadd.f32 %v10145_v54, %v2221_v51  ;;  %v2808_v55 = vadd.f32 %v2705_v36, %v10944_v20  ;;  %v10272_v13 = vpop.f32.mrf.mxu1  ;;  %v2806_v54 = vadd.f32 %v10189_v43, %v2245_v41  ;;  %v6165_v36 = vld [vmem:[%s10068_s13 + $0x88] sm:$0xff]  ;;  %v10290_v10 = vsel %vm8906_vm4, %v5770_v29, %v5771_v12 }
 0x257   : > { %7781 = vmatmul.mubr.bf16.gmra.mxu1 %v6185_v23  ;;  %v7447_v51 = vpop.f32.mrf.mxu0  ;;  %v10946_v20 = vld [vmem:[#allocation29_spill] sm:$0xff]  ;;  %v2807_v43 = vadd.f32 %v10218_v57, %v2248_v0  ;;  %v7027_v41 = vcombine.low %v10276_v22, %v10290_v10  ;;  %v10947_v12 = vcombine.low %v10171_v32, %v10186_v16  ;;  %v6188_v57 = vpack.c.bf16 %v6165_v36, %v6164_v7  ;;  %v10948_v0 = vld [vmem:[#allocation23_spill] sm:$0xff] }
 0x258   : > { %v2811_v28 = vadd.f32 %v7447_v51, %v10945_v24  ;;  %7784 = vmatprep.mubr.bf16.mxu1 %v6186_v31  ;;  %v10283_v18 = vpop.f32.mrf.mxu1  ;;  %v5750_v8 = vrot.slane %v10946_v20, 5  ;;  %v6187_v31 = vpack.c.bf16 %v6163_v56, %v6162_v35  ;;  %v10299_v51 = vadd.f32 %v10096_v5, %v2800_v34  ;;  %v10950_v34 = vld [vmem:[#allocation31_spill] sm:$0xff]  ;;  %v10953_v35 = vld [vmem:[#allocation17_spill] sm:$0xff] }
 0x259   : > { %v2708_v37 = vpop.f32.mrf.mxu0  ;;  %v10311_v40 = vadd.f32 %v10127_v3, %v2806_v54  ;;  %v10949_v5 = vcombine.low %v10195_v62, %v10206_v53  ;;  %v5748_v32 = vsel %vm8906_vm4, %v6992_v52, %v5747_v46  ;;  %v10322_v16 = vadd.f32 %v10136_v33, %v2804_v44  ;;  %v10951_v46 = vld [vmem:[#allocation24_spill] sm:$0xff]  ;;  %v5623_v54 = vld [vmem:[#allocation2 + $0xa8] sm:$0xe] }
 0x25a   : > { %v2809_v23 = vadd.f32 %v2708_v37, %v2256_v47  ;;  %v7502_v38 = vpop.f32.mrf.mxu1  ;;  %v5751_v27 = vsel %vm8906_vm4, %v5749_v6, %v5750_v8  ;;  %v5761_v3 = vrot.slane %v10950_v34, 5  ;;  %v10326_v50 = vadd.f32 %v10150_v14, %v2807_v43  ;;  %v10954_v52 = vld [vmem:[#allocation25_spill] sm:$0xff] }
 0x25b   : > { %v7450_v24 = vpop.f32.mrf.mxu0  ;;  %v10329_v62 = vadd.f32 %v10167_v15, %v2805_v49  ;;  %v10332_v53 = vadd.f32 %v10181_v45, %v2810_v39  ;;  %v10336_v33 = vadd.f32 %v10198_v19, %v2808_v55  ;;  %v10339_v44 = vadd.f32 %v10208_v61, %v2811_v28  ;;  %v10952_v39 = vld [vmem:[#allocation18_spill] sm:$0xff]  ;;  %v6167_v55 = vld [vmem:[%s10068_s13 + $0x98] sm:$0xff]  ;;  %v6168_v28 = vld [vmem:[%s10068_s13 + $0xa0] sm:$0xff] }
 0x25c   : > { %v2814_v47 = vadd.f32 %v7450_v24, %v10948_v0  ;;  %v3123_v11 = vpop.f32.mrf.mxu1  ;;  %v10342_v14 = vadd.f32 %v10228_v2, %v2809_v23  ;;  %v2272_v56 = vadd.f32 %v10953_v35, %v10952_v39  ;;  %v6166_v19 = vld [vmem:[%s10068_s13 + $0x90] sm:$0xff]  ;;  %v7024_v6 = vcombine.low %v5748_v32, %v5751_v27  ;;  %v6169_v20 = vld [vmem:[%s10068_s13 + $0xa8] sm:$0xff] }
 0x25d   : > { %7737 = vmatmul.mubr.bf16.gmra.mxu0 %v10947_v12  ;;  %v2721_v26 = vpop.f32.mrf.mxu0  ;;  %v6994_v8 = vrot.slane %v5623_v54, 9  ;;  %v5763_v43 = vrot.slane %v5761_v3, 4  ;;  %v6189_v24 = vpack.c.bf16 %v6167_v55, %v6166_v19  ;;  %v10960_v39 = vld [vmem:[#allocation21_spill] sm:$0xff] }
 0x25e   : > { %7740 = vmatprep.mubr.bf16.mxu0 %v10949_v5  ;;  %v2812_v29 = vadd.f32 %v2721_v26, %v10951_v46  ;;  %v7503_v48 = vpop.f32.mrf.mxu1  ;;  %v10345_v45 = vadd.f32 %v10246_v25, %v2814_v47  ;;  %v10955_v25 = vld [vmem:[#allocation33_spill] sm:$0xff]  ;;  %v6190_v47 = vpack.c.bf16 %v6169_v20, %v6168_v28 }
 0x25f   : > { %7785 = vmatmul.mubr.bf16.gmra.mxu1 %v6187_v31  ;;  %v7451_v15 = vpop.f32.mrf.mxu0  ;;  %v5764_v49 = vrot.slane %v10955_v25, 5  ;;  %v6173_v28 = vld [vmem:[%s10068_s13 + $0xc8] sm:$0xff] }
 0x260   : > { %v2815_v7 = vadd.f32 %v7451_v15, %v10954_v52  ;;  %7788 = vmatprep.mubr.bf16.mxu1 %v6188_v57  ;;  %v3126_v36 = vpop.f32.mrf.mxu1  ;;  %v10353_v61 = vadd.f32 %v10256_v4, %v2812_v29  ;;  %v10956_v57 = vcombine.low %v10202_v1, %v10214_v58  ;;  %v10957_v4 = vld [vmem:[#allocation26_spill] sm:$0xff]  ;;  %v5775_v1 = vrot.slane %v10038_v9, 5  ;;  %v10958_v58 = vld [vmem:[#allocation27_spill] sm:$0xff]  ;;  %v5625_v29 = vld [vmem:[#allocation2 + $0xc0] sm:$0xe] }
 0x261   : > { %v2724_v2 = vpop.f32.mrf.mxu0  ;;  %v5765_v26 = vsel %vm8906_vm4, %v5763_v43, %v5764_v49  ;;  %v10959_v15 = vld [vmem:[#allocation22_spill] sm:$0xff]  ;;  %v6996_v20 = vrot.slane %v5625_v29, 9 }
 0x262   : > { %v2813_v37 = vadd.f32 %v2724_v2, %v2272_v56  ;;  %v7506_v23 = vpop.f32.mrf.mxu1  ;;  %v10359_v31 = vadd.f32 %v10272_v13, %v2815_v7  ;;  %v5762_v13 = vsel %vm8906_vm4, %v6994_v8, %v5761_v3  ;;  %v2288_v35 = vadd.f32 %v10960_v39, %v10959_v15  ;;  %v10961_v56 = vld [vmem:[#allocation28_spill] sm:$0xff]  ;;  %v6170_v52 = vld [vmem:[%s10068_s13 + $0xb0] sm:$0xff]  ;;  %v6171_v7 = vld [vmem:[%s10068_s13 + $0xb8] sm:$0xff] }
 0x263   : > { %v7454_v12 = vpop.f32.mrf.mxu0  ;;  %v7026_v9 = vcombine.low %v5762_v13, %v5765_v26  ;;  %v6172_v2 = vld [vmem:[%s10068_s13 + $0xc0] sm:$0xff]  ;;  %v10962_v8 = vld [vmem:[#allocation39_spill] sm:$0xff]  ;;  %v6174_v15 = vld [vmem:[%s10068_s13 + $0xd0] sm:$0xff] }
 0x264   : > { %v2818_v0 = vadd.f32 %v7454_v12, %v10957_v4  ;;  %v3139_v5 = vpop.f32.mrf.mxu1  ;;  %v10366_v32 = vadd.f32 %v10283_v18, %v2813_v37  ;;  %v5778_v43 = vrot.slane %v10962_v8, 5  ;;  %v6192_v4 = vpack.c.bf16 %v6173_v28, %v6172_v2 }
 0x265   : > { %7741 = vmatmul.mubr.bf16.gmra.mxu0 %v10956_v57  ;;  %v2737_v27 = vpop.f32.mrf.mxu0  ;;  %v10963_v57 = vld [vmem:[#allocation30_spill] sm:$0xff] }
 0x266   : > { %7744 = vmatprep.mubr.bf16.mxu0 %v7024_v6  ;;  %v2816_v34 = vadd.f32 %v2737_v27, %v10958_v58  ;;  %v7507_v46 = vpop.f32.mrf.mxu1  ;;  %v10374_v54 = vadd.f32 %v7502_v38, %v2818_v0  ;;  %v5777_v38 = vrot.slane %v5775_v1, 4  ;;  %v10964_v27 = vld [vmem:[#allocation40_spill] sm:$0xff]  ;;  %v5776_v58 = vsel %vm8906_vm4, %v6996_v20, %v5775_v1 }
 0x267   : > { %7789 = vmatmul.mubr.bf16.gmra.mxu1 %v6189_v24  ;;  %v7455_v18 = vpop.f32.mrf.mxu0  ;;  %v6191_v24 = vpack.c.bf16 %v6171_v7, %v6170_v52  ;;  %v5782_v13 = vrot.slane %v10964_v27, 5  ;;  %v6175_v52 = vld [vmem:[%s10068_s13 + $0xd8] sm:$0xff]  ;;  %v6176_v1 = vld [vmem:[%s10068_s13 + $0xe0] sm:$0xff] }
 0x268   : > { %v2819_v3 = vadd.f32 %v7455_v18, %v10961_v56  ;;  %7792 = vmatprep.mubr.bf16.mxu1 %v6190_v47  ;;  %v3142_v19 = vpop.f32.mrf.mxu1  ;;  %v10381_v55 = vadd.f32 %v3123_v11, %v2816_v34  ;;  %v5626_v47 = vld [vmem:[#allocation2 + $0xcc] sm:$0xe]  ;;  %v5779_v17 = vsel %vm8906_vm4, %v5777_v38, %v5778_v43  ;;  %v10967_v56 = vld [vmem:[#allocation34_spill] sm:$0xff] }
 0x269   : > { %v2740_v6 = vpop.f32.mrf.mxu0  ;;  %v6997_v39 = vrot.slane %v5626_v47, 9  ;;  %v5784_v2 = vrot.slane %v5782_v13, 4 }
 0x26a   : > { %v2817_v25 = vadd.f32 %v2740_v6, %v2288_v35  ;;  %v7510_v49 = vpop.f32.mrf.mxu1  ;;  %v10386_v37 = vadd.f32 %v7503_v48, %v2819_v3  ;;  %v7028_v6 = vcombine.low %v5776_v58, %v5779_v17 }
 0x26c   : > { %v7458_v12 = vpop.f32.mrf.mxu0  ;;  %v3155_v0 = vpop.f32.mrf.mxu1  ;;  %v10393_v26 = vadd.f32 %v3126_v36, %v2817_v25  ;;  %v10966_v36 = vld [vmem:[#allocation42_spill] sm:$0xff]  ;;  %v6193_v25 = vpack.c.bf16 %v6175_v52, %v6174_v15  ;;  %v6179_v15 = vld [vmem:[%s10068_s13 + $0xf8] sm:$0xff] }
 0x26d   : > { %7745 = vmatmul.mubr.bf16.gmra.mxu0 %v7025_v21  ;;  %v2822_v11 = vadd.f32 %v7458_v12, %v10963_v57  ;;  %v5785_v35 = vrot.slane %v10966_v36, 5  ;;  %v10969_v57 = vld [vmem:[#allocation36_spill] sm:$0xff]  ;;  %v10973_v52 = vld [vmem:[#allocation43_spill] sm:$0xff] }
 0x26e   : > { %7748 = vmatprep.mubr.bf16.mxu0 %v7026_v9  ;;  %v2753_v48 = vpop.f32.mrf.mxu0  ;;  %v7511_v34 = vpop.f32.mrf.mxu1  ;;  %v6177_v9 = vld [vmem:[%s10068_s13 + $0xe8] sm:$0xff] }
 0x26f   : > { %v2820_v21 = vadd.f32 %v2753_v48, %v10965_v63  ;;  %v10400_v29 = vadd.f32 %v7506_v23, %v2822_v11  ;;  %7793 = vmatmul.mubr.bf16.gmra.mxu1 %v6191_v24  ;;  %v10968_v23 = vld [vmem:[#allocation35_spill] sm:$0xff]  ;;  %v6194_v12 = vpack.c.bf16 %v6177_v9, %v6176_v1  ;;  %v10970_v48 = vld [vmem:[#allocation37_spill] sm:$0xff]  ;;  %v10971_v63 = vld [vmem:[#allocation38_spill] sm:$0xff] }
 0x270   : > { %v7459_v18 = vpop.f32.mrf.mxu0  ;;  %7796 = vmatprep.mubr.bf16.mxu1 %v6192_v4  ;;  %v3158_v7 = vpop.f32.mrf.mxu1  ;;  %v5783_v4 = vsel %vm8906_vm4, %v6997_v39, %v5782_v13 }
 0x271   : > { %v2823_v3 = vadd.f32 %v7459_v18, %v10967_v56  ;;  %v10408_v28 = vadd.f32 %v3139_v5, %v2820_v21  ;;  %v6178_v18 = vld [vmem:[%s10068_s13 + $0xf0] sm:$0xff] }
 0x272   : > { %v2756_v20 = vpop.f32.mrf.mxu0  ;;  %v7514_v8 = vpop.f32.mrf.mxu1 }
 0x273   : > { %v2821_v38 = vadd.f32 %v2756_v20, %v10968_v23  ;;  %v10411_v43 = vadd.f32 %v7507_v46, %v2823_v3  ;;  %v5786_v46 = vsel %vm8906_vm4, %v5784_v2, %v5785_v35  ;;  %v6195_v3 = vpack.c.bf16 %v6179_v15, %v6178_v18  ;;  %v10974_v20 = vld [vmem:[#allocation44_spill] sm:$0xff] }
 0x274   : > { %v7462_v24 = vpop.f32.mrf.mxu0  ;;  %v3171_v5 = vpop.f32.mrf.mxu1  ;;  %v7029_v17 = vcombine.low %v5783_v4, %v5786_v46  ;;  %v10976_v4 = vld [vmem:[#allocation46_spill] sm:$0xff] }
 0x275   : > { %7749 = vmatmul.mubr.bf16.gmra.mxu0 %v7027_v41  ;;  %v2826_v11 = vadd.f32 %v7462_v24, %v10969_v57  ;;  %v10421_v47 = vadd.f32 %v3142_v19, %v2821_v38  ;;  %v10972_v19 = vld [vmem:[#allocation41_spill] sm:$0xff] }
 0x276   : > { %7752 = vmatprep.mubr.bf16.mxu0 %v7028_v6  ;;  %v2769_v27 = vpop.f32.mrf.mxu0  ;;  %v7515_v22 = vpop.f32.mrf.mxu1  ;;  %v10975_v24 = vld [vmem:[#allocation45_spill] sm:$0xff] }
 0x277   : > { %v2824_v58 = vadd.f32 %v2769_v27, %v10970_v48  ;;  %v10424_v10 = vadd.f32 %v7510_v49, %v2826_v11  ;;  %7797 = vmatmul.mubr.bf16.gmra.mxu1 %v6193_v25 }
 0x278   : > { %v7463_v41 = vpop.f32.mrf.mxu0  ;;  %7800 = vmatprep.mubr.bf16.mxu1 %v6194_v12  ;;  %v3174_v13 = vpop.f32.mrf.mxu1 }
 0x279   : > { %v2827_v21 = vadd.f32 %v7463_v41, %v10971_v63  ;;  %v10429_v39 = vadd.f32 %v3155_v0, %v2824_v58 }
 0x27a   : > { %v2772_v42 = vpop.f32.mrf.mxu0  ;;  %v7582_v35 = vpop.f32.mrf.mxu1 }
 0x27b   : > { %v2825_v36 = vadd.f32 %v2772_v42, %v10972_v19  ;;  %v10432_v56 = vadd.f32 %v7511_v34, %v2827_v21 }
 0x27c   : > { %v4311_v9 = vpop.f32.mrf.mxu1 }
 0x27d   : > { %v7466_v49 = vpop.f32.mrf.mxu0  ;;  %7753 = vmatmul.mubr.bf16.gmra.mxu0 %v7029_v17  ;;  %v10435_v6 = vadd.f32 %v3158_v7, %v2825_v36 }
 0x27e   : > { %v2830_v1 = vadd.f32 %v7466_v49, %v10973_v52  ;;  %v7583_v38 = vpop.f32.mrf.mxu1 }
 0x27f   : > { %v2785_v2 = vpop.f32.mrf.mxu0  ;;  %7801 = vmatmul.mubr.bf16.gmra.mxu1 %v6195_v3 }
 0x280   : > { %v2828_v23 = vadd.f32 %v2785_v2, %v10974_v20  ;;  %v10438_v0 = vadd.f32 %v7514_v8, %v2830_v1  ;;  %v4314_v34 = vpop.f32.mrf.mxu1 }
 0x281   : > { %v7467_v25 = vpop.f32.mrf.mxu0 }
 0x282   : > { %v2831_v12 = vadd.f32 %v7467_v25, %v10975_v24  ;;  %v10441_v57 = vadd.f32 %v3171_v5, %v2828_v23  ;;  %v7586_v27 = vpop.f32.mrf.mxu1 }
 0x283   : > { %v2788_v11 = vpop.f32.mrf.mxu0 }
 0x284   : > { %v2829_v46 = vadd.f32 %v2788_v11, %v10976_v4  ;;  %v10444_v48 = vadd.f32 %v7515_v22, %v2831_v12  ;;  %v4327_v41 = vpop.f32.mrf.mxu1 }
 0x285   : > { %v7534_v7 = vpop.f32.mrf.mxu0 }
 0x286   : > { %v3942_v58 = vadd.f32 %v7534_v7, %v10296_v30  ;;  %v10447_v17 = vadd.f32 %v3174_v13, %v2829_v46  ;;  %v7587_v21 = vpop.f32.mrf.mxu1 }
 0x287   : > { %v3813_v8 = vpop.f32.mrf.mxu0 }
 0x288   : > { %v3940_v63 = vadd.f32 %v3813_v8, %v10299_v51  ;;  %v10450_v18 = vadd.f32 %v7582_v35, %v3942_v58  ;;  %v4330_v42 = vpop.f32.mrf.mxu1 }
 0x289   : > { %v7535_v5 = vpop.f32.mrf.mxu0 }
 0x28a   : > { %v3943_v15 = vadd.f32 %v7535_v5, %v10305_v59  ;;  %v10453_v19 = vadd.f32 %v4311_v9, %v3940_v63  ;;  %v7590_v3 = vpop.f32.mrf.mxu1 }
 0x28b   : > { %v3816_v22 = vpop.f32.mrf.mxu0 }
 0x28c   : > { %v3941_v36 = vadd.f32 %v3816_v22, %v10308_v60  ;;  %v10456_v30 = vadd.f32 %v7583_v38, %v3943_v15  ;;  %v4343_v52 = vpop.f32.mrf.mxu1 }
 0x28d   : > { %v7538_v13 = vpop.f32.mrf.mxu0 }
 0x28e   : > { %v3946_v49 = vadd.f32 %v7538_v13, %v10311_v40  ;;  %v10459_v51 = vadd.f32 %v4314_v34, %v3941_v36  ;;  %v7591_v2 = vpop.f32.mrf.mxu1 }
 0x28f   : > { %v3829_v35 = vpop.f32.mrf.mxu0 }
 0x290   : > { %v3944_v1 = vadd.f32 %v3829_v35, %v10322_v16  ;;  %v10462_v59 = vadd.f32 %v7586_v27, %v3946_v49  ;;  %v4346_v23 = vpop.f32.mrf.mxu1 }
 0x291   : > { %v7539_v9 = vpop.f32.mrf.mxu0 }
 0x292   : > { %v3947_v20 = vadd.f32 %v7539_v9, %v10326_v50  ;;  %v10465_v60 = vadd.f32 %v4327_v41, %v3944_v1  ;;  %v7594_v24 = vpop.f32.mrf.mxu1 }
 0x293   : > { %v3832_v38 = vpop.f32.mrf.mxu0 }
 0x294   : > { %v3945_v25 = vadd.f32 %v3832_v38, %v10329_v62  ;;  %v10468_v40 = vadd.f32 %v7587_v21, %v3947_v20  ;;  %v4359_v11 = vpop.f32.mrf.mxu1 }
 0x295   : > { %v7542_v12 = vpop.f32.mrf.mxu0 }
 0x296   : > { %v3950_v34 = vadd.f32 %v7542_v12, %v10332_v53  ;;  %v10471_v16 = vadd.f32 %v4330_v42, %v3945_v25  ;;  %v7595_v27 = vpop.f32.mrf.mxu1 }
 0x297   : > { %v3845_v4 = vpop.f32.mrf.mxu0 }
 0x298   : > { %v3948_v46 = vadd.f32 %v3845_v4, %v10336_v33  ;;  %v10474_v50 = vadd.f32 %v7590_v3, %v3950_v34  ;;  %v4362_v41 = vpop.f32.mrf.mxu1 }
 0x299   : > { %v7543_v7 = vpop.f32.mrf.mxu0 }
 0x29a   : > { %v3951_v58 = vadd.f32 %v7543_v7, %v10339_v44  ;;  %v10477_v62 = vadd.f32 %v4343_v52, %v3948_v46  ;;  %v7598_v21 = vpop.f32.mrf.mxu1 }
 0x29b   : > { %v3848_v8 = vpop.f32.mrf.mxu0 }
 0x29c   : > { %v3949_v63 = vadd.f32 %v3848_v8, %v10342_v14  ;;  %v10480_v53 = vadd.f32 %v7591_v2, %v3951_v58  ;;  %v4375_v42 = vpop.f32.mrf.mxu1 }
 0x29d   : > { %v7546_v5 = vpop.f32.mrf.mxu0 }
 0x29e   : > { %v3954_v15 = vadd.f32 %v7546_v5, %v10345_v45  ;;  %v10483_v33 = vadd.f32 %v4346_v23, %v3949_v63  ;;  %v7599_v3 = vpop.f32.mrf.mxu1 }
 0x29f   : > { %v3861_v22 = vpop.f32.mrf.mxu0 }
 0x2a0   : > { %v3952_v36 = vadd.f32 %v3861_v22, %v10353_v61  ;;  %v10486_v44 = vadd.f32 %v7594_v24, %v3954_v15  ;;  %v4378_v52 = vpop.f32.mrf.mxu1 }
 0x2a1   : > { %v7547_v13 = vpop.f32.mrf.mxu0 }
 0x2a2   : > { %v3955_v49 = vadd.f32 %v7547_v13, %v10359_v31  ;;  %v10489_v14 = vadd.f32 %v4359_v11, %v3952_v36  ;;  %v7602_v2 = vpop.f32.mrf.mxu1 }
 0x2a3   : > { %v3864_v35 = vpop.f32.mrf.mxu0 }
 0x2a4   : > { %v3953_v1 = vadd.f32 %v3864_v35, %v10366_v32  ;;  %v10492_v45 = vadd.f32 %v7595_v27, %v3955_v49  ;;  %v4391_v23 = vpop.f32.mrf.mxu1 }
 0x2a5   : > { %v7550_v9 = vpop.f32.mrf.mxu0 }
 0x2a6   : > { %v3958_v20 = vadd.f32 %v7550_v9, %v10374_v54  ;;  %v10495_v61 = vadd.f32 %v4362_v41, %v3953_v1  ;;  %v7603_v24 = vpop.f32.mrf.mxu1 }
 0x2a7   : > { %v3877_v38 = vpop.f32.mrf.mxu0 }
 0x2a8   : > { %v3956_v25 = vadd.f32 %v3877_v38, %v10381_v55  ;;  %v10498_v31 = vadd.f32 %v7598_v21, %v3958_v20  ;;  %v4394_v11 = vpop.f32.mrf.mxu1 }
 0x2a9   : > { %v7551_v12 = vpop.f32.mrf.mxu0 }
 0x2aa   : > { %v3959_v34 = vadd.f32 %v7551_v12, %v10386_v37  ;;  %v10501_v32 = vadd.f32 %v4375_v42, %v3956_v25  ;;  %v7606_v27 = vpop.f32.mrf.mxu1 }
 0x2ab   : > { %v3880_v4 = vpop.f32.mrf.mxu0 }
 0x2ac   : > { %v3957_v46 = vadd.f32 %v3880_v4, %v10393_v26  ;;  %v10504_v54 = vadd.f32 %v7599_v3, %v3959_v34  ;;  %v4407_v41 = vpop.f32.mrf.mxu1 }
 0x2ad   : > { %v7554_v7 = vpop.f32.mrf.mxu0 }
 0x2ae   : > { %v3962_v58 = vadd.f32 %v7554_v7, %v10400_v29  ;;  %v10507_v55 = vadd.f32 %v4378_v52, %v3957_v46  ;;  %v7607_v21 = vpop.f32.mrf.mxu1 }
 0x2af   : > { %v3893_v8 = vpop.f32.mrf.mxu0 }
 0x2b0   : > { %10977 = vst [vmem:[#allocation7_spill] sm:$0xff] %v10507_v55  ;;  %v3960_v63 = vadd.f32 %v3893_v8, %v10408_v28  ;;  %v10510_v37 = vadd.f32 %v7602_v2, %v3962_v58  ;;  %v4410_v42 = vpop.f32.mrf.mxu1 }
 0x2b1   : > { %v7555_v5 = vpop.f32.mrf.mxu0 }
 0x2b2   : > { %10978 = vst [vmem:[#allocation6_spill] sm:$0xff] %v10510_v37  ;;  %v3963_v15 = vadd.f32 %v7555_v5, %v10411_v43  ;;  %v10513_v26 = vadd.f32 %v4391_v23, %v3960_v63  ;;  %v7610_v3 = vpop.f32.mrf.mxu1 }
 0x2b3   : > { %v3896_v22 = vpop.f32.mrf.mxu0 }
 0x2b4   : > { %10979 = vst [vmem:[#allocation5_spill] sm:$0xff] %v10513_v26  ;;  %v3961_v36 = vadd.f32 %v3896_v22, %v10421_v47  ;;  %v10516_v29 = vadd.f32 %v7603_v24, %v3963_v15  ;;  %v4423_v52 = vpop.f32.mrf.mxu1 }
 0x2b5   : > { %v7558_v13 = vpop.f32.mrf.mxu0 }
 0x2b6   : > { %10980 = vst [vmem:[#allocation3_spill] sm:$0xff] %v10516_v29  ;;  %v3966_v49 = vadd.f32 %v7558_v13, %v10424_v10  ;;  %v10519_v28 = vadd.f32 %v4394_v11, %v3961_v36  ;;  %v7611_v2 = vpop.f32.mrf.mxu1 }
 0x2b7   : > { %v3909_v35 = vpop.f32.mrf.mxu0 }
 0x2b8   : > { %10981 = vst [vmem:[#allocation8_spill] sm:$0xff] %v10519_v28  ;;  %v3964_v1 = vadd.f32 %v3909_v35, %v10429_v39  ;;  %v10522_v43 = vadd.f32 %v7606_v27, %v3966_v49  ;;  %v4426_v23 = vpop.f32.mrf.mxu1 }
 0x2b9   : > { %v7559_v9 = vpop.f32.mrf.mxu0 }
 0x2ba   : > { %10982 = vst [vmem:[#allocation4_spill] sm:$0xff] %v10522_v43  ;;  %v3967_v20 = vadd.f32 %v7559_v9, %v10432_v56  ;;  %v10525_v47 = vadd.f32 %v4407_v41, %v3964_v1 }
 0x2bb   : > { %v3912_v38 = vpop.f32.mrf.mxu0  ;;  %v10530_v12 = vpop.f32.mrf.mxu1 }
 0x2bc   : > { %10983 = vst [vmem:[#allocation10_spill] sm:$0xff] %v10525_v47  ;;  %v3965_v25 = vadd.f32 %v3912_v38, %v10435_v6  ;;  %v10528_v24 = vadd.f32 %v7607_v21, %v3967_v20 }
 0x2bd   : > { %v7562_v10 = vpop.f32.mrf.mxu0  ;;  %v10535_v4 = vpop.f32.mrf.mxu1 }
 0x2be   : > { %10984 = vst [vmem:[#allocation9_spill] sm:$0xff] %v10528_v24  ;;  %v3970_v34 = vadd.f32 %v7562_v10, %v10438_v0  ;;  %v10533_v39 = vadd.f32 %v4410_v42, %v3965_v25 }
 0x2bf   : > { %v3925_v11 = vpop.f32.mrf.mxu0  ;;  %v10540_v7 = vpop.f32.mrf.mxu1 }
 0x2c0   : > { %10985 = vst [vmem:[#allocation12_spill] sm:$0xff] %v10533_v39  ;;  %v3968_v56 = vadd.f32 %v3925_v11, %v10441_v57  ;;  %v10538_v46 = vadd.f32 %v7610_v3, %v3970_v34 }
 0x2c1   : > { %v7563_v27 = vpop.f32.mrf.mxu0  ;;  %v10545_v8 = vpop.f32.mrf.mxu1 }
 0x2c2   : > { %10986 = vst [vmem:[#allocation11_spill] sm:$0xff] %v10538_v46  ;;  %v3971_v6 = vadd.f32 %v7563_v27, %v10444_v48  ;;  %v10543_v58 = vadd.f32 %v4423_v52, %v3968_v56 }
 0x2c3   : > { %v3928_v41 = vpop.f32.mrf.mxu0 }
 0x2c4   : > { %10987 = vst [vmem:[#allocation14_spill] sm:$0xff] %v10543_v58  ;;  %v3969_v0 = vadd.f32 %v3928_v41, %v10447_v17  ;;  %v10548_v63 = vadd.f32 %v7611_v2, %v3971_v6 }
 0x2c5   : > { %v7630_v21 = vpop.f32.mrf.mxu0  ;;  %v10552_v15 = vpop.f32.mrf.mxu1 }
 0x2c6   : > { %10988 = vst [vmem:[#allocation13_spill] sm:$0xff] %v10548_v63  ;;  %v10550_v5 = vadd.f32 %v4426_v23, %v3969_v0 }
 0x2c7   : > { %v4698_v57 = vpop.f32.mrf.mxu0  ;;  %v10554_v22 = vpop.f32.mrf.mxu1 }
 0x2c8   : > { %10989 = vst [vmem:[#allocation16_spill] sm:$0xff] %v10550_v5 }
 0x2c9   : > { %v7631_v42 = vpop.f32.mrf.mxu0  ;;  %v10556_v48 = vpop.f32.mrf.mxu1 }
 0x2cb   : > { %v4701_v36 = vpop.f32.mrf.mxu0  ;;  %v10558_v13 = vpop.f32.mrf.mxu1 }
 0x2cd   : > { %v7634_v3 = vpop.f32.mrf.mxu0 }
 0x2cf   : > { %v10560_v49 = vpop.f32.mrf.mxu0  ;;  %v10564_v52 = vpop.f32.mrf.mxu1 }
 0x2d1   : > { %v10562_v17 = vpop.f32.mrf.mxu0  ;;  %v10568_v1 = vpop.f32.mrf.mxu1 }
 0x2d3   : > { %v10566_v35 = vpop.f32.mrf.mxu0  ;;  %v10572_v9 = vpop.f32.mrf.mxu1 }
 0x2d5   : > { %v10570_v2 = vpop.f32.mrf.mxu0  ;;  %v10576_v23 = vpop.f32.mrf.mxu1 }
 0x2d7   : > { %v10574_v20 = vpop.f32.mrf.mxu0  ;;  %v10580_v25 = vpop.f32.mrf.mxu1 }
 0x2d9   : > { %v10578_v38 = vpop.f32.mrf.mxu0  ;;  %v10584_v34 = vpop.f32.mrf.mxu1 }
 0x2db   : > { %v10582_v10 = vpop.f32.mrf.mxu0  ;;  %v10588_v56 = vpop.f32.mrf.mxu1 }
 0x2dd   : > { %v10586_v11 = vpop.f32.mrf.mxu0  ;;  %v10592_v6 = vpop.f32.mrf.mxu1 }
 0x2df   : > { %v10590_v27 = vpop.f32.mrf.mxu0 }
 0x2e0   : > { %v10598_v5 = vpop.f32.mrf.mxu1 }
 0x2e1   : > { %v10594_v41 = vpop.f32.mrf.mxu0  ;;  %10990 = vst [vmem:[#allocation15_spill] sm:$0xff] %v10598_v5 }
 0x2e2   : > { %v10602_v58 = vpop.f32.mrf.mxu1 }
 0x2e3   : > { %v10596_v0 = vpop.f32.mrf.mxu0  ;;  %10991 = vst [vmem:[#allocation19_spill] sm:$0xff] %v10602_v58 }
 0x2e4   : > { %v10606_v39 = vpop.f32.mrf.mxu1 }
 0x2e5   : > { %v10600_v63 = vpop.f32.mrf.mxu0  ;;  %10992 = vst [vmem:[#allocation20_spill] sm:$0xff] %v10606_v39 }
 0x2e6   : > { %v10610_v47 = vpop.f32.mrf.mxu1 }
 0x2e7   : > { %v10604_v46 = vpop.f32.mrf.mxu0  ;;  %10994 = vst [vmem:[#allocation23_spill] sm:$0xff] %v10610_v47 }
 0x2e9   : > { %v10608_v24 = vpop.f32.mrf.mxu0 }
 0x2ea   : > { %10993 = vst [vmem:[#allocation29_spill] sm:$0xff] %v10608_v24  ;;  %v10616_v29 = vpop.f32.mrf.mxu1 }
 0x2eb   : > { %v10612_v43 = vpop.f32.mrf.mxu0  ;;  %10997 = vst [vmem:[#allocation18_spill] sm:$0xff] %v10616_v29 }
 0x2ec   : > { %10995 = vst [vmem:[#allocation31_spill] sm:$0xff] %v10612_v43  ;;  %v10620_v37 = vpop.f32.mrf.mxu1 }
 0x2ed   : > { %v10614_v28 = vpop.f32.mrf.mxu0  ;;  %10999 = vst [vmem:[#allocation25_spill] sm:$0xff] %v10620_v37 }
 0x2ee   : > { %10996 = vst [vmem:[#allocation24_spill] sm:$0xff] %v10614_v28  ;;  %v10624_v58 = vpop.f32.mrf.mxu1 }
 0x2ef   : > { %v10618_v26 = vpop.f32.mrf.mxu0  ;;  %11001 = vst [vmem:[#allocation26_spill] sm:$0xff] %v10624_v58 }
 0x2f0   : > { %10998 = vst [vmem:[#allocation17_spill] sm:$0xff] %v10618_v26  ;;  %v10628_v39 = vpop.f32.mrf.mxu1 }
 0x2f1   : > { %v10622_v55 = vpop.f32.mrf.mxu0  ;;  %11003 = vst [vmem:[#allocation22_spill] sm:$0xff] %v10628_v39  ;;  %v4827_v39 = vadd.f32 %v7630_v21, %v10450_v18  ;;  %v10667_v18 = vld [vmem:[%s10835_s4] ss:$0 sm:$0xff]  ;;  %v4826_v21 = vadd.f32 %v4701_v36, %v10459_v51 }
 0x2f2   : > { %11000 = vst [vmem:[#allocation33_spill] sm:$0xff] %v10622_v55 }
 0x2f3   : > { %v10626_v5 = vpop.f32.mrf.mxu0 }
 0x2f4   : > { %11002 = vst [vmem:[#allocation27_spill] sm:$0xff] %v10626_v5  ;;  %v10632_v47 = vpop.f32.mrf.mxu1 }
 0x2f5   : > { %v10630_v24 = vpop.f32.mrf.mxu0  ;;  %11005 = vst [vmem:[#allocation28_spill] sm:$0xff] %v10632_v47 }
 0x2f6   : > { %11004 = vst [vmem:[#allocation21_spill] sm:$0xff] %v10630_v24  ;;  %v10636_v28 = vpop.f32.mrf.mxu1 }
 0x2f7   : > { %v10634_v43 = vpop.f32.mrf.mxu0  ;;  %11007 = vst [vmem:[#allocation30_spill] sm:$0xff] %v10636_v28  ;;  %v4825_v28 = vadd.f32 %v4698_v57, %v10453_v19  ;;  %v4831_v57 = vadd.f32 %v7634_v3, %v10462_v59  ;;  %v4832_v59 = vadd.f32 %v10562_v17, %v10468_v40 }
 0x2f8   : > { %11006 = vst [vmem:[#allocation39_spill] sm:$0xff] %v10634_v43  ;;  %v10640_v26 = vpop.f32.mrf.mxu1 }
 0x2f9   : > { %v10638_v29 = vpop.f32.mrf.mxu0  ;;  %11009 = vst [vmem:[#allocation32_spill] sm:$0xff] %v10640_v26  ;;  %v4828_v26 = vadd.f32 %v7631_v42, %v10456_v30  ;;  %v5579_v19 = vadd.f32 %v10535_v4, %v4825_v28  ;;  %v5580_v28 = vadd.f32 %v10545_v8, %v4826_v21  ;;  %v4830_v8 = vadd.f32 %v10566_v35, %v10471_v16 }
 0x2fa   : > { %11008 = vst [vmem:[#allocation40_spill] sm:$0xff] %v10638_v29  ;;  %v10644_v55 = vpop.f32.mrf.mxu1 }
 0x2fb   : > { %v10642_v37 = vpop.f32.mrf.mxu0  ;;  %11011 = vst [vmem:[#allocation34_spill] sm:$0xff] %v10644_v55  ;;  %v5581_v55 = vadd.f32 %v10530_v12, %v4827_v39  ;;  %v5582_v42 = vadd.f32 %v10540_v7, %v4828_v26 }
 0x2fc   : > { %11010 = vst [vmem:[#allocation42_spill] sm:$0xff] %v10642_v37 }
 0x2fd   : > { %v10646_v58 = vpop.f32.mrf.mxu0 }
 0x2fe   : > { %11012 = vst [vmem:[#allocation35_spill] sm:$0xff] %v10646_v58 }
 0x2ff   : > { %v10648_v5 = vpop.f32.mrf.mxu0  ;;  %v10651_v24 = vpop.f32.mrf.mxu1 }
 0x300   : > { %11013 = vst [vmem:[#allocation36_spill] sm:$0xff] %v10651_v24 }
 0x301   : > { %v10653_v47 = vpop.f32.mrf.mxu0  ;;  %v10656_v43 = vpop.f32.mrf.mxu1 }
 0x302   : > { %11014 = vst [vmem:[#allocation37_spill] sm:$0xff] %v10653_v47  ;;  %11015 = vst [vmem:[#allocation38_spill] sm:$0xff] %v10656_v43 }
 0x303   : > { %v10658_v29 = vpop.f32.mrf.mxu0  ;;  %v10662_v37 = vpop.f32.mrf.mxu1 }
 0x304   : > { %11016 = vst [vmem:[#allocation41_spill] sm:$0xff] %v10658_v29  ;;  %11017 = vst [vmem:[#allocation43_spill] sm:$0xff] %v10662_v37  ;;  %v4829_v37 = vadd.f32 %v10560_v49, %v10465_v60  ;;  %v5585_v60 = vadd.f32 %v10552_v15, %v4831_v57 }
 0x305   : > { %v7726_v58 = vpop.f32.mrf.mxu0  ;;  %v10672_v43 = vpop.f32.mrf.mxu1 }
 0x306   : > { %v6079_v24 = vadd.f32 %v7726_v58, %v5581_v55  ;;  %v5583_v3 = vadd.f32 %v10554_v22, %v4829_v37 }
 0x307   : > { %v5950_v30 = vpop.f32.mrf.mxu0  ;;  %v7774_v29 = vpop.f32.mrf.mxu1 }
 0x308   : > { %v6118_v12 = vadd.f32 %v10667_v18, %v6079_v24  ;;  %v6077_v39 = vadd.f32 %v5950_v30, %v5579_v19  ;;  %v4835_v19 = vadd.f32 %v10570_v2, %v10474_v50 }
 0x309   : > { %v7727_v47 = vpop.f32.mrf.mxu0  ;;  %v6294_v26 = vpop.f32.mrf.mxu1 }
 0x30a   : > { %v6423_v51 = vadd.f32 %v7774_v29, %v6118_v12  ;;  %v6116_v55 = vadd.f32 %v10667_v18, %v6077_v39  ;;  %v6080_v58 = vadd.f32 %v7727_v47, %v5582_v42  ;;  %v5586_v12 = vadd.f32 %v10556_v48, %v4832_v59 }
 0x30b   : > { %v5953_v24 = vpop.f32.mrf.mxu0  ;;  %v7775_v40 = vpop.f32.mrf.mxu1  ;;  %v4833_v39 = vadd.f32 %v10574_v20, %v10477_v62 }
 0x30c   : > { %v6455_v4 = vmul.f32 0.70710677, %v6423_v51  ;;  %v6421_v29 = vadd.f32 %v6294_v26, %v6116_v55  ;;  %v6119_v47 = vadd.f32 %v10667_v18, %v6080_v58  ;;  %v6078_v7 = vadd.f32 %v5953_v24, %v5580_v28 }
 0x30d   : > { %v7730_v36 = vpop.f32.mrf.mxu0  ;;  %v6297_v57 = vpop.f32.mrf.mxu1  ;;  %v5584_v55 = vadd.f32 %v10558_v13, %v4830_v8  ;;  %v4836_v28 = vadd.f32 %v10578_v38, %v10480_v53  ;;  %v5589_v24 = vadd.f32 %v10564_v52, %v4835_v19 }
 0x30e   : > { %6487 = vst [vmem:[%s10686_s17 + $0x10] sm:$0xff] %v6455_v4  ;;  %v6453_v49 = vmul.f32 0.70710677, %v6421_v29  ;;  %v6424_v17 = vadd.f32 %v7775_v40, %v6119_v47  ;;  %v6117_v21 = vadd.f32 %v10667_v18, %v6078_v7  ;;  %v6083_v15 = vadd.f32 %v7730_v36, %v5585_v60 }
 0x30f   : > { %v5966_v30 = vpop.f32.mrf.mxu0  ;;  %v7778_v42 = vpop.f32.mrf.mxu1  ;;  %v4834_v4 = vadd.f32 %v10582_v10, %v10483_v33  ;;  %v5587_v7 = vadd.f32 %v10568_v1, %v4833_v39  ;;  %v4839_v40 = vadd.f32 %v10586_v11, %v10486_v44  ;;  %v4838_v39 = vadd.f32 %v10596_v0, %v10495_v61 }
 0x310   : > { %6485 = vst [vmem:[%s10686_s17] sm:$0xff] %v6453_v49  ;;  %v6456_v16 = vmul.f32 0.70710677, %v6424_v17  ;;  %v6422_v35 = vadd.f32 %v6297_v57, %v6117_v21  ;;  %v6122_v37 = vadd.f32 %v10667_v18, %v6083_v15  ;;  %v6081_v22 = vadd.f32 %v5966_v30, %v5583_v3 }
 0x311   : > { %v7731_v51 = vpop.f32.mrf.mxu0  ;;  %v6310_v59 = vpop.f32.mrf.mxu1  ;;  %v5590_v49 = vadd.f32 %v10572_v9, %v4836_v28  ;;  %v4837_v21 = vadd.f32 %v10590_v27, %v10489_v14  ;;  %v5588_v57 = vadd.f32 %v10576_v23, %v4834_v4 }
 0x312   : > { %6488 = vst [vmem:[%s10686_s17 + $0x18] sm:$0xff] %v6456_v16  ;;  %v6454_v50 = vmul.f32 0.70710677, %v6422_v35  ;;  %v6427_v2 = vadd.f32 %v7778_v42, %v6122_v37  ;;  %v6120_v48 = vadd.f32 %v10667_v18, %v6081_v22  ;;  %v6084_v58 = vadd.f32 %v7731_v51, %v5586_v12 }
 0x313   : > { %v5969_v26 = vpop.f32.mrf.mxu0  ;;  %v7779_v29 = vpop.f32.mrf.mxu1  ;;  %v4840_v12 = vadd.f32 %v10594_v41, %v10492_v45  ;;  %v5593_v37 = vadd.f32 %v10580_v25, %v4839_v40 }
 0x314   : > { %6486 = vst [vmem:[%s10686_s17 + $0x8] sm:$0xff] %v6454_v50  ;;  %v6459_v62 = vmul.f32 0.70710677, %v6427_v2  ;;  %v6425_v20 = vadd.f32 %v6310_v59, %v6120_v48  ;;  %v6123_v13 = vadd.f32 %v10667_v18, %v6084_v58  ;;  %v6082_v60 = vadd.f32 %v5969_v26, %v5584_v55 }
 0x315   : > { %v7734_v47 = vpop.f32.mrf.mxu0  ;;  %v6313_v36 = vpop.f32.mrf.mxu1  ;;  %v5591_v55 = vadd.f32 %v10584_v34, %v4837_v21  ;;  %v4843_v2 = vadd.f32 %v10600_v63, %v10498_v31  ;;  %v5594_v28 = vadd.f32 %v10588_v56, %v4840_v12  ;;  %v4841_v26 = vadd.f32 %v10604_v46, %v10501_v32  ;;  %v11023_v21 = vld [vmem:[#allocation6_spill] sm:$0xff] }
 0x316   : > { %6491 = vst [vmem:[%s10686_s17 + $0x30] sm:$0xff] %v6459_v62  ;;  %v6457_v53 = vmul.f32 0.70710677, %v6425_v20  ;;  %v6428_v38 = vadd.f32 %v7779_v29, %v6123_v13  ;;  %v6121_v52 = vadd.f32 %v10667_v18, %v6082_v60  ;;  %v6087_v8 = vadd.f32 %v7734_v47, %v5589_v24  ;;  %v11018_v60 = vld [vmem:[#allocation29_spill] sm:$0xff] }
 0x317   : > { %v5982_v3 = vpop.f32.mrf.mxu0  ;;  %v7782_v15 = vpop.f32.mrf.mxu1  ;;  %v5592_v20 = vadd.f32 %v10592_v6, %v4838_v39  ;;  %v4844_v4 = vadd.f32 %v11018_v60, %v10504_v54  ;;  %v11028_v39 = vld [vmem:[#allocation23_spill] sm:$0xff] }
 0x318   : > { %6489 = vst [vmem:[%s10686_s17 + $0x20] sm:$0xff] %v6457_v53  ;;  %v6460_v33 = vmul.f32 0.70710677, %v6428_v38  ;;  %v6426_v10 = vadd.f32 %v6313_v36, %v6121_v52  ;;  %v6126_v1 = vadd.f32 %v10667_v18, %v6087_v8  ;;  %v6085_v17 = vadd.f32 %v5982_v3, %v5587_v7  ;;  %v11019_v7 = vld [vmem:[#allocation15_spill] sm:$0xff] }
 0x319   : > { %v7735_v19 = vpop.f32.mrf.mxu0  ;;  %v6326_v16 = vpop.f32.mrf.mxu1  ;;  %v5597_v53 = vadd.f32 %v11019_v7, %v4843_v2  ;;  %v11020_v52 = vld [vmem:[#allocation7_spill] sm:$0xff]  ;;  %v11035_v7 = vld [vmem:[#allocation4_spill] sm:$0xff] }
 0x31a   : > { %6492 = vst [vmem:[%s10686_s17 + $0x38] sm:$0xff] %v6460_v33  ;;  %v6458_v44 = vmul.f32 0.70710677, %v6426_v10  ;;  %v6431_v11 = vadd.f32 %v7782_v15, %v6126_v1  ;;  %v6124_v9 = vadd.f32 %v10667_v18, %v6085_v17  ;;  %v6088_v30 = vadd.f32 %v7735_v19, %v5590_v49  ;;  %v11021_v8 = vld [vmem:[#allocation31_spill] sm:$0xff]  ;;  %v11024_v15 = vld [vmem:[#allocation24_spill] sm:$0xff] }
 0x31b   : > { %v5985_v35 = vpop.f32.mrf.mxu0  ;;  %v7783_v42 = vpop.f32.mrf.mxu1  ;;  %v4842_v40 = vadd.f32 %v11021_v8, %v11020_v52  ;;  %v11022_v49 = vld [vmem:[#allocation19_spill] sm:$0xff]  ;;  %v4847_v19 = vadd.f32 %v11024_v15, %v11023_v21 }
 0x31c   : > { %6490 = vst [vmem:[%s10686_s17 + $0x28] sm:$0xff] %v6458_v44  ;;  %v6463_v14 = vmul.f32 0.70710677, %v6431_v11  ;;  %v6429_v27 = vadd.f32 %v6326_v16, %v6124_v9  ;;  %v6127_v23 = vadd.f32 %v10667_v18, %v6088_v30  ;;  %v6086_v22 = vadd.f32 %v5985_v35, %v5588_v57  ;;  %v11025_v11 = vld [vmem:[#allocation20_spill] sm:$0xff] }
 0x31d   : > { %v7738_v51 = vpop.f32.mrf.mxu0  ;;  %v6329_v48 = vpop.f32.mrf.mxu1  ;;  %v5595_v33 = vadd.f32 %v11022_v49, %v4841_v26  ;;  %v5598_v9 = vadd.f32 %v11025_v11, %v4844_v4  ;;  %v11038_v49 = vld [vmem:[#allocation10_spill] sm:$0xff]  ;;  %v11041_v11 = vld [vmem:[#allocation9_spill] sm:$0xff] }
 0x31e   : > { %6495 = vst [vmem:[%s10686_s17 + $0x50] sm:$0xff] %v6463_v14  ;;  %v6461_v45 = vmul.f32 0.70710677, %v6429_v27  ;;  %v6432_v41 = vadd.f32 %v7783_v42, %v6127_v23  ;;  %v6125_v25 = vadd.f32 %v10667_v18, %v6086_v22  ;;  %v6091_v50 = vadd.f32 %v7738_v51, %v5593_v37  ;;  %v11026_v37 = vld [vmem:[#allocation5_spill] sm:$0xff] }
 0x31f   : > { %v5998_v58 = vpop.f32.mrf.mxu0  ;;  %v7786_v24 = vpop.f32.mrf.mxu1  ;;  %v11027_v14 = vld [vmem:[#allocation17_spill] sm:$0xff]  ;;  %v5596_v42 = vadd.f32 %v11028_v39, %v4842_v40  ;;  %v11044_v39 = vld [vmem:[#allocation12_spill] sm:$0xff] }
 0x320   : > { %6493 = vst [vmem:[%s10686_s17 + $0x40] sm:$0xff] %v6461_v45  ;;  %v6464_v61 = vmul.f32 0.70710677, %v6432_v41  ;;  %v6430_v0 = vadd.f32 %v6329_v48, %v6125_v25  ;;  %v6130_v34 = vadd.f32 %v10667_v18, %v6091_v50  ;;  %v6089_v59 = vadd.f32 %v5998_v58, %v5591_v55  ;;  %v11029_v25 = vld [vmem:[#allocation3_spill] sm:$0xff]  ;;  %v11030_v50 = vld [vmem:[#allocation33_spill] sm:$0xff] }
 0x321   : > { %v7739_v62 = vpop.f32.mrf.mxu0  ;;  %v6342_v29 = vpop.f32.mrf.mxu1  ;;  %v4845_v27 = vadd.f32 %v11027_v14, %v11026_v37  ;;  %v4848_v2 = vadd.f32 %v11030_v50, %v11029_v25 }
 0x322   : > { %6496 = vst [vmem:[%s10686_s17 + $0x58] sm:$0xff] %v6464_v61  ;;  %v6462_v31 = vmul.f32 0.70710677, %v6430_v0  ;;  %v6435_v63 = vadd.f32 %v7786_v24, %v6130_v34  ;;  %v6128_v56 = vadd.f32 %v10667_v18, %v6089_v59  ;;  %v6092_v13 = vadd.f32 %v7739_v62, %v5594_v28  ;;  %v11031_v28 = vld [vmem:[#allocation18_spill] sm:$0xff]  ;;  %v11032_v24 = vld [vmem:[#allocation8_spill] sm:$0xff]  ;;  %v11033_v62 = vld [vmem:[#allocation27_spill] sm:$0xff] }
 0x323   : > { %v6001_v47 = vpop.f32.mrf.mxu0  ;;  %v7787_v36 = vpop.f32.mrf.mxu1  ;;  %v5601_v61 = vadd.f32 %v11031_v28, %v4847_v19  ;;  %v11047_v28 = vld [vmem:[#allocation11_spill] sm:$0xff] }
 0x324   : > { %6494 = vst [vmem:[%s10686_s17 + $0x48] sm:$0xff] %v6462_v31  ;;  %v6467_v32 = vmul.f32 0.70710677, %v6435_v63  ;;  %v6433_v46 = vadd.f32 %v6342_v29, %v6128_v56  ;;  %v6131_v6 = vadd.f32 %v10667_v18, %v6092_v13  ;;  %v6090_v38 = vadd.f32 %v6001_v47, %v5592_v20  ;;  %v11034_v56 = vld [vmem:[#allocation25_spill] sm:$0xff] }
 0x325   : > { %v7742_v3 = vpop.f32.mrf.mxu0  ;;  %v6345_v57 = vpop.f32.mrf.mxu1  ;;  %v4846_v20 = vadd.f32 %v11033_v62, %v11032_v24  ;;  %v5599_v13 = vadd.f32 %v11034_v56, %v4845_v27  ;;  %v11050_v56 = vld [vmem:[#allocation14_spill] sm:$0xff] }
 0x326   : > { %6499 = vst [vmem:[%s10686_s17 + $0x70] sm:$0xff] %v6467_v32  ;;  %v6465_v54 = vmul.f32 0.70710677, %v6433_v46  ;;  %v6436_v10 = vadd.f32 %v7787_v36, %v6131_v6  ;;  %v6129_v1 = vadd.f32 %v10667_v18, %v6090_v38  ;;  %v6095_v17 = vadd.f32 %v7742_v3, %v5597_v53  ;;  %v11036_v53 = vld [vmem:[#allocation21_spill] sm:$0xff]  ;;  %v11037_v38 = vld [vmem:[#allocation26_spill] sm:$0xff] }
 0x327   : > { %v6014_v44 = vpop.f32.mrf.mxu0  ;;  %v7790_v23 = vpop.f32.mrf.mxu1  ;;  %v4851_v32 = vadd.f32 %v11036_v53, %v11035_v7  ;;  %v5602_v52 = vadd.f32 %v11037_v38, %v4848_v2  ;;  %v11053_v38 = vld [vmem:[#allocation37_spill] sm:$0xff] }
 0x328   : > { %6497 = vst [vmem:[%s10686_s17 + $0x60] sm:$0xff] %v6465_v54  ;;  %v6468_v30 = vmul.f32 0.70710677, %v6436_v10  ;;  %v6434_v12 = vadd.f32 %v6345_v57, %v6129_v1  ;;  %v6134_v16 = vadd.f32 %v10667_v18, %v6095_v17  ;;  %v6093_v35 = vadd.f32 %v6014_v44, %v5595_v33  ;;  %v11039_v33 = vld [vmem:[#allocation39_spill] sm:$0xff]  ;;  %v11040_v17 = vld [vmem:[#allocation22_spill] sm:$0xff] }
 0x329   : > { %v7743_v22 = vpop.f32.mrf.mxu0  ;;  %v6358_v48 = vpop.f32.mrf.mxu1  ;;  %v4849_v54 = vadd.f32 %v11039_v33, %v11038_v49  ;;  %v5600_v21 = vadd.f32 %v11040_v17, %v4846_v20 }
 0x32a   : > { %6500 = vst [vmem:[%s10686_s17 + $0x78] sm:$0xff] %v6468_v30  ;;  %v6466_v51 = vmul.f32 0.70710677, %v6434_v12  ;;  %v6439_v55 = vadd.f32 %v7790_v23, %v6134_v16  ;;  %v6132_v45 = vadd.f32 %v10667_v18, %v6093_v35  ;;  %v6096_v41 = vadd.f32 %v7743_v22, %v5598_v9  ;;  %v11042_v9 = vld [vmem:[#allocation40_spill] sm:$0xff] }
 0x32b   : > { %v6017_v58 = vpop.f32.mrf.mxu0  ;;  %v7791_v31 = vpop.f32.mrf.mxu1  ;;  %v4852_v30 = vadd.f32 %v11042_v9, %v11041_v11  ;;  %v11043_v35 = vld [vmem:[#allocation28_spill] sm:$0xff] }
 0x32c   : > { %6498 = vst [vmem:[%s10686_s17 + $0x68] sm:$0xff] %v6466_v51  ;;  %v6471_v0 = vmul.f32 0.70710677, %v6439_v55  ;;  %v6437_v34 = vadd.f32 %v6358_v48, %v6132_v45  ;;  %v6135_v59 = vadd.f32 %v10667_v18, %v6096_v41  ;;  %v6094_v26 = vadd.f32 %v6017_v58, %v5596_v42  ;;  %v11045_v42 = vld [vmem:[#allocation42_spill] sm:$0xff] }
 0x32d   : > { %v7746_v63 = vpop.f32.mrf.mxu0  ;;  %v6361_v46 = vpop.f32.mrf.mxu1  ;;  %v5605_v37 = vadd.f32 %v11043_v35, %v4851_v32  ;;  %v4850_v51 = vadd.f32 %v11045_v42, %v11044_v39  ;;  %v11046_v41 = vld [vmem:[#allocation30_spill] sm:$0xff]  ;;  %v11058_v35 = vld [vmem:[#allocation43_spill] sm:$0xff] }
 0x32e   : > { %6503 = vst [vmem:[%s10686_s17 + $0x90] sm:$0xff] %v6471_v0  ;;  %v6469_v60 = vmul.f32 0.70710677, %v6437_v34  ;;  %v6440_v4 = vadd.f32 %v7791_v31, %v6135_v59  ;;  %v6133_v29 = vadd.f32 %v10667_v18, %v6094_v26  ;;  %v6099_v47 = vadd.f32 %v7746_v63, %v5601_v61  ;;  %v11048_v61 = vld [vmem:[#allocation35_spill] sm:$0xff]  ;;  %v11049_v26 = vld [vmem:[#allocation32_spill] sm:$0xff] }
 0x32f   : > { %v6030_v6 = vpop.f32.mrf.mxu0  ;;  %v7794_v10 = vpop.f32.mrf.mxu1  ;;  %v5603_v25 = vadd.f32 %v11046_v41, %v4849_v54  ;;  %v4855_v0 = vadd.f32 %v11048_v61, %v11047_v28  ;;  %v5606_v24 = vadd.f32 %v11049_v26, %v4852_v30 }
 0x330   : > { %6501 = vst [vmem:[%s10686_s17 + $0x80] sm:$0xff] %v6469_v60  ;;  %v6472_v8 = vmul.f32 0.70710677, %v6440_v4  ;;  %v6438_v40 = vadd.f32 %v6361_v46, %v6133_v29  ;;  %v6138_v36 = vadd.f32 %v10667_v18, %v6099_v47  ;;  %v6097_v3 = vadd.f32 %v6030_v6, %v5599_v13  ;;  %v11051_v29 = vld [vmem:[#allocation34_spill] sm:$0xff]  ;;  %v11052_v6 = vld [vmem:[#allocation13_spill] sm:$0xff] }
 0x331   : > { %v7747_v1 = vpop.f32.mrf.mxu0  ;;  %v6374_v12 = vpop.f32.mrf.mxu1  ;;  %v4853_v13 = vadd.f32 %v10648_v5, %v11050_v56  ;;  %v5604_v47 = vadd.f32 %v11051_v29, %v4850_v51 }
 0x332   : > { %6504 = vst [vmem:[%s10686_s17 + $0x98] sm:$0xff] %v6472_v8  ;;  %v6470_v15 = vmul.f32 0.70710677, %v6438_v40  ;;  %v6443_v19 = vadd.f32 %v7794_v10, %v6138_v36  ;;  %v6136_v57 = vadd.f32 %v10667_v18, %v6097_v3  ;;  %v6100_v44 = vadd.f32 %v7747_v1, %v5602_v52  ;;  %v11054_v36 = vld [vmem:[#allocation36_spill] sm:$0xff]  ;;  %v11056_v1 = vld [vmem:[#allocation41_spill] sm:$0xff] }
 0x333   : > { %v6033_v16 = vpop.f32.mrf.mxu0  ;;  %v7795_v55 = vpop.f32.mrf.mxu1  ;;  %v4856_v52 = vadd.f32 %v11053_v38, %v11052_v6  ;;  %v5609_v3 = vadd.f32 %v11054_v36, %v4855_v0  ;;  %v11055_v10 = vld [vmem:[#allocation16_spill] sm:$0xff] }
 0x334   : > { %6502 = vst [vmem:[%s10686_s17 + $0x88] sm:$0xff] %v6470_v15  ;;  %v6475_v14 = vmul.f32 0.70710677, %v6443_v19  ;;  %v6441_v27 = vadd.f32 %v6374_v12, %v6136_v57  ;;  %v6139_v23 = vadd.f32 %v10667_v18, %v6100_v44  ;;  %v6098_v22 = vadd.f32 %v6033_v16, %v5600_v21  ;;  %v11057_v19 = vld [vmem:[#allocation38_spill] sm:$0xff] }
 0x335   : > { %v7750_v45 = vpop.f32.mrf.mxu0  ;;  %v6377_v34 = vpop.f32.mrf.mxu1  ;;  %v4854_v17 = vadd.f32 %v11056_v1, %v11055_v10  ;;  %v5607_v57 = vadd.f32 %v11057_v19, %v4853_v13 }
 0x336   : > { %6507 = vst [vmem:[%s10686_s17 + $0xb0] sm:$0xff] %v6475_v14  ;;  %v6473_v50 = vmul.f32 0.70710677, %v6441_v27  ;;  %v6444_v2 = vadd.f32 %v7795_v55, %v6139_v23  ;;  %v6137_v48 = vadd.f32 %v10667_v18, %v6098_v22  ;;  %v6103_v58 = vadd.f32 %v7750_v45, %v5605_v37 }
 0x337   : > { %v6046_v59 = vpop.f32.mrf.mxu0  ;;  %v7798_v60 = vpop.f32.mrf.mxu1  ;;  %v5610_v37 = vadd.f32 %v11058_v35, %v4856_v52  ;;  %v5608_v51 = vadd.f32 %v10672_v43, %v4854_v17 }
 0x338   : > { %6505 = vst [vmem:[%s10686_s17 + $0xa0] sm:$0xff] %v6473_v50  ;;  %v6476_v62 = vmul.f32 0.70710677, %v6444_v2  ;;  %v6442_v20 = vadd.f32 %v6377_v34, %v6137_v48  ;;  %v6142_v31 = vadd.f32 %v10667_v18, %v6103_v58  ;;  %v6101_v63 = vadd.f32 %v6046_v59, %v5603_v25 }
 0x339   : > { %v7751_v4 = vpop.f32.mrf.mxu0  ;;  %v6390_v8 = vpop.f32.mrf.mxu1 }
 0x33a   : > { %6508 = vst [vmem:[%s10686_s17 + $0xb8] sm:$0xff] %v6476_v62  ;;  %v6474_v7 = vmul.f32 0.70710677, %v6442_v20  ;;  %v6447_v53 = vadd.f32 %v7798_v60, %v6142_v31  ;;  %v6140_v32 = vadd.f32 %v10667_v18, %v6101_v63  ;;  %v6104_v46 = vadd.f32 %v7751_v4, %v5606_v24 }
 0x33b   : > { %v6049_v40 = vpop.f32.mrf.mxu0  ;;  %v7799_v21 = vpop.f32.mrf.mxu1 }
 0x33c   : > { %6506 = vst [vmem:[%s10686_s17 + $0xa8] sm:$0xff] %v6474_v7  ;;  %v6479_v5 = vmul.f32 0.70710677, %v6447_v53  ;;  %v6445_v49 = vadd.f32 %v6390_v8, %v6140_v32  ;;  %v6143_v33 = vadd.f32 %v10667_v18, %v6104_v46  ;;  %v6102_v54 = vadd.f32 %v6049_v40, %v5604_v47 }
 0x33d   : > { %v7754_v15 = vpop.f32.mrf.mxu0  ;;  %v6393_v12 = vpop.f32.mrf.mxu1 }
 0x33e   : > { %6511 = vst [vmem:[%s10686_s17 + $0xd0] sm:$0xff] %v6479_v5  ;;  %v6477_v44 = vmul.f32 0.70710677, %v6445_v49  ;;  %v6448_v11 = vadd.f32 %v7799_v21, %v6143_v33  ;;  %v6141_v9 = vadd.f32 %v10667_v18, %v6102_v54  ;;  %v6107_v30 = vadd.f32 %v7754_v15, %v5609_v3 }
 0x33f   : > { %v6062_v16 = vpop.f32.mrf.mxu0  ;;  %v7802_v39 = vpop.f32.mrf.mxu1 }
 0x340   : > { %6509 = vst [vmem:[%s10686_s17 + $0xc0] sm:$0xff] %v6477_v44  ;;  %v6480_v14 = vmul.f32 0.70710677, %v6448_v11  ;;  %v6446_v27 = vadd.f32 %v6393_v12, %v6141_v9  ;;  %v6146_v23 = vadd.f32 %v10667_v18, %v6107_v30  ;;  %v6105_v22 = vadd.f32 %v6062_v16, %v5607_v57 }
 0x341   : > { %v7755_v42 = vpop.f32.mrf.mxu0  ;;  %v6406_v50 = vpop.f32.mrf.mxu1 }
 0x342   : > { %6512 = vst [vmem:[%s10686_s17 + $0xd8] sm:$0xff] %v6480_v14  ;;  %v6478_v55 = vmul.f32 0.70710677, %v6446_v27  ;;  %v6451_v45 = vadd.f32 %v7802_v39, %v6146_v23  ;;  %v6144_v41 = vadd.f32 %v10667_v18, %v6105_v22  ;;  %v6108_v25 = vadd.f32 %v7755_v42, %v5610_v37 }
 0x343   : > { %v6065_v2 = vpop.f32.mrf.mxu0  ;;  %v7803_v0 = vpop.f32.mrf.mxu1 }
 0x344   : > { %6510 = vst [vmem:[%s10686_s17 + $0xc8] sm:$0xff] %v6478_v55  ;;  %v6483_v48 = vmul.f32 0.70710677, %v6451_v45  ;;  %v6449_v58 = vadd.f32 %v6406_v50, %v6144_v41  ;;  %v6147_v28 = vadd.f32 %v10667_v18, %v6108_v25  ;;  %v6106_v61 = vadd.f32 %v6065_v2, %v5608_v51 }
 0x345   : > { %v6409_v26 = vpop.f32.mrf.mxu1 }
 0x346   : > { %6515 = vst [vmem:[%s10686_s17 + $0xf0] sm:$0xff] %v6483_v48  ;;  %v6481_v43 = vmul.f32 0.70710677, %v6449_v58  ;;  %v6452_v34 = vadd.f32 %v7803_v0, %v6147_v28  ;;  %v6145_v59 = vadd.f32 %v10667_v18, %v6106_v61 }
 0x348   : > { %6513 = vst [vmem:[%s10686_s17 + $0xe0] sm:$0xff] %v6481_v43  ;;  %v6484_v24 = vmul.f32 0.70710677, %v6452_v34  ;;  %v6450_v62 = vadd.f32 %v6409_v26, %v6145_v59 }
 0x34a   : > { %6516 = vst [vmem:[%s10686_s17 + $0xf8] sm:$0xff] %v6484_v24  ;;  %v6482_v20 = vmul.f32 0.70710677, %v6450_v62 }
 0x34c   : > { %6514 = vst [vmem:[%s10686_s17 + $0xe8] sm:$0xff] %v6482_v20 }
 0x34d PF: > { %s17_s24 = sadd.s32 1, %s7965_s24  }
 0x34e   : > { %p14_p4 = scmp.ge.s32.totalorder %s17_s24, 4  }
 0x350   :  { %16 = sbr.rel (!%p14_p4) target bundleno = 1 (0x1), region = 97 }

</bundles_post_ra>
